<compile_context>
chip_gen: v7x
topology: tpu7x:2x2x1
jax: 0.10.0
libtpu: 0.0.40
codegen_flags: <defaults>
</compile_context>

<pallas_src>
import functools

import numpy as np

import jax
import jax.numpy as jnp
from jax.experimental import pallas as pl

BN_EPS = 1e-5
MXU_DTYPE = jnp.bfloat16   # matmul-input dtype; accumulation / epilogues stay f32


# ----------------------------- Pallas kernels ------------------------------ #
def _layer0_kernel(xt_ref, w_ref, g_ref, b_ref, o_ref, *, c0, count):
    """ConvTranspose2d(z, c0, 4, 1, 0) on a 1x1 input + training-mode BN + ReLU.

    xt: (z, N) f32 | w: (16*c0, z) bf16, row = (ky*4+kx)*c0 + co
    g, b: (c0, 1) f32 | o: (16*c0, N) f32
    """
    y = jnp.dot(w_ref[...], xt_ref[...].astype(MXU_DTYPE),
                preferred_element_type=jnp.float32)                 # (16*c0, N)
    s1 = jnp.sum(y, axis=1, keepdims=True)                          # (16*c0, 1)
    s2 = jnp.sum(y * y, axis=1, keepdims=True)
    s1c = sum(s1[p * c0:(p + 1) * c0] for p in range(16))           # (c0, 1)
    s2c = sum(s2[p * c0:(p + 1) * c0] for p in range(16))
    inv = 1.0 / count
    mean = s1c * inv
    var = s2c * inv - mean * mean
    scale = g_ref[...] * jax.lax.rsqrt(var + BN_EPS)
    shift = b_ref[...] - mean * scale
    scale16 = jnp.concatenate([scale] * 16, axis=0)                 # (16*c0, 1)
    shift16 = jnp.concatenate([shift] * 16, axis=0)
    o_ref[...] = jnp.maximum(y * scale16 + shift16, 0.0)


def _build_rhs(x_ref, wp, l):
    """9 shifted slabs of the padded-flat activation, one sublane-aligned concat.

    x: (Cin, L_in) f32, padded-flat layout  n*(H+2)*(W+2) + i*(W+2) + j.
    slab(a, b) = x shifted by a*(W+2)+b  ->  pure static lane-offset slices.
    """
    slabs = [x_ref[:, a * wp + b: a * wp + b + l]
             for a in range(3) for b in range(3)]
    return jnp.concatenate(slabs, axis=0).astype(MXU_DTYPE)         # (9*Cin, L)


def _deconv_bn_kernel(x_ref, mask_ref, w_ref, g_ref, b_ref, o_ref,
                      *, cout, wp, l, count):
    """Stride-2 ConvTranspose2d (all 4 phases in one matmul) + batch-stat BN + ReLU.

    x: (Cin, L_in) f32 | mask: (1, L) f32 valid-column mask | w: (4*Cout, 9*Cin) bf16
    g, b: (Cout, 1) f32 | o: (4*Cout, L) f32  (rows = phase*Cout + channel)
    """
    rhs = _build_rhs(x_ref, wp, l)
    y = jnp.dot(w_ref[...], rhs, preferred_element_type=jnp.float32)   # (4*Cout, L)
    m = mask_ref[...]
    ym = y * m                                     # zero the padded/garbage columns
    s1 = jnp.sum(ym, axis=1, keepdims=True)
    s2 = jnp.sum(ym * ym, axis=1, keepdims=True)
    s1c = sum(s1[p * cout:(p + 1) * cout] for p in range(4))            # (Cout, 1)
    s2c = sum(s2[p * cout:(p + 1) * cout] for p in range(4))
    inv = 1.0 / count
    mean = s1c * inv
    var = s2c * inv - mean * mean
    scale = g_ref[...] * jax.lax.rsqrt(var + BN_EPS)
    shift = b_ref[...] - mean * scale
    scale4 = jnp.concatenate([scale] * 4, axis=0)                       # (4*Cout, 1)
    shift4 = jnp.concatenate([shift] * 4, axis=0)
    o_ref[...] = jnp.maximum(y * scale4 + shift4, 0.0)


def _deconv_tanh_kernel(x_ref, w_ref, bias_ref, o_ref, *, wp, l):
    """Final stride-2 ConvTranspose2d + bias + tanh, streamed one phase at a time.

    x: (Cin, L_in) f32 | w: (4, oc, 9*Cin) bf16 | bias: (oc, 1) f32 | o: (4, oc, L) f32
    """
    rhs = _build_rhs(x_ref, wp, l)
    bias = bias_ref[...]
    for ph in range(4):           # per-phase streaming caps live accumulator state
        y = jnp.dot(w_ref[ph], rhs, preferred_element_type=jnp.float32)  # (oc, L)
        o_ref[ph] = jnp.tanh(y + bias)


# ------------------------- gridless pallas_call wrappers -------------------- #
def _layer0_call(xt, w, g, b):
    c0 = g.shape[0]
    n = xt.shape[1]
    return pl.pallas_call(
        functools.partial(_layer0_kernel, c0=c0, count=float(16 * n)),
        out_shape=jax.ShapeDtypeStruct((16 * c0, n), jnp.float32),
    )(xt, w, g, b)


def _deconv_bn_call(x_flat, mask, w, g, b, *, wp, l, count):
    cout4 = w.shape[0]
    return pl.pallas_call(
        functools.partial(_deconv_bn_kernel, cout=cout4 // 4, wp=wp, l=l, count=count),
        out_shape=jax.ShapeDtypeStruct((cout4, l), jnp.float32),
    )(x_flat, mask, w, g, b)


def _deconv_tanh_call(x_flat, w, bias, *, wp, l):
    oc = w.shape[1]
    return pl.pallas_call(
        functools.partial(_deconv_tanh_kernel, wp=wp, l=l),
        out_shape=jax.ShapeDtypeStruct((4, oc, l), jnp.float32),
    )(x_flat, w, bias)


# ------------------------------ thin XLA glue ------------------------------- #
def _valid_mask(n, h, w):
    """(1, N*(H+2)*(W+2)) f32 mask of columns that are real (non-pad) positions."""
    hp, wp = h + 2, w + 2
    cols = np.arange(n * hp * wp)
    j = cols % wp
    i = (cols // wp) % hp
    return jnp.asarray(((j < w) & (i < h)).astype(np.float32))[None, :]


def _pad_and_flatten(a):
    """(C, N, H, W) -> zero-padded, flattened (C, L_in) + validity mask.

    L_in is rounded up so the largest slab shift (2*(W+2)+2) stays in bounds and the
    lane extent is a multiple of 128.
    """
    c, n, h, w = a.shape
    hp, wp = h + 2, w + 2
    l = n * hp * wp
    l_in = -(-(l + 2 * wp + 2) // 128) * 128
    ap = jnp.pad(a, ((0, 0), (0, 0), (1, 1), (1, 1)))
    flat = jnp.pad(ap.reshape(c, l), ((0, 0), (0, l_in - l)))
    return flat, _valid_mask(n, h, w), wp, l


def _unshuffle(o, cout, n, h, w):
    """(4*Cout, N*(H+2)*(W+2)) phase-stacked output -> (Cout, N, 2H, 2W) pixel shuffle."""
    t = o.reshape(2, 2, cout, n, h + 2, w + 2)[:, :, :, :, :h, :w]
    return t.transpose(2, 3, 4, 0, 5, 1).reshape(cout, n, 2 * h, 2 * w)


# ------------------------------- parameters --------------------------------- #
def layer_cfgs(z, d, oc):
    # (cin, cout, K, stride, pad, is_final)
    return [
        (z,     d * 8, 4, 1, 0, False),
        (d * 8, d * 4, 4, 2, 1, False),
        (d * 4, d * 2, 4, 2, 1, False),
        (d * 2, d,     4, 2, 1, False),
        (d,     oc,    4, 2, 1, True),
    ]


def make_params(key, z, d, oc, std=0.02):
    """Raw parameters in the PyTorch module's layout/init."""
    params = {}
    for i, (cin, cout, K, _s, _p, final) in enumerate(layer_cfgs(z, d, oc)):
        key, kw, kb = jax.random.split(key, 3)
        params[f"w{i}"] = std * jax.random.normal(kw, (cin, cout, K, K), jnp.float32)
        params[f"b{i}"] = 0.01 * jax.random.normal(kb, (cout,), jnp.float32)
        if not final:
            params[f"g{i}"] = jnp.ones((cout,), jnp.float32)      # BN gamma
            params[f"beta{i}"] = jnp.zeros((cout,), jnp.float32)  # BN beta
    return params


def prepare_params(params, z, d, oc):
    """One-time re-layout of ConvTranspose2d/BN params into the kernel formats."""
    cfgs = layer_cfgs(z, d, oc)
    prep = []
    # layer 0: dense matmul, rows (p=ky*4+kx, co), cols ci
    w0 = params["w0"]                                       # (z, c0, 4, 4)
    c0 = w0.shape[1]
    w0tall = w0.transpose(2, 3, 1, 0).reshape(16 * c0, z)   # [(p)*c0+co, ci]
    prep.append(dict(w=w0tall.astype(MXU_DTYPE),
                     g=params["g0"].reshape(c0, 1),
                     b=params["beta0"].reshape(c0, 1)))
    # layers 1..4: phase (py,px) row-blocks x 9 tap column-blocks (zeros on unused taps)
    for i in range(1, 5):
        cin, cout, _k, _stride, _pad, final = cfgs[i]
        w = params[f"w{i}"]                                 # (cin, cout, 4, 4)
        blocks = []
        for py in (0, 1):
            for px in (0, 1):
                row = []
                for a in range(3):
                    for b in range(3):
                        r, s = a - py, b - px
                        if r in (0, 1) and s in (0, 1):
                            blk = w[:, :, 3 - py - 2 * r, 3 - px - 2 * s].T  # (cout, cin)
                        else:
                            blk = jnp.zeros((cout, cin), w.dtype)
                        row.append(blk)
                blocks.append(jnp.concatenate(row, axis=1))  # (cout, 9*cin)
        if final:
            prep.append(dict(w=jnp.stack(blocks, axis=0).astype(MXU_DTYPE),   # (4,oc,9cin)
                             bias=params[f"b{i}"].reshape(cout, 1)))
        else:
            # conv bias dropped: training-mode BN mean-subtraction cancels it exactly
            prep.append(dict(w=jnp.concatenate(blocks, axis=0).astype(MXU_DTYPE),
                             g=params[f"g{i}"].reshape(cout, 1),
                             b=params[f"beta{i}"].reshape(cout, 1)))
    return tuple(prep)


# --------------------------------- forward ---------------------------------- #
def generator_dc_forward(x, prep):
    """x: (N, z) latent -> (N, oc, 64, 64), matching the torch module
    (fresh BatchNorm2d in training mode, i.e. batch statistics)."""
    n, _z = x.shape
    # layer 0: ConvTranspose2d(z, 8d, 4, 1, 0) + BN + ReLU (one dense matmul in-kernel)
    p0 = prep[0]
    c0 = p0["g"].shape[0]
    y0 = _layer0_call(x.T, p0["w"], p0["g"], p0["b"])              # (16*c0, N)
    a = y0.reshape(4, 4, c0, n).transpose(2, 3, 0, 1)              # (c0, N, 4, 4)
    h = w = 4
    # layers 1..3: stride-2 deconv + BN + ReLU
    for i in (1, 2, 3):
        pi = prep[i]
        cout = pi["g"].shape[0]
        x_flat, mask, wp, l = _pad_and_flatten(a)
        o = _deconv_bn_call(x_flat, mask, pi["w"], pi["g"], pi["b"],
                            wp=wp, l=l, count=float(4 * n * h * w))
        a = _unshuffle(o, cout, n, h, w)                           # (cout, N, 2h, 2w)
        h, w = 2 * h, 2 * w
    # layer 4: stride-2 deconv + bias + tanh (per-phase streaming)
    p4 = prep[4]
    oc = p4["bias"].shape[0]
    x_flat, _mask, wp, l = _pad_and_flatten(a)
    o = _deconv_tanh_call(x_flat, p4["w"], p4["bias"], wp=wp, l=l)  # (4, oc, L)
    img = _unshuffle(o.reshape(4 * oc, l), oc, n, h, w)             # (oc, N, 2h, 2w)
    return img.transpose(1, 0, 2, 3)                                # NCHW


# --------------------------- pure-JAX reference ----------------------------- #
def reference_forward(x, params, z, d, oc):
    N = x.shape[0]
    h = x.reshape(N, z, 1, 1)
    for i, (cin, cout, K, s, p, final) in enumerate(layer_cfgs(z, d, oc)):
        w = params[f"w{i}"]
        w_conv = jnp.flip(w, axis=(2, 3)).transpose(1, 0, 2, 3)   # OIHW
        y = jax.lax.conv_general_dilated(
            h, w_conv, window_strides=(1, 1),
            padding=[(K - 1 - p, K - 1 - p)] * 2,
            lhs_dilation=(s, s),
            dimension_numbers=("NCHW", "OIHW", "NCHW"))
        y = y + params[f"b{i}"].reshape(1, cout, 1, 1)
        if final:
            h = jnp.tanh(y)
        else:
            mean = jnp.mean(y, axis=(0, 2, 3), keepdims=True)
            var = jnp.mean(jnp.square(y - mean), axis=(0, 2, 3), keepdims=True)
            yn = (y - mean) * jax.lax.rsqrt(var + BN_EPS)
            h = jnp.maximum(yn * params[f"g{i}"].reshape(1, cout, 1, 1)
                            + params[f"beta{i}"].reshape(1, cout, 1, 1), 0.0)
    return h


if __name__ == "__main__":
    # Small config consistent with the module: z=16, d=8, out_channel=3, batch=2.
    # Spatial progression fixed by the architecture: 1 -> 4 -> 8 -> 16 -> 32 -> 64.
    z, d, oc, N = 16, 8, 3, 2
    key = jax.random.PRNGKey(0)
    kx, kp = jax.random.split(key)
    x = jax.random.normal(kx, (N, z), jnp.float32)
    params = make_params(kp, z, d, oc)
    prep = prepare_params(params, z, d, oc)    # one-time weight re-layout (not per call)

    fwd = jax.jit(generator_dc_forward)
    out = fwd(x, prep)
    jax.block_until_ready(out)
    assert out.shape == (N, oc, 64, 64), out.shape

    ref = reference_forward(x, params, z, d, oc)
    err = float(jnp.max(jnp.abs(out - ref)))
    assert err < 5e-2, f"max abs err {err}"

    print("KERNEL_OK")
</pallas_src>

<mosaic_0001>
module attributes {stable_mosaic.version = 11 : i64} {
  func.func @_layer0_kernel(%arg0: memref<16x2xf32, #tpu.memory_space<vmem>>, %arg1: memref<1024x16xbf16, #tpu.memory_space<vmem>>, %arg2: memref<64x1xf32, #tpu.memory_space<vmem>>, %arg3: memref<64x1xf32, #tpu.memory_space<vmem>>, %arg4: memref<1024x2xf32, #tpu.memory_space<vmem>>) attributes {dimension_semantics = [], scalar_prefetch = 0 : i64, scratch_operands = 0 : i64, tpu.core_type = #tpu.core_type<tc>} {
    %c0 = arith.constant 0 : index
    %c0_0 = arith.constant 0 : index
    %0 = vector.load %arg1[%c0, %c0_0] : memref<1024x16xbf16, #tpu.memory_space<vmem>>, vector<1024x16xbf16>
    %c0_1 = arith.constant 0 : index
    %c0_2 = arith.constant 0 : index
    %1 = vector.load %arg0[%c0_1, %c0_2] : memref<16x2xf32, #tpu.memory_space<vmem>>, vector<16x2xf32>
    %2 = arith.truncf %1 : vector<16x2xf32> to vector<16x2xbf16>
    %cst = arith.constant dense<0.000000e+00> : vector<1024x2xf32>
    %3 = tpu.matmul %0, %2, %cst {dimension_numbers = #tpu.dot_dimension_numbers<[1], [0], [0], [1], [0, 0, 1, 1], [], []>} : vector<1024x16xbf16>, vector<16x2xbf16>, vector<1024x2xf32> -> vector<1024x2xf32>
    %cst_3 = arith.constant dense<0.000000e+00> : vector<1024xf32>
    %4 = vector.multi_reduction <add>, %3, %cst_3 [1] : vector<1024x2xf32> to vector<1024xf32>
    %5 = vector.shape_cast %4 : vector<1024xf32> to vector<1024x1xf32>
    %6 = arith.mulf %3, %3 : vector<1024x2xf32>
    %cst_4 = arith.constant dense<0.000000e+00> : vector<1024xf32>
    %7 = vector.multi_reduction <add>, %6, %cst_4 [1] : vector<1024x2xf32> to vector<1024xf32>
    %8 = vector.shape_cast %7 : vector<1024xf32> to vector<1024x1xf32>
    %9 = vector.extract_strided_slice %5 {offsets = [0, 0], sizes = [64, 1], strides = [1, 1]} : vector<1024x1xf32> to vector<64x1xf32>
    %cst_5 = arith.constant 0.000000e+00 : f32
    %10 = vector.broadcast %cst_5 : f32 to vector<64x1xf32>
    %11 = arith.addf %10, %9 : vector<64x1xf32>
    %12 = vector.extract_strided_slice %5 {offsets = [64, 0], sizes = [64, 1], strides = [1, 1]} : vector<1024x1xf32> to vector<64x1xf32>
    %13 = arith.addf %11, %12 : vector<64x1xf32>
    %14 = vector.extract_strided_slice %5 {offsets = [128, 0], sizes = [64, 1], strides = [1, 1]} : vector<1024x1xf32> to vector<64x1xf32>
    %15 = arith.addf %13, %14 : vector<64x1xf32>
    %16 = vector.extract_strided_slice %5 {offsets = [192, 0], sizes = [64, 1], strides = [1, 1]} : vector<1024x1xf32> to vector<64x1xf32>
    %17 = arith.addf %15, %16 : vector<64x1xf32>
    %18 = vector.extract_strided_slice %5 {offsets = [256, 0], sizes = [64, 1], strides = [1, 1]} : vector<1024x1xf32> to vector<64x1xf32>
    %19 = arith.addf %17, %18 : vector<64x1xf32>
    %20 = vector.extract_strided_slice %5 {offsets = [320, 0], sizes = [64, 1], strides = [1, 1]} : vector<1024x1xf32> to vector<64x1xf32>
    %21 = arith.addf %19, %20 : vector<64x1xf32>
    %22 = vector.extract_strided_slice %5 {offsets = [384, 0], sizes = [64, 1], strides = [1, 1]} : vector<1024x1xf32> to vector<64x1xf32>
    %23 = arith.addf %21, %22 : vector<64x1xf32>
    %24 = vector.extract_strided_slice %5 {offsets = [448, 0], sizes = [64, 1], strides = [1, 1]} : vector<1024x1xf32> to vector<64x1xf32>
    %25 = arith.addf %23, %24 : vector<64x1xf32>
    %26 = vector.extract_strided_slice %5 {offsets = [512, 0], sizes = [64, 1], strides = [1, 1]} : vector<1024x1xf32> to vector<64x1xf32>
    %27 = arith.addf %25, %26 : vector<64x1xf32>
    %28 = vector.extract_strided_slice %5 {offsets = [576, 0], sizes = [64, 1], strides = [1, 1]} : vector<1024x1xf32> to vector<64x1xf32>
    %29 = arith.addf %27, %28 : vector<64x1xf32>
    %30 = vector.extract_strided_slice %5 {offsets = [640, 0], sizes = [64, 1], strides = [1, 1]} : vector<1024x1xf32> to vector<64x1xf32>
    %31 = arith.addf %29, %30 : vector<64x1xf32>
    %32 = vector.extract_strided_slice %5 {offsets = [704, 0], sizes = [64, 1], strides = [1, 1]} : vector<1024x1xf32> to vector<64x1xf32>
    %33 = arith.addf %31, %32 : vector<64x1xf32>
    %34 = vector.extract_strided_slice %5 {offsets = [768, 0], sizes = [64, 1], strides = [1, 1]} : vector<1024x1xf32> to vector<64x1xf32>
    %35 = arith.addf %33, %34 : vector<64x1xf32>
    %36 = vector.extract_strided_slice %5 {offsets = [832, 0], sizes = [64, 1], strides = [1, 1]} : vector<1024x1xf32> to vector<64x1xf32>
    %37 = arith.addf %35, %36 : vector<64x1xf32>
    %38 = vector.extract_strided_slice %5 {offsets = [896, 0], sizes = [64, 1], strides = [1, 1]} : vector<1024x1xf32> to vector<64x1xf32>
    %39 = arith.addf %37, %38 : vector<64x1xf32>
    %40 = vector.extract_strided_slice %5 {offsets = [960, 0], sizes = [64, 1], strides = [1, 1]} : vector<1024x1xf32> to vector<64x1xf32>
    %41 = arith.addf %39, %40 : vector<64x1xf32>
    %42 = vector.extract_strided_slice %8 {offsets = [0, 0], sizes = [64, 1], strides = [1, 1]} : vector<1024x1xf32> to vector<64x1xf32>
    %cst_6 = arith.constant 0.000000e+00 : f32
    %43 = vector.broadcast %cst_6 : f32 to vector<64x1xf32>
    %44 = arith.addf %43, %42 : vector<64x1xf32>
    %45 = vector.extract_strided_slice %8 {offsets = [64, 0], sizes = [64, 1], strides = [1, 1]} : vector<1024x1xf32> to vector<64x1xf32>
    %46 = arith.addf %44, %45 : vector<64x1xf32>
    %47 = vector.extract_strided_slice %8 {offsets = [128, 0], sizes = [64, 1], strides = [1, 1]} : vector<1024x1xf32> to vector<64x1xf32>
    %48 = arith.addf %46, %47 : vector<64x1xf32>
    %49 = vector.extract_strided_slice %8 {offsets = [192, 0], sizes = [64, 1], strides = [1, 1]} : vector<1024x1xf32> to vector<64x1xf32>
    %50 = arith.addf %48, %49 : vector<64x1xf32>
    %51 = vector.extract_strided_slice %8 {offsets = [256, 0], sizes = [64, 1], strides = [1, 1]} : vector<1024x1xf32> to vector<64x1xf32>
    %52 = arith.addf %50, %51 : vector<64x1xf32>
    %53 = vector.extract_strided_slice %8 {offsets = [320, 0], sizes = [64, 1], strides = [1, 1]} : vector<1024x1xf32> to vector<64x1xf32>
    %54 = arith.addf %52, %53 : vector<64x1xf32>
    %55 = vector.extract_strided_slice %8 {offsets = [384, 0], sizes = [64, 1], strides = [1, 1]} : vector<1024x1xf32> to vector<64x1xf32>
    %56 = arith.addf %54, %55 : vector<64x1xf32>
    %57 = vector.extract_strided_slice %8 {offsets = [448, 0], sizes = [64, 1], strides = [1, 1]} : vector<1024x1xf32> to vector<64x1xf32>
    %58 = arith.addf %56, %57 : vector<64x1xf32>
    %59 = vector.extract_strided_slice %8 {offsets = [512, 0], sizes = [64, 1], strides = [1, 1]} : vector<1024x1xf32> to vector<64x1xf32>
    %60 = arith.addf %58, %59 : vector<64x1xf32>
    %61 = vector.extract_strided_slice %8 {offsets = [576, 0], sizes = [64, 1], strides = [1, 1]} : vector<1024x1xf32> to vector<64x1xf32>
    %62 = arith.addf %60, %61 : vector<64x1xf32>
    %63 = vector.extract_strided_slice %8 {offsets = [640, 0], sizes = [64, 1], strides = [1, 1]} : vector<1024x1xf32> to vector<64x1xf32>
    %64 = arith.addf %62, %63 : vector<64x1xf32>
    %65 = vector.extract_strided_slice %8 {offsets = [704, 0], sizes = [64, 1], strides = [1, 1]} : vector<1024x1xf32> to vector<64x1xf32>
    %66 = arith.addf %64, %65 : vector<64x1xf32>
    %67 = vector.extract_strided_slice %8 {offsets = [768, 0], sizes = [64, 1], strides = [1, 1]} : vector<1024x1xf32> to vector<64x1xf32>
    %68 = arith.addf %66, %67 : vector<64x1xf32>
    %69 = vector.extract_strided_slice %8 {offsets = [832, 0], sizes = [64, 1], strides = [1, 1]} : vector<1024x1xf32> to vector<64x1xf32>
    %70 = arith.addf %68, %69 : vector<64x1xf32>
    %71 = vector.extract_strided_slice %8 {offsets = [896, 0], sizes = [64, 1], strides = [1, 1]} : vector<1024x1xf32> to vector<64x1xf32>
    %72 = arith.addf %70, %71 : vector<64x1xf32>
    %73 = vector.extract_strided_slice %8 {offsets = [960, 0], sizes = [64, 1], strides = [1, 1]} : vector<1024x1xf32> to vector<64x1xf32>
    %74 = arith.addf %72, %73 : vector<64x1xf32>
    %cst_7 = arith.constant 3.125000e-02 : f32
    %75 = vector.broadcast %cst_7 : f32 to vector<64x1xf32>
    %76 = arith.mulf %41, %75 : vector<64x1xf32>
    %cst_8 = arith.constant 3.125000e-02 : f32
    %77 = vector.broadcast %cst_8 : f32 to vector<64x1xf32>
    %78 = arith.mulf %74, %77 : vector<64x1xf32>
    %79 = arith.mulf %76, %76 : vector<64x1xf32>
    %80 = arith.subf %78, %79 : vector<64x1xf32>
    %c0_9 = arith.constant 0 : index
    %c0_10 = arith.constant 0 : index
    %81 = vector.load %arg2[%c0_9, %c0_10] : memref<64x1xf32, #tpu.memory_space<vmem>>, vector<64x1xf32>
    %cst_11 = arith.constant 9.99999974E-6 : f32
    %82 = vector.broadcast %cst_11 : f32 to vector<64x1xf32>
    %83 = arith.addf %80, %82 : vector<64x1xf32>
    %84 = math.rsqrt %83 : vector<64x1xf32>
    %85 = arith.mulf %81, %84 : vector<64x1xf32>
    %c0_12 = arith.constant 0 : index
    %c0_13 = arith.constant 0 : index
    %86 = vector.load %arg3[%c0_12, %c0_13] : memref<64x1xf32, #tpu.memory_space<vmem>>, vector<64x1xf32>
    %87 = arith.mulf %76, %85 : vector<64x1xf32>
    %88 = arith.subf %86, %87 : vector<64x1xf32>
    %89 = tpu.concatenate %85, %85, %85, %85, %85, %85, %85, %85, %85, %85, %85, %85, %85, %85, %85, %85 in 0 : vector<64x1xf32>, vector<64x1xf32>, vector<64x1xf32>, vector<64x1xf32>, vector<64x1xf32>, vector<64x1xf32>, vector<64x1xf32>, vector<64x1xf32>, vector<64x1xf32>, vector<64x1xf32>, vector<64x1xf32>, vector<64x1xf32>, vector<64x1xf32>, vector<64x1xf32>, vector<64x1xf32>, vector<64x1xf32> -> vector<1024x1xf32>
    %90 = tpu.concatenate %88, %88, %88, %88, %88, %88, %88, %88, %88, %88, %88, %88, %88, %88, %88, %88 in 0 : vector<64x1xf32>, vector<64x1xf32>, vector<64x1xf32>, vector<64x1xf32>, vector<64x1xf32>, vector<64x1xf32>, vector<64x1xf32>, vector<64x1xf32>, vector<64x1xf32>, vector<64x1xf32>, vector<64x1xf32>, vector<64x1xf32>, vector<64x1xf32>, vector<64x1xf32>, vector<64x1xf32>, vector<64x1xf32> -> vector<1024x1xf32>
    %91 = vector.broadcast %89 : vector<1024x1xf32> to vector<1024x2xf32>
    %92 = arith.mulf %3, %91 : vector<1024x2xf32>
    %93 = vector.broadcast %90 : vector<1024x1xf32> to vector<1024x2xf32>
    %94 = arith.addf %92, %93 : vector<1024x2xf32>
    %cst_14 = arith.constant 0.000000e+00 : f32
    %95 = vector.broadcast %cst_14 : f32 to vector<1024x2xf32>
    %96 = arith.maximumf %94, %95 : vector<1024x2xf32>
    %c0_15 = arith.constant 0 : index
    %c0_16 = arith.constant 0 : index
    %97 = vector.load %arg4[%c0_15, %c0_16] : memref<1024x2xf32, #tpu.memory_space<vmem>>, vector<1024x2xf32>
    tpu.vector_store %arg4[%c0_15, %c0_16], %96 {strides = array<i32>} : memref<1024x2xf32, #tpu.memory_space<vmem>>, vector<1024x2xf32>,
    return
  }
}

module attributes {stable_mosaic.version = 11 : i64} {
  func.func @_deconv_bn_kernel(%arg0: memref<64x128xf32, #tpu.memory_space<vmem>>, %arg1: memref<1x72xf32, #tpu.memory_space<vmem>>, %arg2: memref<128x576xbf16, #tpu.memory_space<vmem>>, %arg3: memref<32x1xf32, #tpu.memory_space<vmem>>, %arg4: memref<32x1xf32, #tpu.memory_space<vmem>>, %arg5: memref<128x72xf32, #tpu.memory_space<vmem>>) attributes {dimension_semantics = [], scalar_prefetch = 0 : i64, scratch_operands = 0 : i64, tpu.core_type = #tpu.core_type<tc>} {
    %c0 = arith.constant 0 : index
    %c0_0 = arith.constant 0 : index
    %0 = vector.load %arg0[%c0, %c0_0] : memref<64x128xf32, #tpu.memory_space<vmem>>, vector<64x72xf32>
    %c0_1 = arith.constant 0 : index
    %c1 = arith.constant 1 : index
    %1 = vector.load %arg0[%c0_1, %c1] : memref<64x128xf32, #tpu.memory_space<vmem>>, vector<64x72xf32>
    %c0_2 = arith.constant 0 : index
    %c2 = arith.constant 2 : index
    %2 = vector.load %arg0[%c0_2, %c2] : memref<64x128xf32, #tpu.memory_space<vmem>>, vector<64x72xf32>
    %c0_3 = arith.constant 0 : index
    %c6 = arith.constant 6 : index
    %3 = vector.load %arg0[%c0_3, %c6] : memref<64x128xf32, #tpu.memory_space<vmem>>, vector<64x72xf32>
    %c0_4 = arith.constant 0 : index
    %c7 = arith.constant 7 : index
    %4 = vector.load %arg0[%c0_4, %c7] : memref<64x128xf32, #tpu.memory_space<vmem>>, vector<64x72xf32>
    %c0_5 = arith.constant 0 : index
    %c8 = arith.constant 8 : index
    %5 = vector.load %arg0[%c0_5, %c8] : memref<64x128xf32, #tpu.memory_space<vmem>>, vector<64x72xf32>
    %c0_6 = arith.constant 0 : index
    %c12 = arith.constant 12 : index
    %6 = vector.load %arg0[%c0_6, %c12] : memref<64x128xf32, #tpu.memory_space<vmem>>, vector<64x72xf32>
    %c0_7 = arith.constant 0 : index
    %c13 = arith.constant 13 : index
    %7 = vector.load %arg0[%c0_7, %c13] : memref<64x128xf32, #tpu.memory_space<vmem>>, vector<64x72xf32>
    %c0_8 = arith.constant 0 : index
    %c14 = arith.constant 14 : index
    %8 = vector.load %arg0[%c0_8, %c14] : memref<64x128xf32, #tpu.memory_space<vmem>>, vector<64x72xf32>
    %9 = tpu.concatenate %0, %1, %2, %3, %4, %5, %6, %7, %8 in 0 : vector<64x72xf32>, vector<64x72xf32>, vector<64x72xf32>, vector<64x72xf32>, vector<64x72xf32>, vector<64x72xf32>, vector<64x72xf32>, vector<64x72xf32>, vector<64x72xf32> -> vector<576x72xf32>
    %10 = arith.truncf %9 : vector<576x72xf32> to vector<576x72xbf16>
    %c0_9 = arith.constant 0 : index
    %c0_10 = arith.constant 0 : index
    %11 = vector.load %arg2[%c0_9, %c0_10] : memref<128x576xbf16, #tpu.memory_space<vmem>>, vector<128x576xbf16>
    %cst = arith.constant dense<0.000000e+00> : vector<128x72xf32>
    %12 = tpu.matmul %11, %10, %cst {dimension_numbers = #tpu.dot_dimension_numbers<[1], [0], [0], [1], [0, 0, 1, 1], [], []>} : vector<128x576xbf16>, vector<576x72xbf16>, vector<128x72xf32> -> vector<128x72xf32>
    %c0_11 = arith.constant 0 : index
    %c0_12 = arith.constant 0 : index
    %13 = vector.load %arg1[%c0_11, %c0_12] : memref<1x72xf32, #tpu.memory_space<vmem>>, vector<1x72xf32>
    %14 = vector.broadcast %13 : vector<1x72xf32> to vector<128x72xf32>
    %15 = arith.mulf %12, %14 : vector<128x72xf32>
    %cst_13 = arith.constant dense<0.000000e+00> : vector<128xf32>
    %16 = vector.multi_reduction <add>, %15, %cst_13 [1] : vector<128x72xf32> to vector<128xf32>
    %17 = vector.shape_cast %16 : vector<128xf32> to vector<128x1xf32>
    %18 = arith.mulf %15, %15 : vector<128x72xf32>
    %cst_14 = arith.constant dense<0.000000e+00> : vector<128xf32>
    %19 = vector.multi_reduction <add>, %18, %cst_14 [1] : vector<128x72xf32> to vector<128xf32>
    %20 = vector.shape_cast %19 : vector<128xf32> to vector<128x1xf32>
    %21 = vector.extract_strided_slice %17 {offsets = [0, 0], sizes = [32, 1], strides = [1, 1]} : vector<128x1xf32> to vector<32x1xf32>
    %cst_15 = arith.constant 0.000000e+00 : f32
    %22 = vector.broadcast %cst_15 : f32 to vector<32x1xf32>
    %23 = arith.addf %22, %21 : vector<32x1xf32>
    %24 = vector.extract_strided_slice %17 {offsets = [32, 0], sizes = [32, 1], strides = [1, 1]} : vector<128x1xf32> to vector<32x1xf32>
    %25 = arith.addf %23, %24 : vector<32x1xf32>
    %26 = vector.extract_strided_slice %17 {offsets = [64, 0], sizes = [32, 1], strides = [1, 1]} : vector<128x1xf32> to vector<32x1xf32>
    %27 = arith.addf %25, %26 : vector<32x1xf32>
    %28 = vector.extract_strided_slice %17 {offsets = [96, 0], sizes = [32, 1], strides = [1, 1]} : vector<128x1xf32> to vector<32x1xf32>
    %29 = arith.addf %27, %28 : vector<32x1xf32>
    %30 = vector.extract_strided_slice %20 {offsets = [0, 0], sizes = [32, 1], strides = [1, 1]} : vector<128x1xf32> to vector<32x1xf32>
    %cst_16 = arith.constant 0.000000e+00 : f32
    %31 = vector.broadcast %cst_16 : f32 to vector<32x1xf32>
    %32 = arith.addf %31, %30 : vector<32x1xf32>
    %33 = vector.extract_strided_slice %20 {offsets = [32, 0], sizes = [32, 1], strides = [1, 1]} : vector<128x1xf32> to vector<32x1xf32>
    %34 = arith.addf %32, %33 : vector<32x1xf32>
    %35 = vector.extract_strided_slice %20 {offsets = [64, 0], sizes = [32, 1], strides = [1, 1]} : vector<128x1xf32> to vector<32x1xf32>
    %36 = arith.addf %34, %35 : vector<32x1xf32>
    %37 = vector.extract_strided_slice %20 {offsets = [96, 0], sizes = [32, 1], strides = [1, 1]} : vector<128x1xf32> to vector<32x1xf32>
    %38 = arith.addf %36, %37 : vector<32x1xf32>
    %cst_17 = arith.constant 7.812500e-03 : f32
    %39 = vector.broadcast %cst_17 : f32 to vector<32x1xf32>
    %40 = arith.mulf %29, %39 : vector<32x1xf32>
    %cst_18 = arith.constant 7.812500e-03 : f32
    %41 = vector.broadcast %cst_18 : f32 to vector<32x1xf32>
    %42 = arith.mulf %38, %41 : vector<32x1xf32>
    %43 = arith.mulf %40, %40 : vector<32x1xf32>
    %44 = arith.subf %42, %43 : vector<32x1xf32>
    %c0_19 = arith.constant 0 : index
    %c0_20 = arith.constant 0 : index
    %45 = vector.load %arg3[%c0_19, %c0_20] : memref<32x1xf32, #tpu.memory_space<vmem>>, vector<32x1xf32>
    %cst_21 = arith.constant 9.99999974E-6 : f32
    %46 = vector.broadcast %cst_21 : f32 to vector<32x1xf32>
    %47 = arith.addf %44, %46 : vector<32x1xf32>
    %48 = math.rsqrt %47 : vector<32x1xf32>
    %49 = arith.mulf %45, %48 : vector<32x1xf32>
    %c0_22 = arith.constant 0 : index
    %c0_23 = arith.constant 0 : index
    %50 = vector.load %arg4[%c0_22, %c0_23] : memref<32x1xf32, #tpu.memory_space<vmem>>, vector<32x1xf32>
    %51 = arith.mulf %40, %49 : vector<32x1xf32>
    %52 = arith.subf %50, %51 : vector<32x1xf32>
    %53 = tpu.concatenate %49, %49, %49, %49 in 0 : vector<32x1xf32>, vector<32x1xf32>, vector<32x1xf32>, vector<32x1xf32> -> vector<128x1xf32>
    %54 = tpu.concatenate %52, %52, %52, %52 in 0 : vector<32x1xf32>, vector<32x1xf32>, vector<32x1xf32>, vector<32x1xf32> -> vector<128x1xf32>
    %55 = vector.broadcast %53 : vector<128x1xf32> to vector<128x72xf32>
    %56 = arith.mulf %12, %55 : vector<128x72xf32>
    %57 = vector.broadcast %54 : vector<128x1xf32> to vector<128x72xf32>
    %58 = arith.addf %56, %57 : vector<128x72xf32>
    %cst_24 = arith.constant 0.000000e+00 : f32
    %59 = vector.broadcast %cst_24 : f32 to vector<128x72xf32>
    %60 = arith.maximumf %58, %59 : vector<128x72xf32>
    %c0_25 = arith.constant 0 : index
    %c0_26 = arith.constant 0 : index
    %61 = vector.load %arg5[%c0_25, %c0_26] : memref<128x72xf32, #tpu.memory_space<vmem>>, vector<128x72xf32>
    tpu.vector_store %arg5[%c0_25, %c0_26], %60 {strides = array<i32>} : memref<128x72xf32, #tpu.memory_space<vmem>>, vector<128x72xf32>,
    return
  }
}

module attributes {stable_mosaic.version = 11 : i64} {
  func.func @_deconv_bn_kernel(%arg0: memref<32x256xf32, #tpu.memory_space<vmem>>, %arg1: memref<1x200xf32, #tpu.memory_space<vmem>>, %arg2: memref<64x288xbf16, #tpu.memory_space<vmem>>, %arg3: memref<16x1xf32, #tpu.memory_space<vmem>>, %arg4: memref<16x1xf32, #tpu.memory_space<vmem>>, %arg5: memref<64x200xf32, #tpu.memory_space<vmem>>) attributes {dimension_semantics = [], scalar_prefetch = 0 : i64, scratch_operands = 0 : i64, tpu.core_type = #tpu.core_type<tc>} {
    %c0 = arith.constant 0 : index
    %c0_0 = arith.constant 0 : index
    %0 = vector.load %arg0[%c0, %c0_0] : memref<32x256xf32, #tpu.memory_space<vmem>>, vector<32x200xf32>
    %c0_1 = arith.constant 0 : index
    %c1 = arith.constant 1 : index
    %1 = vector.load %arg0[%c0_1, %c1] : memref<32x256xf32, #tpu.memory_space<vmem>>, vector<32x200xf32>
    %c0_2 = arith.constant 0 : index
    %c2 = arith.constant 2 : index
    %2 = vector.load %arg0[%c0_2, %c2] : memref<32x256xf32, #tpu.memory_space<vmem>>, vector<32x200xf32>
    %c0_3 = arith.constant 0 : index
    %c10 = arith.constant 10 : index
    %3 = vector.load %arg0[%c0_3, %c10] : memref<32x256xf32, #tpu.memory_space<vmem>>, vector<32x200xf32>
    %c0_4 = arith.constant 0 : index
    %c11 = arith.constant 11 : index
    %4 = vector.load %arg0[%c0_4, %c11] : memref<32x256xf32, #tpu.memory_space<vmem>>, vector<32x200xf32>
    %c0_5 = arith.constant 0 : index
    %c12 = arith.constant 12 : index
    %5 = vector.load %arg0[%c0_5, %c12] : memref<32x256xf32, #tpu.memory_space<vmem>>, vector<32x200xf32>
    %c0_6 = arith.constant 0 : index
    %c20 = arith.constant 20 : index
    %6 = vector.load %arg0[%c0_6, %c20] : memref<32x256xf32, #tpu.memory_space<vmem>>, vector<32x200xf32>
    %c0_7 = arith.constant 0 : index
    %c21 = arith.constant 21 : index
    %7 = vector.load %arg0[%c0_7, %c21] : memref<32x256xf32, #tpu.memory_space<vmem>>, vector<32x200xf32>
    %c0_8 = arith.constant 0 : index
    %c22 = arith.constant 22 : index
    %8 = vector.load %arg0[%c0_8, %c22] : memref<32x256xf32, #tpu.memory_space<vmem>>, vector<32x200xf32>
    %9 = tpu.concatenate %0, %1, %2, %3, %4, %5, %6, %7, %8 in 0 : vector<32x200xf32>, vector<32x200xf32>, vector<32x200xf32>, vector<32x200xf32>, vector<32x200xf32>, vector<32x200xf32>, vector<32x200xf32>, vector<32x200xf32>, vector<32x200xf32> -> vector<288x200xf32>
    %10 = arith.truncf %9 : vector<288x200xf32> to vector<288x200xbf16>
    %c0_9 = arith.constant 0 : index
    %c0_10 = arith.constant 0 : index
    %11 = vector.load %arg2[%c0_9, %c0_10] : memref<64x288xbf16, #tpu.memory_space<vmem>>, vector<64x288xbf16>
    %cst = arith.constant dense<0.000000e+00> : vector<64x200xf32>
    %12 = tpu.matmul %11, %10, %cst {dimension_numbers = #tpu.dot_dimension_numbers<[1], [0], [0], [1], [0, 0, 1, 1], [], []>} : vector<64x288xbf16>, vector<288x200xbf16>, vector<64x200xf32> -> vector<64x200xf32>
    %c0_11 = arith.constant 0 : index
    %c0_12 = arith.constant 0 : index
    %13 = vector.load %arg1[%c0_11, %c0_12] : memref<1x200xf32, #tpu.memory_space<vmem>>, vector<1x200xf32>
    %14 = vector.broadcast %13 : vector<1x200xf32> to vector<64x200xf32>
    %15 = arith.mulf %12, %14 : vector<64x200xf32>
    %cst_13 = arith.constant dense<0.000000e+00> : vector<64xf32>
    %16 = vector.multi_reduction <add>, %15, %cst_13 [1] : vector<64x200xf32> to vector<64xf32>
    %17 = vector.shape_cast %16 : vector<64xf32> to vector<64x1xf32>
    %18 = arith.mulf %15, %15 : vector<64x200xf32>
    %cst_14 = arith.constant dense<0.000000e+00> : vector<64xf32>
    %19 = vector.multi_reduction <add>, %18, %cst_14 [1] : vector<64x200xf32> to vector<64xf32>
    %20 = vector.shape_cast %19 : vector<64xf32> to vector<64x1xf32>
    %21 = vector.extract_strided_slice %17 {offsets = [0, 0], sizes = [16, 1], strides = [1, 1]} : vector<64x1xf32> to vector<16x1xf32>
    %cst_15 = arith.constant 0.000000e+00 : f32
    %22 = vector.broadcast %cst_15 : f32 to vector<16x1xf32>
    %23 = arith.addf %22, %21 : vector<16x1xf32>
    %24 = vector.extract_strided_slice %17 {offsets = [16, 0], sizes = [16, 1], strides = [1, 1]} : vector<64x1xf32> to vector<16x1xf32>
    %25 = arith.addf %23, %24 : vector<16x1xf32>
    %26 = vector.extract_strided_slice %17 {offsets = [32, 0], sizes = [16, 1], strides = [1, 1]} : vector<64x1xf32> to vector<16x1xf32>
    %27 = arith.addf %25, %26 : vector<16x1xf32>
    %28 = vector.extract_strided_slice %17 {offsets = [48, 0], sizes = [16, 1], strides = [1, 1]} : vector<64x1xf32> to vector<16x1xf32>
    %29 = arith.addf %27, %28 : vector<16x1xf32>
    %30 = vector.extract_strided_slice %20 {offsets = [0, 0], sizes = [16, 1], strides = [1, 1]} : vector<64x1xf32> to vector<16x1xf32>
    %cst_16 = arith.constant 0.000000e+00 : f32
    %31 = vector.broadcast %cst_16 : f32 to vector<16x1xf32>
    %32 = arith.addf %31, %30 : vector<16x1xf32>
    %33 = vector.extract_strided_slice %20 {offsets = [16, 0], sizes = [16, 1], strides = [1, 1]} : vector<64x1xf32> to vector<16x1xf32>
    %34 = arith.addf %32, %33 : vector<16x1xf32>
    %35 = vector.extract_strided_slice %20 {offsets = [32, 0], sizes = [16, 1], strides = [1, 1]} : vector<64x1xf32> to vector<16x1xf32>
    %36 = arith.addf %34, %35 : vector<16x1xf32>
    %37 = vector.extract_strided_slice %20 {offsets = [48, 0], sizes = [16, 1], strides = [1, 1]} : vector<64x1xf32> to vector<16x1xf32>
    %38 = arith.addf %36, %37 : vector<16x1xf32>
    %cst_17 = arith.constant 0.001953125 : f32
    %39 = vector.broadcast %cst_17 : f32 to vector<16x1xf32>
    %40 = arith.mulf %29, %39 : vector<16x1xf32>
    %cst_18 = arith.constant 0.001953125 : f32
    %41 = vector.broadcast %cst_18 : f32 to vector<16x1xf32>
    %42 = arith.mulf %38, %41 : vector<16x1xf32>
    %43 = arith.mulf %40, %40 : vector<16x1xf32>
    %44 = arith.subf %42, %43 : vector<16x1xf32>
    %c0_19 = arith.constant 0 : index
    %c0_20 = arith.constant 0 : index
    %45 = vector.load %arg3[%c0_19, %c0_20] : memref<16x1xf32, #tpu.memory_space<vmem>>, vector<16x1xf32>
    %cst_21 = arith.constant 9.99999974E-6 : f32
    %46 = vector.broadcast %cst_21 : f32 to vector<16x1xf32>
    %47 = arith.addf %44, %46 : vector<16x1xf32>
    %48 = math.rsqrt %47 : vector<16x1xf32>
    %49 = arith.mulf %45, %48 : vector<16x1xf32>
    %c0_22 = arith.constant 0 : index
    %c0_23 = arith.constant 0 : index
    %50 = vector.load %arg4[%c0_22, %c0_23] : memref<16x1xf32, #tpu.memory_space<vmem>>, vector<16x1xf32>
    %51 = arith.mulf %40, %49 : vector<16x1xf32>
    %52 = arith.subf %50, %51 : vector<16x1xf32>
    %53 = tpu.concatenate %49, %49, %49, %49 in 0 : vector<16x1xf32>, vector<16x1xf32>, vector<16x1xf32>, vector<16x1xf32> -> vector<64x1xf32>
    %54 = tpu.concatenate %52, %52, %52, %52 in 0 : vector<16x1xf32>, vector<16x1xf32>, vector<16x1xf32>, vector<16x1xf32> -> vector<64x1xf32>
    %55 = vector.broadcast %53 : vector<64x1xf32> to vector<64x200xf32>
    %56 = arith.mulf %12, %55 : vector<64x200xf32>
    %57 = vector.broadcast %54 : vector<64x1xf32> to vector<64x200xf32>
    %58 = arith.addf %56, %57 : vector<64x200xf32>
    %cst_24 = arith.constant 0.000000e+00 : f32
    %59 = vector.broadcast %cst_24 : f32 to vector<64x200xf32>
    %60 = arith.maximumf %58, %59 : vector<64x200xf32>
    %c0_25 = arith.constant 0 : index
    %c0_26 = arith.constant 0 : index
    %61 = vector.load %arg5[%c0_25, %c0_26] : memref<64x200xf32, #tpu.memory_space<vmem>>, vector<64x200xf32>
    tpu.vector_store %arg5[%c0_25, %c0_26], %60 {strides = array<i32>} : memref<64x200xf32, #tpu.memory_space<vmem>>, vector<64x200xf32>,
    return
  }
}

module attributes {stable_mosaic.version = 11 : i64} {
  func.func @_deconv_bn_kernel(%arg0: memref<16x768xf32, #tpu.memory_space<vmem>>, %arg1: memref<1x648xf32, #tpu.memory_space<vmem>>, %arg2: memref<32x144xbf16, #tpu.memory_space<vmem>>, %arg3: memref<8x1xf32, #tpu.memory_space<vmem>>, %arg4: memref<8x1xf32, #tpu.memory_space<vmem>>, %arg5: memref<32x648xf32, #tpu.memory_space<vmem>>) attributes {dimension_semantics = [], scalar_prefetch = 0 : i64, scratch_operands = 0 : i64, tpu.core_type = #tpu.core_type<tc>} {
    %c0 = arith.constant 0 : index
    %c0_0 = arith.constant 0 : index
    %0 = vector.load %arg0[%c0, %c0_0] : memref<16x768xf32, #tpu.memory_space<vmem>>, vector<16x648xf32>
    %c0_1 = arith.constant 0 : index
    %c1 = arith.constant 1 : index
    %1 = vector.load %arg0[%c0_1, %c1] : memref<16x768xf32, #tpu.memory_space<vmem>>, vector<16x648xf32>
    %c0_2 = arith.constant 0 : index
    %c2 = arith.constant 2 : index
    %2 = vector.load %arg0[%c0_2, %c2] : memref<16x768xf32, #tpu.memory_space<vmem>>, vector<16x648xf32>
    %c0_3 = arith.constant 0 : index
    %c18 = arith.constant 18 : index
    %3 = vector.load %arg0[%c0_3, %c18] : memref<16x768xf32, #tpu.memory_space<vmem>>, vector<16x648xf32>
    %c0_4 = arith.constant 0 : index
    %c19 = arith.constant 19 : index
    %4 = vector.load %arg0[%c0_4, %c19] : memref<16x768xf32, #tpu.memory_space<vmem>>, vector<16x648xf32>
    %c0_5 = arith.constant 0 : index
    %c20 = arith.constant 20 : index
    %5 = vector.load %arg0[%c0_5, %c20] : memref<16x768xf32, #tpu.memory_space<vmem>>, vector<16x648xf32>
    %c0_6 = arith.constant 0 : index
    %c36 = arith.constant 36 : index
    %6 = vector.load %arg0[%c0_6, %c36] : memref<16x768xf32, #tpu.memory_space<vmem>>, vector<16x648xf32>
    %c0_7 = arith.constant 0 : index
    %c37 = arith.constant 37 : index
    %7 = vector.load %arg0[%c0_7, %c37] : memref<16x768xf32, #tpu.memory_space<vmem>>, vector<16x648xf32>
    %c0_8 = arith.constant 0 : index
    %c38 = arith.constant 38 : index
    %8 = vector.load %arg0[%c0_8, %c38] : memref<16x768xf32, #tpu.memory_space<vmem>>, vector<16x648xf32>
    %9 = tpu.concatenate %0, %1, %2, %3, %4, %5, %6, %7, %8 in 0 : vector<16x648xf32>, vector<16x648xf32>, vector<16x648xf32>, vector<16x648xf32>, vector<16x648xf32>, vector<16x648xf32>, vector<16x648xf32>, vector<16x648xf32>, vector<16x648xf32> -> vector<144x648xf32>
    %10 = arith.truncf %9 : vector<144x648xf32> to vector<144x648xbf16>
    %c0_9 = arith.constant 0 : index
    %c0_10 = arith.constant 0 : index
    %11 = vector.load %arg2[%c0_9, %c0_10] : memref<32x144xbf16, #tpu.memory_space<vmem>>, vector<32x144xbf16>
    %cst = arith.constant dense<0.000000e+00> : vector<32x648xf32>
    %12 = tpu.matmul %11, %10, %cst {dimension_numbers = #tpu.dot_dimension_numbers<[1], [0], [0], [1], [0, 0, 1, 1], [], []>} : vector<32x144xbf16>, vector<144x648xbf16>, vector<32x648xf32> -> vector<32x648xf32>
    %c0_11 = arith.constant 0 : index
    %c0_12 = arith.constant 0 : index
    %13 = vector.load %arg1[%c0_11, %c0_12] : memref<1x648xf32, #tpu.memory_space<vmem>>, vector<1x648xf32>
    %14 = vector.broadcast %13 : vector<1x648xf32> to vector<32x648xf32>
    %15 = arith.mulf %12, %14 : vector<32x648xf32>
    %cst_13 = arith.constant dense<0.000000e+00> : vector<32xf32>
    %16 = vector.multi_reduction <add>, %15, %cst_13 [1] : vector<32x648xf32> to vector<32xf32>
    %17 = vector.shape_cast %16 : vector<32xf32> to vector<32x1xf32>
    %18 = arith.mulf %15, %15 : vector<32x648xf32>
    %cst_14 = arith.constant dense<0.000000e+00> : vector<32xf32>
    %19 = vector.multi_reduction <add>, %18, %cst_14 [1] : vector<32x648xf32> to vector<32xf32>
    %20 = vector.shape_cast %19 : vector<32xf32> to vector<32x1xf32>
    %21 = vector.extract_strided_slice %17 {offsets = [0, 0], sizes = [8, 1], strides = [1, 1]} : vector<32x1xf32> to vector<8x1xf32>
    %cst_15 = arith.constant 0.000000e+00 : f32
    %22 = vector.broadcast %cst_15 : f32 to vector<8x1xf32>
    %23 = arith.addf %22, %21 : vector<8x1xf32>
    %24 = vector.extract_strided_slice %17 {offsets = [8, 0], sizes = [8, 1], strides = [1, 1]} : vector<32x1xf32> to vector<8x1xf32>
    %25 = arith.addf %23, %24 : vector<8x1xf32>
    %26 = vector.extract_strided_slice %17 {offsets = [16, 0], sizes = [8, 1], strides = [1, 1]} : vector<32x1xf32> to vector<8x1xf32>
    %27 = arith.addf %25, %26 : vector<8x1xf32>
    %28 = vector.extract_strided_slice %17 {offsets = [24, 0], sizes = [8, 1], strides = [1, 1]} : vector<32x1xf32> to vector<8x1xf32>
    %29 = arith.addf %27, %28 : vector<8x1xf32>
    %30 = vector.extract_strided_slice %20 {offsets = [0, 0], sizes = [8, 1], strides = [1, 1]} : vector<32x1xf32> to vector<8x1xf32>
    %cst_16 = arith.constant 0.000000e+00 : f32
    %31 = vector.broadcast %cst_16 : f32 to vector<8x1xf32>
    %32 = arith.addf %31, %30 : vector<8x1xf32>
    %33 = vector.extract_strided_slice %20 {offsets = [8, 0], sizes = [8, 1], strides = [1, 1]} : vector<32x1xf32> to vector<8x1xf32>
    %34 = arith.addf %32, %33 : vector<8x1xf32>
    %35 = vector.extract_strided_slice %20 {offsets = [16, 0], sizes = [8, 1], strides = [1, 1]} : vector<32x1xf32> to vector<8x1xf32>
    %36 = arith.addf %34, %35 : vector<8x1xf32>
    %37 = vector.extract_strided_slice %20 {offsets = [24, 0], sizes = [8, 1], strides = [1, 1]} : vector<32x1xf32> to vector<8x1xf32>
    %38 = arith.addf %36, %37 : vector<8x1xf32>
    %cst_17 = arith.constant 4.8828125E-4 : f32
    %39 = vector.broadcast %cst_17 : f32 to vector<8x1xf32>
    %40 = arith.mulf %29, %39 : vector<8x1xf32>
    %cst_18 = arith.constant 4.8828125E-4 : f32
    %41 = vector.broadcast %cst_18 : f32 to vector<8x1xf32>
    %42 = arith.mulf %38, %41 : vector<8x1xf32>
    %43 = arith.mulf %40, %40 : vector<8x1xf32>
    %44 = arith.subf %42, %43 : vector<8x1xf32>
    %c0_19 = arith.constant 0 : index
    %c0_20 = arith.constant 0 : index
    %45 = vector.load %arg3[%c0_19, %c0_20] : memref<8x1xf32, #tpu.memory_space<vmem>>, vector<8x1xf32>
    %cst_21 = arith.constant 9.99999974E-6 : f32
    %46 = vector.broadcast %cst_21 : f32 to vector<8x1xf32>
    %47 = arith.addf %44, %46 : vector<8x1xf32>
    %48 = math.rsqrt %47 : vector<8x1xf32>
    %49 = arith.mulf %45, %48 : vector<8x1xf32>
    %c0_22 = arith.constant 0 : index
    %c0_23 = arith.constant 0 : index
    %50 = vector.load %arg4[%c0_22, %c0_23] : memref<8x1xf32, #tpu.memory_space<vmem>>, vector<8x1xf32>
    %51 = arith.mulf %40, %49 : vector<8x1xf32>
    %52 = arith.subf %50, %51 : vector<8x1xf32>
    %53 = tpu.concatenate %49, %49, %49, %49 in 0 : vector<8x1xf32>, vector<8x1xf32>, vector<8x1xf32>, vector<8x1xf32> -> vector<32x1xf32>
    %54 = tpu.concatenate %52, %52, %52, %52 in 0 : vector<8x1xf32>, vector<8x1xf32>, vector<8x1xf32>, vector<8x1xf32> -> vector<32x1xf32>
    %55 = vector.broadcast %53 : vector<32x1xf32> to vector<32x648xf32>
    %56 = arith.mulf %12, %55 : vector<32x648xf32>
    %57 = vector.broadcast %54 : vector<32x1xf32> to vector<32x648xf32>
    %58 = arith.addf %56, %57 : vector<32x648xf32>
    %cst_24 = arith.constant 0.000000e+00 : f32
    %59 = vector.broadcast %cst_24 : f32 to vector<32x648xf32>
    %60 = arith.maximumf %58, %59 : vector<32x648xf32>
    %c0_25 = arith.constant 0 : index
    %c0_26 = arith.constant 0 : index
    %61 = vector.load %arg5[%c0_25, %c0_26] : memref<32x648xf32, #tpu.memory_space<vmem>>, vector<32x648xf32>
    tpu.vector_store %arg5[%c0_25, %c0_26], %60 {strides = array<i32>} : memref<32x648xf32, #tpu.memory_space<vmem>>, vector<32x648xf32>,
    return
  }
}

module attributes {stable_mosaic.version = 11 : i64} {
  func.func @_deconv_tanh_kernel(%arg0: memref<8x2432xf32, #tpu.memory_space<vmem>>, %arg1: memref<4x3x72xbf16, #tpu.memory_space<vmem>>, %arg2: memref<3x1xf32, #tpu.memory_space<vmem>>, %arg3: memref<4x3x2312xf32, #tpu.memory_space<vmem>>) attributes {dimension_semantics = [], scalar_prefetch = 0 : i64, scratch_operands = 0 : i64, tpu.core_type = #tpu.core_type<tc>} {
    %c0 = arith.constant 0 : index
    %c0_0 = arith.constant 0 : index
    %0 = vector.load %arg0[%c0, %c0_0] : memref<8x2432xf32, #tpu.memory_space<vmem>>, vector<8x2312xf32>
    %c0_1 = arith.constant 0 : index
    %c1 = arith.constant 1 : index
    %1 = vector.load %arg0[%c0_1, %c1] : memref<8x2432xf32, #tpu.memory_space<vmem>>, vector<8x2312xf32>
    %c0_2 = arith.constant 0 : index
    %c2 = arith.constant 2 : index
    %2 = vector.load %arg0[%c0_2, %c2] : memref<8x2432xf32, #tpu.memory_space<vmem>>, vector<8x2312xf32>
    %c0_3 = arith.constant 0 : index
    %c34 = arith.constant 34 : index
    %3 = vector.load %arg0[%c0_3, %c34] : memref<8x2432xf32, #tpu.memory_space<vmem>>, vector<8x2312xf32>
    %c0_4 = arith.constant 0 : index
    %c35 = arith.constant 35 : index
    %4 = vector.load %arg0[%c0_4, %c35] : memref<8x2432xf32, #tpu.memory_space<vmem>>, vector<8x2312xf32>
    %c0_5 = arith.constant 0 : index
    %c36 = arith.constant 36 : index
    %5 = vector.load %arg0[%c0_5, %c36] : memref<8x2432xf32, #tpu.memory_space<vmem>>, vector<8x2312xf32>
    %c0_6 = arith.constant 0 : index
    %c68 = arith.constant 68 : index
    %6 = vector.load %arg0[%c0_6, %c68] : memref<8x2432xf32, #tpu.memory_space<vmem>>, vector<8x2312xf32>
    %c0_7 = arith.constant 0 : index
    %c69 = arith.constant 69 : index
    %7 = vector.load %arg0[%c0_7, %c69] : memref<8x2432xf32, #tpu.memory_space<vmem>>, vector<8x2312xf32>
    %c0_8 = arith.constant 0 : index
    %c70 = arith.constant 70 : index
    %8 = vector.load %arg0[%c0_8, %c70] : memref<8x2432xf32, #tpu.memory_space<vmem>>, vector<8x2312xf32>
    %9 = tpu.concatenate %0, %1, %2, %3, %4, %5, %6, %7, %8 in 0 : vector<8x2312xf32>, vector<8x2312xf32>, vector<8x2312xf32>, vector<8x2312xf32>, vector<8x2312xf32>, vector<8x2312xf32>, vector<8x2312xf32>, vector<8x2312xf32>, vector<8x2312xf32> -> vector<72x2312xf32>
    %10 = arith.truncf %9 : vector<72x2312xf32> to vector<72x2312xbf16>
    %c0_9 = arith.constant 0 : index
    %c0_10 = arith.constant 0 : index
    %11 = vector.load %arg2[%c0_9, %c0_10] : memref<3x1xf32, #tpu.memory_space<vmem>>, vector<3x1xf32>
    %c0_11 = arith.constant 0 : index
    %c0_12 = arith.constant 0 : index
    %c0_13 = arith.constant 0 : index
    %12 = vector.load %arg1[%c0_11, %c0_12, %c0_13] : memref<4x3x72xbf16, #tpu.memory_space<vmem>>, vector<1x3x72xbf16>
    %13 = vector.shape_cast %12 : vector<1x3x72xbf16> to vector<3x72xbf16>
    %cst = arith.constant dense<0.000000e+00> : vector<3x2312xf32>
    %14 = tpu.matmul %13, %10, %cst {dimension_numbers = #tpu.dot_dimension_numbers<[1], [0], [0], [1], [0, 0, 1, 1], [], []>} : vector<3x72xbf16>, vector<72x2312xbf16>, vector<3x2312xf32> -> vector<3x2312xf32>
    %15 = vector.broadcast %11 : vector<3x1xf32> to vector<3x2312xf32>
    %16 = arith.addf %14, %15 : vector<3x2312xf32>
    %17 = math.tanh %16 : vector<3x2312xf32>
    %c0_14 = arith.constant 0 : index
    %c0_15 = arith.constant 0 : index
    %c0_16 = arith.constant 0 : index
    %18 = vector.load %arg3[%c0_14, %c0_15, %c0_16] : memref<4x3x2312xf32, #tpu.memory_space<vmem>>, vector<1x3x2312xf32>
    %19 = vector.shape_cast %18 : vector<1x3x2312xf32> to vector<3x2312xf32>
    %20 = vector.shape_cast %17 : vector<3x2312xf32> to vector<1x3x2312xf32>
    tpu.vector_store %arg3[%c0_14, %c0_15, %c0_16], %20 {strides = array<i32>} : memref<4x3x2312xf32, #tpu.memory_space<vmem>>, vector<1x3x2312xf32>,
    %c1_17 = arith.constant 1 : index
    %c0_18 = arith.constant 0 : index
    %c0_19 = arith.constant 0 : index
    %21 = vector.load %arg1[%c1_17, %c0_18, %c0_19] : memref<4x3x72xbf16, #tpu.memory_space<vmem>>, vector<1x3x72xbf16>
    %22 = vector.shape_cast %21 : vector<1x3x72xbf16> to vector<3x72xbf16>
    %cst_20 = arith.constant dense<0.000000e+00> : vector<3x2312xf32>
    %23 = tpu.matmul %22, %10, %cst_20 {dimension_numbers = #tpu.dot_dimension_numbers<[1], [0], [0], [1], [0, 0, 1, 1], [], []>} : vector<3x72xbf16>, vector<72x2312xbf16>, vector<3x2312xf32> -> vector<3x2312xf32>
    %24 = vector.broadcast %11 : vector<3x1xf32> to vector<3x2312xf32>
    %25 = arith.addf %23, %24 : vector<3x2312xf32>
    %26 = math.tanh %25 : vector<3x2312xf32>
    %c1_21 = arith.constant 1 : index
    %c0_22 = arith.constant 0 : index
    %c0_23 = arith.constant 0 : index
    %27 = vector.load %arg3[%c1_21, %c0_22, %c0_23] : memref<4x3x2312xf32, #tpu.memory_space<vmem>>, vector<1x3x2312xf32>
    %28 = vector.shape_cast %27 : vector<1x3x2312xf32> to vector<3x2312xf32>
    %29 = vector.shape_cast %26 : vector<3x2312xf32> to vector<1x3x2312xf32>
    tpu.vector_store %arg3[%c1_21, %c0_22, %c0_23], %29 {strides = array<i32>} : memref<4x3x2312xf32, #tpu.memory_space<vmem>>, vector<1x3x2312xf32>,
    %c2_24 = arith.constant 2 : index
    %c0_25 = arith.constant 0 : index
    %c0_26 = arith.constant 0 : index
    %30 = vector.load %arg1[%c2_24, %c0_25, %c0_26] : memref<4x3x72xbf16, #tpu.memory_space<vmem>>, vector<1x3x72xbf16>
    %31 = vector.shape_cast %30 : vector<1x3x72xbf16> to vector<3x72xbf16>
    %cst_27 = arith.constant dense<0.000000e+00> : vector<3x2312xf32>
    %32 = tpu.matmul %31, %10, %cst_27 {dimension_numbers = #tpu.dot_dimension_numbers<[1], [0], [0], [1], [0, 0, 1, 1], [], []>} : vector<3x72xbf16>, vector<72x2312xbf16>, vector<3x2312xf32> -> vector<3x2312xf32>
    %33 = vector.broadcast %11 : vector<3x1xf32> to vector<3x2312xf32>
    %34 = arith.addf %32, %33 : vector<3x2312xf32>
    %35 = math.tanh %34 : vector<3x2312xf32>
    %c2_28 = arith.constant 2 : index
    %c0_29 = arith.constant 0 : index
    %c0_30 = arith.constant 0 : index
    %36 = vector.load %arg3[%c2_28, %c0_29, %c0_30] : memref<4x3x2312xf32, #tpu.memory_space<vmem>>, vector<1x3x2312xf32>
    %37 = vector.shape_cast %36 : vector<1x3x2312xf32> to vector<3x2312xf32>
    %38 = vector.shape_cast %35 : vector<3x2312xf32> to vector<1x3x2312xf32>
    tpu.vector_store %arg3[%c2_28, %c0_29, %c0_30], %38 {strides = array<i32>} : memref<4x3x2312xf32, #tpu.memory_space<vmem>>, vector<1x3x2312xf32>,
    %c3 = arith.constant 3 : index
    %c0_31 = arith.constant 0 : index
    %c0_32 = arith.constant 0 : index
    %39 = vector.load %arg1[%c3, %c0_31, %c0_32] : memref<4x3x72xbf16, #tpu.memory_space<vmem>>, vector<1x3x72xbf16>
    %40 = vector.shape_cast %39 : vector<1x3x72xbf16> to vector<3x72xbf16>
    %cst_33 = arith.constant dense<0.000000e+00> : vector<3x2312xf32>
    %41 = tpu.matmul %40, %10, %cst_33 {dimension_numbers = #tpu.dot_dimension_numbers<[1], [0], [0], [1], [0, 0, 1, 1], [], []>} : vector<3x72xbf16>, vector<72x2312xbf16>, vector<3x2312xf32> -> vector<3x2312xf32>
    %42 = vector.broadcast %11 : vector<3x1xf32> to vector<3x2312xf32>
    %43 = arith.addf %41, %42 : vector<3x2312xf32>
    %44 = math.tanh %43 : vector<3x2312xf32>
    %c3_34 = arith.constant 3 : index
    %c0_35 = arith.constant 0 : index
    %c0_36 = arith.constant 0 : index
    %45 = vector.load %arg3[%c3_34, %c0_35, %c0_36] : memref<4x3x2312xf32, #tpu.memory_space<vmem>>, vector<1x3x2312xf32>
    %46 = vector.shape_cast %45 : vector<1x3x2312xf32> to vector<3x2312xf32>
    %47 = vector.shape_cast %44 : vector<3x2312xf32> to vector<1x3x2312xf32>
    tpu.vector_store %arg3[%c3_34, %c0_35, %c0_36], %47 {strides = array<i32>} : memref<4x3x2312xf32, #tpu.memory_space<vmem>>, vector<1x3x2312xf32>,
    return
  }
}

</mosaic_0001>

<bundles_post_ra>
// kernel: generator_dc_forward.7
= control target key start
LH: loop header
LB: loop body
LE: loop exit
PB: predicated region body
PF: predicated region fallthrough
CT: control target
= control target key end

     0   :  { %10 = vsyncpa [#allocation3], 0  ;;  %s1386_s0 = inlined_call_operand.vmem [shape: f32[32,256], index: 0, kind: input, shape index: {}]   ;;  %s1387_s1 = inlined_call_operand.hbm [shape: f32[1,200], index: 1, kind: input, shape index: {}]   ;;  %s1388_s2 = inlined_call_operand.hbm [shape: bf16[64,288], index: 2, kind: input, shape index: {}]   ;;  %s1389_s3 = inlined_call_operand.vmem [shape: f32[16,1], index: 3, kind: input, shape index: {}]   ;;  %s1390_s4 = inlined_call_operand.vmem [shape: f32[16,1], index: 4, kind: input, shape index: {}]   ;;  %s1391_s5 = inlined_call_operand.vmem [shape: f32[64,200], index: 5, kind: output, shape index: {}]  }
   0x1   :  { %11 = vsyncpa [#allocation5], 0  ;;  %s1078_s18 = smov [#allocation2]   ;;  %s1079_s20 = smov [#allocation4]  }
   0x2   :  { %s20_s19 = sshll.u32 %s1078_s18, 4  ;;  %s29_s21 = sshll.u32 %s1079_s20, 4  ;;  %s21_s19 = int_to_ptr.vmem [resolvable:$true] %s20_s19  ;;  %s1121_s21 = int_to_ptr.vmem [resolvable:$true] %s29_s21 }
   0x3   :  { %s1030_s24 = scalar_lea.hbm %s1387_s1, 32 }
   0x4   :  { %p1031_p0 = scmp.ne.s32.totalorder %s1387_s1, %s1030_s24  ;;  %p1034_p1 = scmp.lt.u32.totalorder %s1030_s24, %s1387_s1 }
   0x6   :  { %p1036_p2 = pnand %p1034_p1, %p1031_p0 }
   0x8   :  { %1039 = shalt.err (!%p1036_p2)
}
   0x9   :  { %s1040_s29 = scalar_lea.vmem %s21_s19, 32  ;;  %p1045_p4 = scmp.lt.s32.totalorder %s21_s19, %s21_s19 }
   0xa   :  { %p1041_p3 = scmp.ne.s32.totalorder %s21_s19, %s1040_s29  ;;  %p1046_p5 = scmp.lt.s32.totalorder %s1040_s29, %s1040_s29 }
   0xc   :  { %p1047_p6 = por %p1046_p5, %p1045_p4 }
   0xe   :  { %p1048_p7 = pnand %p1047_p6, %p1041_p3 }
  0x10   :  { %1051 = shalt.err (!%p1048_p7)
}
  0x11   :  { %23 = dma.hbm_to_vmem [thread:$0]  %s1387_s1, 32, %s21_s19, [#allocation3]  }
  0x12   :  { %s1052_s9 = scalar_lea.hbm %s1388_s2, 1536 }
  0x13   :  { %p1053_p8 = scmp.ne.s32.totalorder %s1388_s2, %s1052_s9  ;;  %p1056_p9 = scmp.lt.u32.totalorder %s1052_s9, %s1388_s2 }
  0x15   :  { %p1058_p10 = pnand %p1056_p9, %p1053_p8 }
  0x17   :  { %1061 = shalt.err (!%p1058_p10)
}
  0x18   :  { %s1062_s14 = scalar_lea.vmem %s1121_s21, 1536  ;;  %p1067_p12 = scmp.lt.s32.totalorder %s1121_s21, %s1121_s21 }
  0x19   :  { %p1063_p11 = scmp.ne.s32.totalorder %s1121_s21, %s1062_s14  ;;  %p1068_p13 = scmp.lt.s32.totalorder %s1062_s14, %s1062_s14 }
  0x1b   :  { %p1069_p0 = por %p1068_p13, %p1067_p12 }
  0x1d   :  { %p1070_p1 = pnand %p1069_p0, %p1063_p11 }
  0x1f   :  { %1073 = shalt.err (!%p1070_p1)
}
  0x20   :  { %s1080_s1 = smov 192   ;;  %s1081_s15 = smov 12  }
  0x21   :  { %35 = dma.hbm_to_vmem [thread:$0]  %s1388_s2, 1536, %s1121_s21, [#allocation5], %s1080_s1, %s1080_s1, %s1081_s15  }
  0x22   :  { %1074 = dma.done.wait [#allocation3], 32  }
  0x23   :  { %1075 = vsyncadd [#allocation3], 4294967264 }
  0x24   :  { %1076 = dma.done.wait [#allocation5], 1536  }
  0x25   :  { %1077 = vsyncadd [#allocation5], 4294965760  ;;  %v51_v0 = vld [vmem:[%s1386_s0 + $0x20] sm:$0xff]  ;;  %v52_v1 = vld [vmem:[%s1386_s0 + $0x28] sm:$0xff]  ;;  %s1082_s8 = smov 127   ;;  %s1083_s9 = smov 126  }
  0x26   :  { %v47_v2 = vld [vmem:[%s1386_s0] sm:$0xff]  ;;  %v858_v3 = vpack.i.bf16 %v52_v1, %v51_v0  ;;  %v48_v4 = vld [vmem:[%s1386_s0 + $0x8] sm:$0xff]  ;;  %v53_v5 = vld [vmem:[%s1386_s0 + $0x30] sm:$0xff]  ;;  %s1085_s10 = smov 117   ;;  %s1086_s11 = smov 116   ;;  %v1090_v17 = vmov 0  }
  0x27   :  { %v54_v6 = vld [vmem:[%s1386_s0 + $0x38] sm:$0xff]  ;;  %v848_v7 = vpack.i.bf16 %v48_v4, %v47_v2  ;;  %v49_v8 = vld [vmem:[%s1386_s0 + $0x10] sm:$0xff]  ;;  %v297_v15 = vpack.c.bf16 %v53_v5, %v51_v0  ;;  %s1087_s12 = smov 108   ;;  %s1088_s13 = smov 107   ;;  %525 = vmatprep.mubr.bf16.mxu0 %v1090_v17  ;;  %1008 = vset.pattern.permute.xlu1 %v1090_v17  ;;  %vm79_vm0 = vcmask 1039360   ;;  %vm108_vm1 = vcmask 1031168  }
  0x28   :  { %v50_v9 = vld [vmem:[%s1386_s0 + $0x18] sm:$0xff]  ;;  %859 = vrot.lane.b32.xlu1 %v858_v3, %s1082_s8  ;;  %v863_v10 = vpack.i.bf16 %v54_v6, %v53_v5  ;;  %v295_v13 = vpack.c.bf16 %v49_v8, %v47_v2  ;;  %v298_v14 = vpack.c.bf16 %v54_v6, %v52_v1  ;;  %s1084_s0 = smov 118   ;;  %v1012_v16 = vld [vmem:[#allocation4 + $0x4] ss:$12 sps:$4 sm:$0xff]   ;;  %s1089_s14 = smov 106   ;;  %1009 = vset.pattern.permute.xlu0 %v1090_v17  ;;  %vm137_vm2 = vcmask 965632  }
  0x29   :  { %849 = vrot.lane.b32.xlu0 %v848_v7, %s1082_s8  ;;  %v853_v11 = vpack.i.bf16 %v50_v9, %v49_v8  ;;  %v296_v12 = vpack.c.bf16 %v50_v9, %v48_v4  ;;  %452 = vmatprep.mubr.bf16.mxu1 %v1012_v16  ;;  %vm166_vm3 = vcmask 957440   ;;  %vm195_vm4 = vcmask 949248  }
  0x2a   :  { %vm224_vm5 = vcmask 883712   ;;  %vm253_vm6 = vcmask 875520   ;;  %vm282_vm7 = vcmask 867328   ;;  %vm407_vm8 = vcmask 261120  }
  0x2b   :  { %420 = vmatprep.subr.bf16.mxu1 %v296_v12  ;;  %vm594_vm9 = vcmask 588800  }
  0x2c   :  { %864 = vrot.lane.b32.xlu1 %v863_v10, %s1082_s8  ;;  %421 = vmatpush1.bf16.msra.mxu1 %v295_v13 }
  0x2d   :  { %854 = vrot.lane.b32.xlu0 %v853_v11, %s1082_s8  ;;  %422 = vmatprep.subr.bf16.mxu1 %v298_v14 }
  0x30   :  { %874 = vrot.lane.b32.xlu1 %v853_v11, %s1083_s9  ;;  %423 = vmatpush1.bf16.msra.mxu1 %v297_v15 }
  0x31   :  { %869 = vrot.lane.b32.xlu0 %v848_v7, %s1083_s9 }
  0x34   :  { %884 = vrot.lane.b32.xlu1 %v863_v10, %s1083_s9 }
  0x35   :  { %879 = vrot.lane.b32.xlu0 %v858_v3, %s1083_s9 }
  0x38   :  { %894 = vrot.lane.b32.xlu1 %v853_v11, %s1084_s0 }
  0x39   :  { %889 = vrot.lane.b32.xlu0 %v848_v7, %s1084_s0 }
  0x3c   :  { %904 = vrot.lane.b32.xlu1 %v863_v10, %s1084_s0 }
  0x3d   :  { %899 = vrot.lane.b32.xlu0 %v858_v3, %s1084_s0 }
  0x40   :  { %914 = vrot.lane.b32.xlu1 %v853_v11, %s1085_s10 }
  0x41   :  { %909 = vrot.lane.b32.xlu0 %v848_v7, %s1085_s10 }
  0x44   :  { %924 = vrot.lane.b32.xlu1 %v863_v10, %s1085_s10 }
  0x45   :  { %919 = vrot.lane.b32.xlu0 %v858_v3, %s1085_s10 }
  0x48   :  { %934 = vrot.lane.b32.xlu1 %v853_v11, %s1086_s11 }
  0x49   :  { %929 = vrot.lane.b32.xlu0 %v848_v7, %s1086_s11 }
  0x4c   :  { %944 = vrot.lane.b32.xlu1 %v863_v10, %s1086_s11 }
  0x4d   :  { %939 = vrot.lane.b32.xlu0 %v858_v3, %s1086_s11 }
  0x50   :  { %954 = vrot.lane.b32.xlu1 %v853_v11, %s1087_s12 }
  0x51   :  { %949 = vrot.lane.b32.xlu0 %v848_v7, %s1087_s12 }
  0x54   :  { %964 = vrot.lane.b32.xlu1 %v863_v10, %s1087_s12 }
  0x55   :  { %959 = vrot.lane.b32.xlu0 %v858_v3, %s1087_s12 }
  0x58   :  { %974 = vrot.lane.b32.xlu1 %v853_v11, %s1088_s13 }
  0x59   :  { %969 = vrot.lane.b32.xlu0 %v848_v7, %s1088_s13 }
  0x5c   :  { %984 = vrot.lane.b32.xlu1 %v853_v11, %s1089_s14 }
  0x5d   :  { %979 = vrot.lane.b32.xlu0 %v848_v7, %s1089_s14 }
  0x60   :  { %994 = vrot.lane.b32.xlu1 %v863_v10, %s1088_s13 }
  0x61   :  { %989 = vrot.lane.b32.xlu0 %v858_v3, %s1088_s13 }
  0x64   :  { %1004 = vrot.lane.b32.xlu1 %v863_v10, %s1089_s14 }
  0x65   :  { %999 = vrot.lane.b32.xlu0 %v858_v3, %s1089_s14 }
  0x9a   :  { %v860_v18 = vpop.permute.xlu1 %859 }
  0x9b   :  { %v850_v19 = vpop.permute.xlu0 %849  ;;  %v862_v28 = vunpack.i.h.bf16 %v860_v18  ;;  %v861_v29 = vunpack.i.l.bf16 %v860_v18 }
  0x9c   :  { %v852_v20 = vunpack.i.h.bf16 %v850_v19  ;;  %v851_v21 = vunpack.i.l.bf16 %v850_v19 }
  0x9d   :  { %v82_v43 = vsel %vm79_vm0, %v861_v29, %v862_v28 }
  0x9e   :  { %v865_v22 = vpop.permute.xlu1 %864  ;;  %v80_v32 = vsel %vm79_vm0, %v851_v21, %v852_v20 }
  0x9f   :  { %v855_v23 = vpop.permute.xlu0 %854  ;;  %v867_v24 = vunpack.i.h.bf16 %v865_v22  ;;  %v866_v25 = vunpack.i.l.bf16 %v865_v22 }
  0xa0   :  { %v857_v26 = vunpack.i.h.bf16 %v855_v23  ;;  %v856_v27 = vunpack.i.l.bf16 %v855_v23 }
  0xa1   :  { %v302_v38 = vpack.c.bf16 %v867_v24, %v862_v28  ;;  %v83_v41 = vsel %vm79_vm0, %v866_v25, %v867_v24 }
  0xa2   :  { %v300_v30 = vpack.c.bf16 %v857_v26, %v852_v20  ;;  %v875_v31 = vpop.permute.xlu1 %874  ;;  %v81_v33 = vsel %vm79_vm0, %v856_v27, %v857_v26  ;;  %v301_v47 = vpack.c.bf16 %v83_v41, %v82_v43 }
  0xa3   :  { %v877_v34 = vunpack.i.h.bf16 %v875_v31  ;;  %v876_v35 = vunpack.i.l.bf16 %v875_v31  ;;  %v870_v36 = vpop.permute.xlu0 %869  ;;  %v299_v37 = vpack.c.bf16 %v81_v33, %v80_v32 }
  0xa4   :  { %v872_v39 = vunpack.i.h.bf16 %v870_v36  ;;  %v871_v40 = vunpack.i.l.bf16 %v870_v36  ;;  %424 = vmatprep.subr.bf16.mxu1 %v300_v30 }
  0xa5   :  { %425 = vmatpush1.bf16.msra.mxu1 %v299_v37  ;;  %v110_v48 = vsel %vm108_vm1, %v876_v35, %v877_v34 }
  0xa6   :  { %426 = vmatprep.subr.bf16.mxu1 %v302_v38  ;;  %v885_v42 = vpop.permute.xlu1 %884  ;;  %v304_v49 = vpack.c.bf16 %v877_v34, %v872_v39  ;;  %v109_v52 = vsel %vm108_vm1, %v871_v40, %v872_v39 }
  0xa7   :  { %v887_v44 = vunpack.i.h.bf16 %v885_v42  ;;  %v886_v45 = vunpack.i.l.bf16 %v885_v42  ;;  %v880_v46 = vpop.permute.xlu0 %879  ;;  %v303_v57 = vpack.c.bf16 %v110_v48, %v109_v52 }
  0xa8   :  { %v882_v50 = vunpack.i.h.bf16 %v880_v46  ;;  %v881_v51 = vunpack.i.l.bf16 %v880_v46 }
  0xa9   :  { %427 = vmatpush1.bf16.msra.mxu1 %v301_v47  ;;  %v112_v58 = vsel %vm108_vm1, %v886_v45, %v887_v44 }
  0xaa   :  { %428 = vmatprep.subr.bf16.mxu1 %v304_v49  ;;  %v895_v53 = vpop.permute.xlu1 %894  ;;  %v306_v59 = vpack.c.bf16 %v887_v44, %v882_v50  ;;  %v111_v62 = vsel %vm108_vm1, %v881_v51, %v882_v50 }
  0xab   :  { %v897_v54 = vunpack.i.h.bf16 %v895_v53  ;;  %v896_v55 = vunpack.i.l.bf16 %v895_v53  ;;  %v890_v56 = vpop.permute.xlu0 %889  ;;  %v305_v3 = vpack.c.bf16 %v112_v58, %v111_v62 }
  0xac   :  { %v892_v60 = vunpack.i.h.bf16 %v890_v56  ;;  %v891_v61 = vunpack.i.l.bf16 %v890_v56 }
  0xad   :  { %429 = vmatpush1.bf16.msra.mxu1 %v303_v57  ;;  %v139_v4 = vsel %vm137_vm2, %v896_v55, %v897_v54 }
  0xae   :  { %430 = vmatprep.subr.bf16.mxu1 %v306_v59  ;;  %v905_v63 = vpop.permute.xlu1 %904  ;;  %v308_v5 = vpack.c.bf16 %v897_v54, %v892_v60  ;;  %v138_v8 = vsel %vm137_vm2, %v891_v61, %v892_v60 }
  0xaf   :  { %v907_v0 = vunpack.i.h.bf16 %v905_v63  ;;  %v906_v1 = vunpack.i.l.bf16 %v905_v63  ;;  %v900_v2 = vpop.permute.xlu0 %899  ;;  %v307_v13 = vpack.c.bf16 %v139_v4, %v138_v8 }
  0xb0   :  { %v902_v6 = vunpack.i.h.bf16 %v900_v2  ;;  %v901_v7 = vunpack.i.l.bf16 %v900_v2 }
  0xb1   :  { %431 = vmatpush1.bf16.msra.mxu1 %v305_v3  ;;  %v141_v14 = vsel %vm137_vm2, %v906_v1, %v907_v0 }
  0xb2   :  { %432 = vmatprep.subr.bf16.mxu1 %v308_v5  ;;  %v915_v9 = vpop.permute.xlu1 %914  ;;  %v310_v15 = vpack.c.bf16 %v907_v0, %v902_v6  ;;  %v140_v19 = vsel %vm137_vm2, %v901_v7, %v902_v6 }
  0xb3   :  { %v917_v10 = vunpack.i.h.bf16 %v915_v9  ;;  %v916_v11 = vunpack.i.l.bf16 %v915_v9  ;;  %v910_v12 = vpop.permute.xlu0 %909  ;;  %v309_v24 = vpack.c.bf16 %v141_v14, %v140_v19 }
  0xb4   :  { %v912_v16 = vunpack.i.h.bf16 %v910_v12  ;;  %v911_v18 = vunpack.i.l.bf16 %v910_v12 }
  0xb5   :  { %433 = vmatpush1.bf16.msra.mxu1 %v307_v13  ;;  %v168_v25 = vsel %vm166_vm3, %v916_v11, %v917_v10 }
  0xb6   :  { %434 = vmatprep.subr.bf16.mxu1 %v310_v15  ;;  %v925_v20 = vpop.permute.xlu1 %924  ;;  %v312_v26 = vpack.c.bf16 %v917_v10, %v912_v16  ;;  %v167_v29 = vsel %vm166_vm3, %v911_v18, %v912_v16 }
  0xb7   :  { %v927_v21 = vunpack.i.h.bf16 %v925_v20  ;;  %v926_v22 = vunpack.i.l.bf16 %v925_v20  ;;  %v920_v23 = vpop.permute.xlu0 %919  ;;  %v311_v34 = vpack.c.bf16 %v168_v25, %v167_v29 }
  0xb8   :  { %v922_v27 = vunpack.i.h.bf16 %v920_v23  ;;  %v921_v28 = vunpack.i.l.bf16 %v920_v23 }
  0xb9   :  { %435 = vmatpush1.bf16.msra.mxu1 %v309_v24  ;;  %v170_v35 = vsel %vm166_vm3, %v926_v22, %v927_v21 }
  0xba   :  { %436 = vmatprep.subr.bf16.mxu1 %v312_v26  ;;  %v935_v30 = vpop.permute.xlu1 %934  ;;  %v314_v36 = vpack.c.bf16 %v927_v21, %v922_v27  ;;  %v169_v39 = vsel %vm166_vm3, %v921_v28, %v922_v27 }
  0xbb   :  { %v937_v31 = vunpack.i.h.bf16 %v935_v30  ;;  %v936_v32 = vunpack.i.l.bf16 %v935_v30  ;;  %v930_v33 = vpop.permute.xlu0 %929  ;;  %v313_v44 = vpack.c.bf16 %v170_v35, %v169_v39 }
  0xbc   :  { %v932_v37 = vunpack.i.h.bf16 %v930_v33  ;;  %v931_v38 = vunpack.i.l.bf16 %v930_v33 }
  0xbd   :  { %437 = vmatpush1.bf16.msra.mxu1 %v311_v34  ;;  %v197_v45 = vsel %vm195_vm4, %v936_v32, %v937_v31 }
  0xbe   :  { %438 = vmatprep.subr.bf16.mxu1 %v314_v36  ;;  %v945_v40 = vpop.permute.xlu1 %944  ;;  %v316_v46 = vpack.c.bf16 %v937_v31, %v932_v37  ;;  %v196_v49 = vsel %vm195_vm4, %v931_v38, %v932_v37 }
  0xbf   :  { %v947_v41 = vunpack.i.h.bf16 %v945_v40  ;;  %v946_v42 = vunpack.i.l.bf16 %v945_v40  ;;  %v940_v43 = vpop.permute.xlu0 %939  ;;  %v315_v54 = vpack.c.bf16 %v197_v45, %v196_v49 }
  0xc0   :  { %v942_v47 = vunpack.i.h.bf16 %v940_v43  ;;  %v941_v48 = vunpack.i.l.bf16 %v940_v43 }
  0xc1   :  { %439 = vmatpush1.bf16.msra.mxu1 %v313_v44  ;;  %v199_v55 = vsel %vm195_vm4, %v946_v42, %v947_v41 }
  0xc2   :  { %440 = vmatprep.subr.bf16.mxu1 %v316_v46  ;;  %v955_v50 = vpop.permute.xlu1 %954  ;;  %v318_v56 = vpack.c.bf16 %v947_v41, %v942_v47  ;;  %v198_v59 = vsel %vm195_vm4, %v941_v48, %v942_v47  ;;  %v1010_v48 = vld [vmem:[#allocation4] ss:$12 sps:$4 sm:$0xff]  }
  0xc3   :  { %v957_v51 = vunpack.i.h.bf16 %v955_v50  ;;  %v956_v52 = vunpack.i.l.bf16 %v955_v50  ;;  %v950_v53 = vpop.permute.xlu0 %949  ;;  %v317_v0 = vpack.c.bf16 %v199_v55, %v198_v59  ;;  %v1014_v50 = vld [vmem:[#allocation4 + $0x1c] ss:$12 sps:$4 sm:$0xff]   ;;  %v1016_v55 = vld [vmem:[#allocation4 + $0x18] ss:$12 sps:$4 sm:$0xff]  }
  0xc4   :  { %v952_v57 = vunpack.i.h.bf16 %v950_v53  ;;  %v951_v58 = vunpack.i.l.bf16 %v950_v53  ;;  %v1022_v59 = vld [vmem:[#allocation4 + $0x4c] ss:$12 sps:$4 sm:$0xff]  }
  0xc5   :  { %441 = vmatpush1.bf16.msra.mxu1 %v315_v54  ;;  %v226_v1 = vsel %vm224_vm5, %v956_v52, %v957_v51  ;;  %v1013_v54 = vld [vmem:[#allocation4 + $0x8] ss:$12 sps:$4 sm:$0xff]  }
  0xc6   :  { %442 = vmatprep.subr.bf16.mxu1 %v318_v56  ;;  %v965_v60 = vpop.permute.xlu1 %964  ;;  %v320_v2 = vpack.c.bf16 %v957_v51, %v952_v57  ;;  %v225_v5 = vsel %vm224_vm5, %v951_v58, %v952_v57  ;;  %v1018_v56 = vld [vmem:[#allocation4 + $0x34] ss:$12 sps:$4 sm:$0xff]   ;;  %v1020_v58 = vld [vmem:[#allocation4 + $0x30] ss:$12 sps:$4 sm:$0xff]  }
  0xc7   :  { %v967_v61 = vunpack.i.h.bf16 %v965_v60  ;;  %v966_v62 = vunpack.i.l.bf16 %v965_v60  ;;  %v960_v63 = vpop.permute.xlu0 %959  ;;  %v319_v10 = vpack.c.bf16 %v226_v1, %v225_v5  ;;  %v1017_v57 = vld [vmem:[#allocation4 + $0x20] ss:$12 sps:$4 sm:$0xff]   ;;  %v1021_v60 = vld [vmem:[#allocation4 + $0x38] ss:$12 sps:$4 sm:$0xff]  }
  0xc8   :  { %v962_v3 = vunpack.i.h.bf16 %v960_v63  ;;  %v961_v4 = vunpack.i.l.bf16 %v960_v63  ;;  %v568_v63 = vlaneseq }
  0xc9   :  { %443 = vmatpush1.bf16.msra.mxu1 %v317_v0  ;;  %v228_v11 = vsel %vm224_vm5, %v966_v62, %v967_v61  ;;  %v1025_v62 = vld [vmem:[#allocation4 + $0x50] ss:$12 sps:$4 sm:$0xff]  }
  0xca   :  { %444 = vmatprep.subr.bf16.mxu1 %v320_v2  ;;  %v975_v6 = vpop.permute.xlu1 %974  ;;  %v322_v12 = vpack.c.bf16 %v967_v61, %v962_v3  ;;  %v227_v15 = vsel %vm224_vm5, %v961_v4, %v962_v3  ;;  %v1024_v61 = vld [vmem:[#allocation4 + $0x48] ss:$12 sps:$4 sm:$0xff]   ;;  %v569_v0 = vshrl.u32 %v568_v63, 7  ;;  %v566_v4 = vld [vmem:[#allocation2] sm:$0x3] }
  0xcb   :  { %v977_v7 = vunpack.i.h.bf16 %v975_v6  ;;  %v976_v8 = vunpack.i.l.bf16 %v975_v6  ;;  %v970_v9 = vpop.permute.xlu0 %969  ;;  %v321_v21 = vpack.c.bf16 %v228_v11, %v227_v15 }
  0xcc   :  { %v972_v13 = vunpack.i.h.bf16 %v970_v9  ;;  %v971_v14 = vunpack.i.l.bf16 %v970_v9  ;;  %v574_v2 = vsub.s32 1, %v569_v0  ;;  %v570_v5 = vsub.s32 0, %v569_v0 }
  0xcd   :  { %445 = vmatpush1.bf16.msra.mxu1 %v319_v10  ;;  %v255_v22 = vsel %vm253_vm6, %v976_v8, %v977_v7 }
  0xce   :  { %446 = vmatprep.subr.bf16.mxu1 %v322_v12  ;;  %v985_v16 = vpop.permute.xlu1 %984  ;;  %v324_v23 = vpack.c.bf16 %v977_v7, %v972_v13  ;;  %v254_v26 = vsel %vm253_vm6, %v971_v14, %v972_v13  ;;  %v1218_v9 = vrot.slane %v566_v4, %v574_v2  ;;  %v1222_v11 = vrot.slane %v566_v4, %v570_v5 }
  0xcf   :  { %v987_v18 = vunpack.i.h.bf16 %v985_v16  ;;  %v986_v19 = vunpack.i.l.bf16 %v985_v16  ;;  %v980_v20 = vpop.permute.xlu0 %979  ;;  %v323_v34 = vpack.c.bf16 %v255_v22, %v254_v26 }
  0xd0   :  { %v982_v24 = vunpack.i.h.bf16 %v980_v20  ;;  %v981_v25 = vunpack.i.l.bf16 %v980_v20 }
  0xd1   :  { %447 = vmatpush1.bf16.msra.mxu1 %v321_v21  ;;  %v284_v27 = vsel %vm282_vm7, %v986_v19, %v987_v18 }
  0xd2   :  { %448 = vmatprep.subr.bf16.mxu1 %v324_v23  ;;  %v995_v28 = vpop.permute.xlu1 %994  ;;  %v328_v29 = vpack.c.bf16 %v987_v18, %v982_v24  ;;  %v283_v30 = vsel %vm282_vm7, %v981_v25, %v982_v24 }
  0xd3   :  { %v997_v31 = vunpack.i.h.bf16 %v995_v28  ;;  %v996_v32 = vunpack.i.l.bf16 %v995_v28  ;;  %v990_v33 = vpop.permute.xlu0 %989  ;;  %v327_v35 = vpack.c.bf16 %v284_v27, %v283_v30 }
  0xd4   :  { %v992_v36 = vunpack.i.h.bf16 %v990_v33  ;;  %v991_v37 = vunpack.i.l.bf16 %v990_v33  ;;  %493 = vmatprep.subr.bf16.mxu0 %v328_v29 }
  0xd5   :  { %449 = vmatpush1.bf16.msra.mxu1 %v323_v34  ;;  %494 = vmatpush1.bf16.msra.mxu0 %v327_v35  ;;  %v257_v38 = vsel %vm253_vm6, %v996_v32, %v997_v31 }
  0xd6   :  { %v326_v39 = vpack.c.bf16 %v997_v31, %v992_v36  ;;  %v1005_v40 = vpop.permute.xlu1 %1004  ;;  %v256_v41 = vsel %vm253_vm6, %v991_v37, %v992_v36 }
  0xd7   :  { %v1007_v42 = vunpack.i.h.bf16 %v1005_v40  ;;  %v1006_v43 = vunpack.i.l.bf16 %v1005_v40  ;;  %v1000_v44 = vpop.permute.xlu0 %999  ;;  %v325_v45 = vpack.c.bf16 %v257_v38, %v256_v41 }
  0xd8   :  { %v1002_v46 = vunpack.i.h.bf16 %v1000_v44  ;;  %v1001_v47 = vunpack.i.l.bf16 %v1000_v44  ;;  %450 = vmatprep.subr.bf16.mxu1 %v326_v39 }
  0xd9   :  { %451 = vmatpush1.bf16.msra.mxu1 %v325_v45  ;;  %v286_v49 = vsel %vm282_vm7, %v1006_v43, %v1007_v42 }
  0xda   :  { %v330_v51 = vpack.c.bf16 %v1007_v42, %v1002_v46  ;;  %v285_v52 = vsel %vm282_vm7, %v1001_v47, %v1002_v46 }
  0xdb   :  { %v329_v53 = vpack.c.bf16 %v286_v49, %v285_v52 }
  0xdc   :  { %495 = vmatprep.subr.bf16.mxu0 %v330_v51  ;;  %453 = vmatmul.mubr.bf16.vlgmr.msra.gmra.mrb[0].mxu1 %v1010_v48 }
  0xdd   :  { %496 = vmatpush1.bf16.msra.mxu0 %v329_v53  ;;  %462 = vmatprep.mubr.bf16.mxu1 %v1014_v50 }
  0xe0   :  { %815 = vmatmul.mubr.msk.bf16.vlgmr.msra.gmra.mrb[0].mxu0 %vm407_vm8, %v1013_v54 }
  0xe1   :  { %535 = vmatprep.mubr.bf16.mxu0 %v1090_v17 }
  0xe4   :  { %463 = vmatmul.mubr.bf16.gmra.mrb[4].mxu1 %v1016_v55 }
  0xe5   :  { %472 = vmatprep.mubr.bf16.mxu1 %v1018_v56 }
  0xe8   :  { %816 = vmatmul.mubr.msk.bf16.gmra.mrb[4].mxu0 %vm407_vm8, %v1017_v57 }
  0xe9   :  { %545 = vmatprep.mubr.bf16.mxu0 %v1090_v17 }
  0xec   :  { %473 = vmatmul.mubr.bf16.gmra.mrb[8].mxu1 %v1020_v58 }
  0xed   :  { %482 = vmatprep.mubr.bf16.mxu1 %v1022_v59 }
  0xf0   :  { %817 = vmatmul.mubr.msk.bf16.gmra.mrb[8].mxu0 %vm407_vm8, %v1021_v60 }
  0xf1   :  { %555 = vmatprep.mubr.bf16.mxu0 %v1090_v17 }
  0xf4   :  { %483 = vmatmul.mubr.bf16.gmra.mrb[12].mxu1 %v1024_v61 }
  0xf8   :  { %818 = vmatmul.mubr.msk.bf16.gmra.mrb[12].mxu0 %vm407_vm8, %v1025_v62 }
 0x1af   :  { %v454_v1 = vpop.f32.mrb[0].mxu1 }
 0x1b0   :  { %v456_v3 = vpop.f32.mrb[1].mxu1 }
 0x1b1   :  { %v458_v6 = vpop.f32.mrb[2].mxu1 }
 0x1b2   :  { %v460_v7 = vpop.f32.mrb[3].mxu1 }
 0x1b3   :  { %v527_v8 = vpop.f32.mrb[0].mxu0 }
 0x1b4   :  { %v1220_v10 = vadd.f32 %v527_v8, %v454_v1  ;;  %v529_v17 = vpop.f32.mrb[1].mxu0 }
 0x1b5   :  { %v1224_v12 = vadd.f32 %v529_v17, %v456_v3  ;;  %v531_v13 = vpop.f32.mrb[2].mxu0 }
 0x1b6   :  { %v1226_v14 = vadd.f32 %v531_v13, %v458_v6  ;;  %v533_v15 = vpop.f32.mrb[3].mxu0  ;;  %v578_v20 = vmul.f32 %v1222_v11, %v1220_v10 }
 0x1b7   :  { %v579_v16 = vmul.f32 %v1218_v9, %v1224_v12  ;;  %v1230_v18 = vadd.f32 %v533_v15, %v460_v7  ;;  %v464_v19 = vpop.f32.mrb[4].mxu1 }
 0x1b8   :  { %v580_v21 = vmul.f32 %v1222_v11, %v1226_v14  ;;  %v466_v22 = vpop.f32.mrb[5].mxu1  ;;  %v627_v44 = vmul.f32 %v578_v20, %v578_v20 }
 0x1b9   :  { %v581_v23 = vmul.f32 %v1218_v9, %v1230_v18  ;;  %v468_v24 = vpop.f32.mrb[6].mxu1  ;;  %v595_v25 = vsel %vm594_vm9, %v579_v16, 0.0  ;;  %v628_v26 = vmul.f32 %v579_v16, %v579_v16 }
 0x1ba   :  { %v470_v27 = vpop.f32.mrb[7].mxu1  ;;  %v596_v28 = vadd.f32 %v595_v25, %v578_v20  ;;  %v629_v35 = vmul.f32 %v580_v21, %v580_v21 }
 0x1bb   :  { %v537_v29 = vpop.f32.mrb[4].mxu0  ;;  %v599_v30 = vsel %vm594_vm9, %v581_v23, 0.0  ;;  %v630_v31 = vmul.f32 %v581_v23, %v581_v23  ;;  %v643_v39 = vsel %vm594_vm9, %v628_v26, 0.0 }
 0x1bc   :  { %v1240_v32 = vadd.f32 %v537_v29, %v464_v19  ;;  %v539_v33 = vpop.f32.mrb[5].mxu0  ;;  %597 = vadd.xlane.f32.xlu0 %v596_v28  ;;  %v600_v34 = vadd.f32 %v599_v30, %v580_v21  ;;  %v644_v49 = vadd.f32 %v643_v39, %v627_v44 }
 0x1bd   :  { %v1242_v36 = vadd.f32 %v539_v33, %v466_v22  ;;  %v541_v37 = vpop.f32.mrb[6].mxu0  ;;  %v647_v38 = vsel %vm594_vm9, %v630_v31, 0.0 }
 0x1be   :  { %v582_v40 = vmul.f32 %v1222_v11, %v1240_v32  ;;  %v1248_v41 = vadd.f32 %v541_v37, %v468_v24  ;;  %v543_v42 = vpop.f32.mrb[7].mxu0  ;;  %601 = vadd.xlane.f32.xlu1 %v600_v34  ;;  %v648_v43 = vadd.f32 %v647_v38, %v629_v35 }
 0x1bf   :  { %v583_v45 = vmul.f32 %v1218_v9, %v1242_v36  ;;  %v1252_v46 = vadd.f32 %v543_v42, %v470_v27  ;;  %v474_v47 = vpop.f32.mrb[8].mxu1 }
 0x1c0   :  { %649 = vadd.xlane.f32.xlu0 %v648_v43  ;;  %v476_v48 = vpop.f32.mrb[9].mxu1  ;;  %v631_v56 = vmul.f32 %v582_v40, %v582_v40  ;;  %v584_v61 = vmul.f32 %v1222_v11, %v1248_v41 }
 0x1c1   :  { %v585_v50 = vmul.f32 %v1218_v9, %v1252_v46  ;;  %v478_v51 = vpop.f32.mrb[10].mxu1  ;;  %v603_v52 = vsel %vm594_vm9, %v583_v45, 0.0  ;;  %v632_v53 = vmul.f32 %v583_v45, %v583_v45 }
 0x1c2   :  { %645 = vadd.xlane.f32.xlu1 %v644_v49  ;;  %v480_v54 = vpop.f32.mrb[11].mxu1  ;;  %v604_v55 = vadd.f32 %v603_v52, %v582_v40  ;;  %v633_v16 = vmul.f32 %v584_v61, %v584_v61 }
 0x1c3   :  { %v547_v57 = vpop.f32.mrb[8].mxu0  ;;  %v651_v58 = vsel %vm594_vm9, %v632_v53, 0.0  ;;  %v607_v59 = vsel %vm594_vm9, %v585_v50, 0.0  ;;  %v634_v60 = vmul.f32 %v585_v50, %v585_v50 }
 0x1c4   :  { %v1261_v62 = vadd.f32 %v547_v57, %v474_v47  ;;  %v549_v63 = vpop.f32.mrb[9].mxu0  ;;  %605 = vadd.xlane.f32.xlu0 %v604_v55  ;;  %v652_v0 = vadd.f32 %v651_v58, %v631_v56  ;;  %v608_v5 = vadd.f32 %v607_v59, %v584_v61 }
 0x1c5   :  { %v1263_v1 = vadd.f32 %v549_v63, %v476_v48  ;;  %v551_v2 = vpop.f32.mrb[10].mxu0  ;;  %v655_v17 = vsel %vm594_vm9, %v634_v60, 0.0 }
 0x1c6   :  { %v1265_v3 = vadd.f32 %v551_v2, %v478_v51  ;;  %v553_v4 = vpop.f32.mrb[11].mxu0  ;;  %653 = vadd.xlane.f32.xlu1 %v652_v0  ;;  %v586_v13 = vmul.f32 %v1222_v11, %v1261_v62  ;;  %v656_v24 = vadd.f32 %v655_v17, %v633_v16 }
 0x1c7   :  { %v587_v6 = vmul.f32 %v1218_v9, %v1263_v1  ;;  %v1269_v7 = vadd.f32 %v553_v4, %v480_v54  ;;  %v484_v8 = vpop.f32.mrb[12].mxu1 }
 0x1c8   :  { %609 = vadd.xlane.f32.xlu0 %v608_v5  ;;  %v486_v15 = vpop.f32.mrb[13].mxu1  ;;  %v588_v30 = vmul.f32 %v1222_v11, %v1265_v3  ;;  %v635_v34 = vmul.f32 %v586_v13, %v586_v13 }
 0x1c9   :  { %v589_v19 = vmul.f32 %v1218_v9, %v1269_v7  ;;  %v488_v20 = vpop.f32.mrb[14].mxu1  ;;  %v611_v21 = vsel %vm594_vm9, %v587_v6, 0.0  ;;  %v636_v22 = vmul.f32 %v587_v6, %v587_v6 }
 0x1ca   :  { %v490_v23 = vpop.f32.mrb[15].mxu1  ;;  %v612_v25 = vadd.f32 %v611_v21, %v586_v13  ;;  %v637_v48 = vmul.f32 %v588_v30, %v588_v30 }
 0x1cb   :  { %v557_v26 = vpop.f32.mrb[12].mxu0  ;;  %v659_v27 = vsel %vm594_vm9, %v636_v22, 0.0  ;;  %v615_v28 = vsel %vm594_vm9, %v589_v19, 0.0  ;;  %v638_v29 = vmul.f32 %v589_v19, %v589_v19 }
 0x1cc   :  { %v1281_v31 = vadd.f32 %v557_v26, %v484_v8  ;;  %v559_v33 = vpop.f32.mrb[13].mxu0  ;;  %657 = vadd.xlane.f32.xlu0 %v656_v24  ;;  %613 = vadd.xlane.f32.xlu1 %v612_v25  ;;  %v660_v40 = vadd.f32 %v659_v27, %v635_v34  ;;  %v616_v42 = vadd.f32 %v615_v28, %v588_v30 }
 0x1cd   :  { %v1283_v35 = vadd.f32 %v559_v33, %v486_v15  ;;  %v561_v37 = vpop.f32.mrb[14].mxu0  ;;  %v663_v45 = vsel %vm594_vm9, %v638_v29, 0.0 }
 0x1ce   :  { %v1285_v38 = vadd.f32 %v561_v37, %v488_v20  ;;  %v563_v39 = vpop.f32.mrb[15].mxu0  ;;  %v590_v47 = vmul.f32 %v1222_v11, %v1281_v31  ;;  %v664_v52 = vadd.f32 %v663_v45, %v637_v48 }
 0x1cf   :  { %v591_v43 = vmul.f32 %v1218_v9, %v1283_v35  ;;  %v1289_v44 = vadd.f32 %v563_v39, %v490_v23 }
 0x1d0   :  { %661 = vadd.xlane.f32.xlu1 %v660_v40  ;;  %617 = vadd.xlane.f32.xlu0 %v616_v42  ;;  %v592_v57 = vmul.f32 %v1222_v11, %v1285_v38  ;;  %v639_v58 = vmul.f32 %v590_v47, %v590_v47 }
 0x1d1   :  { %v593_v49 = vmul.f32 %v1218_v9, %v1289_v44  ;;  %v619_v50 = vsel %vm594_vm9, %v591_v43, 0.0  ;;  %v640_v51 = vmul.f32 %v591_v43, %v591_v43 }
 0x1d2   :  { %v620_v53 = vadd.f32 %v619_v50, %v590_v47  ;;  %v641_v61 = vmul.f32 %v592_v57, %v592_v57 }
 0x1d3   :  { %v667_v54 = vsel %vm594_vm9, %v640_v51, 0.0  ;;  %v623_v55 = vsel %vm594_vm9, %v593_v49, 0.0  ;;  %v642_v56 = vmul.f32 %v593_v49, %v593_v49 }
 0x1d4   :  { %665 = vadd.xlane.f32.xlu0 %v664_v52  ;;  %621 = vadd.xlane.f32.xlu1 %v620_v53  ;;  %v668_v59 = vadd.f32 %v667_v54, %v639_v58  ;;  %v624_v60 = vadd.f32 %v623_v55, %v592_v57  ;;  %v699_v54 = vld [vmem:[%s1389_s3] sm:$0xff]  ;;  %v700_v58 = vld [vmem:[%s1389_s3 + $0x8] sm:$0xff] }
 0x1d5   :  { %v671_v9 = vsel %vm594_vm9, %v642_v56, 0.0  ;;  %v707_v57 = vld [vmem:[%s1390_s4] sm:$0xff] }
 0x1d6   :  { %v672_v63 = vadd.f32 %v671_v9, %v641_v61 }
 0x1d8   :  { %669 = vadd.xlane.f32.xlu1 %v668_v59  ;;  %625 = vadd.xlane.f32.xlu0 %v624_v60 }
 0x1dc   :  { %673 = vadd.xlane.f32.xlu0 %v672_v63  ;;  %v708_v63 = vld [vmem:[%s1390_s4 + $0x8] sm:$0xff] }
 0x249   :  { %v598_v0 = vpop.xlane.xlu0 %597 }
 0x24b   :  { %v602_v2 = vpop.xlane.xlu1 %601 }
 0x24d   :  { %v650_v4 = vpop.xlane.xlu0 %649 }
 0x24f   :  { %v646_v5 = vpop.xlane.xlu1 %645 }
 0x251   :  { %v606_v6 = vpop.xlane.xlu0 %605 }
 0x252   :  { %v677_v19 = vadd.f32 %v606_v6, %v598_v0 }
 0x253   :  { %v654_v8 = vpop.xlane.xlu1 %653 }
 0x254   :  { %v685_v23 = vadd.f32 %v654_v8, %v646_v5 }
 0x255   :  { %v610_v17 = vpop.xlane.xlu0 %609 }
 0x256   :  { %v678_v24 = vadd.f32 %v610_v17, %v602_v2 }
 0x259   :  { %v658_v11 = vpop.xlane.xlu0 %657  ;;  %v614_v13 = vpop.xlane.xlu1 %613 }
 0x25a   :  { %v679_v20 = vadd.f32 %v677_v19, %v614_v13  ;;  %v686_v33 = vadd.f32 %v658_v11, %v650_v4 }
 0x25d   :  { %v662_v15 = vpop.xlane.xlu1 %661  ;;  %v618_v16 = vpop.xlane.xlu0 %617 }
 0x25e   :  { %v687_v26 = vadd.f32 %v685_v23, %v662_v15  ;;  %v680_v27 = vadd.f32 %v678_v24, %v618_v16 }
 0x261   :  { %v666_v21 = vpop.xlane.xlu0 %665  ;;  %v622_v22 = vpop.xlane.xlu1 %621 }
 0x262   :  { %v681_v25 = vadd.f32 %v679_v20, %v622_v22  ;;  %v688_v39 = vadd.f32 %v686_v33, %v666_v21 }
 0x264   :  { %v691_v28 = vmul.f32 0.001953125, %v681_v25 }
 0x265   :  { %v670_v29 = vpop.xlane.xlu1 %669  ;;  %v626_v30 = vpop.xlane.xlu0 %625 }
 0x266   :  { %v689_v34 = vadd.f32 %v687_v26, %v670_v29  ;;  %v682_v37 = vadd.f32 %v680_v27, %v626_v30  ;;  %v695_v40 = vmul.f32 %v691_v28, %v691_v28 }
 0x268   :  { %v693_v42 = vmul.f32 0.001953125, %v689_v34  ;;  %v692_v43 = vmul.f32 0.001953125, %v682_v37 }
 0x269   :  { %v674_v45 = vpop.xlane.xlu0 %673 }
 0x26a   :  { %v697_v47 = vsub.f32 %v693_v42, %v695_v40  ;;  %v690_v48 = vadd.f32 %v688_v39, %v674_v45  ;;  %v696_v50 = vmul.f32 %v692_v43, %v692_v43 }
 0x26c   :  { %v701_v49 = vadd.f32 1e-05, %v697_v47  ;;  %v694_v51 = vmul.f32 0.001953125, %v690_v48 }
 0x26e   :  { %1026 = vrsqrt.f32 %v701_v49  ;;  %v698_v52 = vsub.f32 %v694_v51, %v696_v50 }
 0x270   :  { %v702_v53 = vadd.f32 1e-05, %v698_v52 }
 0x272   :  { %1028 = vrsqrt.f32 %v702_v53 }
 0x278   :  { %v1027_v55 = vpop.eup %1026 }
 0x279   :  { %v705_v56 = vmul.f32 %v1027_v55, %v699_v54 }
 0x27b   :  { %715 = vperm.xlu1 %1008, %v705_v56   ;;  %v709_v59 = vmul.f32 %v705_v56, %v691_v28 }
 0x27c   :  { %v1029_v60 = vpop.eup %1028 }
 0x27d   :  { %v711_v9 = vsub.f32 %v707_v57, %v709_v59  ;;  %v706_v61 = vmul.f32 %v1029_v60, %v700_v58 }
 0x27f   :  { %741 = vperm.xlu1 %1008, %v711_v9   ;;  %720 = vperm.xlu0 %1009, %v706_v61   ;;  %v710_v0 = vmul.f32 %v706_v61, %v692_v43 }
 0x281   :  { %v712_v2 = vsub.f32 %v708_v63, %v710_v0 }
 0x283   :  { %746 = vperm.xlu1 %1008, %v712_v2  }
 0x2fa   :  { %v716_v4 = vpop.permute.xlu1 %715 }
 0x2fb   :  { %v723_v5 = vmul.f32 %v716_v4, %v1220_v10  ;;  %v724_v6 = vmul.f32 %v716_v4, %v1224_v12  ;;  %v727_v8 = vmul.f32 %v716_v4, %v1240_v32  ;;  %v728_v17 = vmul.f32 %v716_v4, %v1242_v36 }
 0x2fc   :  { %v731_v11 = vmul.f32 %v716_v4, %v1261_v62  ;;  %v732_v13 = vmul.f32 %v716_v4, %v1263_v1  ;;  %v735_v15 = vmul.f32 %v716_v4, %v1281_v31  ;;  %v736_v16 = vmul.f32 %v716_v4, %v1283_v35 }
 0x2fe   :  { %v742_v19 = vpop.permute.xlu1 %741  ;;  %v721_v32 = vpop.permute.xlu0 %720 }
 0x2ff   :  { %v749_v20 = vadd.f32 %v742_v19, %v723_v5  ;;  %v750_v21 = vadd.f32 %v742_v19, %v724_v6  ;;  %v753_v22 = vadd.f32 %v742_v19, %v727_v8  ;;  %v754_v23 = vadd.f32 %v742_v19, %v728_v17 }
 0x300   :  { %v757_v10 = vadd.f32 %v742_v19, %v731_v11  ;;  %v758_v24 = vadd.f32 %v742_v19, %v732_v13  ;;  %v761_v12 = vadd.f32 %v742_v19, %v735_v15  ;;  %v762_v25 = vadd.f32 %v742_v19, %v736_v16 }
 0x301   :  { %v765_v26 = vmax.f32 %v749_v20, 0.0  ;;  %v766_v36 = vmax.f32 %v750_v21, 0.0  ;;  %v769_v27 = vmax.f32 %v753_v22, 0.0  ;;  %v770_v62 = vmax.f32 %v754_v23, 0.0 }
 0x302   :  { %v773_v28 = vmax.f32 %v757_v10, 0.0  ;;  %v774_v1 = vmax.f32 %v758_v24, 0.0  ;;  %v777_v29 = vmax.f32 %v761_v12, 0.0  ;;  %v778_v31 = vmax.f32 %v762_v25, 0.0  ;;  %v747_v30 = vpop.permute.xlu1 %746 }
 0x303   :  { %781 = vst [vmem:[%s1391_s5] sm:$0xff] %v765_v26  ;;  %782 = vst.msk [vmem:[%s1391_s5 + $0x8] sm:$0xff] %vm594_vm9, %v766_v36  ;;  %v725_v35 = vmul.f32 %v721_v32, %v1226_v14  ;;  %v726_v33 = vmul.f32 %v721_v32, %v1230_v18  ;;  %v729_v34 = vmul.f32 %v721_v32, %v1248_v41 }
 0x304   :  { %785 = vst [vmem:[%s1391_s5 + $0x20] sm:$0xff] %v769_v27  ;;  %786 = vst.msk [vmem:[%s1391_s5 + $0x28] sm:$0xff] %vm594_vm9, %v770_v62  ;;  %v730_v37 = vmul.f32 %v721_v32, %v1252_v46  ;;  %v733_v14 = vmul.f32 %v721_v32, %v1265_v3  ;;  %v734_v18 = vmul.f32 %v721_v32, %v1269_v7 }
 0x305   :  { %789 = vst [vmem:[%s1391_s5 + $0x40] sm:$0xff] %v773_v28  ;;  %790 = vst.msk [vmem:[%s1391_s5 + $0x48] sm:$0xff] %vm594_vm9, %v774_v1  ;;  %v737_v41 = vmul.f32 %v721_v32, %v1285_v38  ;;  %v738_v46 = vmul.f32 %v721_v32, %v1289_v44  ;;  %v751_v39 = vadd.f32 %v747_v30, %v725_v35 }
 0x306   :  { %793 = vst [vmem:[%s1391_s5 + $0x60] sm:$0xff] %v777_v29  ;;  %794 = vst.msk [vmem:[%s1391_s5 + $0x68] sm:$0xff] %vm594_vm9, %v778_v31  ;;  %v752_v40 = vadd.f32 %v747_v30, %v726_v33  ;;  %v755_v42 = vadd.f32 %v747_v30, %v729_v34  ;;  %v756_v43 = vadd.f32 %v747_v30, %v730_v37 }
 0x307   :  { %v759_v45 = vadd.f32 %v747_v30, %v733_v14  ;;  %v760_v47 = vadd.f32 %v747_v30, %v734_v18  ;;  %v763_v48 = vadd.f32 %v747_v30, %v737_v41  ;;  %v764_v49 = vadd.f32 %v747_v30, %v738_v46 }
 0x308   :  { %v767_v50 = vmax.f32 %v751_v39, 0.0  ;;  %v768_v51 = vmax.f32 %v752_v40, 0.0  ;;  %v771_v52 = vmax.f32 %v755_v42, 0.0  ;;  %v772_v53 = vmax.f32 %v756_v43, 0.0 }
 0x309   :  { %v775_v54 = vmax.f32 %v759_v45, 0.0  ;;  %v776_v3 = vmax.f32 %v760_v47, 0.0  ;;  %v779_v55 = vmax.f32 %v763_v48, 0.0  ;;  %v780_v7 = vmax.f32 %v764_v49, 0.0 }
 0x30a   :  { %783 = vst [vmem:[%s1391_s5 + $0x10] sm:$0xff] %v767_v50  ;;  %784 = vst.msk [vmem:[%s1391_s5 + $0x18] sm:$0xff] %vm594_vm9, %v768_v51 }
 0x30b   :  { %787 = vst [vmem:[%s1391_s5 + $0x30] sm:$0xff] %v771_v52  ;;  %788 = vst.msk [vmem:[%s1391_s5 + $0x38] sm:$0xff] %vm594_vm9, %v772_v53 }
 0x30c   :  { %791 = vst [vmem:[%s1391_s5 + $0x50] sm:$0xff] %v775_v54  ;;  %792 = vst.msk [vmem:[%s1391_s5 + $0x58] sm:$0xff] %vm594_vm9, %v776_v3 }
 0x30d   :  { %795 = vst [vmem:[%s1391_s5 + $0x70] sm:$0xff] %v779_v55  ;;  %796 = vst.msk [vmem:[%s1391_s5 + $0x78] sm:$0xff] %vm594_vm9, %v780_v7 }
 0x30e   :  { %801 = vsyncpa [#allocation3], 1 }
 0x30f   :  { %802 = vsyncpa [#allocation5], 1 }

// kernel: generator_dc_forward.6
= control target key start
LH: loop header
LB: loop body
LE: loop exit
PB: predicated region body
PF: predicated region fallthrough
CT: control target
= control target key end

     0   :  { %10 = vsyncpa [#allocation3], 0  ;;  %s1643_s18 = smov [#allocation2]   ;;  %s2114_s0 = inlined_call_operand.vmem [shape: f32[64,128], index: 0, kind: input, shape index: {}]   ;;  %s2115_s1 = inlined_call_operand.hbm [shape: f32[1,72], index: 1, kind: input, shape index: {}]   ;;  %s2116_s2 = inlined_call_operand.vmem [shape: bf16[128,576], index: 2, kind: input, shape index: {}]   ;;  %s2117_s3 = inlined_call_operand.vmem [shape: f32[32,1], index: 3, kind: input, shape index: {}]   ;;  %s2118_s4 = inlined_call_operand.vmem [shape: f32[32,1], index: 4, kind: input, shape index: {}]   ;;  %s2119_s5 = inlined_call_operand.vmem [shape: f32[128,72], index: 5, kind: output, shape index: {}]  }
   0x1   :  { %s19_s19 = sshll.u32 %s1643_s18, 4  ;;  %s1619_s22 = scalar_lea.hbm %s2115_s1, 16  ;;  %s20_s19 = int_to_ptr.vmem [resolvable:$true] %s19_s19 }
   0x2   :  { %p1620_p0 = scmp.ne.s32.totalorder %s2115_s1, %s1619_s22  ;;  %p1623_p1 = scmp.lt.u32.totalorder %s1619_s22, %s2115_s1 }
   0x4   :  { %p1625_p2 = pnand %p1623_p1, %p1620_p0 }
   0x6   :  { %1628 = shalt.err (!%p1625_p2)
}
   0x7   :  { %s1629_s27 = scalar_lea.vmem %s20_s19, 16  ;;  %s1633_s28 = scalar_lea.vmem %s20_s19, 32 }
   0x8   :  { %p1630_p3 = scmp.ne.s32.totalorder %s20_s19, %s1629_s27  ;;  %p1634_p4 = scmp.lt.s32.totalorder %s20_s19, %s20_s19 }
   0x9   :  { %p1635_p5 = scmp.lt.s32.totalorder %s1633_s28, %s1629_s27 }
   0xb   :  { %p1636_p6 = por %p1635_p5, %p1634_p4 }
   0xd   :  { %p1637_p7 = pnand %p1636_p6, %p1630_p3 }
   0xf   :  { %1640 = shalt.err (!%p1637_p7)
}
  0x10   :  { %22 = dma.hbm_to_vmem [thread:$0]  %s2115_s1, 16, %s20_s19, [#allocation3]  }
  0x11   :  { %1641 = dma.done.wait [#allocation3], 16  }
  0x12   :  { %1642 = vsyncadd [#allocation3], 4294967280  ;;  %v1698_v0 = vld [vmem:[%s2114_s0] sm:$0xff]  ;;  %v1703_v1 = vld [vmem:[%s2114_s0 + $0x8] sm:$0xff]  ;;  %s1644_s17 = smov 126   ;;  %s1645_s18 = smov 116  }
  0x13   :  { %v1708_v2 = vld [vmem:[%s2114_s0 + $0x10] sm:$0xff]  ;;  %v1393_v3 = vpack.i.bf16 %v1703_v1, %v1698_v0  ;;  %v1715_v4 = vld [vmem:[%s2114_s0 + $0x18] sm:$0xff]  ;;  %v1720_v5 = vld [vmem:[%s2114_s0 + $0x20] sm:$0xff]  ;;  %s1646_s23 = smov 121   ;;  %v241_v11 = vpack.c.bf16 %v1703_v1, %v1698_v0  ;;  %s1648_s24 = smov 127   ;;  %vm525_vm0 = vcmask 523264  }
  0x14   :  { %v1725_v6 = vld [vmem:[%s2114_s0 + $0x28] sm:$0xff]  ;;  %v1398_v7 = vpack.i.bf16 %v1715_v4, %v1708_v2  ;;  %v1732_v8 = vld [vmem:[%s2114_s0 + $0x30] sm:$0xff]  ;;  %v1737_v9 = vld [vmem:[%s2114_s0 + $0x38] sm:$0xff]  ;;  %v242_v12 = vpack.c.bf16 %v1715_v4, %v1708_v2  ;;  %s1647_s0 = smov 122   ;;  %s1649_s25 = smov 115   ;;  %vm864_vm1 = vcmask 588800  }
  0x15   :  { %1394 = vrot.lane.b32.xlu0 %v1393_v3, %s1644_s17  ;;  %1404 = vrot.lane.b32.xlu1 %v1393_v3, %s1645_s18  ;;  %v1413_v10 = vpack.i.bf16 %v1725_v6, %v1720_v5  ;;  %v243_v13 = vpack.c.bf16 %v1725_v6, %v1720_v5  ;;  %v1428_v14 = vpack.i.bf16 %v1737_v9, %v1732_v8  ;;  %s1650_s26 = smov 120   ;;  %v1557_v16 = vld [vmem:[%s2116_s2 + $0x4] ss:$20 sps:$4 sm:$0xff]   ;;  %v1560_v17 = vld [vmem:[%s2116_s2 + $0xc] ss:$20 sps:$4 sm:$0xff]   ;;  %s1651_s6 = smov 114  }
  0x16   :  { %v244_v15 = vpack.c.bf16 %v1737_v9, %v1732_v8  ;;  %582 = vmatprep.mubr.bf16.mxu0 %v1557_v16  ;;  %679 = vmatprep.mubr.bf16.mxu1 %v1560_v17 }
  0x19   :  { %1399 = vrot.lane.b32.xlu0 %v1398_v7, %s1644_s17  ;;  %1409 = vrot.lane.b32.xlu1 %v1393_v3, %s1646_s23 }
  0x1d   :  { %1414 = vrot.lane.b32.xlu0 %v1413_v10, %s1644_s17  ;;  %1419 = vrot.lane.b32.xlu1 %v1398_v7, %s1645_s18 }
  0x21   :  { %1424 = vrot.lane.b32.xlu0 %v1398_v7, %s1646_s23  ;;  %1429 = vrot.lane.b32.xlu1 %v1428_v14, %s1644_s17 }
  0x25   :  { %1434 = vrot.lane.b32.xlu0 %v1413_v10, %s1645_s18  ;;  %1439 = vrot.lane.b32.xlu1 %v1413_v10, %s1646_s23 }
  0x29   :  { %1444 = vrot.lane.b32.xlu0 %v1393_v3, %s1647_s0  ;;  %1449 = vrot.lane.b32.xlu1 %v1428_v14, %s1645_s18 }
  0x2d   :  { %1454 = vrot.lane.b32.xlu0 %v1393_v3, %s1648_s24  ;;  %1459 = vrot.lane.b32.xlu1 %v1428_v14, %s1646_s23 }
  0x31   :  { %1464 = vrot.lane.b32.xlu0 %v1398_v7, %s1647_s0  ;;  %1469 = vrot.lane.b32.xlu1 %v1393_v3, %s1649_s25 }
  0x35   :  { %1474 = vrot.lane.b32.xlu0 %v1398_v7, %s1648_s24  ;;  %1479 = vrot.lane.b32.xlu1 %v1393_v3, %s1650_s26 }
  0x39   :  { %1484 = vrot.lane.b32.xlu0 %v1413_v10, %s1647_s0  ;;  %1489 = vrot.lane.b32.xlu1 %v1398_v7, %s1649_s25 }
  0x3d   :  { %1494 = vrot.lane.b32.xlu0 %v1413_v10, %s1648_s24  ;;  %1499 = vrot.lane.b32.xlu1 %v1398_v7, %s1650_s26 }
  0x41   :  { %1504 = vrot.lane.b32.xlu0 %v1428_v14, %s1647_s0  ;;  %1509 = vrot.lane.b32.xlu1 %v1413_v10, %s1649_s25 }
  0x45   :  { %1514 = vrot.lane.b32.xlu0 %v1428_v14, %s1648_s24  ;;  %1519 = vrot.lane.b32.xlu1 %v1413_v10, %s1650_s26 }
  0x49   :  { %1524 = vrot.lane.b32.xlu0 %v1428_v14, %s1649_s25  ;;  %1529 = vrot.lane.b32.xlu1 %v1428_v14, %s1650_s26 }
  0x4d   :  { %1534 = vrot.lane.b32.xlu0 %v1393_v3, %s1651_s6  ;;  %1539 = vrot.lane.b32.xlu1 %v1398_v7, %s1651_s6 }
  0x51   :  { %1544 = vrot.lane.b32.xlu0 %v1413_v10, %s1651_s6  ;;  %1549 = vrot.lane.b32.xlu1 %v1428_v14, %s1651_s6 }
  0x87   :  { %v1395_v18 = vpop.permute.xlu0 %1394  ;;  %v1405_v19 = vpop.permute.xlu1 %1404 }
  0x88   :  { %v1397_v20 = vunpack.i.h.bf16 %v1395_v18  ;;  %v1396_v21 = vunpack.i.l.bf16 %v1395_v18  ;;  %v1407_v22 = vunpack.i.h.bf16 %v1405_v19  ;;  %v1406_v23 = vunpack.i.l.bf16 %v1405_v19 }
  0x8a   :  { %v249_v24 = vpack.c.bf16 %v1397_v20, %v1396_v21  ;;  %v265_v25 = vpack.c.bf16 %v1407_v22, %v1406_v23 }
  0x8b   :  { %v1400_v26 = vpop.permute.xlu0 %1399  ;;  %v1410_v27 = vpop.permute.xlu1 %1409 }
  0x8c   :  { %v1402_v28 = vunpack.i.h.bf16 %v1400_v26  ;;  %v1401_v29 = vunpack.i.l.bf16 %v1400_v26  ;;  %v1412_v30 = vunpack.i.h.bf16 %v1410_v27  ;;  %v1411_v31 = vunpack.i.l.bf16 %v1410_v27  ;;  %1211 = vmatprep.subr.bf16.mxu0 %v249_v24  ;;  %1275 = vmatprep.subr.bf16.mxu1 %v265_v25 }
  0x8d   :  { %1212 = vmatpush3.bf16.msra.mxu0 %v241_v11 }
  0x8e   :  { %v250_v32 = vpack.c.bf16 %v1402_v28, %v1401_v29  ;;  %v257_v33 = vpack.c.bf16 %v1412_v30, %v1411_v31 }
  0x8f   :  { %v1415_v34 = vpop.permute.xlu0 %1414  ;;  %v1420_v35 = vpop.permute.xlu1 %1419 }
  0x90   :  { %v1417_v36 = vunpack.i.h.bf16 %v1415_v34  ;;  %v1416_v37 = vunpack.i.l.bf16 %v1415_v34  ;;  %v1422_v38 = vunpack.i.h.bf16 %v1420_v35  ;;  %v1421_v39 = vunpack.i.l.bf16 %v1420_v35  ;;  %1213 = vmatprep.subr.bf16.mxu0 %v250_v32  ;;  %1276 = vmatpush3.bf16.msra.mxu1 %v257_v33 }
  0x91   :  { %1214 = vmatpush3.bf16.msra.mxu0 %v242_v12 }
  0x92   :  { %v251_v40 = vpack.c.bf16 %v1417_v36, %v1416_v37  ;;  %v266_v41 = vpack.c.bf16 %v1422_v38, %v1421_v39 }
  0x93   :  { %v1425_v42 = vpop.permute.xlu0 %1424  ;;  %v1430_v43 = vpop.permute.xlu1 %1429 }
  0x94   :  { %v1427_v44 = vunpack.i.h.bf16 %v1425_v42  ;;  %v1426_v45 = vunpack.i.l.bf16 %v1425_v42  ;;  %v1432_v46 = vunpack.i.h.bf16 %v1430_v43  ;;  %v1431_v47 = vunpack.i.l.bf16 %v1430_v43  ;;  %1215 = vmatprep.subr.bf16.mxu0 %v251_v40  ;;  %1277 = vmatprep.subr.bf16.mxu1 %v266_v41 }
  0x95   :  { %1216 = vmatpush3.bf16.msra.mxu0 %v243_v13 }
  0x96   :  { %v258_v48 = vpack.c.bf16 %v1427_v44, %v1426_v45  ;;  %v252_v49 = vpack.c.bf16 %v1432_v46, %v1431_v47 }
  0x97   :  { %v1435_v50 = vpop.permute.xlu0 %1434  ;;  %v1440_v51 = vpop.permute.xlu1 %1439 }
  0x98   :  { %v1437_v52 = vunpack.i.h.bf16 %v1435_v50  ;;  %v1436_v53 = vunpack.i.l.bf16 %v1435_v50  ;;  %v1442_v54 = vunpack.i.h.bf16 %v1440_v51  ;;  %v1441_v55 = vunpack.i.l.bf16 %v1440_v51  ;;  %1278 = vmatpush3.bf16.msra.mxu1 %v258_v48  ;;  %1217 = vmatprep.subr.bf16.mxu0 %v252_v49 }
  0x99   :  { %1218 = vmatpush3.bf16.msra.mxu0 %v244_v15 }
  0x9a   :  { %v267_v56 = vpack.c.bf16 %v1437_v52, %v1436_v53  ;;  %v259_v57 = vpack.c.bf16 %v1442_v54, %v1441_v55 }
  0x9b   :  { %v1445_v58 = vpop.permute.xlu0 %1444  ;;  %v1450_v59 = vpop.permute.xlu1 %1449 }
  0x9c   :  { %v1447_v60 = vunpack.i.h.bf16 %v1445_v58  ;;  %v1446_v61 = vunpack.i.l.bf16 %v1445_v58  ;;  %v1452_v62 = vunpack.i.h.bf16 %v1450_v59  ;;  %v1451_v63 = vunpack.i.l.bf16 %v1450_v59  ;;  %1279 = vmatprep.subr.bf16.mxu1 %v267_v56 }
  0x9d   :  { %1280 = vmatpush3.bf16.msra.mxu1 %v259_v57 }
  0x9e   :  { %v253_v0 = vpack.c.bf16 %v1447_v60, %v1446_v61  ;;  %v268_v1 = vpack.c.bf16 %v1452_v62, %v1451_v63  ;;  %v1555_v60 = vld [vmem:[%s2116_s2] ss:$20 sps:$4 sm:$0xff]  }
  0x9f   :  { %v1455_v2 = vpop.permute.xlu0 %1454  ;;  %v1460_v3 = vpop.permute.xlu1 %1459 }
  0xa0   :  { %v1457_v4 = vunpack.i.h.bf16 %v1455_v2  ;;  %v1456_v5 = vunpack.i.l.bf16 %v1455_v2  ;;  %v1462_v6 = vunpack.i.h.bf16 %v1460_v3  ;;  %v1461_v7 = vunpack.i.l.bf16 %v1460_v3  ;;  %1219 = vmatprep.subr.bf16.mxu0 %v253_v0  ;;  %1281 = vmatprep.subr.bf16.mxu1 %v268_v1  ;;  %v1561_v1 = vld [vmem:[%s2116_s2 + $0x2c] ss:$20 sps:$4 sm:$0xff]  }
  0xa2   :  { %v245_v8 = vpack.c.bf16 %v1457_v4, %v1456_v5  ;;  %v260_v9 = vpack.c.bf16 %v1462_v6, %v1461_v7 }
  0xa3   :  { %v1465_v10 = vpop.permute.xlu0 %1464  ;;  %v1470_v11 = vpop.permute.xlu1 %1469 }
  0xa4   :  { %v1467_v12 = vunpack.i.h.bf16 %v1465_v10  ;;  %v1466_v13 = vunpack.i.l.bf16 %v1465_v10  ;;  %v1472_v14 = vunpack.i.h.bf16 %v1470_v11  ;;  %v1471_v15 = vunpack.i.l.bf16 %v1470_v11  ;;  %1220 = vmatpush3.bf16.msra.mxu0 %v245_v8  ;;  %1282 = vmatpush3.bf16.msra.mxu1 %v260_v9  ;;  %v1558_v8 = vld [vmem:[%s2116_s2 + $0x8] ss:$20 sps:$4 sm:$0xff]  }
  0xa6   :  { %v254_v16 = vpack.c.bf16 %v1467_v12, %v1466_v13  ;;  %v269_v17 = vpack.c.bf16 %v1472_v14, %v1471_v15  ;;  %v1564_v12 = vld [vmem:[%s2116_s2 + $0x34] ss:$20 sps:$4 sm:$0xff]  }
  0xa7   :  { %v1475_v18 = vpop.permute.xlu0 %1474  ;;  %v1480_v19 = vpop.permute.xlu1 %1479  ;;  %v1563_v13 = vld [vmem:[%s2116_s2 + $0x28] ss:$20 sps:$4 sm:$0xff]  }
  0xa8   :  { %v1477_v20 = vunpack.i.h.bf16 %v1475_v18  ;;  %v1476_v21 = vunpack.i.l.bf16 %v1475_v18  ;;  %v1482_v22 = vunpack.i.h.bf16 %v1480_v19  ;;  %v1481_v23 = vunpack.i.l.bf16 %v1480_v19  ;;  %1221 = vmatprep.subr.bf16.mxu0 %v254_v16  ;;  %1283 = vmatprep.subr.bf16.mxu1 %v269_v17  ;;  %v1567_v17 = vld [vmem:[%s2116_s2 + $0x54] ss:$20 sps:$4 sm:$0xff]  }
  0xaa   :  { %v246_v24 = vpack.c.bf16 %v1477_v20, %v1476_v21  ;;  %v261_v25 = vpack.c.bf16 %v1482_v22, %v1481_v23  ;;  %v1566_v23 = vld [vmem:[%s2116_s2 + $0x30] ss:$20 sps:$4 sm:$0xff]  }
  0xab   :  { %v1485_v26 = vpop.permute.xlu0 %1484  ;;  %v1490_v27 = vpop.permute.xlu1 %1489 }
  0xac   :  { %v1487_v28 = vunpack.i.h.bf16 %v1485_v26  ;;  %v1486_v29 = vunpack.i.l.bf16 %v1485_v26  ;;  %v1492_v30 = vunpack.i.h.bf16 %v1490_v27  ;;  %v1491_v31 = vunpack.i.l.bf16 %v1490_v27  ;;  %1222 = vmatpush3.bf16.msra.mxu0 %v246_v24  ;;  %1284 = vmatpush3.bf16.msra.mxu1 %v261_v25  ;;  %v1570_v24 = vld [vmem:[%s2116_s2 + $0x5c] ss:$20 sps:$4 sm:$0xff]  }
  0xad   :  { %v1569_v26 = vld [vmem:[%s2116_s2 + $0x50] ss:$20 sps:$4 sm:$0xff]  }
  0xae   :  { %v255_v32 = vpack.c.bf16 %v1487_v28, %v1486_v29  ;;  %v270_v33 = vpack.c.bf16 %v1492_v30, %v1491_v31  ;;  %v1573_v27 = vld [vmem:[%s2116_s2 + $0x7c] ss:$20 sps:$4 sm:$0xff]   ;;  %v1572_v28 = vld [vmem:[%s2116_s2 + $0x58] ss:$20 sps:$4 sm:$0xff]  }
  0xaf   :  { %v1495_v34 = vpop.permute.xlu0 %1494  ;;  %v1500_v35 = vpop.permute.xlu1 %1499  ;;  %v1576_v29 = vld [vmem:[%s2116_s2 + $0x84] ss:$20 sps:$4 sm:$0xff]  }
  0xb0   :  { %v1497_v36 = vunpack.i.h.bf16 %v1495_v34  ;;  %v1496_v37 = vunpack.i.l.bf16 %v1495_v34  ;;  %v1502_v38 = vunpack.i.h.bf16 %v1500_v35  ;;  %v1501_v39 = vunpack.i.l.bf16 %v1500_v35  ;;  %1223 = vmatprep.subr.bf16.mxu0 %v255_v32  ;;  %1285 = vmatprep.subr.bf16.mxu1 %v270_v33  ;;  %v1575_v30 = vld [vmem:[%s2116_s2 + $0x78] ss:$20 sps:$4 sm:$0xff]   ;;  %v1578_v32 = vld [vmem:[%s2116_s2 + $0x80] ss:$20 sps:$4 sm:$0xff]  }
  0xb1   :  { %v1579_v31 = vld [vmem:[%s2116_s2 + $0xa4] ss:$20 sps:$4 sm:$0xff]   ;;  %v1582_v33 = vld [vmem:[%s2116_s2 + $0xac] ss:$20 sps:$4 sm:$0xff]  }
  0xb2   :  { %v247_v40 = vpack.c.bf16 %v1497_v36, %v1496_v37  ;;  %v262_v41 = vpack.c.bf16 %v1502_v38, %v1501_v39  ;;  %v1581_v34 = vld [vmem:[%s2116_s2 + $0xa0] ss:$20 sps:$4 sm:$0xff]   ;;  %v1584_v36 = vld [vmem:[%s2116_s2 + $0xa8] ss:$20 sps:$4 sm:$0xff]  }
  0xb3   :  { %v1505_v42 = vpop.permute.xlu0 %1504  ;;  %v1510_v43 = vpop.permute.xlu1 %1509  ;;  %v1585_v35 = vld [vmem:[%s2116_s2 + $0xcc] ss:$20 sps:$4 sm:$0xff]   ;;  %v1588_v37 = vld [vmem:[%s2116_s2 + $0xd4] ss:$20 sps:$4 sm:$0xff]  }
  0xb4   :  { %v1507_v44 = vunpack.i.h.bf16 %v1505_v42  ;;  %v1506_v45 = vunpack.i.l.bf16 %v1505_v42  ;;  %v1512_v46 = vunpack.i.h.bf16 %v1510_v43  ;;  %v1511_v47 = vunpack.i.l.bf16 %v1510_v43  ;;  %1224 = vmatpush3.bf16.msra.mxu0 %v247_v40  ;;  %1286 = vmatpush3.bf16.msra.mxu1 %v262_v41  ;;  %v1587_v38 = vld [vmem:[%s2116_s2 + $0xc8] ss:$20 sps:$4 sm:$0xff]   ;;  %v1590_v40 = vld [vmem:[%s2116_s2 + $0xd0] ss:$20 sps:$4 sm:$0xff]  }
  0xb5   :  { %v1591_v39 = vld [vmem:[%s2116_s2 + $0xf4] ss:$20 sps:$4 sm:$0xff]   ;;  %v1594_v41 = vld [vmem:[%s2116_s2 + $0xfc] ss:$20 sps:$4 sm:$0xff]  }
  0xb6   :  { %v256_v48 = vpack.c.bf16 %v1507_v44, %v1506_v45  ;;  %v271_v49 = vpack.c.bf16 %v1512_v46, %v1511_v47  ;;  %v1593_v42 = vld [vmem:[%s2116_s2 + $0xf0] ss:$20 sps:$4 sm:$0xff]   ;;  %v1596_v44 = vld [vmem:[%s2116_s2 + $0xf8] ss:$20 sps:$4 sm:$0xff]  }
  0xb7   :  { %v1515_v50 = vpop.permute.xlu0 %1514  ;;  %v1520_v51 = vpop.permute.xlu1 %1519  ;;  %v1597_v43 = vld [vmem:[%s2116_s2 + $0x11c] ss:$20 sps:$4 sm:$0xff]   ;;  %v1600_v45 = vld [vmem:[%s2116_s2 + $0x124] ss:$20 sps:$4 sm:$0xff]  }
  0xb8   :  { %v1517_v52 = vunpack.i.h.bf16 %v1515_v50  ;;  %v1516_v53 = vunpack.i.l.bf16 %v1515_v50  ;;  %v1522_v54 = vunpack.i.h.bf16 %v1520_v51  ;;  %v1521_v55 = vunpack.i.l.bf16 %v1520_v51  ;;  %1225 = vmatprep.subr.bf16.mxu0 %v256_v48  ;;  %1287 = vmatprep.subr.bf16.mxu1 %v271_v49  ;;  %v1599_v46 = vld [vmem:[%s2116_s2 + $0x118] ss:$20 sps:$4 sm:$0xff]   ;;  %v1603_v47 = vld [vmem:[%s2116_s2 + $0x10] ss:$20 sps:$4 sm:$0xff]   ;;  %v1602_v48 = vld [vmem:[%s2116_s2 + $0x120] ss:$20 sps:$4 sm:$0xff]  }
  0xb9   :  { %v1605_v49 = vld [vmem:[%s2116_s2 + $0xb0] ss:$20 sps:$4 sm:$0xff]   ;;  %v1604_v50 = vld [vmem:[%s2116_s2 + $0x38] ss:$20 sps:$4 sm:$0xff]   ;;  %v1607_v51 = vld [vmem:[%s2116_s2 + $0x60] ss:$20 sps:$4 sm:$0xff]  }
  0xba   :  { %v248_v56 = vpack.c.bf16 %v1517_v52, %v1516_v53  ;;  %v263_v57 = vpack.c.bf16 %v1522_v54, %v1521_v55  ;;  %v1606_v52 = vld [vmem:[%s2116_s2 + $0xd8] ss:$20 sps:$4 sm:$0xff]   ;;  %v1609_v53 = vld [vmem:[%s2116_s2 + $0x100] ss:$20 sps:$4 sm:$0xff]   ;;  %v1608_v54 = vld [vmem:[%s2116_s2 + $0x88] ss:$20 sps:$4 sm:$0xff]  }
  0xbb   :  { %v1525_v58 = vpop.permute.xlu0 %1524  ;;  %v1530_v59 = vpop.permute.xlu1 %1529  ;;  %v1610_v55 = vld [vmem:[%s2116_s2 + $0x128] ss:$20 sps:$4 sm:$0xff]  }
  0xbc   :  { %v1527_v61 = vunpack.i.h.bf16 %v1525_v58  ;;  %v1526_v62 = vunpack.i.l.bf16 %v1525_v58  ;;  %v1532_v63 = vunpack.i.h.bf16 %v1530_v59  ;;  %v1531_v0 = vunpack.i.l.bf16 %v1530_v59  ;;  %1226 = vmatpush3.bf16.msra.mxu0 %v248_v56  ;;  %1288 = vmatpush3.bf16.msra.mxu1 %v263_v57 }
  0xbe   :  { %v272_v2 = vpack.c.bf16 %v1527_v61, %v1526_v62  ;;  %v264_v3 = vpack.c.bf16 %v1532_v63, %v1531_v0 }
  0xbf   :  { %v1535_v4 = vpop.permute.xlu0 %1534  ;;  %583 = vmatmul.mubr.bf16.vlgmr.msra.gmra.mrb[0].mxu0 %v1555_v60  ;;  %v1540_v5 = vpop.permute.xlu1 %1539 }
  0xc0   :  { %v1537_v6 = vunpack.i.h.bf16 %v1535_v4  ;;  %v1536_v7 = vunpack.i.l.bf16 %v1535_v4  ;;  %1289 = vmatprep.subr.bf16.mxu1 %v272_v2  ;;  %590 = vmatprep.mubr.bf16.mxu0 %v1561_v1  ;;  %v1542_v9 = vunpack.i.h.bf16 %v1540_v5  ;;  %v1541_v10 = vunpack.i.l.bf16 %v1540_v5 }
  0xc1   :  { %1290 = vmatpush3.bf16.msra.mxu1 %v264_v3 }
  0xc2   :  { %v273_v11 = vpack.c.bf16 %v1537_v6, %v1536_v7  ;;  %v274_v14 = vpack.c.bf16 %v1542_v9, %v1541_v10 }
  0xc3   :  { %v1545_v15 = vpop.permute.xlu0 %1544  ;;  %v1550_v16 = vpop.permute.xlu1 %1549 }
  0xc4   :  { %680 = vmatmul.mubr.bf16.vlgmr.msra.gmra.mrb[0].mxu1 %v1558_v8  ;;  %1351 = vmatprep.subr.bf16.mxu0 %v273_v11  ;;  %v1547_v18 = vunpack.i.h.bf16 %v1545_v15  ;;  %v1546_v19 = vunpack.i.l.bf16 %v1545_v15  ;;  %v1552_v21 = vunpack.i.h.bf16 %v1550_v16  ;;  %v1551_v22 = vunpack.i.l.bf16 %v1550_v16 }
  0xc5   :  { %1375 = vmatprep.subr.bf16.mxu1 %v273_v11  ;;  %1352 = vmatpush3.bf16.msra.mxu0 %v273_v11 }
  0xc6   :  { %1379 = vmatpush3.bf16.msra.mxu1 %v273_v11  ;;  %687 = vmatprep.mubr.bf16.mxu1 %v1564_v12  ;;  %v275_v20 = vpack.c.bf16 %v1547_v18, %v1546_v19  ;;  %v276_v25 = vpack.c.bf16 %v1552_v21, %v1551_v22 }
  0xc7   :  { %591 = vmatmul.mubr.bf16.gmra.mrb[4].mxu0 %v1563_v13  ;;  %1353 = vmatprep.subr.bf16.mxu0 %v274_v14 }
  0xc8   :  { %598 = vmatprep.mubr.bf16.mxu0 %v1567_v17  ;;  %1376 = vmatprep.subr.bf16.mxu1 %v274_v14 }
  0xc9   :  { %1354 = vmatpush3.bf16.msra.mxu0 %v274_v14 }
  0xca   :  { %1380 = vmatpush3.bf16.msra.mxu1 %v274_v14  ;;  %1355 = vmatprep.subr.bf16.mxu0 %v275_v20 }
  0xcb   :  { %1377 = vmatprep.subr.bf16.mxu1 %v275_v20 }
  0xcc   :  { %688 = vmatmul.mubr.bf16.gmra.mrb[4].mxu1 %v1566_v23 }
  0xcd   :  { %695 = vmatprep.mubr.bf16.mxu1 %v1570_v24  ;;  %1356 = vmatpush3.bf16.msra.mxu0 %v275_v20 }
  0xce   :  { %1381 = vmatpush3.bf16.msra.mxu1 %v275_v20  ;;  %1357 = vmatprep.subr.bf16.mxu0 %v276_v25 }
  0xcf   :  { %599 = vmatmul.mubr.bf16.gmra.mrb[8].mxu0 %v1569_v26  ;;  %1378 = vmatprep.subr.bf16.mxu1 %v276_v25 }
  0xd0   :  { %606 = vmatprep.mubr.bf16.mxu0 %v1573_v27 }
  0xd1   :  { %1358 = vmatpush3.bf16.msra.mxu0 %v276_v25 }
  0xd2   :  { %1382 = vmatpush3.bf16.msra.mxu1 %v276_v25 }
  0xd4   :  { %696 = vmatmul.mubr.bf16.gmra.mrb[8].mxu1 %v1572_v28 }
  0xd5   :  { %703 = vmatprep.mubr.bf16.mxu1 %v1576_v29 }
  0xd7   :  { %607 = vmatmul.mubr.bf16.gmra.mrb[12].mxu0 %v1575_v30 }
  0xd8   :  { %614 = vmatprep.mubr.bf16.mxu0 %v1579_v31 }
  0xdc   :  { %704 = vmatmul.mubr.bf16.gmra.mrb[12].mxu1 %v1578_v32 }
  0xdd   :  { %711 = vmatprep.mubr.bf16.mxu1 %v1582_v33 }
  0xdf   :  { %615 = vmatmul.mubr.bf16.gmra.mrb[16].mxu0 %v1581_v34 }
  0xe0   :  { %622 = vmatprep.mubr.bf16.mxu0 %v1585_v35 }
  0xe4   :  { %712 = vmatmul.mubr.bf16.gmra.mrb[16].mxu1 %v1584_v36 }
  0xe5   :  { %719 = vmatprep.mubr.bf16.mxu1 %v1588_v37 }
  0xe7   :  { %623 = vmatmul.mubr.bf16.gmra.mrb[20].mxu0 %v1587_v38 }
  0xe8   :  { %630 = vmatprep.mubr.bf16.mxu0 %v1591_v39 }
  0xec   :  { %720 = vmatmul.mubr.bf16.gmra.mrb[20].mxu1 %v1590_v40 }
  0xed   :  { %727 = vmatprep.mubr.bf16.mxu1 %v1594_v41 }
  0xef   :  { %631 = vmatmul.mubr.bf16.gmra.mrb[24].mxu0 %v1593_v42 }
  0xf0   :  { %638 = vmatprep.mubr.bf16.mxu0 %v1597_v43 }
  0xf4   :  { %728 = vmatmul.mubr.bf16.gmra.mrb[24].mxu1 %v1596_v44 }
  0xf5   :  { %735 = vmatprep.mubr.bf16.mxu1 %v1600_v45 }
  0xf7   :  { %639 = vmatmul.mubr.bf16.gmra.mrb[28].mxu0 %v1599_v46 }
  0xf8   :  { %1359 = vmatprep.mubr.msk.bf16.mxu0 %vm525_vm0, %v1603_v47 }
  0xfc   :  { %736 = vmatmul.mubr.bf16.gmra.mrb[28].mxu1 %v1602_v48 }
  0xfd   :  { %1367 = vmatprep.mubr.msk.bf16.mxu1 %vm525_vm0, %v1605_v49 }
  0xff   :  { %1360 = vmatmul.mubr.msk.bf16.vlgmr.msra.gmra.mrb[32].mxu0 %vm525_vm0, %v1604_v50 }
 0x100   :  { %1363 = vmatprep.mubr.msk.bf16.mxu0 %vm525_vm0, %v1607_v51 }
 0x104   :  { %1368 = vmatmul.mubr.msk.bf16.vlgmr.msra.gmra.mrb[32].mxu1 %vm525_vm0, %v1606_v52 }
 0x105   :  { %1371 = vmatprep.mubr.msk.bf16.mxu1 %vm525_vm0, %v1609_v53 }
 0x107   :  { %1364 = vmatmul.mubr.msk.bf16.gmra.mrb[36].mxu0 %vm525_vm0, %v1608_v54 }
 0x10c   :  { %1372 = vmatmul.mubr.msk.bf16.gmra.mrb[36].mxu1 %vm525_vm0, %v1610_v55 }
 0x192   :  { %v1227_v56 = vpop.f32.mrb[0].mxu0 }
 0x193   :  { %v1228_v57 = vpop.f32.mrb[1].mxu0 }
 0x194   :  { %v1229_v58 = vadd.f32 %v1228_v57, %v1227_v56  ;;  %v1230_v59 = vpop.f32.mrb[2].mxu0 }
 0x195   :  { %v1231_v60 = vpop.f32.mrb[3].mxu0 }
 0x196   :  { %v1232_v61 = vadd.f32 %v1231_v60, %v1230_v59 }
 0x197   :  { %v1291_v62 = vpop.f32.mrb[0].mxu1 }
 0x198   :  { %v1292_v63 = vpop.f32.mrb[1].mxu1 }
 0x199   :  { %v1293_v0 = vadd.f32 %v1292_v63, %v1291_v62  ;;  %v1294_v1 = vpop.f32.mrb[2].mxu1 }
 0x19a   :  { %v1295_v2 = vpop.f32.mrb[3].mxu1  ;;  %v1233_v3 = vpop.f32.mrb[4].mxu0 }
 0x19b   :  { %v1296_v4 = vadd.f32 %v1295_v2, %v1294_v1  ;;  %v1234_v5 = vpop.f32.mrb[5].mxu0  ;;  %v1888_v6 = vadd.f32 %v1293_v0, %v1229_v58 }
 0x19c   :  { %v1235_v7 = vadd.f32 %v1234_v5, %v1233_v3  ;;  %v1236_v8 = vpop.f32.mrb[6].mxu0 }
 0x19d   :  { %v1237_v9 = vpop.f32.mrb[7].mxu0  ;;  %v1890_v10 = vadd.f32 %v1296_v4, %v1232_v61 }
 0x19e   :  { %v1238_v11 = vadd.f32 %v1237_v9, %v1236_v8 }
 0x19f   :  { %v1297_v12 = vpop.f32.mrb[4].mxu1 }
 0x1a0   :  { %v1298_v13 = vpop.f32.mrb[5].mxu1 }
 0x1a1   :  { %v1299_v14 = vadd.f32 %v1298_v13, %v1297_v12  ;;  %v1300_v15 = vpop.f32.mrb[6].mxu1 }
 0x1a2   :  { %v1301_v16 = vpop.f32.mrb[7].mxu1  ;;  %v1239_v17 = vpop.f32.mrb[8].mxu0 }
 0x1a3   :  { %v1302_v18 = vadd.f32 %v1301_v16, %v1300_v15  ;;  %v1240_v19 = vpop.f32.mrb[9].mxu0  ;;  %v1892_v20 = vadd.f32 %v1299_v14, %v1235_v7 }
 0x1a4   :  { %v1241_v21 = vadd.f32 %v1240_v19, %v1239_v17  ;;  %v1242_v22 = vpop.f32.mrb[10].mxu0 }
 0x1a5   :  { %v1243_v23 = vpop.f32.mrb[11].mxu0  ;;  %v1894_v24 = vadd.f32 %v1302_v18, %v1238_v11 }
 0x1a6   :  { %v1244_v25 = vadd.f32 %v1243_v23, %v1242_v22 }
 0x1a7   :  { %v1303_v26 = vpop.f32.mrb[8].mxu1 }
 0x1a8   :  { %v1304_v27 = vpop.f32.mrb[9].mxu1 }
 0x1a9   :  { %v1305_v28 = vadd.f32 %v1304_v27, %v1303_v26  ;;  %v1306_v29 = vpop.f32.mrb[10].mxu1 }
 0x1aa   :  { %v1307_v30 = vpop.f32.mrb[11].mxu1  ;;  %v1245_v31 = vpop.f32.mrb[12].mxu0 }
 0x1ab   :  { %v1308_v32 = vadd.f32 %v1307_v30, %v1306_v29  ;;  %v1246_v33 = vpop.f32.mrb[13].mxu0  ;;  %v1896_v34 = vadd.f32 %v1305_v28, %v1241_v21 }
 0x1ac   :  { %v1247_v35 = vadd.f32 %v1246_v33, %v1245_v31  ;;  %v1248_v36 = vpop.f32.mrb[14].mxu0 }
 0x1ad   :  { %v1249_v37 = vpop.f32.mrb[15].mxu0  ;;  %v1898_v38 = vadd.f32 %v1308_v32, %v1244_v25 }
 0x1ae   :  { %v1250_v39 = vadd.f32 %v1249_v37, %v1248_v36 }
 0x1af   :  { %v1309_v40 = vpop.f32.mrb[12].mxu1 }
 0x1b0   :  { %v1310_v41 = vpop.f32.mrb[13].mxu1 }
 0x1b1   :  { %v1311_v42 = vadd.f32 %v1310_v41, %v1309_v40  ;;  %v1312_v43 = vpop.f32.mrb[14].mxu1 }
 0x1b2   :  { %v1313_v44 = vpop.f32.mrb[15].mxu1  ;;  %v1251_v45 = vpop.f32.mrb[16].mxu0 }
 0x1b3   :  { %v1314_v46 = vadd.f32 %v1313_v44, %v1312_v43  ;;  %v1252_v47 = vpop.f32.mrb[17].mxu0  ;;  %v1900_v48 = vadd.f32 %v1311_v42, %v1247_v35  ;;  %v1904_v44 = vld [vmem:[#allocation2] ss:$0 sm:$0xff] }
 0x1b4   :  { %v1253_v49 = vadd.f32 %v1252_v47, %v1251_v45  ;;  %v1254_v50 = vpop.f32.mrb[18].mxu0 }
 0x1b5   :  { %v1255_v51 = vpop.f32.mrb[19].mxu0  ;;  %v1902_v52 = vadd.f32 %v1314_v46, %v1250_v39 }
 0x1b6   :  { %v1256_v53 = vadd.f32 %v1255_v51, %v1254_v50 }
 0x1b7   :  { %v1315_v54 = vpop.f32.mrb[16].mxu1 }
 0x1b8   :  { %v1316_v55 = vpop.f32.mrb[17].mxu1 }
 0x1b9   :  { %v1317_v56 = vadd.f32 %v1316_v55, %v1315_v54  ;;  %v1318_v57 = vpop.f32.mrb[18].mxu1 }
 0x1ba   :  { %v1319_v58 = vpop.f32.mrb[19].mxu1  ;;  %v1257_v59 = vpop.f32.mrb[20].mxu0 }
 0x1bb   :  { %v1320_v60 = vadd.f32 %v1319_v58, %v1318_v57  ;;  %v1258_v61 = vpop.f32.mrb[21].mxu0  ;;  %v714_v62 = vadd.f32 %v1317_v56, %v1253_v49 }
 0x1bc   :  { %v1259_v63 = vadd.f32 %v1258_v61, %v1257_v59  ;;  %v1260_v0 = vpop.f32.mrb[22].mxu0 }
 0x1bd   :  { %v1261_v1 = vpop.f32.mrb[23].mxu0  ;;  %v717_v2 = vadd.f32 %v1320_v60, %v1256_v53 }
 0x1be   :  { %v1262_v3 = vadd.f32 %v1261_v1, %v1260_v0 }
 0x1bf   :  { %v1321_v4 = vpop.f32.mrb[20].mxu1 }
 0x1c0   :  { %v1322_v5 = vpop.f32.mrb[21].mxu1 }
 0x1c1   :  { %v1323_v7 = vadd.f32 %v1322_v5, %v1321_v4  ;;  %v1324_v8 = vpop.f32.mrb[22].mxu1 }
 0x1c2   :  { %v1325_v9 = vpop.f32.mrb[23].mxu1  ;;  %v1263_v11 = vpop.f32.mrb[24].mxu0 }
 0x1c3   :  { %v1326_v12 = vadd.f32 %v1325_v9, %v1324_v8  ;;  %v1264_v13 = vpop.f32.mrb[25].mxu0  ;;  %v722_v14 = vadd.f32 %v1323_v7, %v1259_v63 }
 0x1c4   :  { %v1265_v15 = vadd.f32 %v1264_v13, %v1263_v11  ;;  %v1266_v16 = vpop.f32.mrb[26].mxu0 }
 0x1c5   :  { %v1267_v17 = vpop.f32.mrb[27].mxu0  ;;  %v725_v18 = vadd.f32 %v1326_v12, %v1262_v3 }
 0x1c6   :  { %v1268_v19 = vadd.f32 %v1267_v17, %v1266_v16 }
 0x1c7   :  { %v1327_v21 = vpop.f32.mrb[24].mxu1 }
 0x1c8   :  { %v1328_v22 = vpop.f32.mrb[25].mxu1 }
 0x1c9   :  { %v1329_v23 = vadd.f32 %v1328_v22, %v1327_v21  ;;  %v1330_v25 = vpop.f32.mrb[26].mxu1 }
 0x1ca   :  { %v1331_v26 = vpop.f32.mrb[27].mxu1  ;;  %v1269_v27 = vpop.f32.mrb[28].mxu0 }
 0x1cb   :  { %v1332_v28 = vadd.f32 %v1331_v26, %v1330_v25  ;;  %v1270_v29 = vpop.f32.mrb[29].mxu0  ;;  %v730_v30 = vadd.f32 %v1329_v23, %v1265_v15 }
 0x1cc   :  { %v1271_v31 = vadd.f32 %v1270_v29, %v1269_v27  ;;  %v1272_v32 = vpop.f32.mrb[30].mxu0 }
 0x1cd   :  { %v1273_v33 = vpop.f32.mrb[31].mxu0  ;;  %v733_v35 = vadd.f32 %v1332_v28, %v1268_v19 }
 0x1ce   :  { %v1274_v36 = vadd.f32 %v1273_v33, %v1272_v32 }
 0x1cf   :  { %v1333_v37 = vpop.f32.mrb[28].mxu1 }
 0x1d0   :  { %v1334_v39 = vpop.f32.mrb[29].mxu1 }
 0x1d1   :  { %v1335_v40 = vadd.f32 %v1334_v39, %v1333_v37  ;;  %v1336_v41 = vpop.f32.mrb[30].mxu1 }
 0x1d2   :  { %v1337_v42 = vpop.f32.mrb[31].mxu1  ;;  %v1361_v43 = vpop.f32.mrb[32].mxu0 }
 0x1d3   :  { %v1338_v45 = vadd.f32 %v1337_v42, %v1336_v41  ;;  %v1907_v46 = vadd.f32 %v1361_v43, %v1892_v20  ;;  %v778_v47 = vpop.f32.mrb[33].mxu0  ;;  %v738_v49 = vadd.f32 %v1335_v40, %v1271_v31 }
 0x1d4   :  { %v1910_v50 = vadd.f32 %v778_v47, %v1888_v6  ;;  %v1362_v51 = vpop.f32.mrb[34].mxu0 }
 0x1d5   :  { %v1913_v53 = vadd.f32 %v1362_v51, %v1894_v24  ;;  %v781_v54 = vpop.f32.mrb[35].mxu0  ;;  %v850_v55 = vmul.f32 %v1904_v44, %v1907_v46  ;;  %v741_v56 = vadd.f32 %v1338_v45, %v1274_v36 }
 0x1d6   :  { %v1918_v57 = vadd.f32 %v781_v54, %v1890_v10  ;;  %v848_v6 = vmul.f32 %v1904_v44, %v1910_v50 }
 0x1d7   :  { %v1369_v20 = vpop.f32.mrb[32].mxu1  ;;  %v871_v58 = vsel %vm864_vm1, %v850_v55, 0.0  ;;  %v915_v19 = vmul.f32 %v850_v55, %v850_v55 }
 0x1d8   :  { %v1923_v59 = vadd.f32 %v1369_v20, %v722_v14  ;;  %v810_v60 = vpop.f32.mrb[33].mxu1  ;;  %872 = vadd.xlane.f32.xlu0 %v871_v58  ;;  %v865_v7 = vsel %vm864_vm1, %v848_v6, 0.0  ;;  %v849_v32 = vmul.f32 %v1904_v44, %v1918_v57  ;;  %v913_v37 = vmul.f32 %v848_v6, %v848_v6 }
 0x1d9   :  { %v1925_v24 = vadd.f32 %v810_v60, %v714_v62  ;;  %v1370_v61 = vpop.f32.mrb[34].mxu1  ;;  %v851_v62 = vmul.f32 %v1904_v44, %v1913_v53  ;;  %v935_v27 = vsel %vm864_vm1, %v915_v19, 0.0 }
 0x1da   :  { %v1927_v63 = vadd.f32 %v1370_v61, %v725_v18  ;;  %v1365_v0 = vpop.f32.mrb[36].mxu0  ;;  %v813_v1 = vpop.f32.mrb[35].mxu1  ;;  %v858_v10 = vmul.f32 %v1904_v44, %v1923_v59  ;;  %v868_v36 = vsel %vm864_vm1, %v849_v32, 0.0  ;;  %v914_v40 = vmul.f32 %v849_v32, %v849_v32 }
 0x1db   :  { %v1932_v3 = vadd.f32 %v1365_v0, %v1900_v48  ;;  %v1934_v4 = vadd.f32 %v813_v1, %v717_v2  ;;  %v794_v5 = vpop.f32.mrb[37].mxu0  ;;  %v856_v12 = vmul.f32 %v1904_v44, %v1925_v24  ;;  %v874_v15 = vsel %vm864_vm1, %v851_v62, 0.0 }
 0x1dc   :  { %v1940_v8 = vadd.f32 %v794_v5, %v1896_v34  ;;  %v1366_v9 = vpop.f32.mrb[38].mxu0  ;;  %866 = vadd.xlane.f32.xlu0 %v865_v7  ;;  %v895_v11 = vsel %vm864_vm1, %v858_v10, 0.0  ;;  %v859_v34 = vmul.f32 %v1904_v44, %v1927_v63  ;;  %v923_v28 = vmul.f32 %v858_v10, %v858_v10 }
 0x1dd   :  { %v1946_v48 = vadd.f32 %v1366_v9, %v1902_v52  ;;  %v797_v2 = vpop.f32.mrb[39].mxu0  ;;  %896 = vadd.xlane.f32.xlu1 %v895_v11  ;;  %v889_v18 = vsel %vm864_vm1, %v856_v12, 0.0  ;;  %v857_v26 = vmul.f32 %v1904_v44, %v1934_v4  ;;  %v929_v41 = vsel %vm864_vm1, %v913_v37, 0.0 }
 0x1de   :  { %v1949_v13 = vadd.f32 %v797_v2, %v1898_v38  ;;  %v898_v25 = vsel %vm864_vm1, %v859_v34, 0.0  ;;  %v959_v31 = vsel %vm864_vm1, %v923_v28, 0.0  ;;  %v921_v42 = vmul.f32 %v856_v12, %v856_v12 }
 0x1df   :  { %v1373_v14 = vpop.f32.mrb[36].mxu1  ;;  %v892_v29 = vsel %vm864_vm1, %v857_v26, 0.0  ;;  %v932_v43 = vsel %vm864_vm1, %v914_v40, 0.0  ;;  %v922_v45 = vmul.f32 %v857_v26, %v857_v26  ;;  %v855_v54 = vmul.f32 %v1904_v44, %v1946_v48 }
 0x1e0   :  { %v1954_v16 = vadd.f32 %v1373_v14, %v738_v49  ;;  %v826_v17 = vpop.f32.mrb[37].mxu1  ;;  %875 = vadd.xlane.f32.xlu0 %v874_v15  ;;  %v953_v47 = vsel %vm864_vm1, %v921_v42, 0.0  ;;  %v854_v49 = vmul.f32 %v1904_v44, %v1932_v3  ;;  %v852_v60 = vmul.f32 %v1904_v44, %v1940_v8 }
 0x1e1   :  { %v1957_v52 = vadd.f32 %v826_v17, %v730_v30  ;;  %v1374_v21 = vpop.f32.mrb[38].mxu1  ;;  %890 = vadd.xlane.f32.xlu1 %v889_v18  ;;  %v916_v30 = vmul.f32 %v851_v62, %v851_v62  ;;  %v956_v51 = vsel %vm864_vm1, %v922_v45, 0.0  ;;  %v886_v20 = vsel %vm864_vm1, %v855_v54, 0.0 }
 0x1e2   :  { %v1959_v22 = vadd.f32 %v1374_v21, %v741_v56  ;;  %v829_v38 = vpop.f32.mrb[39].mxu1  ;;  %v883_v55 = vsel %vm864_vm1, %v854_v49, 0.0  ;;  %v862_v56 = vmul.f32 %v1904_v44, %v1954_v16  ;;  %v853_v0 = vmul.f32 %v1904_v44, %v1949_v13 }
 0x1e3   :  { %v1961_v23 = vadd.f32 %v829_v38, %v733_v35  ;;  %v938_v33 = vsel %vm864_vm1, %v916_v30, 0.0  ;;  %v924_v35 = vmul.f32 %v859_v34, %v859_v34  ;;  %v877_v1 = vsel %vm864_vm1, %v852_v60, 0.0 }
 0x1e4   :  { %899 = vadd.xlane.f32.xlu0 %v898_v25  ;;  %v863_v58 = vmul.f32 %v1904_v44, %v1959_v22  ;;  %v907_v6 = vsel %vm864_vm1, %v862_v56, 0.0  ;;  %v860_v10 = vmul.f32 %v1904_v44, %v1957_v52  ;;  %v880_v5 = vsel %vm864_vm1, %v853_v0, 0.0 }
 0x1e5   :  { %936 = vadd.xlane.f32.xlu1 %v935_v27  ;;  %v962_v39 = vsel %vm864_vm1, %v924_v35, 0.0  ;;  %v861_v7 = vmul.f32 %v1904_v44, %v1961_v23  ;;  %v919_v9 = vmul.f32 %v854_v49, %v854_v49  ;;  %v920_v12 = vmul.f32 %v855_v54, %v855_v54 }
 0x1e6   :  { %v910_v61 = vsel %vm864_vm1, %v863_v58, 0.0  ;;  %v901_v62 = vsel %vm864_vm1, %v860_v10, 0.0  ;;  %v917_v14 = vmul.f32 %v852_v60, %v852_v60  ;;  %v918_v34 = vmul.f32 %v853_v0, %v853_v0 }
 0x1e7   :  { %v904_v11 = vsel %vm864_vm1, %v861_v7, 0.0  ;;  %v947_v2 = vsel %vm864_vm1, %v919_v9, 0.0  ;;  %v950_v15 = vsel %vm864_vm1, %v920_v12, 0.0  ;;  %v925_v44 = vmul.f32 %v860_v10, %v860_v10 }
 0x1e8   :  { %893 = vadd.xlane.f32.xlu0 %v892_v29  ;;  %v941_v17 = vsel %vm864_vm1, %v917_v14, 0.0  ;;  %v944_v18 = vsel %vm864_vm1, %v918_v34, 0.0  ;;  %v926_v19 = vmul.f32 %v861_v7, %v861_v7  ;;  %v927_v38 = vmul.f32 %v862_v56, %v862_v56 }
 0x1e9   :  { %960 = vadd.xlane.f32.xlu1 %v959_v31  ;;  %v965_v21 = vsel %vm864_vm1, %v925_v44, 0.0  ;;  %v928_v26 = vmul.f32 %v863_v58, %v863_v58  ;;  %v1652_v29 = vmov 0  }
 0x1ea   :  { %v968_v25 = vsel %vm864_vm1, %v926_v19, 0.0  ;;  %v971_v27 = vsel %vm864_vm1, %v927_v38, 0.0  ;;  %1553 = vset.pattern.permute.xlu1 %v1652_v29  ;;  %1554 = vset.pattern.permute.xlu0 %v1652_v29 }
 0x1eb   :  { %v974_v28 = vsel %vm864_vm1, %v928_v26, 0.0 }
 0x1ec   :  { %939 = vadd.xlane.f32.xlu0 %v938_v33 }
 0x1ed   :  { %869 = vadd.xlane.f32.xlu1 %v868_v36 }
 0x1f0   :  { %963 = vadd.xlane.f32.xlu0 %v962_v39 }
 0x1f1   :  { %930 = vadd.xlane.f32.xlu1 %v929_v41 }
 0x1f4   :  { %933 = vadd.xlane.f32.xlu0 %v932_v43 }
 0x1f5   :  { %954 = vadd.xlane.f32.xlu1 %v953_v47 }
 0x1f8   :  { %957 = vadd.xlane.f32.xlu0 %v956_v51 }
 0x1f9   :  { %884 = vadd.xlane.f32.xlu1 %v883_v55 }
 0x1fc   :  { %887 = vadd.xlane.f32.xlu0 %v886_v20 }
 0x1fd   :  { %908 = vadd.xlane.f32.xlu1 %v907_v6 }
 0x200   :  { %911 = vadd.xlane.f32.xlu0 %v910_v61 }
 0x201   :  { %878 = vadd.xlane.f32.xlu1 %v877_v1 }
 0x204   :  { %881 = vadd.xlane.f32.xlu0 %v880_v5 }
 0x205   :  { %902 = vadd.xlane.f32.xlu1 %v901_v62 }
 0x208   :  { %905 = vadd.xlane.f32.xlu0 %v904_v11 }
 0x209   :  { %948 = vadd.xlane.f32.xlu1 %v947_v2 }
 0x20c   :  { %951 = vadd.xlane.f32.xlu0 %v950_v15 }
 0x20d   :  { %942 = vadd.xlane.f32.xlu1 %v941_v17 }
 0x210   :  { %945 = vadd.xlane.f32.xlu0 %v944_v18 }
 0x211   :  { %966 = vadd.xlane.f32.xlu1 %v965_v21 }
 0x214   :  { %969 = vadd.xlane.f32.xlu0 %v968_v25 }
 0x215   :  { %972 = vadd.xlane.f32.xlu1 %v971_v27 }
 0x218   :  { %975 = vadd.xlane.f32.xlu0 %v974_v28 }
 0x265   :  { %v873_v30 = vpop.xlane.xlu0 %872 }
 0x269   :  { %v867_v31 = vpop.xlane.xlu0 %866 }
 0x26a   :  { %v897_v32 = vpop.xlane.xlu1 %896 }
 0x26d   :  { %v876_v33 = vpop.xlane.xlu0 %875 }
 0x26e   :  { %v891_v35 = vpop.xlane.xlu1 %890 }
 0x271   :  { %v900_v36 = vpop.xlane.xlu0 %899 }
 0x272   :  { %v937_v37 = vpop.xlane.xlu1 %936 }
 0x275   :  { %v894_v39 = vpop.xlane.xlu0 %893 }
 0x276   :  { %v961_v40 = vpop.xlane.xlu1 %960 }
 0x279   :  { %v940_v41 = vpop.xlane.xlu0 %939 }
 0x27a   :  { %v870_v42 = vpop.xlane.xlu1 %869 }
 0x27d   :  { %v964_v43 = vpop.xlane.xlu0 %963 }
 0x27e   :  { %v931_v45 = vpop.xlane.xlu1 %930 }
 0x281   :  { %v934_v47 = vpop.xlane.xlu0 %933 }
 0x282   :  { %v955_v49 = vpop.xlane.xlu1 %954 }
 0x285   :  { %v958_v51 = vpop.xlane.xlu0 %957 }
 0x286   :  { %v885_v54 = vpop.xlane.xlu1 %884 }
 0x287   :  { %v983_v1 = vadd.f32 %v885_v54, %v873_v30 }
 0x289   :  { %v888_v55 = vpop.xlane.xlu0 %887  ;;  %v987_v11 = vadd.f32 %v983_v1, %v897_v32 }
 0x28a   :  { %v909_v56 = vpop.xlane.xlu1 %908  ;;  %v984_v62 = vadd.f32 %v888_v55, %v876_v33 }
 0x28b   :  { %v991_v44 = vadd.f32 %v987_v11, %v909_v56  ;;  %v1026_v11 = vld [vmem:[%s2117_s3 + $0x8] sm:$0xff] }
 0x28c   :  { %v988_v34 = vadd.f32 %v984_v62, %v900_v36 }
 0x28d   :  { %v912_v20 = vpop.xlane.xlu0 %911  ;;  %v1011_v33 = vmul.f32 0.0078125, %v991_v44 }
 0x28e   :  { %v879_v58 = vpop.xlane.xlu1 %878  ;;  %v992_v28 = vadd.f32 %v988_v34, %v912_v20 }
 0x28f   :  { %v981_v6 = vadd.f32 %v879_v58, %v867_v31 }
 0x290   :  { %v1012_v56 = vmul.f32 0.0078125, %v992_v28 }
 0x291   :  { %v882_v60 = vpop.xlane.xlu0 %881  ;;  %v985_v10 = vadd.f32 %v981_v6, %v891_v35 }
 0x292   :  { %v903_v61 = vpop.xlane.xlu1 %902  ;;  %v982_v0 = vadd.f32 %v882_v60, %v870_v42 }
 0x293   :  { %v989_v12 = vadd.f32 %v985_v10, %v903_v61 }
 0x294   :  { %v986_v9 = vadd.f32 %v982_v0, %v894_v39  ;;  %v1020_v0 = vmul.f32 %v1012_v56, %v1012_v56 }
 0x295   :  { %v906_v5 = vpop.xlane.xlu0 %905  ;;  %v1009_v18 = vmul.f32 0.0078125, %v989_v12  ;;  %v1027_v12 = vld [vmem:[%s2117_s3 + $0x10] sm:$0xff] }
 0x296   :  { %v949_v7 = vpop.xlane.xlu1 %948  ;;  %v990_v17 = vadd.f32 %v986_v9, %v906_v5 }
 0x297   :  { %v999_v19 = vadd.f32 %v949_v7, %v937_v37  ;;  %v1017_v32 = vmul.f32 %v1009_v18, %v1009_v18 }
 0x298   :  { %v1010_v29 = vmul.f32 0.0078125, %v990_v17  ;;  %v1028_v17 = vld [vmem:[%s2117_s3 + $0x18] sm:$0xff] }
 0x299   :  { %v952_v2 = vpop.xlane.xlu0 %951  ;;  %v1003_v42 = vadd.f32 %v999_v19, %v961_v40 }
 0x29a   :  { %v943_v14 = vpop.xlane.xlu1 %942  ;;  %v1000_v30 = vadd.f32 %v952_v2, %v940_v41  ;;  %v1018_v37 = vmul.f32 %v1010_v29, %v1010_v29 }
 0x29b   :  { %v997_v15 = vadd.f32 %v943_v14, %v931_v45 }
 0x29d   :  { %v946_v21 = vpop.xlane.xlu0 %945  ;;  %v1001_v38 = vadd.f32 %v997_v15, %v955_v49  ;;  %v1004_v49 = vadd.f32 %v1000_v30, %v964_v43  ;;  %v1025_v43 = vld [vmem:[%s2117_s3] sm:$0xff] }
 0x29e   :  { %v998_v25 = vadd.f32 %v946_v21, %v934_v47  ;;  %v967_v26 = vpop.xlane.xlu1 %966  ;;  %v1019_v47 = vmul.f32 %v1011_v33, %v1011_v33 }
 0x29f   :  { %v1005_v27 = vadd.f32 %v1001_v38, %v967_v26  ;;  %v1043_v38 = vld [vmem:[%s2118_s4 + $0x10] sm:$0xff] }
 0x2a0   :  { %v1002_v31 = vadd.f32 %v998_v25, %v958_v51 }
 0x2a1   :  { %v1013_v35 = vmul.f32 0.0078125, %v1005_v27  ;;  %v970_v39 = vpop.xlane.xlu0 %969  ;;  %v1041_v27 = vld [vmem:[%s2118_s4] sm:$0xff] }
 0x2a2   :  { %v1006_v45 = vadd.f32 %v1002_v31, %v970_v39  ;;  %v973_v36 = vpop.xlane.xlu1 %972  ;;  %v1042_v31 = vld [vmem:[%s2118_s4 + $0x8] sm:$0xff] }
 0x2a3   :  { %v1021_v54 = vsub.f32 %v1013_v35, %v1017_v32  ;;  %v1007_v55 = vadd.f32 %v1003_v42, %v973_v36  ;;  %v1044_v35 = vld [vmem:[%s2118_s4 + $0x18] sm:$0xff] }
 0x2a4   :  { %v1014_v58 = vmul.f32 0.0078125, %v1006_v45 }
 0x2a5   :  { %v1029_v6 = vadd.f32 1e-05, %v1021_v54  ;;  %v1015_v60 = vmul.f32 0.0078125, %v1007_v55  ;;  %v976_v20 = vpop.xlane.xlu0 %975 }
 0x2a6   :  { %v1022_v61 = vsub.f32 %v1014_v58, %v1018_v37  ;;  %v1008_v41 = vadd.f32 %v1004_v49, %v976_v20 }
 0x2a7   :  { %1611 = vrsqrt.f32 %v1029_v6  ;;  %v1023_v51 = vsub.f32 %v1015_v60, %v1019_v47 }
 0x2a8   :  { %v1030_v1 = vadd.f32 1e-05, %v1022_v61  ;;  %v1016_v10 = vmul.f32 0.0078125, %v1008_v41 }
 0x2a9   :  { %v1031_v40 = vadd.f32 1e-05, %v1023_v51 }
 0x2aa   :  { %1613 = vrsqrt.f32 %v1030_v1  ;;  %v1024_v5 = vsub.f32 %v1016_v10, %v1020_v0 }
 0x2ab   :  { %1615 = vrsqrt.f32 %v1031_v40 }
 0x2ac   :  { %v1032_v7 = vadd.f32 1e-05, %v1024_v5 }
 0x2ae   :  { %1617 = vrsqrt.f32 %v1032_v7 }
 0x2b1   :  { %v1612_v62 = vpop.eup %1611 }
 0x2b2   :  { %v1037_v9 = vmul.f32 %v1612_v62, %v1025_v43 }
 0x2b4   :  { %v1614_v2 = vpop.eup %1613  ;;  %1055 = vperm.xlu1 %1553, %v1037_v9   ;;  %v1045_v26 = vmul.f32 %v1037_v9, %v1009_v18 }
 0x2b5   :  { %v1616_v14 = vpop.eup %1615  ;;  %v1038_v15 = vmul.f32 %v1614_v2, %v1026_v11 }
 0x2b6   :  { %v1039_v34 = vmul.f32 %v1616_v14, %v1027_v12  ;;  %v1049_v28 = vsub.f32 %v1041_v27, %v1045_v26 }
 0x2b7   :  { %1060 = vperm.xlu0 %1554, %v1038_v15   ;;  %v1046_v30 = vmul.f32 %v1038_v15, %v1010_v29 }
 0x2b8   :  { %v1618_v44 = vpop.eup %1617  ;;  %1065 = vperm.xlu1 %1553, %v1039_v34   ;;  %v1047_v21 = vmul.f32 %v1039_v34, %v1011_v33 }
 0x2b9   :  { %v1040_v19 = vmul.f32 %v1618_v44, %v1028_v17  ;;  %v1050_v33 = vsub.f32 %v1042_v31, %v1046_v30 }
 0x2ba   :  { %v1051_v25 = vsub.f32 %v1043_v38, %v1047_v21 }
 0x2bb   :  { %v1048_v32 = vmul.f32 %v1040_v19, %v1012_v56 }
 0x2bc   :  { %1070 = vperm.xlu1 %1553, %v1040_v19  }
 0x2bd   :  { %v1052_v18 = vsub.f32 %v1044_v35, %v1048_v32 }
 0x2c0   :  { %1101 = vperm.xlu1 %1553, %v1051_v25  }
 0x2c4   :  { %1091 = vperm.xlu1 %1553, %v1049_v28  }
 0x2c8   :  { %1096 = vperm.xlu1 %1553, %v1050_v33  }
 0x2cc   :  { %1106 = vperm.xlu1 %1553, %v1052_v18  }
 0x333   :  { %v1056_v39 = vpop.permute.xlu1 %1055 }
 0x334   :  { %v1073_v6 = vmul.f32 %v1056_v39, %v1910_v50  ;;  %v1077_v60 = vmul.f32 %v1056_v39, %v1940_v8  ;;  %v1081_v20 = vmul.f32 %v1056_v39, %v1925_v24  ;;  %v1085_v61 = vmul.f32 %v1056_v39, %v1957_v52 }
 0x337   :  { %v1066_v42 = vpop.permute.xlu1 %1065 }
 0x338   :  { %v1075_v36 = vmul.f32 %v1066_v42, %v1907_v46  ;;  %v1079_v29 = vmul.f32 %v1066_v42, %v1932_v3  ;;  %v1083_v54 = vmul.f32 %v1066_v42, %v1923_v59  ;;  %v1087_v55 = vmul.f32 %v1066_v42, %v1954_v16  ;;  %v1061_v46 = vpop.permute.xlu0 %1060 }
 0x339   :  { %v1074_v52 = vmul.f32 %v1061_v46, %v1918_v57  ;;  %v1078_v1 = vmul.f32 %v1061_v46, %v1949_v13  ;;  %v1082_v10 = vmul.f32 %v1061_v46, %v1934_v4  ;;  %v1086_v40 = vmul.f32 %v1061_v46, %v1961_v23 }
 0x33b   :  { %v1071_v45 = vpop.permute.xlu1 %1070 }
 0x33c   :  { %v1076_v11 = vmul.f32 %v1071_v45, %v1913_v53  ;;  %v1080_v12 = vmul.f32 %v1071_v45, %v1946_v48  ;;  %v1084_v2 = vmul.f32 %v1071_v45, %v1927_v63  ;;  %v1088_v14 = vmul.f32 %v1071_v45, %v1959_v22 }
 0x33f   :  { %v1102_v37 = vpop.permute.xlu1 %1101 }
 0x340   :  { %v1111_v56 = vadd.f32 %v1102_v37, %v1075_v36  ;;  %v1115_v58 = vadd.f32 %v1102_v37, %v1079_v29  ;;  %v1119_v49 = vadd.f32 %v1102_v37, %v1083_v54  ;;  %v1123_v47 = vadd.f32 %v1102_v37, %v1087_v55 }
 0x342   :  { %v1127_v41 = vmax.f32 %v1111_v56, 0.0  ;;  %v1131_v3 = vmax.f32 %v1115_v58, 0.0  ;;  %v1135_v51 = vmax.f32 %v1119_v49, 0.0  ;;  %v1139_v59 = vmax.f32 %v1123_v47, 0.0 }
 0x343   :  { %v1092_v0 = vpop.permute.xlu1 %1091 }
 0x344   :  { %1143 = vst.msk [vmem:[%s2119_s5 + $0x10] sm:$0xff] %vm864_vm1, %v1127_v41  ;;  %1147 = vst.msk [vmem:[%s2119_s5 + $0x30] sm:$0xff] %vm864_vm1, %v1131_v3  ;;  %v1109_v50 = vadd.f32 %v1092_v0, %v1073_v6  ;;  %v1113_v24 = vadd.f32 %v1092_v0, %v1077_v60  ;;  %v1117_v8 = vadd.f32 %v1092_v0, %v1081_v20 }
 0x345   :  { %1151 = vst.msk [vmem:[%s2119_s5 + $0x50] sm:$0xff] %vm864_vm1, %v1135_v51  ;;  %1155 = vst.msk [vmem:[%s2119_s5 + $0x70] sm:$0xff] %vm864_vm1, %v1139_v59  ;;  %v1121_v16 = vadd.f32 %v1092_v0, %v1085_v61 }
 0x346   :  { %v1125_v5 = vmax.f32 %v1109_v50, 0.0  ;;  %v1129_v7 = vmax.f32 %v1113_v24, 0.0  ;;  %v1133_v43 = vmax.f32 %v1117_v8, 0.0 }
 0x347   :  { %v1137_v62 = vmax.f32 %v1121_v16, 0.0  ;;  %v1097_v9 = vpop.permute.xlu1 %1096 }
 0x348   :  { %1141 = vst.msk [vmem:[%s2119_s5] sm:$0xff] %vm864_vm1, %v1125_v5  ;;  %1145 = vst.msk [vmem:[%s2119_s5 + $0x20] sm:$0xff] %vm864_vm1, %v1129_v7  ;;  %v1110_v57 = vadd.f32 %v1097_v9, %v1074_v52  ;;  %v1114_v4 = vadd.f32 %v1097_v9, %v1078_v1  ;;  %v1118_v13 = vadd.f32 %v1097_v9, %v1082_v10 }
 0x349   :  { %1149 = vst.msk [vmem:[%s2119_s5 + $0x40] sm:$0xff] %vm864_vm1, %v1133_v43  ;;  %1153 = vst.msk [vmem:[%s2119_s5 + $0x60] sm:$0xff] %vm864_vm1, %v1137_v62  ;;  %v1122_v23 = vadd.f32 %v1097_v9, %v1086_v40 }
 0x34a   :  { %v1126_v15 = vmax.f32 %v1110_v57, 0.0  ;;  %v1130_v34 = vmax.f32 %v1114_v4, 0.0  ;;  %v1134_v17 = vmax.f32 %v1118_v13, 0.0 }
 0x34b   :  { %v1138_v44 = vmax.f32 %v1122_v23, 0.0  ;;  %v1107_v19 = vpop.permute.xlu1 %1106 }
 0x34c   :  { %1142 = vst.msk [vmem:[%s2119_s5 + $0x8] sm:$0xff] %vm864_vm1, %v1126_v15  ;;  %1146 = vst.msk [vmem:[%s2119_s5 + $0x28] sm:$0xff] %vm864_vm1, %v1130_v34  ;;  %v1112_v53 = vadd.f32 %v1107_v19, %v1076_v11  ;;  %v1116_v63 = vadd.f32 %v1107_v19, %v1080_v12  ;;  %v1120_v48 = vadd.f32 %v1107_v19, %v1084_v2 }
 0x34d   :  { %1150 = vst.msk [vmem:[%s2119_s5 + $0x48] sm:$0xff] %vm864_vm1, %v1134_v17  ;;  %1154 = vst.msk [vmem:[%s2119_s5 + $0x68] sm:$0xff] %vm864_vm1, %v1138_v44  ;;  %v1124_v22 = vadd.f32 %v1107_v19, %v1088_v14 }
 0x34e   :  { %v1128_v21 = vmax.f32 %v1112_v53, 0.0  ;;  %v1132_v38 = vmax.f32 %v1116_v63, 0.0  ;;  %v1136_v25 = vmax.f32 %v1120_v48, 0.0 }
 0x34f   :  { %v1140_v26 = vmax.f32 %v1124_v22, 0.0 }
 0x350   :  { %1144 = vst.msk [vmem:[%s2119_s5 + $0x18] sm:$0xff] %vm864_vm1, %v1128_v21  ;;  %1148 = vst.msk [vmem:[%s2119_s5 + $0x38] sm:$0xff] %vm864_vm1, %v1132_v38 }
 0x351   :  { %1152 = vst.msk [vmem:[%s2119_s5 + $0x58] sm:$0xff] %vm864_vm1, %v1136_v25  ;;  %1156 = vst.msk [vmem:[%s2119_s5 + $0x78] sm:$0xff] %vm864_vm1, %v1140_v26 }
 0x352   :  { %1161 = vsyncpa [#allocation3], 1 }

// kernel: generator_dc_forward.5
= control target key start
LH: loop header
LB: loop body
LE: loop exit
PB: predicated region body
PF: predicated region fallthrough
CT: control target
= control target key end

     0   :  { %vm469_vm0 = vcmask 130048   ;;  %vm1207_vm1 = vcmask 15360   ;;  %s6075_s0 = inlined_call_operand.vmem [shape: f32[16,2], index: 0, kind: input, shape index: {}]   ;;  %s6076_s1 = inlined_call_operand.vmem [shape: bf16[1024,16], index: 1, kind: input, shape index: {}]   ;;  %s6077_s2 = inlined_call_operand.vmem [shape: f32[64,1], index: 2, kind: input, shape index: {}]   ;;  %s6078_s3 = inlined_call_operand.vmem [shape: f32[64,1], index: 3, kind: input, shape index: {}]   ;;  %s6079_s4 = inlined_call_operand.vmem [shape: f32[1024,2], index: 4, kind: output, shape index: {}]  }
   0x1   :  { %v146_v0 = vld [vmem:[%s6075_s0] sm:$0xff]  ;;  %v147_v1 = vld [vmem:[%s6075_s0 + $0x8] sm:$0xff]  ;;  %v3376_v7 = vld [vmem:[%s6076_s1 + $0x10] sm:$0xff]  }
   0x2   :  { %v148_v2 = vpack.c.bf16 %v147_v1, %v146_v0  ;;  %v3372_v3 = vld [vmem:[%s6076_s1] sm:$0xff]   ;;  %v3374_v5 = vld [vmem:[%s6076_s1 + $0x8] sm:$0xff]   ;;  %v3378_v8 = vld [vmem:[%s6076_s1 + $0x110] sm:$0xff]  }
   0x3   :  { %v3373_v4 = vld [vmem:[%s6076_s1 + $0x100] sm:$0xff]   ;;  %v3375_v6 = vld [vmem:[%s6076_s1 + $0x108] sm:$0xff]   ;;  %3239 = vmatprep.mubr.msk.bf16.mxu0 %vm469_vm0, %v3372_v3  ;;  %v3377_v9 = vld [vmem:[%s6076_s1 + $0x18] sm:$0xff]  }
   0x4   :  { %3237 = vmatprep.subr.bf16.mxu0 %v148_v2  ;;  %3367 = vmatprep.subr.bf16.mxu1 %v148_v2  ;;  %v3379_v10 = vld [vmem:[%s6076_s1 + $0x118] sm:$0xff]   ;;  %v3380_v11 = vld [vmem:[%s6076_s1 + $0x20] sm:$0xff]   ;;  %v3381_v13 = vld [vmem:[%s6076_s1 + $0x28] sm:$0xff]  }
   0x5   :  { %3238 = vmatpush3.bf16.msra.mxu0 %v148_v2  ;;  %3368 = vmatpush3.bf16.msra.mxu1 %v148_v2  ;;  %v3382_v12 = vld [vmem:[%s6076_s1 + $0x120] sm:$0xff]   ;;  %v3383_v14 = vld [vmem:[%s6076_s1 + $0x128] sm:$0xff]   ;;  %v3384_v15 = vld [vmem:[%s6076_s1 + $0x30] sm:$0xff]  }
   0x6   :  { %3303 = vmatprep.mubr.msk.bf16.mxu1 %vm469_vm0, %v3373_v4  ;;  %v3386_v16 = vld [vmem:[%s6076_s1 + $0x130] sm:$0xff]   ;;  %v3385_v17 = vld [vmem:[%s6076_s1 + $0x38] sm:$0xff]   ;;  %v3388_v19 = vld [vmem:[%s6076_s1 + $0x40] sm:$0xff]  }
   0x7   :  { %v3387_v18 = vld [vmem:[%s6076_s1 + $0x138] sm:$0xff]   ;;  %v3390_v20 = vld [vmem:[%s6076_s1 + $0x140] sm:$0xff]   ;;  %v3389_v21 = vld [vmem:[%s6076_s1 + $0x48] sm:$0xff]  }
   0x8   :  { %3240 = vmatmul.mubr.msk.bf16.vlgmr.msra.gmra.mrb[0].mxu0 %vm469_vm0, %v3374_v5  ;;  %3304 = vmatmul.mubr.msk.bf16.vlgmr.msra.gmra.mrb[0].mxu1 %vm469_vm0, %v3375_v6  ;;  %v3391_v22 = vld [vmem:[%s6076_s1 + $0x148] sm:$0xff]   ;;  %v3392_v23 = vld [vmem:[%s6076_s1 + $0x50] sm:$0xff]   ;;  %v3393_v25 = vld [vmem:[%s6076_s1 + $0x58] sm:$0xff]  }
   0x9   :  { %3243 = vmatprep.mubr.msk.bf16.mxu0 %vm469_vm0, %v3376_v7  ;;  %3307 = vmatprep.mubr.msk.bf16.mxu1 %vm469_vm0, %v3378_v8  ;;  %v3394_v24 = vld [vmem:[%s6076_s1 + $0x150] sm:$0xff]   ;;  %v3395_v26 = vld [vmem:[%s6076_s1 + $0x158] sm:$0xff]   ;;  %v3396_v27 = vld [vmem:[%s6076_s1 + $0x60] sm:$0xff]  }
   0xa   :  { %v3398_v28 = vld [vmem:[%s6076_s1 + $0x160] sm:$0xff]   ;;  %v3397_v29 = vld [vmem:[%s6076_s1 + $0x68] sm:$0xff]   ;;  %v3400_v31 = vld [vmem:[%s6076_s1 + $0x70] sm:$0xff]  }
   0xb   :  { %v3399_v30 = vld [vmem:[%s6076_s1 + $0x168] sm:$0xff]   ;;  %v3402_v32 = vld [vmem:[%s6076_s1 + $0x170] sm:$0xff]   ;;  %v3401_v33 = vld [vmem:[%s6076_s1 + $0x78] sm:$0xff]  }
   0xc   :  { %v3403_v34 = vld [vmem:[%s6076_s1 + $0x178] sm:$0xff]   ;;  %v3404_v35 = vld [vmem:[%s6076_s1 + $0x80] sm:$0xff]   ;;  %v3405_v37 = vld [vmem:[%s6076_s1 + $0x88] sm:$0xff]  }
   0xd   :  { %v3406_v36 = vld [vmem:[%s6076_s1 + $0x180] sm:$0xff]   ;;  %v3407_v38 = vld [vmem:[%s6076_s1 + $0x188] sm:$0xff]   ;;  %v3408_v39 = vld [vmem:[%s6076_s1 + $0x90] sm:$0xff]  }
   0xe   :  { %v3409_v40 = vld [vmem:[%s6076_s1 + $0x98] sm:$0xff]   ;;  %v3410_v41 = vld [vmem:[%s6076_s1 + $0x190] sm:$0xff]   ;;  %v3412_v43 = vld [vmem:[%s6076_s1 + $0xa0] sm:$0xff]  }
   0xf   :  { %v3411_v42 = vld [vmem:[%s6076_s1 + $0x198] sm:$0xff]   ;;  %v3413_v44 = vld [vmem:[%s6076_s1 + $0xa8] sm:$0xff]   ;;  %v3414_v45 = vld [vmem:[%s6076_s1 + $0x1a0] sm:$0xff]  }
  0x10   :  { %3244 = vmatmul.mubr.msk.bf16.gmra.mrb[4].mxu0 %vm469_vm0, %v3377_v9  ;;  %3308 = vmatmul.mubr.msk.bf16.gmra.mrb[4].mxu1 %vm469_vm0, %v3379_v10  ;;  %v3415_v46 = vld [vmem:[%s6076_s1 + $0x1a8] sm:$0xff]   ;;  %v3416_v47 = vld [vmem:[%s6076_s1 + $0xb0] sm:$0xff]   ;;  %v3417_v48 = vld [vmem:[%s6076_s1 + $0xb8] sm:$0xff]  }
  0x11   :  { %3247 = vmatprep.mubr.msk.bf16.mxu0 %vm469_vm0, %v3380_v11  ;;  %3311 = vmatprep.mubr.msk.bf16.mxu1 %vm469_vm0, %v3382_v12  ;;  %v3418_v49 = vld [vmem:[%s6076_s1 + $0x1b0] sm:$0xff]   ;;  %v3419_v50 = vld [vmem:[%s6076_s1 + $0x1b8] sm:$0xff]   ;;  %v3420_v51 = vld [vmem:[%s6076_s1 + $0xc0] sm:$0xff]  }
  0x12   :  { %v3421_v52 = vld [vmem:[%s6076_s1 + $0xc8] sm:$0xff]   ;;  %v3422_v53 = vld [vmem:[%s6076_s1 + $0x1c0] sm:$0xff]   ;;  %v3424_v55 = vld [vmem:[%s6076_s1 + $0xd0] sm:$0xff]  }
  0x13   :  { %v3423_v54 = vld [vmem:[%s6076_s1 + $0x1c8] sm:$0xff]   ;;  %v3425_v56 = vld [vmem:[%s6076_s1 + $0xd8] sm:$0xff]   ;;  %v3426_v57 = vld [vmem:[%s6076_s1 + $0x1d0] sm:$0xff]  }
  0x14   :  { %v3427_v58 = vld [vmem:[%s6076_s1 + $0x1d8] sm:$0xff]   ;;  %v3428_v59 = vld [vmem:[%s6076_s1 + $0xe0] sm:$0xff]   ;;  %v3429_v60 = vld [vmem:[%s6076_s1 + $0xe8] sm:$0xff]  }
  0x15   :  { %v3430_v61 = vld [vmem:[%s6076_s1 + $0x1e0] sm:$0xff]   ;;  %v3431_v62 = vld [vmem:[%s6076_s1 + $0x1e8] sm:$0xff]   ;;  %v3432_v63 = vld [vmem:[%s6076_s1 + $0xf0] sm:$0xff]  }
  0x16   :  { %v3433_v0 = vld [vmem:[%s6076_s1 + $0xf8] sm:$0xff]   ;;  %v3434_v1 = vld [vmem:[%s6076_s1 + $0x1f0] sm:$0xff]  }
  0x17   :  { %v3435_v2 = vld [vmem:[%s6076_s1 + $0x1f8] sm:$0xff]  }
  0x18   :  { %3248 = vmatmul.mubr.msk.bf16.gmra.mrb[8].mxu0 %vm469_vm0, %v3381_v13  ;;  %3312 = vmatmul.mubr.msk.bf16.gmra.mrb[8].mxu1 %vm469_vm0, %v3383_v14 }
  0x19   :  { %3251 = vmatprep.mubr.msk.bf16.mxu0 %vm469_vm0, %v3384_v15  ;;  %3315 = vmatprep.mubr.msk.bf16.mxu1 %vm469_vm0, %v3386_v16 }
  0x20   :  { %3252 = vmatmul.mubr.msk.bf16.gmra.mrb[12].mxu0 %vm469_vm0, %v3385_v17  ;;  %3316 = vmatmul.mubr.msk.bf16.gmra.mrb[12].mxu1 %vm469_vm0, %v3387_v18 }
  0x21   :  { %3255 = vmatprep.mubr.msk.bf16.mxu0 %vm469_vm0, %v3388_v19  ;;  %3319 = vmatprep.mubr.msk.bf16.mxu1 %vm469_vm0, %v3390_v20 }
  0x28   :  { %3256 = vmatmul.mubr.msk.bf16.gmra.mrb[16].mxu0 %vm469_vm0, %v3389_v21  ;;  %3320 = vmatmul.mubr.msk.bf16.gmra.mrb[16].mxu1 %vm469_vm0, %v3391_v22 }
  0x29   :  { %3259 = vmatprep.mubr.msk.bf16.mxu0 %vm469_vm0, %v3392_v23  ;;  %3323 = vmatprep.mubr.msk.bf16.mxu1 %vm469_vm0, %v3394_v24 }
  0x30   :  { %3260 = vmatmul.mubr.msk.bf16.gmra.mrb[20].mxu0 %vm469_vm0, %v3393_v25  ;;  %3324 = vmatmul.mubr.msk.bf16.gmra.mrb[20].mxu1 %vm469_vm0, %v3395_v26 }
  0x31   :  { %3263 = vmatprep.mubr.msk.bf16.mxu0 %vm469_vm0, %v3396_v27  ;;  %3327 = vmatprep.mubr.msk.bf16.mxu1 %vm469_vm0, %v3398_v28 }
  0x38   :  { %3264 = vmatmul.mubr.msk.bf16.gmra.mrb[24].mxu0 %vm469_vm0, %v3397_v29  ;;  %3328 = vmatmul.mubr.msk.bf16.gmra.mrb[24].mxu1 %vm469_vm0, %v3399_v30 }
  0x39   :  { %3267 = vmatprep.mubr.msk.bf16.mxu0 %vm469_vm0, %v3400_v31  ;;  %3331 = vmatprep.mubr.msk.bf16.mxu1 %vm469_vm0, %v3402_v32 }
  0x40   :  { %3268 = vmatmul.mubr.msk.bf16.gmra.mrb[28].mxu0 %vm469_vm0, %v3401_v33  ;;  %3332 = vmatmul.mubr.msk.bf16.gmra.mrb[28].mxu1 %vm469_vm0, %v3403_v34 }
  0x41   :  { %3271 = vmatprep.mubr.msk.bf16.mxu0 %vm469_vm0, %v3404_v35  ;;  %3335 = vmatprep.mubr.msk.bf16.mxu1 %vm469_vm0, %v3406_v36 }
  0x48   :  { %3272 = vmatmul.mubr.msk.bf16.gmra.mrb[32].mxu0 %vm469_vm0, %v3405_v37  ;;  %3336 = vmatmul.mubr.msk.bf16.gmra.mrb[32].mxu1 %vm469_vm0, %v3407_v38 }
  0x49   :  { %3275 = vmatprep.mubr.msk.bf16.mxu0 %vm469_vm0, %v3408_v39  ;;  %3339 = vmatprep.mubr.msk.bf16.mxu1 %vm469_vm0, %v3410_v41 }
  0x50   :  { %3276 = vmatmul.mubr.msk.bf16.gmra.mrb[36].mxu0 %vm469_vm0, %v3409_v40  ;;  %3340 = vmatmul.mubr.msk.bf16.gmra.mrb[36].mxu1 %vm469_vm0, %v3411_v42 }
  0x51   :  { %3279 = vmatprep.mubr.msk.bf16.mxu0 %vm469_vm0, %v3412_v43  ;;  %3343 = vmatprep.mubr.msk.bf16.mxu1 %vm469_vm0, %v3414_v45 }
  0x58   :  { %3280 = vmatmul.mubr.msk.bf16.gmra.mrb[40].mxu0 %vm469_vm0, %v3413_v44  ;;  %3344 = vmatmul.mubr.msk.bf16.gmra.mrb[40].mxu1 %vm469_vm0, %v3415_v46 }
  0x59   :  { %3283 = vmatprep.mubr.msk.bf16.mxu0 %vm469_vm0, %v3416_v47  ;;  %3347 = vmatprep.mubr.msk.bf16.mxu1 %vm469_vm0, %v3418_v49 }
  0x60   :  { %3284 = vmatmul.mubr.msk.bf16.gmra.mrb[44].mxu0 %vm469_vm0, %v3417_v48  ;;  %3348 = vmatmul.mubr.msk.bf16.gmra.mrb[44].mxu1 %vm469_vm0, %v3419_v50 }
  0x61   :  { %3287 = vmatprep.mubr.msk.bf16.mxu0 %vm469_vm0, %v3420_v51  ;;  %3351 = vmatprep.mubr.msk.bf16.mxu1 %vm469_vm0, %v3422_v53 }
  0x68   :  { %3288 = vmatmul.mubr.msk.bf16.gmra.mrb[48].mxu0 %vm469_vm0, %v3421_v52  ;;  %3352 = vmatmul.mubr.msk.bf16.gmra.mrb[48].mxu1 %vm469_vm0, %v3423_v54 }
  0x69   :  { %3291 = vmatprep.mubr.msk.bf16.mxu0 %vm469_vm0, %v3424_v55  ;;  %3355 = vmatprep.mubr.msk.bf16.mxu1 %vm469_vm0, %v3426_v57 }
  0x70   :  { %3292 = vmatmul.mubr.msk.bf16.gmra.mrb[52].mxu0 %vm469_vm0, %v3425_v56  ;;  %3356 = vmatmul.mubr.msk.bf16.gmra.mrb[52].mxu1 %vm469_vm0, %v3427_v58 }
  0x71   :  { %3295 = vmatprep.mubr.msk.bf16.mxu0 %vm469_vm0, %v3428_v59  ;;  %3359 = vmatprep.mubr.msk.bf16.mxu1 %vm469_vm0, %v3430_v61 }
  0x78   :  { %3296 = vmatmul.mubr.msk.bf16.gmra.mrb[56].mxu0 %vm469_vm0, %v3429_v60  ;;  %3360 = vmatmul.mubr.msk.bf16.gmra.mrb[56].mxu1 %vm469_vm0, %v3431_v62 }
  0x79   :  { %3299 = vmatprep.mubr.msk.bf16.mxu0 %vm469_vm0, %v3432_v63  ;;  %3363 = vmatprep.mubr.msk.bf16.mxu1 %vm469_vm0, %v3434_v1 }
  0x80   :  { %3300 = vmatmul.mubr.msk.bf16.gmra.mrb[60].mxu0 %vm469_vm0, %v3433_v0  ;;  %3364 = vmatmul.mubr.msk.bf16.gmra.mrb[60].mxu1 %vm469_vm0, %v3435_v2 }
  0xdb   :  { %v3740_v3 = vpop.f32.mrb[0].mxu0  ;;  %v3742_v4 = vpop.f32.mrb[0].mxu1 }
  0xdc   :  { %6266 = vst [vmem:[#allocation2_spill] sm:$0xff] %v3740_v3  ;;  %6267 = vst [vmem:[#allocation3_spill] sm:$0xff] %v3742_v4  ;;  %v3744_v5 = vpop.f32.mrb[1].mxu0  ;;  %v3746_v6 = vpop.f32.mrb[1].mxu1  ;;  %v1406_v7 = vsel %vm1207_vm1, %v3742_v4, 0.0  ;;  %v1214_v8 = vsel %vm1207_vm1, %v3740_v3, 0.0  ;;  %v1594_v19 = vmul.f32 %v3740_v3, %v3740_v3 }
  0xdd   :  { %6268 = vst [vmem:[#allocation4_spill] sm:$0xff] %v3744_v5  ;;  %6269 = vst [vmem:[#allocation5_spill] sm:$0xff] %v3746_v6  ;;  %1407 = vadd.xlane.f32.xlu0 %v1406_v7  ;;  %v3752_v9 = vpop.f32.mrb[2].mxu1  ;;  %1215 = vadd.xlane.f32.xlu1 %v1214_v8  ;;  %v3754_v10 = vpop.f32.mrb[2].mxu0  ;;  %v1208_v13 = vsel %vm1207_vm1, %v3744_v5, 0.0  ;;  %v1400_v17 = vsel %vm1207_vm1, %v3746_v6, 0.0  ;;  %v1592_v34 = vmul.f32 %v3744_v5, %v3744_v5 }
  0xde   :  { %6270 = vst [vmem:[#allocation6_spill] sm:$0xff] %v3752_v9  ;;  %6271 = vst [vmem:[#allocation7_spill] sm:$0xff] %v3754_v10  ;;  %v3756_v11 = vpop.f32.mrb[3].mxu0  ;;  %v3758_v12 = vpop.f32.mrb[3].mxu1  ;;  %v1217_v14 = vsel %vm1207_vm1, %v3754_v10, 0.0  ;;  %v1409_v18 = vsel %vm1207_vm1, %v3752_v9, 0.0  ;;  %v1595_v28 = vmul.f32 %v3754_v10, %v3754_v10 }
  0xdf   :  { %6272 = vst [vmem:[#allocation8_spill] sm:$0xff] %v3756_v11  ;;  %6273 = vst [vmem:[#allocation9_spill] sm:$0xff] %v3758_v12  ;;  %v1726_v26 = vsel %vm1207_vm1, %v1594_v19, 0.0  ;;  %v1403_v27 = vsel %vm1207_vm1, %v3758_v12, 0.0  ;;  %v1211_v32 = vsel %vm1207_vm1, %v3756_v11, 0.0  ;;  %v1593_v33 = vmul.f32 %v3756_v11, %v3756_v11 }
  0xe0   :  { %v1729_v31 = vsel %vm1207_vm1, %v1595_v28, 0.0  ;;  %v1720_v42 = vsel %vm1207_vm1, %v1592_v34, 0.0 }
  0xe1   :  { %1209 = vadd.xlane.f32.xlu0 %v1208_v13  ;;  %1218 = vadd.xlane.f32.xlu1 %v1217_v14  ;;  %v1723_v41 = vsel %vm1207_vm1, %v1593_v33, 0.0 }
  0xe3   :  { %v3764_v15 = vpop.f32.mrb[4].mxu0  ;;  %v3766_v16 = vpop.f32.mrb[4].mxu1 }
  0xe4   :  { %6274 = vst [vmem:[#allocation10_spill] sm:$0xff] %v3764_v15  ;;  %6275 = vst [vmem:[#allocation11_spill] sm:$0xff] %v3766_v16  ;;  %v3774_v20 = vpop.f32.mrb[5].mxu0  ;;  %v3776_v21 = vpop.f32.mrb[5].mxu1  ;;  %v1226_v45 = vsel %vm1207_vm1, %v3764_v15, 0.0  ;;  %v1418_v53 = vsel %vm1207_vm1, %v3766_v16, 0.0  ;;  %v1598_v7 = vmul.f32 %v3764_v15, %v3764_v15 }
  0xe5   :  { %6276 = vst [vmem:[#allocation12_spill] sm:$0xff] %v3774_v20  ;;  %6277 = vst [vmem:[#allocation13_spill] sm:$0xff] %v3776_v21  ;;  %1401 = vadd.xlane.f32.xlu0 %v1400_v17  ;;  %1410 = vadd.xlane.f32.xlu1 %v1409_v18  ;;  %v3778_v22 = vpop.f32.mrb[6].mxu0  ;;  %v3780_v23 = vpop.f32.mrb[6].mxu1  ;;  %v1220_v57 = vsel %vm1207_vm1, %v3774_v20, 0.0  ;;  %v1412_v1 = vsel %vm1207_vm1, %v3776_v21, 0.0  ;;  %v1596_v19 = vmul.f32 %v3774_v20, %v3774_v20 }
  0xe6   :  { %6278 = vst [vmem:[#allocation14_spill] sm:$0xff] %v3778_v22  ;;  %6279 = vst [vmem:[#allocation15_spill] sm:$0xff] %v3780_v23  ;;  %v3782_v24 = vpop.f32.mrb[7].mxu0  ;;  %v3784_v25 = vpop.f32.mrb[7].mxu1  ;;  %v1229_v46 = vsel %vm1207_vm1, %v3778_v22, 0.0  ;;  %v1421_v54 = vsel %vm1207_vm1, %v3780_v23, 0.0  ;;  %v1599_v8 = vmul.f32 %v3778_v22, %v3778_v22 }
  0xe7   :  { %6280 = vst [vmem:[#allocation16_spill] sm:$0xff] %v3782_v24  ;;  %6281 = vst [vmem:[#allocation17_spill] sm:$0xff] %v3784_v25  ;;  %v1223_v58 = vsel %vm1207_vm1, %v3782_v24, 0.0  ;;  %v1415_v2 = vsel %vm1207_vm1, %v3784_v25, 0.0  ;;  %v1738_v17 = vsel %vm1207_vm1, %v1598_v7, 0.0 }
  0xe8   :  { %v1741_v18 = vsel %vm1207_vm1, %v1599_v8, 0.0 }
  0xe9   :  { %1727 = vadd.xlane.f32.xlu0 %v1726_v26  ;;  %1404 = vadd.xlane.f32.xlu1 %v1403_v27  ;;  %v1597_v26 = vmul.f32 %v3782_v24, %v3782_v24 }
  0xeb   :  { %v3791_v29 = vpop.f32.mrb[8].mxu0  ;;  %v3793_v30 = vpop.f32.mrb[8].mxu1 }
  0xec   :  { %6282 = vst [vmem:[#allocation18_spill] sm:$0xff] %v3791_v29  ;;  %6283 = vst [vmem:[#allocation19_spill] sm:$0xff] %v3793_v30  ;;  %v3802_v35 = vpop.f32.mrb[9].mxu0  ;;  %v3804_v36 = vpop.f32.mrb[9].mxu1  ;;  %v1602_v10 = vmul.f32 %v3791_v29, %v3791_v29 }
  0xed   :  { %6284 = vst [vmem:[#allocation20_spill] sm:$0xff] %v3802_v35  ;;  %6285 = vst [vmem:[#allocation21_spill] sm:$0xff] %v3804_v36  ;;  %1730 = vadd.xlane.f32.xlu1 %v1729_v31  ;;  %1212 = vadd.xlane.f32.xlu0 %v1211_v32  ;;  %v3806_v37 = vpop.f32.mrb[10].mxu0  ;;  %v3808_v38 = vpop.f32.mrb[10].mxu1  ;;  %v1424_v24 = vsel %vm1207_vm1, %v3804_v36, 0.0 }
  0xee   :  { %6286 = vst [vmem:[#allocation22_spill] sm:$0xff] %v3806_v37  ;;  %6287 = vst [vmem:[#allocation23_spill] sm:$0xff] %v3808_v38  ;;  %v3810_v39 = vpop.f32.mrb[11].mxu0  ;;  %v3812_v40 = vpop.f32.mrb[11].mxu1  ;;  %v1750_v11 = vsel %vm1207_vm1, %v1602_v10, 0.0 }
  0xef   :  { %6288 = vst [vmem:[#allocation24_spill] sm:$0xff] %v3810_v39  ;;  %6289 = vst [vmem:[#allocation25_spill] sm:$0xff] %v3812_v40  ;;  %v1427_v20 = vsel %vm1207_vm1, %v3812_v40, 0.0 }
  0xf1   :  { %1724 = vadd.xlane.f32.xlu1 %v1723_v41  ;;  %1721 = vadd.xlane.f32.xlu0 %v1720_v42  ;;  %v1732_v41 = vsel %vm1207_vm1, %v1596_v19, 0.0  ;;  %v1735_v42 = vsel %vm1207_vm1, %v1597_v26, 0.0 }
  0xf3   :  { %v3816_v43 = vpop.f32.mrb[12].mxu0  ;;  %v3818_v44 = vpop.f32.mrb[12].mxu1 }
  0xf4   :  { %6290 = vst [vmem:[#allocation26_spill] sm:$0xff] %v3816_v43  ;;  %6291 = vst [vmem:[#allocation27_spill] sm:$0xff] %v3818_v44  ;;  %v3824_v47 = vpop.f32.mrb[13].mxu0  ;;  %v3826_v48 = vpop.f32.mrb[13].mxu1 }
  0xf5   :  { %6292 = vst [vmem:[#allocation28_spill] sm:$0xff] %v3824_v47  ;;  %6293 = vst [vmem:[#allocation29_spill] sm:$0xff] %v3826_v48  ;;  %1227 = vadd.xlane.f32.xlu0 %v1226_v45  ;;  %1230 = vadd.xlane.f32.xlu1 %v1229_v46  ;;  %v3828_v49 = vpop.f32.mrb[14].mxu0  ;;  %v3830_v50 = vpop.f32.mrb[14].mxu1 }
  0xf6   :  { %6294 = vst [vmem:[#allocation30_spill] sm:$0xff] %v3828_v49  ;;  %6295 = vst [vmem:[#allocation31_spill] sm:$0xff] %v3830_v50  ;;  %v3832_v51 = vpop.f32.mrb[15].mxu0  ;;  %v3834_v52 = vpop.f32.mrb[15].mxu1  ;;  %v1445_v36 = vsel %vm1207_vm1, %v3830_v50, 0.0 }
  0xf7   :  { %6296 = vst [vmem:[#allocation32_spill] sm:$0xff] %v3832_v51  ;;  %6297 = vst [vmem:[#allocation33_spill] sm:$0xff] %v3834_v52 }
  0xf9   :  { %1419 = vadd.xlane.f32.xlu0 %v1418_v53  ;;  %1422 = vadd.xlane.f32.xlu1 %v1421_v54  ;;  %v1238_v53 = vsel %vm1207_vm1, %v3791_v29, 0.0  ;;  %v1241_v54 = vsel %vm1207_vm1, %v3806_v37, 0.0 }
  0xfb   :  { %v3840_v55 = vpop.f32.mrb[16].mxu0  ;;  %v3842_v56 = vpop.f32.mrb[16].mxu1 }
  0xfc   :  { %6298 = vst [vmem:[#allocation34_spill] sm:$0xff] %v3840_v55  ;;  %6299 = vst [vmem:[#allocation35_spill] sm:$0xff] %v3842_v56  ;;  %v3848_v59 = vpop.f32.mrb[17].mxu0  ;;  %v3850_v60 = vpop.f32.mrb[17].mxu1 }
  0xfd   :  { %6300 = vst [vmem:[#allocation36_spill] sm:$0xff] %v3848_v59  ;;  %6301 = vst [vmem:[#allocation37_spill] sm:$0xff] %v3850_v60  ;;  %1221 = vadd.xlane.f32.xlu0 %v1220_v57  ;;  %1224 = vadd.xlane.f32.xlu1 %v1223_v58  ;;  %v3852_v61 = vpop.f32.mrb[18].mxu0  ;;  %v3854_v62 = vpop.f32.mrb[18].mxu1 }
  0xfe   :  { %6302 = vst [vmem:[#allocation38_spill] sm:$0xff] %v3852_v61  ;;  %6303 = vst [vmem:[#allocation39_spill] sm:$0xff] %v3854_v62  ;;  %v3856_v63 = vpop.f32.mrb[19].mxu0  ;;  %v3858_v0 = vpop.f32.mrb[19].mxu1 }
  0xff   :  { %6304 = vst [vmem:[#allocation40_spill] sm:$0xff] %v3856_v63  ;;  %6305 = vst [vmem:[#allocation41_spill] sm:$0xff] %v3858_v0 }
 0x101   :  { %1413 = vadd.xlane.f32.xlu0 %v1412_v1  ;;  %1416 = vadd.xlane.f32.xlu1 %v1415_v2 }
 0x103   :  { %v3868_v13 = vpop.f32.mrb[20].mxu0  ;;  %v3870_v14 = vpop.f32.mrb[20].mxu1 }
 0x104   :  { %6306 = vst [vmem:[#allocation42_spill] sm:$0xff] %v3868_v13  ;;  %6307 = vst [vmem:[#allocation43_spill] sm:$0xff] %v3870_v14  ;;  %v3878_v27 = vpop.f32.mrb[21].mxu0  ;;  %v3880_v28 = vpop.f32.mrb[21].mxu1 }
 0x105   :  { %6308 = vst [vmem:[#allocation44_spill] sm:$0xff] %v3878_v27  ;;  %6309 = vst [vmem:[#allocation45_spill] sm:$0xff] %v3880_v28  ;;  %1739 = vadd.xlane.f32.xlu0 %v1738_v17  ;;  %1742 = vadd.xlane.f32.xlu1 %v1741_v18  ;;  %v3882_v31 = vpop.f32.mrb[22].mxu0  ;;  %v3884_v32 = vpop.f32.mrb[22].mxu1  ;;  %v1430_v17 = vsel %vm1207_vm1, %v3793_v30, 0.0  ;;  %v1433_v18 = vsel %vm1207_vm1, %v3808_v38, 0.0  ;;  %v1600_v38 = vmul.f32 %v3802_v35, %v3802_v35 }
 0x106   :  { %6310 = vst [vmem:[#allocation46_spill] sm:$0xff] %v3882_v31  ;;  %6311 = vst [vmem:[#allocation47_spill] sm:$0xff] %v3884_v32  ;;  %v3886_v33 = vpop.f32.mrb[23].mxu0  ;;  %v3888_v34 = vpop.f32.mrb[23].mxu1  ;;  %v1601_v30 = vmul.f32 %v3810_v39, %v3810_v39 }
 0x107   :  { %6312 = vst [vmem:[#allocation48_spill] sm:$0xff] %v3886_v33  ;;  %6313 = vst [vmem:[#allocation49_spill] sm:$0xff] %v3888_v34 }
 0x109   :  { %1733 = vadd.xlane.f32.xlu0 %v1732_v41  ;;  %1736 = vadd.xlane.f32.xlu1 %v1735_v42  ;;  %v1232_v41 = vsel %vm1207_vm1, %v3802_v35, 0.0  ;;  %v1235_v42 = vsel %vm1207_vm1, %v3810_v39, 0.0  ;;  %v1747_v35 = vsel %vm1207_vm1, %v1601_v30, 0.0  ;;  %v1250_v39 = vsel %vm1207_vm1, %v3816_v43, 0.0 }
 0x10a   :  { %v1244_v30 = vsel %vm1207_vm1, %v3824_v47, 0.0 }
 0x10b   :  { %v3892_v45 = vpop.f32.mrb[24].mxu0  ;;  %v3894_v46 = vpop.f32.mrb[24].mxu1 }
 0x10c   :  { %6314 = vst [vmem:[#allocation50_spill] sm:$0xff] %v3892_v45  ;;  %6315 = vst [vmem:[#allocation51_spill] sm:$0xff] %v3894_v46  ;;  %v3900_v57 = vpop.f32.mrb[25].mxu0  ;;  %v3902_v58 = vpop.f32.mrb[25].mxu1  ;;  %v1618_v6 = vmul.f32 %v3892_v45, %v3892_v45 }
 0x10d   :  { %6316 = vst [vmem:[#allocation52_spill] sm:$0xff] %v3900_v57  ;;  %6317 = vst [vmem:[#allocation53_spill] sm:$0xff] %v3902_v58  ;;  %1239 = vadd.xlane.f32.xlu0 %v1238_v53  ;;  %1242 = vadd.xlane.f32.xlu1 %v1241_v54  ;;  %v3904_v1 = vpop.f32.mrb[26].mxu0  ;;  %v3906_v2 = vpop.f32.mrb[26].mxu1  ;;  %v1472_v4 = vsel %vm1207_vm1, %v3902_v58, 0.0  ;;  %v1616_v58 = vmul.f32 %v3900_v57, %v3900_v57 }
 0x10e   :  { %6318 = vst [vmem:[#allocation54_spill] sm:$0xff] %v3904_v1  ;;  %6319 = vst [vmem:[#allocation55_spill] sm:$0xff] %v3906_v2  ;;  %v3908_v7 = vpop.f32.mrb[27].mxu0  ;;  %v3910_v8 = vpop.f32.mrb[27].mxu1 }
 0x10f   :  { %6320 = vst [vmem:[#allocation56_spill] sm:$0xff] %v3908_v7  ;;  %6321 = vst [vmem:[#allocation57_spill] sm:$0xff] %v3910_v8  ;;  %v1475_v12 = vsel %vm1207_vm1, %v3910_v8, 0.0  ;;  %v1617_v8 = vmul.f32 %v3908_v7, %v3908_v7 }
 0x111   :  { %1431 = vadd.xlane.f32.xlu0 %v1430_v17  ;;  %1434 = vadd.xlane.f32.xlu1 %v1433_v18 }
 0x113   :  { %v3916_v19 = vpop.f32.mrb[28].mxu0  ;;  %v3918_v26 = vpop.f32.mrb[28].mxu1 }
 0x114   :  { %6322 = vst [vmem:[#allocation58_spill] sm:$0xff] %v3916_v19  ;;  %6323 = vst [vmem:[#allocation59_spill] sm:$0xff] %v3918_v26  ;;  %v3924_v53 = vpop.f32.mrb[29].mxu0  ;;  %v3926_v54 = vpop.f32.mrb[29].mxu1 }
 0x115   :  { %6324 = vst [vmem:[#allocation60_spill] sm:$0xff] %v3924_v53  ;;  %6325 = vst [vmem:[#allocation61_spill] sm:$0xff] %v3926_v54  ;;  %1233 = vadd.xlane.f32.xlu0 %v1232_v41  ;;  %1236 = vadd.xlane.f32.xlu1 %v1235_v42  ;;  %v3928_v15 = vpop.f32.mrb[30].mxu0  ;;  %v3930_v17 = vpop.f32.mrb[30].mxu1  ;;  %v1603_v41 = vmul.f32 %v3806_v37, %v3806_v37 }
 0x116   :  { %6326 = vst [vmem:[#allocation62_spill] sm:$0xff] %v3928_v15  ;;  %6327 = vst [vmem:[#allocation63_spill] sm:$0xff] %v3930_v17  ;;  %v3932_v18 = vpop.f32.mrb[31].mxu0  ;;  %v3934_v22 = vpop.f32.mrb[31].mxu1 }
 0x117   :  { %6328 = vst [vmem:[#allocation64_spill] sm:$0xff] %v3932_v18  ;;  %6329 = vst [vmem:[#allocation65_spill] sm:$0xff] %v3934_v22  ;;  %v1753_v5 = vsel %vm1207_vm1, %v1603_v41, 0.0  ;;  %v1744_v41 = vsel %vm1207_vm1, %v1600_v38, 0.0 }
 0x119   :  { %1425 = vadd.xlane.f32.xlu0 %v1424_v24  ;;  %1428 = vadd.xlane.f32.xlu1 %v1427_v20 }
 0x11b   :  { %v3944_v42 = vpop.f32.mrb[32].mxu0  ;;  %v3946_v3 = vpop.f32.mrb[32].mxu1 }
 0x11c   :  { %6330 = vst [vmem:[#allocation66_spill] sm:$0xff] %v3944_v42  ;;  %6331 = vst [vmem:[#allocation67_spill] sm:$0xff] %v3946_v3  ;;  %v3954_v29 = vpop.f32.mrb[33].mxu0  ;;  %v3956_v40 = vpop.f32.mrb[33].mxu1 }
 0x11d   :  { %6332 = vst [vmem:[#allocation68_spill] sm:$0xff] %v3954_v29  ;;  %6333 = vst [vmem:[#allocation69_spill] sm:$0xff] %v3956_v40  ;;  %1751 = vadd.xlane.f32.xlu0 %v1750_v11  ;;  %1754 = vadd.xlane.f32.xlu1 %v1753_v5  ;;  %v3958_v20 = vpop.f32.mrb[34].mxu0  ;;  %v3960_v24 = vpop.f32.mrb[34].mxu1  ;;  %v1253_v5 = vsel %vm1207_vm1, %v3828_v49, 0.0  ;;  %v1442_v11 = vsel %vm1207_vm1, %v3818_v44, 0.0 }
 0x11e   :  { %6334 = vst [vmem:[#allocation70_spill] sm:$0xff] %v3958_v20  ;;  %6335 = vst [vmem:[#allocation71_spill] sm:$0xff] %v3960_v24  ;;  %v3962_v37 = vpop.f32.mrb[35].mxu0  ;;  %v3964_v10 = vpop.f32.mrb[35].mxu1 }
 0x11f   :  { %6336 = vst [vmem:[#allocation72_spill] sm:$0xff] %v3962_v37  ;;  %6337 = vst [vmem:[#allocation73_spill] sm:$0xff] %v3964_v10 }
 0x121   :  { %1745 = vadd.xlane.f32.xlu0 %v1744_v41  ;;  %1748 = vadd.xlane.f32.xlu1 %v1747_v35  ;;  %v1247_v35 = vsel %vm1207_vm1, %v3832_v51, 0.0  ;;  %v1439_v41 = vsel %vm1207_vm1, %v3834_v52, 0.0 }
 0x123   :  { %v3980_v38 = vpop.f32.mrb[36].mxu0  ;;  %v3996_v50 = vpop.f32.mrb[36].mxu1 }
 0x124   :  { %6338 = vst [vmem:[#allocation74_spill] sm:$0xff] %v3980_v38  ;;  %6342 = vst [vmem:[#allocation78_spill] sm:$0xff] %v3996_v50  ;;  %v3998_v44 = vpop.f32.mrb[37].mxu1 }
 0x125   :  { %1251 = vadd.xlane.f32.xlu0 %v1250_v39  ;;  %1254 = vadd.xlane.f32.xlu1 %v1253_v5  ;;  %v1436_v39 = vsel %vm1207_vm1, %v3826_v48, 0.0  ;;  %v1606_v5 = vmul.f32 %v3816_v43, %v3816_v43  ;;  %6343 = vst [vmem:[#allocation79_spill] sm:$0xff] %v3998_v44  ;;  %v1604_v43 = vmul.f32 %v3824_v47, %v3824_v47 }
 0x127   :  { %v1762_v52 = vsel %vm1207_vm1, %v1606_v5, 0.0  ;;  %v1756_v23 = vsel %vm1207_vm1, %v1604_v43, 0.0  ;;  %v1262_v5 = vsel %vm1207_vm1, %v3840_v55, 0.0 }
 0x129   :  { %1443 = vadd.xlane.f32.xlu0 %v1442_v11  ;;  %1446 = vadd.xlane.f32.xlu1 %v1445_v36  ;;  %v1607_v36 = vmul.f32 %v3828_v49, %v3828_v49  ;;  %v3990_v11 = vpop.f32.mrb[37].mxu0  ;;  %v1605_v49 = vmul.f32 %v3832_v51, %v3832_v51 }
 0x12a   :  { %6339 = vst [vmem:[#allocation75_spill] sm:$0xff] %v3990_v11 }
 0x12b   :  { %v1765_v48 = vsel %vm1207_vm1, %v1607_v36, 0.0  ;;  %v1759_v16 = vsel %vm1207_vm1, %v1605_v49, 0.0  ;;  %v1265_v36 = vsel %vm1207_vm1, %v3852_v61, 0.0  ;;  %v1448_v49 = vsel %vm1207_vm1, %v3850_v60, 0.0 }
 0x12d   :  { %1245 = vadd.xlane.f32.xlu0 %v1244_v30  ;;  %1248 = vadd.xlane.f32.xlu1 %v1247_v35  ;;  %v3992_v30 = vpop.f32.mrb[38].mxu0 }
 0x12e   :  { %6340 = vst [vmem:[#allocation76_spill] sm:$0xff] %v3992_v30  ;;  %v3994_v35 = vpop.f32.mrb[39].mxu0 }
 0x12f   :  { %6341 = vst [vmem:[#allocation77_spill] sm:$0xff] %v3994_v35  ;;  %v4024_v43 = vpop.f32.mrb[40].mxu0 }
 0x130   :  { %6346 = vst [vmem:[#allocation82_spill] sm:$0xff] %v4024_v43 }
 0x131   :  { %1437 = vadd.xlane.f32.xlu0 %v1436_v39  ;;  %1440 = vadd.xlane.f32.xlu1 %v1439_v41  ;;  %v4006_v39 = vpop.f32.mrb[38].mxu1 }
 0x132   :  { %6344 = vst [vmem:[#allocation80_spill] sm:$0xff] %v4006_v39  ;;  %v4008_v41 = vpop.f32.mrb[39].mxu1 }
 0x133   :  { %6345 = vst [vmem:[#allocation81_spill] sm:$0xff] %v4008_v41  ;;  %v4040_v51 = vpop.f32.mrb[40].mxu1 }
 0x134   :  { %6350 = vst [vmem:[#allocation86_spill] sm:$0xff] %v4040_v51 }
 0x135   :  { %1763 = vadd.xlane.f32.xlu0 %v1762_v52  ;;  %1766 = vadd.xlane.f32.xlu1 %v1765_v48  ;;  %v1454_v52 = vsel %vm1207_vm1, %v3842_v56, 0.0  ;;  %v1457_v48 = vsel %vm1207_vm1, %v3854_v62, 0.0  ;;  %v4048_v56 = vpop.f32.mrb[41].mxu1 }
 0x139   :  { %1757 = vadd.xlane.f32.xlu0 %v1756_v23  ;;  %1760 = vadd.xlane.f32.xlu1 %v1759_v16  ;;  %v1256_v23 = vsel %vm1207_vm1, %v3848_v59, 0.0  ;;  %v1259_v16 = vsel %vm1207_vm1, %v3856_v63, 0.0 }
 0x13d   :  { %1263 = vadd.xlane.f32.xlu0 %v1262_v5  ;;  %1266 = vadd.xlane.f32.xlu1 %v1265_v36  ;;  %v1451_v5 = vsel %vm1207_vm1, %v3858_v0, 0.0  ;;  %v1610_v36 = vmul.f32 %v3840_v55, %v3840_v55  ;;  %v1608_v55 = vmul.f32 %v3848_v59, %v3848_v59 }
 0x13f   :  { %v1774_v47 = vsel %vm1207_vm1, %v1610_v36, 0.0  ;;  %v1768_v0 = vsel %vm1207_vm1, %v1608_v55, 0.0  ;;  %v1268_v55 = vsel %vm1207_vm1, %v3878_v27, 0.0 }
 0x141   :  { %1455 = vadd.xlane.f32.xlu0 %v1454_v52  ;;  %1458 = vadd.xlane.f32.xlu1 %v1457_v48  ;;  %v1611_v52 = vmul.f32 %v3852_v61, %v3852_v61  ;;  %v4034_v48 = vpop.f32.mrb[41].mxu0  ;;  %v1609_v61 = vmul.f32 %v3856_v63, %v3856_v63  ;;  %v1277_v63 = vsel %vm1207_vm1, %v3882_v31, 0.0 }
 0x142   :  { %6347 = vst [vmem:[#allocation83_spill] sm:$0xff] %v4034_v48 }
 0x143   :  { %v1777_v62 = vsel %vm1207_vm1, %v1611_v52, 0.0  ;;  %v1771_v36 = vsel %vm1207_vm1, %v1609_v61, 0.0  ;;  %v1274_v52 = vsel %vm1207_vm1, %v3868_v13, 0.0  ;;  %v1271_v61 = vsel %vm1207_vm1, %v3886_v33, 0.0 }
 0x145   :  { %1257 = vadd.xlane.f32.xlu0 %v1256_v23  ;;  %1260 = vadd.xlane.f32.xlu1 %v1259_v16  ;;  %v4036_v23 = vpop.f32.mrb[42].mxu0 }
 0x146   :  { %6348 = vst [vmem:[#allocation84_spill] sm:$0xff] %v4036_v23  ;;  %v4038_v16 = vpop.f32.mrb[43].mxu0 }
 0x147   :  { %6349 = vst [vmem:[#allocation85_spill] sm:$0xff] %v4038_v16 }
 0x149   :  { %1449 = vadd.xlane.f32.xlu0 %v1448_v49  ;;  %1452 = vadd.xlane.f32.xlu1 %v1451_v5  ;;  %v4050_v49 = vpop.f32.mrb[42].mxu1 }
 0x14a   :  { %6351 = vst [vmem:[#allocation87_spill] sm:$0xff] %v4050_v49  ;;  %v4052_v5 = vpop.f32.mrb[43].mxu1 }
 0x14b   :  { %6352 = vst [vmem:[#allocation88_spill] sm:$0xff] %v4052_v5  ;;  %v4084_v59 = vpop.f32.mrb[44].mxu1 }
 0x14c   :  { %6357 = vst [vmem:[#allocation93_spill] sm:$0xff] %v4084_v59 }
 0x14d   :  { %1775 = vadd.xlane.f32.xlu0 %v1774_v47  ;;  %1778 = vadd.xlane.f32.xlu1 %v1777_v62  ;;  %v1466_v47 = vsel %vm1207_vm1, %v3870_v14, 0.0  ;;  %v1469_v62 = vsel %vm1207_vm1, %v3884_v32, 0.0 }
 0x151   :  { %1769 = vadd.xlane.f32.xlu0 %v1768_v0  ;;  %1772 = vadd.xlane.f32.xlu1 %v1771_v36  ;;  %v4068_v0 = vpop.f32.mrb[44].mxu0  ;;  %v1463_v36 = vsel %vm1207_vm1, %v3888_v34, 0.0  ;;  %v4092_v34 = vpop.f32.mrb[45].mxu1 }
 0x152   :  { %6353 = vst [vmem:[#allocation89_spill] sm:$0xff] %v4068_v0  ;;  %6358 = vst [vmem:[#allocation94_spill] sm:$0xff] %v4092_v34 }
 0x155   :  { %1275 = vadd.xlane.f32.xlu0 %v1274_v52  ;;  %1278 = vadd.xlane.f32.xlu1 %v1277_v63  ;;  %v1460_v63 = vsel %vm1207_vm1, %v3880_v28, 0.0  ;;  %v1614_v52 = vmul.f32 %v3868_v13, %v3868_v13  ;;  %v1612_v13 = vmul.f32 %v3878_v27, %v3878_v27 }
 0x157   :  { %v1786_v32 = vsel %vm1207_vm1, %v1614_v52, 0.0  ;;  %v1780_v28 = vsel %vm1207_vm1, %v1612_v13, 0.0 }
 0x159   :  { %1467 = vadd.xlane.f32.xlu0 %v1466_v47  ;;  %1470 = vadd.xlane.f32.xlu1 %v1469_v62  ;;  %v1615_v47 = vmul.f32 %v3882_v31, %v3882_v31  ;;  %v4078_v62 = vpop.f32.mrb[45].mxu0  ;;  %v1613_v31 = vmul.f32 %v3886_v33, %v3886_v33  ;;  %v1286_v33 = vsel %vm1207_vm1, %v3892_v45, 0.0 }
 0x15a   :  { %6354 = vst [vmem:[#allocation90_spill] sm:$0xff] %v4078_v62 }
 0x15b   :  { %v1789_v14 = vsel %vm1207_vm1, %v1615_v47, 0.0  ;;  %v1783_v52 = vsel %vm1207_vm1, %v1613_v31, 0.0  ;;  %v1481_v31 = vsel %vm1207_vm1, %v3906_v2, 0.0  ;;  %v1283_v2 = vsel %vm1207_vm1, %v3908_v7, 0.0 }
 0x15d   :  { %1269 = vadd.xlane.f32.xlu0 %v1268_v55  ;;  %1272 = vadd.xlane.f32.xlu1 %v1271_v61  ;;  %v4080_v55 = vpop.f32.mrb[46].mxu0 }
 0x15e   :  { %6355 = vst [vmem:[#allocation91_spill] sm:$0xff] %v4080_v55  ;;  %v4082_v61 = vpop.f32.mrb[47].mxu0 }
 0x15f   :  { %6356 = vst [vmem:[#allocation92_spill] sm:$0xff] %v4082_v61  ;;  %v4112_v13 = vpop.f32.mrb[48].mxu0 }
 0x160   :  { %6362 = vst [vmem:[#allocation98_spill] sm:$0xff] %v4112_v13 }
 0x161   :  { %1461 = vadd.xlane.f32.xlu0 %v1460_v63  ;;  %1464 = vadd.xlane.f32.xlu1 %v1463_v36  ;;  %v4094_v63 = vpop.f32.mrb[46].mxu1 }
 0x162   :  { %6359 = vst [vmem:[#allocation95_spill] sm:$0xff] %v4094_v63  ;;  %v4096_v36 = vpop.f32.mrb[47].mxu1 }
 0x163   :  { %6360 = vst [vmem:[#allocation96_spill] sm:$0xff] %v4096_v36  ;;  %v4128_v21 = vpop.f32.mrb[48].mxu1 }
 0x164   :  { %6368 = vst [vmem:[#allocation104_spill] sm:$0xff] %v4128_v21  ;;  %v4134_v9 = vpop.f32.mrb[49].mxu1 }
 0x165   :  { %1787 = vadd.xlane.f32.xlu0 %v1786_v32  ;;  %1790 = vadd.xlane.f32.xlu1 %v1789_v14  ;;  %v1289_v14 = vsel %vm1207_vm1, %v3904_v1, 0.0  ;;  %6369 = vst [vmem:[#allocation105_spill] sm:$0xff] %v4134_v9 }
 0x169   :  { %1781 = vadd.xlane.f32.xlu0 %v1780_v28  ;;  %1784 = vadd.xlane.f32.xlu1 %v1783_v52  ;;  %v1478_v28 = vsel %vm1207_vm1, %v3894_v46, 0.0  ;;  %v4118_v52 = vpop.f32.mrb[49].mxu0  ;;  %v1280_v46 = vsel %vm1207_vm1, %v3900_v57, 0.0 }
 0x16a   :  { %v4100_v47 = vpop.xlane.xlu0 %1407  ;;  %v4102_v27 = vpop.xlane.xlu1 %1215  ;;  %6363 = vst [vmem:[#allocation99_spill] sm:$0xff] %v4118_v52 }
 0x16b   :  { %6361 = vst [vmem:[#allocation97_spill] sm:$0xff] %v4100_v47  ;;  %v4120_v47 = vpop.f32.mrb[50].mxu0 }
 0x16c   :  { %6364 = vst [vmem:[#allocation100_spill] sm:$0xff] %v4120_v47  ;;  %v4126_v25 = vpop.f32.mrb[51].mxu0 }
 0x16d   :  { %1287 = vadd.xlane.f32.xlu0 %v1286_v33  ;;  %1290 = vadd.xlane.f32.xlu1 %v1289_v14  ;;  %6367 = vst [vmem:[#allocation103_spill] sm:$0xff] %v4126_v25 }
 0x16e   :  { %v4108_v32 = vpop.xlane.xlu0 %1209  ;;  %v4110_v60 = vpop.xlane.xlu1 %1218 }
 0x171   :  { %1479 = vadd.xlane.f32.xlu0 %v1478_v28  ;;  %1482 = vadd.xlane.f32.xlu1 %v1481_v31  ;;  %v4136_v28 = vpop.f32.mrb[50].mxu1 }
 0x172   :  { %v4122_v33 = vpop.xlane.xlu0 %1401  ;;  %v4124_v14 = vpop.xlane.xlu1 %1410  ;;  %6370 = vst [vmem:[#allocation106_spill] sm:$0xff] %v4136_v28 }
 0x173   :  { %6365 = vst [vmem:[#allocation101_spill] sm:$0xff] %v4122_v33  ;;  %6366 = vst [vmem:[#allocation102_spill] sm:$0xff] %v4124_v14  ;;  %v4142_v14 = vpop.f32.mrb[51].mxu1 }
 0x174   :  { %6372 = vst [vmem:[#allocation108_spill] sm:$0xff] %v4142_v14  ;;  %v4180_v7 = vpop.f32.mrb[52].mxu1 }
 0x175   :  { %1281 = vadd.xlane.f32.xlu0 %v1280_v46  ;;  %1284 = vadd.xlane.f32.xlu1 %v1283_v2  ;;  %v1619_v46 = vmul.f32 %v3904_v1, %v3904_v1  ;;  %v1792_v1 = vsel %vm1207_vm1, %v1616_v58, 0.0  ;;  %6377 = vst [vmem:[#allocation113_spill] sm:$0xff] %v4180_v7  ;;  %v1301_v58 = vsel %vm1207_vm1, %v3928_v15, 0.0  ;;  %v1493_v7 = vsel %vm1207_vm1, %v3930_v17, 0.0 }
 0x176   :  { %v4138_v31 = vpop.xlane.xlu0 %1727  ;;  %v4140_v33 = vpop.xlane.xlu1 %1404  ;;  %v1622_v17 = vmul.f32 %v3916_v19, %v3916_v19 }
 0x177   :  { %6371 = vst [vmem:[#allocation107_spill] sm:$0xff] %v4140_v33  ;;  %v1798_v33 = vsel %vm1207_vm1, %v1618_v6, 0.0  ;;  %v1801_v14 = vsel %vm1207_vm1, %v1619_v46, 0.0  ;;  %v1795_v6 = vsel %vm1207_vm1, %v1617_v8, 0.0  ;;  %v4186_v8 = vpop.f32.mrb[53].mxu1 }
 0x178   :  { %6378 = vst [vmem:[#allocation114_spill] sm:$0xff] %v4186_v8  ;;  %v1623_v8 = vmul.f32 %v3928_v15, %v3928_v15  ;;  %v1620_v15 = vmul.f32 %v3924_v53, %v3924_v53 }
 0x179   :  { %1473 = vadd.xlane.f32.xlu0 %v1472_v4  ;;  %1476 = vadd.xlane.f32.xlu1 %v1475_v12  ;;  %v4166_v12 = vpop.f32.mrb[52].mxu0 }
 0x17a   :  { %v4152_v2 = vpop.xlane.xlu1 %1730  ;;  %v4154_v9 = vpop.xlane.xlu0 %1212  ;;  %6373 = vst [vmem:[#allocation109_spill] sm:$0xff] %v4166_v12  ;;  %v1298_v12 = vsel %vm1207_vm1, %v3916_v19, 0.0  ;;  %v1813_v19 = vsel %vm1207_vm1, %v1623_v8, 0.0 }
 0x17b   :  { %v4170_v25 = vpop.f32.mrb[53].mxu0 }
 0x17c   :  { %6374 = vst [vmem:[#allocation110_spill] sm:$0xff] %v4170_v25  ;;  %v4172_v46 = vpop.f32.mrb[54].mxu0 }
 0x17d   :  { %1799 = vadd.xlane.f32.xlu0 %v1798_v33  ;;  %1802 = vadd.xlane.f32.xlu1 %v1801_v14  ;;  %6375 = vst [vmem:[#allocation111_spill] sm:$0xff] %v4172_v46  ;;  %v4178_v14 = vpop.f32.mrb[55].mxu0 }
 0x17e   :  { %v4162_v45 = vpop.xlane.xlu1 %1724  ;;  %v4164_v4 = vpop.xlane.xlu0 %1721  ;;  %6376 = vst [vmem:[#allocation112_spill] sm:$0xff] %v4178_v14  ;;  %v1490_v14 = vsel %vm1207_vm1, %v3918_v26, 0.0 }
 0x181   :  { %1793 = vadd.xlane.f32.xlu0 %v1792_v1  ;;  %1796 = vadd.xlane.f32.xlu1 %v1795_v6  ;;  %v4188_v1 = vpop.f32.mrb[54].mxu1 }
 0x182   :  { %v4174_v57 = vpop.xlane.xlu0 %1227  ;;  %v4176_v33 = vpop.xlane.xlu1 %1230  ;;  %6379 = vst [vmem:[#allocation115_spill] sm:$0xff] %v4188_v1 }
 0x183   :  { %v4194_v46 = vpop.f32.mrb[55].mxu1 }
 0x184   :  { %6382 = vst [vmem:[#allocation118_spill] sm:$0xff] %v4194_v46  ;;  %v4212_v46 = vpop.f32.mrb[56].mxu0 }
 0x185   :  { %1299 = vadd.xlane.f32.xlu0 %v1298_v12  ;;  %1302 = vadd.xlane.f32.xlu1 %v1301_v58  ;;  %v1292_v58 = vsel %vm1207_vm1, %v3924_v53, 0.0  ;;  %6385 = vst [vmem:[#allocation121_spill] sm:$0xff] %v4212_v46  ;;  %v4232_v46 = vpop.f32.mrb[56].mxu1 }
 0x186   :  { %v4190_v6 = vpop.xlane.xlu0 %1419  ;;  %v4192_v25 = vpop.xlane.xlu1 %1422  ;;  %6389 = vst [vmem:[#allocation125_spill] sm:$0xff] %v4232_v46 }
 0x187   :  { %6380 = vst [vmem:[#allocation116_spill] sm:$0xff] %v4190_v6  ;;  %6381 = vst [vmem:[#allocation117_spill] sm:$0xff] %v4192_v25  ;;  %v1295_v25 = vsel %vm1207_vm1, %v3932_v18, 0.0 }
 0x189   :  { %1491 = vadd.xlane.f32.xlu0 %v1490_v14  ;;  %1494 = vadd.xlane.f32.xlu1 %v1493_v7  ;;  %v1484_v7 = vsel %vm1207_vm1, %v3926_v54, 0.0  ;;  %v1487_v14 = vsel %vm1207_vm1, %v3934_v22, 0.0  ;;  %v1810_v22 = vsel %vm1207_vm1, %v1622_v17, 0.0  ;;  %v1804_v17 = vsel %vm1207_vm1, %v1620_v15, 0.0 }
 0x18a   :  { %v4200_v52 = vpop.xlane.xlu0 %1221  ;;  %v4202_v12 = vpop.xlane.xlu1 %1224 }
 0x18d   :  { %1293 = vadd.xlane.f32.xlu0 %v1292_v58  ;;  %1296 = vadd.xlane.f32.xlu1 %v1295_v25  ;;  %v4222_v58 = vpop.f32.mrb[57].mxu0 }
 0x18e   :  { %v4208_v6 = vpop.xlane.xlu0 %1413  ;;  %v4210_v26 = vpop.xlane.xlu1 %1416  ;;  %6386 = vst [vmem:[#allocation122_spill] sm:$0xff] %v4222_v58 }
 0x18f   :  { %6383 = vst [vmem:[#allocation119_spill] sm:$0xff] %v4208_v6  ;;  %6384 = vst [vmem:[#allocation120_spill] sm:$0xff] %v4210_v26  ;;  %v4224_v25 = vpop.f32.mrb[58].mxu0 }
 0x190   :  { %6387 = vst [vmem:[#allocation123_spill] sm:$0xff] %v4224_v25  ;;  %v4230_v54 = vpop.f32.mrb[59].mxu0 }
 0x191   :  { %1485 = vadd.xlane.f32.xlu0 %v1484_v7  ;;  %1488 = vadd.xlane.f32.xlu1 %v1487_v14  ;;  %6388 = vst [vmem:[#allocation124_spill] sm:$0xff] %v4230_v54  ;;  %v1621_v7 = vmul.f32 %v3932_v18, %v3932_v18  ;;  %v4240_v14 = vpop.f32.mrb[57].mxu1 }
 0x192   :  { %v4226_v26 = vpop.xlane.xlu0 %1739  ;;  %v4228_v6 = vpop.xlane.xlu1 %1742  ;;  %6390 = vst [vmem:[#allocation126_spill] sm:$0xff] %v4240_v14 }
 0x193   :  { %v4242_v58 = vpop.f32.mrb[58].mxu1  ;;  %v1807_v8 = vsel %vm1207_vm1, %v1621_v7, 0.0 }
 0x194   :  { %6391 = vst [vmem:[#allocation127_spill] sm:$0xff] %v4242_v58  ;;  %v4248_v46 = vpop.f32.mrb[59].mxu1 }
 0x195   :  { %1811 = vadd.xlane.f32.xlu0 %v1810_v22  ;;  %1814 = vadd.xlane.f32.xlu1 %v1813_v19  ;;  %6392 = vst [vmem:[#allocation128_spill] sm:$0xff] %v4248_v46  ;;  %v1310_v19 = vsel %vm1207_vm1, %v3944_v42, 0.0  ;;  %v1313_v46 = vsel %vm1207_vm1, %v3958_v20, 0.0 }
 0x196   :  { %v4244_v25 = vpop.xlane.xlu0 %1733  ;;  %v4246_v54 = vpop.xlane.xlu1 %1736 }
 0x199   :  { %1805 = vadd.xlane.f32.xlu0 %v1804_v17  ;;  %1808 = vadd.xlane.f32.xlu1 %v1807_v8  ;;  %v4266_v17 = vpop.f32.mrb[60].mxu0 }
 0x19a   :  { %v1240_v53 = vpop.xlane.xlu0 %1239  ;;  %v1243_v18 = vpop.xlane.xlu1 %1242  ;;  %6395 = vst [vmem:[#allocation131_spill] sm:$0xff] %v4266_v17 }
 0x19b   :  { %v4253_v14 = vadd.f32 %v1240_v53, %v4102_v27  ;;  %v4256_v22 = vadd.f32 %v1243_v18, %v4110_v60  ;;  %v1502_v27 = vsel %vm1207_vm1, %v3946_v3, 0.0  ;;  %v1505_v60 = vsel %vm1207_vm1, %v3960_v24, 0.0  ;;  %v4272_v53 = vpop.f32.mrb[61].mxu0 }
 0x19c   :  { %6396 = vst [vmem:[#allocation132_spill] sm:$0xff] %v4272_v53  ;;  %v1304_v3 = vsel %vm1207_vm1, %v3954_v29, 0.0  ;;  %v1626_v53 = vmul.f32 %v3944_v42, %v3944_v42  ;;  %v1624_v42 = vmul.f32 %v3954_v29, %v3954_v29 }
 0x19d   :  { %1311 = vadd.xlane.f32.xlu0 %v1310_v19  ;;  %1314 = vadd.xlane.f32.xlu1 %v1313_v46 }
 0x19e   :  { %v4262_v15 = vpop.xlane.xlu0 %1431  ;;  %v4264_v7 = vpop.xlane.xlu1 %1434 }
 0x19f   :  { %6393 = vst [vmem:[#allocation129_spill] sm:$0xff] %v4262_v15  ;;  %6394 = vst [vmem:[#allocation130_spill] sm:$0xff] %v4264_v7  ;;  %v4280_v7 = vpop.f32.mrb[62].mxu0  ;;  %v4282_v15 = vpop.f32.mrb[60].mxu1 }
 0x1a0   :  { %6397 = vst [vmem:[#allocation133_spill] sm:$0xff] %v4280_v7  ;;  %6398 = vst [vmem:[#allocation134_spill] sm:$0xff] %v4282_v15  ;;  %v4290_v24 = vpop.f32.mrb[61].mxu1  ;;  %v1627_v7 = vmul.f32 %v3958_v20, %v3958_v20  ;;  %v1625_v20 = vmul.f32 %v3962_v37, %v3962_v37 }
 0x1a1   :  { %1503 = vadd.xlane.f32.xlu0 %v1502_v27  ;;  %1506 = vadd.xlane.f32.xlu1 %v1505_v60  ;;  %v1307_v27 = vsel %vm1207_vm1, %v3962_v37, 0.0  ;;  %v4288_v60 = vpop.f32.mrb[63].mxu0  ;;  %6400 = vst [vmem:[#allocation136_spill] sm:$0xff] %v4290_v24 }
 0x1a2   :  { %v1234_v18 = vpop.xlane.xlu0 %1233  ;;  %v1237_v8 = vpop.xlane.xlu1 %1236  ;;  %6399 = vst [vmem:[#allocation135_spill] sm:$0xff] %v4288_v60  ;;  %v1496_v60 = vsel %vm1207_vm1, %v3956_v40, 0.0  ;;  %v1822_v40 = vsel %vm1207_vm1, %v1626_v53, 0.0 }
 0x1a3   :  { %v4275_v46 = vadd.f32 %v1234_v18, %v4108_v32  ;;  %v4278_v19 = vadd.f32 %v1237_v8, %v4154_v9  ;;  %v4292_v32 = vpop.f32.mrb[62].mxu1 }
 0x1a4   :  { %6401 = vst [vmem:[#allocation137_spill] sm:$0xff] %v4292_v32  ;;  %v4298_v8 = vpop.f32.mrb[63].mxu1 }
 0x1a5   :  { %1305 = vadd.xlane.f32.xlu0 %v1304_v3  ;;  %1308 = vadd.xlane.f32.xlu1 %v1307_v27  ;;  %6404 = vst [vmem:[#allocation140_spill] sm:$0xff] %v4298_v8  ;;  %v1499_v3 = vsel %vm1207_vm1, %v3964_v10, 0.0  ;;  %v1825_v10 = vsel %vm1207_vm1, %v1627_v7, 0.0 }
 0x1a6   :  { %v4294_v9 = vpop.xlane.xlu0 %1425  ;;  %v4296_v18 = vpop.xlane.xlu1 %1428 }
 0x1a7   :  { %6402 = vst [vmem:[#allocation138_spill] sm:$0xff] %v4294_v9  ;;  %6403 = vst [vmem:[#allocation139_spill] sm:$0xff] %v4296_v18 }
 0x1a9   :  { %1497 = vadd.xlane.f32.xlu0 %v1496_v60  ;;  %1500 = vadd.xlane.f32.xlu1 %v1499_v3 }
 0x1aa   :  { %v1752_v27 = vpop.xlane.xlu0 %1751  ;;  %v1755_v9 = vpop.xlane.xlu1 %1754 }
 0x1ab   :  { %v4309_v18 = vadd.f32 %v1752_v27, %v4138_v31  ;;  %v4312_v8 = vadd.f32 %v1755_v9, %v4152_v2  ;;  %v1816_v9 = vsel %vm1207_vm1, %v1624_v42, 0.0  ;;  %v1819_v27 = vsel %vm1207_vm1, %v1625_v20, 0.0 }
 0x1ad   :  { %1823 = vadd.xlane.f32.xlu0 %v1822_v40  ;;  %1826 = vadd.xlane.f32.xlu1 %v1825_v10  ;;  %v1322_v10 = vsel %vm1207_vm1, %v3980_v38, 0.0 }
 0x1ae   :  { %v1746_v60 = vpop.xlane.xlu0 %1745  ;;  %v1749_v3 = vpop.xlane.xlu1 %1748 }
 0x1af   :  { %v4321_v31 = vadd.f32 %v1746_v60, %v4164_v4  ;;  %v4324_v2 = vadd.f32 %v1749_v3, %v4162_v45  ;;  %v1325_v45 = vsel %vm1207_vm1, %v3992_v30, 0.0  ;;  %v1514_v4 = vsel %vm1207_vm1, %v3996_v50, 0.0 }
 0x1b1   :  { %1817 = vadd.xlane.f32.xlu0 %v1816_v9  ;;  %1820 = vadd.xlane.f32.xlu1 %v1819_v27  ;;  %v1316_v9 = vsel %vm1207_vm1, %v3990_v11, 0.0  ;;  %v1319_v27 = vsel %vm1207_vm1, %v3994_v35, 0.0 }
 0x1b2   :  { %v1252_v37 = vpop.xlane.xlu0 %1251  ;;  %v1255_v53 = vpop.xlane.xlu1 %1254 }
 0x1b3   :  { %v4329_v7 = vadd.f32 %v1252_v37, %v4174_v57  ;;  %v4332_v40 = vadd.f32 %v1255_v53, %v4176_v33  ;;  %v1517_v37 = vsel %vm1207_vm1, %v4006_v39, 0.0 }
 0x1b5   :  { %1323 = vadd.xlane.f32.xlu0 %v1322_v10  ;;  %1326 = vadd.xlane.f32.xlu1 %v1325_v45  ;;  %v1630_v45 = vmul.f32 %v3980_v38, %v3980_v38  ;;  %v1629_v38 = vmul.f32 %v3994_v35, %v3994_v35 }
 0x1b6   :  { %v4338_v42 = vpop.xlane.xlu0 %1443  ;;  %v4340_v20 = vpop.xlane.xlu1 %1446 }
 0x1b7   :  { %6405 = vst [vmem:[#allocation141_spill] sm:$0xff] %v4338_v42  ;;  %6406 = vst [vmem:[#allocation142_spill] sm:$0xff] %v4340_v20 }
 0x1b9   :  { %1515 = vadd.xlane.f32.xlu0 %v1514_v4  ;;  %1518 = vadd.xlane.f32.xlu1 %v1517_v37  ;;  %v1511_v4 = vsel %vm1207_vm1, %v4008_v41, 0.0 }
 0x1ba   :  { %v1246_v57 = vpop.xlane.xlu0 %1245  ;;  %v1249_v33 = vpop.xlane.xlu1 %1248 }
 0x1bb   :  { %v4347_v60 = vadd.f32 %v1246_v57, %v4200_v52  ;;  %v4350_v3 = vadd.f32 %v1249_v33, %v4202_v12  ;;  %v1631_v52 = vmul.f32 %v3992_v30, %v3992_v30  ;;  %v1508_v12 = vsel %vm1207_vm1, %v3998_v44, 0.0 }
 0x1bc   :  { %v1834_v30 = vsel %vm1207_vm1, %v1630_v45, 0.0 }
 0x1bd   :  { %1317 = vadd.xlane.f32.xlu0 %v1316_v9  ;;  %1320 = vadd.xlane.f32.xlu1 %v1319_v27  ;;  %v1628_v27 = vmul.f32 %v3990_v11, %v3990_v11  ;;  %v1837_v29 = vsel %vm1207_vm1, %v1631_v52, 0.0  ;;  %v1633_v11 = vmul.f32 %v4038_v16, %v4038_v16 }
 0x1be   :  { %v4356_v53 = vpop.xlane.xlu0 %1437  ;;  %v4358_v10 = vpop.xlane.xlu1 %1440 }
 0x1bf   :  { %6407 = vst [vmem:[#allocation143_spill] sm:$0xff] %v4356_v53  ;;  %6408 = vst [vmem:[#allocation144_spill] sm:$0xff] %v4358_v10 }
 0x1c1   :  { %1509 = vadd.xlane.f32.xlu0 %v1508_v12  ;;  %1512 = vadd.xlane.f32.xlu1 %v1511_v4 }
 0x1c2   :  { %v1764_v37 = vpop.xlane.xlu0 %1763  ;;  %v1767_v57 = vpop.xlane.xlu1 %1766 }
 0x1c3   :  { %v4369_v33 = vadd.f32 %v1764_v37, %v4226_v26  ;;  %v4372_v9 = vadd.f32 %v1767_v57, %v4228_v6  ;;  %v1828_v37 = vsel %vm1207_vm1, %v1628_v27, 0.0  ;;  %v1831_v57 = vsel %vm1207_vm1, %v1629_v38, 0.0 }
 0x1c4   :  { %v1526_v27 = vsel %vm1207_vm1, %v4040_v51, 0.0 }
 0x1c5   :  { %1835 = vadd.xlane.f32.xlu0 %v1834_v30  ;;  %1838 = vadd.xlane.f32.xlu1 %v1837_v29  ;;  %v1334_v30 = vsel %vm1207_vm1, %v4024_v43, 0.0 }
 0x1c6   :  { %v1758_v12 = vpop.xlane.xlu0 %1757  ;;  %v1761_v4 = vpop.xlane.xlu1 %1760 }
 0x1c7   :  { %v4381_v26 = vadd.f32 %v1758_v12, %v4244_v25  ;;  %v4384_v6 = vadd.f32 %v1761_v4, %v4246_v54  ;;  %v1337_v54 = vsel %vm1207_vm1, %v4036_v23, 0.0 }
 0x1c9   :  { %1829 = vadd.xlane.f32.xlu0 %v1828_v37  ;;  %1832 = vadd.xlane.f32.xlu1 %v1831_v57  ;;  %v1328_v37 = vsel %vm1207_vm1, %v4034_v48, 0.0  ;;  %v1331_v57 = vsel %vm1207_vm1, %v4038_v16, 0.0 }
 0x1ca   :  { %v1264_v35 = vpop.xlane.xlu0 %1263  ;;  %v1267_v45 = vpop.xlane.xlu1 %1266 }
 0x1cb   :  { %v4389_v52 = vadd.f32 %v4253_v14, %v1264_v35  ;;  %v4392_v29 = vadd.f32 %v4256_v22, %v1267_v45  ;;  %v1529_v35 = vsel %vm1207_vm1, %v4050_v49, 0.0 }
 0x1cd   :  { %1335 = vadd.xlane.f32.xlu0 %v1334_v30  ;;  %1338 = vadd.xlane.f32.xlu1 %v1337_v54  ;;  %v1634_v54 = vmul.f32 %v4024_v43, %v4024_v43 }
 0x1ce   :  { %v4398_v25 = vpop.xlane.xlu0 %1455  ;;  %v4400_v38 = vpop.xlane.xlu1 %1458 }
 0x1d1   :  { %1527 = vadd.xlane.f32.xlu0 %v1526_v27  ;;  %1530 = vadd.xlane.f32.xlu1 %v1529_v35  ;;  %v1523_v27 = vsel %vm1207_vm1, %v4052_v5, 0.0 }
 0x1d2   :  { %v1258_v14 = vpop.xlane.xlu0 %1257  ;;  %v1261_v22 = vpop.xlane.xlu1 %1260 }
 0x1d3   :  { %v4407_v12 = vadd.f32 %v4275_v46, %v1258_v14  ;;  %v4410_v4 = vadd.f32 %v4278_v19, %v1261_v22  ;;  %v1635_v46 = vmul.f32 %v4036_v23, %v4036_v23  ;;  %v1520_v19 = vsel %vm1207_vm1, %v4048_v56, 0.0 }
 0x1d4   :  { %v1846_v23 = vsel %vm1207_vm1, %v1634_v54, 0.0 }
 0x1d5   :  { %1329 = vadd.xlane.f32.xlu0 %v1328_v37  ;;  %1332 = vadd.xlane.f32.xlu1 %v1331_v57  ;;  %v1632_v57 = vmul.f32 %v4034_v48, %v4034_v48  ;;  %v1849_v43 = vsel %vm1207_vm1, %v1635_v46, 0.0 }
 0x1d6   :  { %v4416_v45 = vpop.xlane.xlu0 %1449  ;;  %v4418_v30 = vpop.xlane.xlu1 %1452 }
 0x1d9   :  { %1521 = vadd.xlane.f32.xlu0 %v1520_v19  ;;  %1524 = vadd.xlane.f32.xlu1 %v1523_v27 }
 0x1da   :  { %v1776_v35 = vpop.xlane.xlu0 %1775  ;;  %v1779_v14 = vpop.xlane.xlu1 %1778 }
 0x1db   :  { %v4429_v22 = vadd.f32 %v4309_v18, %v1776_v35  ;;  %v4432_v37 = vadd.f32 %v4312_v8, %v1779_v14  ;;  %v1840_v35 = vsel %vm1207_vm1, %v1632_v57, 0.0  ;;  %v1843_v14 = vsel %vm1207_vm1, %v1633_v11, 0.0 }
 0x1dc   :  { %v1538_v57 = vsel %vm1207_vm1, %v4084_v59, 0.0 }
 0x1dd   :  { %1847 = vadd.xlane.f32.xlu0 %v1846_v23  ;;  %1850 = vadd.xlane.f32.xlu1 %v1849_v43  ;;  %v1346_v23 = vsel %vm1207_vm1, %v4068_v0, 0.0 }
 0x1de   :  { %v1770_v19 = vpop.xlane.xlu0 %1769  ;;  %v1773_v27 = vpop.xlane.xlu1 %1772 }
 0x1df   :  { %v4441_v18 = vadd.f32 %v4321_v31, %v1770_v19  ;;  %v4444_v8 = vadd.f32 %v4324_v2, %v1773_v27  ;;  %v1349_v31 = vsel %vm1207_vm1, %v4080_v55, 0.0 }
 0x1e1   :  { %1841 = vadd.xlane.f32.xlu0 %v1840_v35  ;;  %1844 = vadd.xlane.f32.xlu1 %v1843_v14  ;;  %v1340_v35 = vsel %vm1207_vm1, %v4078_v62, 0.0  ;;  %v1343_v14 = vsel %vm1207_vm1, %v4082_v61, 0.0 }
 0x1e2   :  { %v1276_v16 = vpop.xlane.xlu0 %1275  ;;  %v1279_v54 = vpop.xlane.xlu1 %1278 }
 0x1e3   :  { %v4449_v46 = vadd.f32 %v4329_v7, %v1276_v16  ;;  %v4452_v43 = vadd.f32 %v4332_v40, %v1279_v54  ;;  %v1541_v16 = vsel %vm1207_vm1, %v4094_v63, 0.0 }
 0x1e5   :  { %1347 = vadd.xlane.f32.xlu0 %v1346_v23  ;;  %1350 = vadd.xlane.f32.xlu1 %v1349_v31  ;;  %v1532_v31 = vsel %vm1207_vm1, %v4092_v34, 0.0 }
 0x1e6   :  { %v4458_v2 = vpop.xlane.xlu0 %1467  ;;  %v4460_v11 = vpop.xlane.xlu1 %1470 }
 0x1e7   :  { %6409 = vst [vmem:[#allocation145_spill] sm:$0xff] %v4458_v2  ;;  %6410 = vst [vmem:[#allocation146_spill] sm:$0xff] %v4460_v11  ;;  %v6418_v11 = vld [vmem:[#allocation111_spill] sm:$0xff] }
 0x1e9   :  { %1539 = vadd.xlane.f32.xlu0 %v1538_v57  ;;  %1542 = vadd.xlane.f32.xlu1 %v1541_v16 }
 0x1ea   :  { %v1270_v7 = vpop.xlane.xlu0 %1269  ;;  %v1273_v40 = vpop.xlane.xlu1 %1272 }
 0x1eb   :  { %v4467_v19 = vadd.f32 %v4347_v60, %v1270_v7  ;;  %v4470_v27 = vadd.f32 %v4350_v3, %v1273_v40  ;;  %v1535_v60 = vsel %vm1207_vm1, %v4096_v36, 0.0  ;;  %v1358_v40 = vsel %vm1207_vm1, %v4112_v13, 0.0 }
 0x1ed   :  { %1341 = vadd.xlane.f32.xlu0 %v1340_v35  ;;  %1344 = vadd.xlane.f32.xlu1 %v1343_v14  ;;  %v1361_v35 = vsel %vm1207_vm1, %v4120_v47, 0.0 }
 0x1ee   :  { %v4476_v54 = vpop.xlane.xlu0 %1461  ;;  %v4478_v23 = vpop.xlane.xlu1 %1464 }
 0x1ef   :  { %6411 = vst [vmem:[#allocation147_spill] sm:$0xff] %v4476_v54  ;;  %6412 = vst [vmem:[#allocation148_spill] sm:$0xff] %v4478_v23 }
 0x1f1   :  { %1533 = vadd.xlane.f32.xlu0 %v1532_v31  ;;  %1536 = vadd.xlane.f32.xlu1 %v1535_v60 }
 0x1f2   :  { %v1788_v3 = vpop.xlane.xlu0 %1787  ;;  %v1791_v57 = vpop.xlane.xlu1 %1790 }
 0x1f3   :  { %v4485_v16 = vadd.f32 %v4369_v33, %v1788_v3  ;;  %v4488_v7 = vadd.f32 %v4372_v9, %v1791_v57  ;;  %v1550_v33 = vsel %vm1207_vm1, %v4128_v21, 0.0  ;;  %v1553_v9 = vsel %vm1207_vm1, %v4136_v28, 0.0 }
 0x1f4   :  { %v1373_v28 = vsel %vm1207_vm1, %v6418_v11, 0.0 }
 0x1f5   :  { %1359 = vadd.xlane.f32.xlu0 %v1358_v40  ;;  %1362 = vadd.xlane.f32.xlu1 %v1361_v35 }
 0x1f6   :  { %v1782_v14 = vpop.xlane.xlu0 %1781  ;;  %v1785_v48 = vpop.xlane.xlu1 %1784 }
 0x1f7   :  { %v4495_v31 = vadd.f32 %v4381_v26, %v1782_v14  ;;  %v4498_v60 = vadd.f32 %v4384_v6, %v1785_v48  ;;  %v6413_v26 = vld [vmem:[#allocation99_spill] sm:$0xff] }
 0x1f8   :  { %v1352_v48 = vsel %vm1207_vm1, %v6413_v26, 0.0  ;;  %v6414_v6 = vld [vmem:[#allocation103_spill] sm:$0xff] }
 0x1f9   :  { %1551 = vadd.xlane.f32.xlu0 %v1550_v33  ;;  %1554 = vadd.xlane.f32.xlu1 %v1553_v9  ;;  %v1355_v14 = vsel %vm1207_vm1, %v6414_v6, 0.0  ;;  %v6415_v9 = vld [vmem:[#allocation105_spill] sm:$0xff] }
 0x1fa   :  { %v1288_v3 = vpop.xlane.xlu0 %1287  ;;  %v1291_v57 = vpop.xlane.xlu1 %1290  ;;  %v1544_v10 = vsel %vm1207_vm1, %v6415_v9, 0.0 }
 0x1fb   :  { %v4505_v40 = vadd.f32 %v4389_v52, %v1288_v3  ;;  %v4508_v35 = vadd.f32 %v4392_v29, %v1291_v57  ;;  %v6416_v52 = vld [vmem:[#allocation108_spill] sm:$0xff] }
 0x1fc   :  { %v1547_v3 = vsel %vm1207_vm1, %v6416_v52, 0.0  ;;  %v6422_v52 = vld [vmem:[#allocation112_spill] sm:$0xff] }
 0x1fd   :  { %1353 = vadd.xlane.f32.xlu0 %v1352_v48  ;;  %1356 = vadd.xlane.f32.xlu1 %v1355_v14  ;;  %v6417_v14 = vld [vmem:[#allocation109_spill] sm:$0xff]  ;;  %v1367_v42 = vsel %vm1207_vm1, %v6422_v52, 0.0 }
 0x1fe   :  { %v4514_v23 = vpop.xlane.xlu0 %1479  ;;  %v4516_v33 = vpop.xlane.xlu1 %1482  ;;  %v1370_v53 = vsel %vm1207_vm1, %v6417_v14, 0.0 }
 0x201   :  { %1545 = vadd.xlane.f32.xlu0 %v1544_v10  ;;  %1548 = vadd.xlane.f32.xlu1 %v1547_v3  ;;  %v6420_v3 = vld [vmem:[#allocation113_spill] sm:$0xff] }
 0x202   :  { %v1282_v29 = vpop.xlane.xlu0 %1281  ;;  %v1285_v57 = vpop.xlane.xlu1 %1284  ;;  %v1562_v21 = vsel %vm1207_vm1, %v6420_v3, 0.0 }
 0x203   :  { %v4523_v54 = vadd.f32 %v4407_v12, %v1282_v29  ;;  %v4526_v48 = vadd.f32 %v4410_v4, %v1285_v57  ;;  %v1565_v12 = vsel %vm1207_vm1, %v4188_v1, 0.0 }
 0x205   :  { %1371 = vadd.xlane.f32.xlu0 %v1370_v53  ;;  %1374 = vadd.xlane.f32.xlu1 %v1373_v28  ;;  %v6421_v28 = vld [vmem:[#allocation110_spill] sm:$0xff] }
 0x206   :  { %v4532_v20 = vpop.xlane.xlu0 %1473  ;;  %v4534_v10 = vpop.xlane.xlu1 %1476  ;;  %v1364_v2 = vsel %vm1207_vm1, %v6421_v28, 0.0 }
 0x207   :  { %6419 = vst [vmem:[#allocation149_spill] sm:$0xff] %v4534_v10 }
 0x209   :  { %1563 = vadd.xlane.f32.xlu0 %v1562_v21  ;;  %1566 = vadd.xlane.f32.xlu1 %v1565_v12 }
 0x20a   :  { %v1800_v4 = vpop.xlane.xlu0 %1799  ;;  %v1803_v29 = vpop.xlane.xlu1 %1802 }
 0x20b   :  { %v4541_v57 = vadd.f32 %v4429_v22, %v1800_v4  ;;  %v4544_v53 = vadd.f32 %v4432_v37, %v1803_v29  ;;  %v6423_v22 = vld [vmem:[#allocation114_spill] sm:$0xff] }
 0x20c   :  { %v1556_v37 = vsel %vm1207_vm1, %v6423_v22, 0.0  ;;  %v6424_v4 = vld [vmem:[#allocation118_spill] sm:$0xff] }
 0x20d   :  { %1365 = vadd.xlane.f32.xlu0 %v1364_v2  ;;  %1368 = vadd.xlane.f32.xlu1 %v1367_v42  ;;  %v1559_v29 = vsel %vm1207_vm1, %v6424_v4, 0.0 }
 0x20e   :  { %v1794_v3 = vpop.xlane.xlu0 %1793  ;;  %v1797_v1 = vpop.xlane.xlu1 %1796 }
 0x20f   :  { %v4551_v21 = vadd.f32 %v4441_v18, %v1794_v3  ;;  %v4554_v12 = vadd.f32 %v4444_v8, %v1797_v1  ;;  %v6425_v18 = vld [vmem:[#allocation121_spill] sm:$0xff]  ;;  %v6426_v8 = vld [vmem:[#allocation123_spill] sm:$0xff] }
 0x210   :  { %v1382_v1 = vsel %vm1207_vm1, %v6425_v18, 0.0  ;;  %v1385_v3 = vsel %vm1207_vm1, %v6426_v8, 0.0 }
 0x211   :  { %1557 = vadd.xlane.f32.xlu0 %v1556_v37  ;;  %1560 = vadd.xlane.f32.xlu1 %v1559_v29  ;;  %v6429_v29 = vld [vmem:[#allocation125_spill] sm:$0xff] }
 0x212   :  { %v1300_v9 = vpop.xlane.xlu0 %1299  ;;  %v1303_v63 = vpop.xlane.xlu1 %1302  ;;  %v1574_v4 = vsel %vm1207_vm1, %v6429_v29, 0.0 }
 0x213   :  { %v4561_v42 = vadd.f32 %v4449_v46, %v1300_v9  ;;  %v4564_v2 = vadd.f32 %v4452_v43, %v1303_v63  ;;  %v1577_v46 = vsel %vm1207_vm1, %v4242_v58, 0.0 }
 0x215   :  { %1383 = vadd.xlane.f32.xlu0 %v1382_v1  ;;  %1386 = vadd.xlane.f32.xlu1 %v1385_v3  ;;  %v6430_v3 = vld [vmem:[#allocation122_spill] sm:$0xff] }
 0x216   :  { %v4570_v22 = vpop.xlane.xlu0 %1491  ;;  %v4572_v37 = vpop.xlane.xlu1 %1494 }
 0x217   :  { %6427 = vst [vmem:[#allocation150_spill] sm:$0xff] %v4570_v22  ;;  %6428 = vst [vmem:[#allocation151_spill] sm:$0xff] %v4572_v37  ;;  %v1376_v22 = vsel %vm1207_vm1, %v6430_v3, 0.0  ;;  %v6431_v37 = vld [vmem:[#allocation124_spill] sm:$0xff] }
 0x218   :  { %v1379_v59 = vsel %vm1207_vm1, %v6431_v37, 0.0 }
 0x219   :  { %1575 = vadd.xlane.f32.xlu0 %v1574_v4  ;;  %1578 = vadd.xlane.f32.xlu1 %v1577_v46  ;;  %v1637_v46 = vmul.f32 %v4082_v61, %v4082_v61 }
 0x21a   :  { %v1294_v63 = vpop.xlane.xlu0 %1293  ;;  %v1297_v43 = vpop.xlane.xlu1 %1296 }
 0x21b   :  { %v4579_v9 = vadd.f32 %v4467_v19, %v1294_v63  ;;  %v4582_v1 = vadd.f32 %v4470_v27, %v1297_v43  ;;  %v6434_v19 = vld [vmem:[#allocation126_spill] sm:$0xff]  ;;  %v6435_v27 = vld [vmem:[#allocation128_spill] sm:$0xff]  ;;  %v1855_v61 = vsel %vm1207_vm1, %v1637_v46, 0.0 }
 0x21c   :  { %v1568_v63 = vsel %vm1207_vm1, %v6434_v19, 0.0  ;;  %v1571_v43 = vsel %vm1207_vm1, %v6435_v27, 0.0 }
 0x21d   :  { %1377 = vadd.xlane.f32.xlu0 %v1376_v22  ;;  %1380 = vadd.xlane.f32.xlu1 %v1379_v59  ;;  %v1394_v59 = vsel %vm1207_vm1, %v4266_v17, 0.0 }
 0x21e   :  { %v4588_v29 = vpop.xlane.xlu0 %1485  ;;  %v4590_v4 = vpop.xlane.xlu1 %1488 }
 0x21f   :  { %6432 = vst [vmem:[#allocation152_spill] sm:$0xff] %v4588_v29  ;;  %6433 = vst [vmem:[#allocation153_spill] sm:$0xff] %v4590_v4 }
 0x221   :  { %1569 = vadd.xlane.f32.xlu0 %v1568_v63  ;;  %1572 = vadd.xlane.f32.xlu1 %v1571_v43  ;;  %v1586_v63 = vsel %vm1207_vm1, %v4282_v15, 0.0 }
 0x222   :  { %v1812_v58 = vpop.xlane.xlu0 %1811  ;;  %v1815_v10 = vpop.xlane.xlu1 %1814 }
 0x223   :  { %v4601_v22 = vadd.f32 %v4485_v16, %v1812_v58  ;;  %v4604_v4 = vadd.f32 %v4488_v7, %v1815_v10  ;;  %v6436_v58 = vld [vmem:[#allocation133_spill] sm:$0xff] }
 0x224   :  { %v1397_v16 = vsel %vm1207_vm1, %v6436_v58, 0.0 }
 0x225   :  { %1856 = vadd.xlane.f32.xlu1 %v1855_v61  ;;  %1395 = vadd.xlane.f32.xlu0 %v1394_v59  ;;  %v6437_v59 = vld [vmem:[#allocation132_spill] sm:$0xff] }
 0x226   :  { %v1806_v19 = vpop.xlane.xlu0 %1805  ;;  %v1809_v29 = vpop.xlane.xlu1 %1808 }
 0x227   :  { %v4610_v43 = vadd.f32 %v4495_v31, %v1806_v19  ;;  %v4613_v27 = vadd.f32 %v4498_v60, %v1809_v29  ;;  %v1388_v31 = vsel %vm1207_vm1, %v6437_v59, 0.0  ;;  %v1589_v60 = vsel %vm1207_vm1, %v4292_v32, 0.0 }
 0x228   :  { %v1638_v32 = vmul.f32 %v4068_v0, %v4068_v0 }
 0x229   :  { %1587 = vadd.xlane.f32.xlu0 %v1586_v63  ;;  %1398 = vadd.xlane.f32.xlu1 %v1397_v16  ;;  %v1636_v63 = vmul.f32 %v4078_v62, %v4078_v62  ;;  %v1639_v62 = vmul.f32 %v4080_v55, %v4080_v55 }
 0x22a   :  { %v1312_v7 = vpop.xlane.xlu0 %1311  ;;  %v1315_v10 = vpop.xlane.xlu1 %1314 }
 0x22b   :  { %v4618_v61 = vadd.f32 %v4505_v40, %v1312_v7  ;;  %v4621_v46 = vadd.f32 %v4508_v35, %v1315_v10  ;;  %v1580_v40 = vsel %vm1207_vm1, %v4290_v24, 0.0  ;;  %v6438_v35 = vld [vmem:[#allocation135_spill] sm:$0xff]  ;;  %v1852_v15 = vsel %vm1207_vm1, %v1636_v63, 0.0  ;;  %v6439_v24 = vld [vmem:[#allocation140_spill] sm:$0xff] }
 0x22c   :  { %v1391_v16 = vsel %vm1207_vm1, %v6438_v35, 0.0  ;;  %v1861_v0 = vsel %vm1207_vm1, %v1639_v62, 0.0 }
 0x22d   :  { %1389 = vadd.xlane.f32.xlu0 %v1388_v31  ;;  %1590 = vadd.xlane.f32.xlu1 %v1589_v60 }
 0x22e   :  { %v4627_v29 = vpop.xlane.xlu0 %1503  ;;  %v4629_v19 = vpop.xlane.xlu1 %1506 }
 0x231   :  { %1581 = vadd.xlane.f32.xlu0 %v1580_v40  ;;  %1392 = vadd.xlane.f32.xlu1 %v1391_v16  ;;  %v1583_v40 = vsel %vm1207_vm1, %v6439_v24, 0.0  ;;  %v6479_v24 = vld [vmem:[#allocation67_spill] sm:$0xff] }
 0x232   :  { %v1306_v7 = vpop.xlane.xlu0 %1305  ;;  %v1309_v10 = vpop.xlane.xlu1 %1308 }
 0x233   :  { %v4638_v31 = vadd.f32 %v4523_v54, %v1306_v7  ;;  %v4641_v60 = vadd.f32 %v4526_v48, %v1309_v10  ;;  %v1640_v48 = vmul.f32 %v6413_v26, %v6413_v26  ;;  %v1641_v7 = vmul.f32 %v6414_v6, %v6414_v6 }
 0x234   :  { %v1858_v10 = vsel %vm1207_vm1, %v1638_v32, 0.0  ;;  %v1642_v26 = vmul.f32 %v4112_v13, %v4112_v13  ;;  %v1643_v6 = vmul.f32 %v4120_v47, %v4120_v47  ;;  %v6448_v47 = vld [vmem:[#allocation11_spill] sm:$0xff] }
 0x235   :  { %1853 = vadd.xlane.f32.xlu0 %v1852_v15  ;;  %1584 = vadd.xlane.f32.xlu1 %v1583_v40  ;;  %v1864_v32 = vsel %vm1207_vm1, %v1640_v48, 0.0  ;;  %v1867_v62 = vsel %vm1207_vm1, %v1641_v7, 0.0 }
 0x236   :  { %v4650_v16 = vpop.xlane.xlu0 %1497  ;;  %v4652_v54 = vpop.xlane.xlu1 %1500  ;;  %v1870_v48 = vsel %vm1207_vm1, %v1642_v26, 0.0  ;;  %v1873_v7 = vsel %vm1207_vm1, %v1643_v6, 0.0 }
 0x239   :  { %1859 = vadd.xlane.f32.xlu0 %v1858_v10  ;;  %1862 = vadd.xlane.f32.xlu1 %v1861_v0 }
 0x23a   :  { %v1824_v63 = vpop.xlane.xlu0 %1823  ;;  %v1827_v55 = vpop.xlane.xlu1 %1826 }
 0x23b   :  { %v4661_v15 = vadd.f32 %v4541_v57, %v1824_v63  ;;  %v4664_v40 = vadd.f32 %v4544_v53, %v1827_v55  ;;  %v1644_v53 = vmul.f32 %v6421_v28, %v6421_v28  ;;  %v1645_v63 = vmul.f32 %v6422_v52, %v6422_v52 }
 0x23c   :  { %v1654_v52 = vmul.f32 %v4266_v17, %v4266_v17  ;;  %v6443_v17 = vld [vmem:[#allocation9_spill] sm:$0xff] }
 0x23d   :  { %1865 = vadd.xlane.f32.xlu0 %v1864_v32  ;;  %1868 = vadd.xlane.f32.xlu1 %v1867_v62  ;;  %v1876_v26 = vsel %vm1207_vm1, %v1644_v53, 0.0  ;;  %v1879_v6 = vsel %vm1207_vm1, %v1645_v63, 0.0 }
 0x23e   :  { %v1818_v0 = vpop.xlane.xlu0 %1817  ;;  %v1821_v10 = vpop.xlane.xlu1 %1820 }
 0x23f   :  { %v4673_v57 = vadd.f32 %v4551_v21, %v1818_v0  ;;  %v4676_v55 = vadd.f32 %v4554_v12, %v1821_v10  ;;  %v1646_v0 = vmul.f32 %v6417_v14, %v6417_v14  ;;  %v1647_v10 = vmul.f32 %v6418_v11, %v6418_v11 }
 0x240   :  { %v1650_v14 = vmul.f32 %v6425_v18, %v6425_v18  ;;  %v1651_v11 = vmul.f32 %v6426_v8, %v6426_v8  ;;  %v6454_v18 = vld [vmem:[#allocation19_spill] sm:$0xff] }
 0x241   :  { %1871 = vadd.xlane.f32.xlu0 %v1870_v48  ;;  %1874 = vadd.xlane.f32.xlu1 %v1873_v7  ;;  %v1666_v13 = vmul.f32 %v6454_v18, %v6454_v18  ;;  %v6458_v18 = vld [vmem:[#allocation33_spill] sm:$0xff] }
 0x242   :  { %v1324_v32 = vpop.xlane.xlu0 %1323  ;;  %v1327_v62 = vpop.xlane.xlu1 %1326 }
 0x243   :  { %v4685_v21 = vadd.f32 %v4561_v42, %v1324_v32  ;;  %v4688_v12 = vadd.f32 %v4564_v2, %v1327_v62  ;;  %v1648_v42 = vmul.f32 %v6430_v3, %v6430_v3  ;;  %v1649_v2 = vmul.f32 %v6431_v37, %v6431_v37  ;;  %v6463_v37 = vld [vmem:[#allocation35_spill] sm:$0xff] }
 0x244   :  { %v1882_v32 = vsel %vm1207_vm1, %v1646_v0, 0.0  ;;  %v1885_v62 = vsel %vm1207_vm1, %v1647_v10, 0.0  ;;  %v6468_v3 = vld [vmem:[#allocation47_spill] sm:$0xff] }
 0x245   :  { %1877 = vadd.xlane.f32.xlu0 %v1876_v26  ;;  %1880 = vadd.xlane.f32.xlu1 %v1879_v6  ;;  %v1888_v0 = vsel %vm1207_vm1, %v1648_v42, 0.0  ;;  %v1891_v10 = vsel %vm1207_vm1, %v1649_v2, 0.0 }
 0x246   :  { %v4696_v48 = vpop.xlane.xlu0 %1515  ;;  %v4698_v7 = vpop.xlane.xlu1 %1518 }
 0x249   :  { %1883 = vadd.xlane.f32.xlu0 %v1882_v32  ;;  %1886 = vadd.xlane.f32.xlu1 %v1885_v62 }
 0x24a   :  { %v1318_v53 = vpop.xlane.xlu0 %1317  ;;  %v1321_v63 = vpop.xlane.xlu1 %1320 }
 0x24b   :  { %v4707_v26 = vadd.f32 %v4579_v9, %v1318_v53  ;;  %v4710_v6 = vadd.f32 %v4582_v1, %v1321_v63  ;;  %v1652_v9 = vmul.f32 %v6437_v59, %v6437_v59  ;;  %v1653_v1 = vmul.f32 %v6438_v35, %v6438_v35  ;;  %v6445_v59 = vld [vmem:[#allocation6_spill] sm:$0xff] }
 0x24c   :  { %v1894_v53 = vsel %vm1207_vm1, %v1650_v14, 0.0  ;;  %v1897_v63 = vsel %vm1207_vm1, %v1651_v11, 0.0  ;;  %v1655_v35 = vmul.f32 %v6436_v58, %v6436_v58  ;;  %v1657_v58 = vmul.f32 %v6443_v17, %v6443_v17  ;;  %v6455_v17 = vld [vmem:[#allocation23_spill] sm:$0xff] }
 0x24d   :  { %1889 = vadd.xlane.f32.xlu0 %v1888_v0  ;;  %1892 = vadd.xlane.f32.xlu1 %v1891_v10  ;;  %v1900_v14 = vsel %vm1207_vm1, %v1652_v9, 0.0  ;;  %v1903_v11 = vsel %vm1207_vm1, %v1653_v1, 0.0  ;;  %v1906_v9 = vsel %vm1207_vm1, %v1654_v52, 0.0  ;;  %v1659_v28 = vmul.f32 %v6445_v59, %v6445_v59 }
 0x24e   :  { %v4718_v32 = vpop.xlane.xlu0 %1509  ;;  %v4720_v62 = vpop.xlane.xlu1 %1512  ;;  %v1909_v1 = vsel %vm1207_vm1, %v1655_v35, 0.0  ;;  %v1915_v35 = vsel %vm1207_vm1, %v1657_v58, 0.0 }
 0x24f   :  { %v1921_v59 = vsel %vm1207_vm1, %v1659_v28, 0.0 }
 0x251   :  { %1895 = vadd.xlane.f32.xlu0 %v1894_v53  ;;  %1898 = vadd.xlane.f32.xlu1 %v1897_v63 }
 0x252   :  { %v1836_v42 = vpop.xlane.xlu0 %1835  ;;  %v1839_v2 = vpop.xlane.xlu1 %1838 }
 0x253   :  { %v4729_v0 = vadd.f32 %v4601_v22, %v1836_v42  ;;  %v4732_v10 = vadd.f32 %v4604_v4, %v1839_v2  ;;  %v6442_v42 = vld [vmem:[#allocation5_spill] sm:$0xff] }
 0x254   :  { %v1656_v2 = vmul.f32 %v6442_v42, %v6442_v42  ;;  %v6467_v42 = vld [vmem:[#allocation43_spill] sm:$0xff] }
 0x255   :  { %6440 = vst [vmem:[#allocation154_spill] sm:$0xff] %v4732_v10  ;;  %1901 = vadd.xlane.f32.xlu0 %v1900_v14  ;;  %1904 = vadd.xlane.f32.xlu1 %v1903_v11  ;;  %v6475_v10 = vld [vmem:[#allocation59_spill] sm:$0xff] }
 0x256   :  { %v1830_v53 = vpop.xlane.xlu0 %1829  ;;  %v1833_v63 = vpop.xlane.xlu1 %1832  ;;  %v1912_v52 = vsel %vm1207_vm1, %v1656_v2, 0.0 }
 0x257   :  { %v4741_v22 = vadd.f32 %v4610_v43, %v1830_v53  ;;  %v4744_v4 = vadd.f32 %v4613_v27, %v1833_v63  ;;  %v6444_v53 = vld [vmem:[#allocation3_spill] sm:$0xff] }
 0x258   :  { %v1658_v63 = vmul.f32 %v6444_v53, %v6444_v53  ;;  %v6449_v53 = vld [vmem:[#allocation15_spill] sm:$0xff] }
 0x259   :  { %6441 = vst [vmem:[#allocation155_spill] sm:$0xff] %v4744_v4  ;;  %1907 = vadd.xlane.f32.xlu0 %v1906_v9  ;;  %1910 = vadd.xlane.f32.xlu1 %v1909_v1  ;;  %v6476_v4 = vld [vmem:[#allocation63_spill] sm:$0xff] }
 0x25a   :  { %v1336_v14 = vpop.xlane.xlu0 %1335  ;;  %v1339_v11 = vpop.xlane.xlu1 %1338  ;;  %v1918_v8 = vsel %vm1207_vm1, %v1658_v63, 0.0 }
 0x25b   :  { %v4753_v43 = vadd.f32 %v4618_v61, %v1336_v14  ;;  %v4756_v27 = vadd.f32 %v4621_v46, %v1339_v11  ;;  %v6446_v61 = vld [vmem:[#allocation13_spill] sm:$0xff] }
 0x25c   :  { %v1660_v46 = vmul.f32 %v6446_v61, %v6446_v61  ;;  %v6447_v14 = vld [vmem:[#allocation17_spill] sm:$0xff]  ;;  %v1662_v61 = vmul.f32 %v6448_v47, %v6448_v47 }
 0x25d   :  { %1913 = vadd.xlane.f32.xlu0 %v1912_v52  ;;  %1916 = vadd.xlane.f32.xlu1 %v1915_v35  ;;  %v1661_v11 = vmul.f32 %v6447_v14, %v6447_v14  ;;  %v1663_v14 = vmul.f32 %v6449_v53, %v6449_v53 }
 0x25e   :  { %v4764_v9 = vpop.xlane.xlu0 %1527  ;;  %v4766_v1 = vpop.xlane.xlu1 %1530  ;;  %v1924_v63 = vsel %vm1207_vm1, %v1660_v46, 0.0  ;;  %v1930_v47 = vsel %vm1207_vm1, %v1662_v61, 0.0 }
 0x25f   :  { %v1927_v28 = vsel %vm1207_vm1, %v1661_v11, 0.0  ;;  %v1933_v53 = vsel %vm1207_vm1, %v1663_v14, 0.0 }
 0x261   :  { %1919 = vadd.xlane.f32.xlu0 %v1918_v8  ;;  %1922 = vadd.xlane.f32.xlu1 %v1921_v59 }
 0x262   :  { %v1330_v2 = vpop.xlane.xlu0 %1329  ;;  %v1333_v58 = vpop.xlane.xlu1 %1332 }
 0x263   :  { %v4775_v52 = vadd.f32 %v4638_v31, %v1330_v2  ;;  %v4778_v35 = vadd.f32 %v4641_v60, %v1333_v58  ;;  %v6450_v31 = vld [vmem:[#allocation21_spill] sm:$0xff] }
 0x264   :  { %v1664_v60 = vmul.f32 %v6450_v31, %v6450_v31  ;;  %v6451_v2 = vld [vmem:[#allocation25_spill] sm:$0xff]  ;;  %v6464_v31 = vld [vmem:[#allocation39_spill] sm:$0xff] }
 0x265   :  { %1925 = vadd.xlane.f32.xlu0 %v1924_v63  ;;  %1928 = vadd.xlane.f32.xlu1 %v1927_v28  ;;  %v1665_v58 = vmul.f32 %v6451_v2, %v6451_v2  ;;  %v1667_v2 = vmul.f32 %v6455_v17, %v6455_v17  ;;  %v1669_v17 = vmul.f32 %v6458_v18, %v6458_v18 }
 0x266   :  { %v4786_v8 = vpop.xlane.xlu0 %1521  ;;  %v4788_v59 = vpop.xlane.xlu1 %1524  ;;  %v1936_v61 = vsel %vm1207_vm1, %v1664_v60, 0.0  ;;  %v1942_v60 = vsel %vm1207_vm1, %v1666_v13, 0.0 }
 0x267   :  { %v1939_v14 = vsel %vm1207_vm1, %v1665_v58, 0.0  ;;  %v1945_v58 = vsel %vm1207_vm1, %v1667_v2, 0.0  ;;  %v1951_v2 = vsel %vm1207_vm1, %v1669_v17, 0.0 }
 0x269   :  { %1931 = vadd.xlane.f32.xlu0 %v1930_v47  ;;  %1934 = vadd.xlane.f32.xlu1 %v1933_v53 }
 0x26a   :  { %v1848_v46 = vpop.xlane.xlu0 %1847  ;;  %v1851_v11 = vpop.xlane.xlu1 %1850 }
 0x26b   :  { %v4797_v63 = vadd.f32 %v4661_v15, %v1848_v46  ;;  %v4800_v28 = vadd.f32 %v4664_v40, %v1851_v11  ;;  %v6457_v46 = vld [vmem:[#allocation29_spill] sm:$0xff] }
 0x26c   :  { %v1668_v11 = vmul.f32 %v6457_v46, %v6457_v46  ;;  %v6460_v46 = vld [vmem:[#allocation31_spill] sm:$0xff] }
 0x26d   :  { %6452 = vst [vmem:[#allocation156_spill] sm:$0xff] %v4797_v63  ;;  %6453 = vst [vmem:[#allocation157_spill] sm:$0xff] %v4800_v28  ;;  %1937 = vadd.xlane.f32.xlu0 %v1936_v61  ;;  %1940 = vadd.xlane.f32.xlu1 %v1939_v14  ;;  %v1671_v18 = vmul.f32 %v6460_v46, %v6460_v46  ;;  %v6471_v28 = vld [vmem:[#allocation51_spill] sm:$0xff] }
 0x26e   :  { %v1842_v47 = vpop.xlane.xlu0 %1841  ;;  %v1845_v53 = vpop.xlane.xlu1 %1844  ;;  %v1948_v13 = vsel %vm1207_vm1, %v1668_v11, 0.0  ;;  %v6480_v63 = vld [vmem:[#allocation71_spill] sm:$0xff] }
 0x26f   :  { %v4809_v15 = vadd.f32 %v4673_v57, %v1842_v47  ;;  %v4812_v40 = vadd.f32 %v4676_v55, %v1845_v53  ;;  %v6459_v47 = vld [vmem:[#allocation27_spill] sm:$0xff]  ;;  %v1957_v46 = vsel %vm1207_vm1, %v1671_v18, 0.0 }
 0x270   :  { %v1670_v53 = vmul.f32 %v6459_v47, %v6459_v47 }
 0x271   :  { %6456 = vst [vmem:[#allocation158_spill] sm:$0xff] %v4812_v40  ;;  %1943 = vadd.xlane.f32.xlu0 %v1942_v60  ;;  %1946 = vadd.xlane.f32.xlu1 %v1945_v58  ;;  %v6472_v40 = vld [vmem:[#allocation55_spill] sm:$0xff] }
 0x272   :  { %v1348_v61 = vpop.xlane.xlu0 %1347  ;;  %v1351_v14 = vpop.xlane.xlu1 %1350  ;;  %v1954_v47 = vsel %vm1207_vm1, %v1670_v53, 0.0 }
 0x273   :  { %v4821_v57 = vadd.f32 %v4685_v21, %v1348_v61  ;;  %v4824_v55 = vadd.f32 %v4688_v12, %v1351_v14  ;;  %v6461_v21 = vld [vmem:[#allocation37_spill] sm:$0xff] }
 0x274   :  { %v1672_v12 = vmul.f32 %v6461_v21, %v6461_v21  ;;  %v6462_v61 = vld [vmem:[#allocation41_spill] sm:$0xff]  ;;  %v1674_v21 = vmul.f32 %v6463_v37, %v6463_v37 }
 0x275   :  { %1949 = vadd.xlane.f32.xlu0 %v1948_v13  ;;  %1952 = vadd.xlane.f32.xlu1 %v1951_v2  ;;  %v1673_v14 = vmul.f32 %v6462_v61, %v6462_v61  ;;  %v1675_v61 = vmul.f32 %v6464_v31, %v6464_v31 }
 0x276   :  { %v4832_v60 = vpop.xlane.xlu0 %1539  ;;  %v4834_v58 = vpop.xlane.xlu1 %1542  ;;  %v1960_v53 = vsel %vm1207_vm1, %v1672_v12, 0.0  ;;  %v1966_v37 = vsel %vm1207_vm1, %v1674_v21, 0.0 }
 0x277   :  { %v1963_v18 = vsel %vm1207_vm1, %v1673_v14, 0.0  ;;  %v1969_v31 = vsel %vm1207_vm1, %v1675_v61, 0.0 }
 0x279   :  { %1955 = vadd.xlane.f32.xlu0 %v1954_v47  ;;  %1958 = vadd.xlane.f32.xlu1 %v1957_v46 }
 0x27a   :  { %v1342_v11 = vpop.xlane.xlu0 %1341  ;;  %v1345_v17 = vpop.xlane.xlu1 %1344 }
 0x27b   :  { %v4843_v13 = vadd.f32 %v4707_v26, %v1342_v11  ;;  %v4846_v2 = vadd.f32 %v4710_v6, %v1345_v17  ;;  %v6465_v26 = vld [vmem:[#allocation45_spill] sm:$0xff] }
 0x27c   :  { %v1676_v6 = vmul.f32 %v6465_v26, %v6465_v26  ;;  %v6466_v11 = vld [vmem:[#allocation49_spill] sm:$0xff]  ;;  %v1678_v26 = vmul.f32 %v6467_v42, %v6467_v42 }
 0x27d   :  { %1961 = vadd.xlane.f32.xlu0 %v1960_v53  ;;  %1964 = vadd.xlane.f32.xlu1 %v1963_v18  ;;  %v1677_v17 = vmul.f32 %v6466_v11, %v6466_v11  ;;  %v1679_v11 = vmul.f32 %v6468_v3, %v6468_v3 }
 0x27e   :  { %v4854_v46 = vpop.xlane.xlu0 %1533  ;;  %v4856_v47 = vpop.xlane.xlu1 %1536  ;;  %v1972_v21 = vsel %vm1207_vm1, %v1676_v6, 0.0  ;;  %v1978_v42 = vsel %vm1207_vm1, %v1678_v26, 0.0 }
 0x27f   :  { %v1975_v61 = vsel %vm1207_vm1, %v1677_v17, 0.0  ;;  %v1981_v3 = vsel %vm1207_vm1, %v1679_v11, 0.0 }
 0x281   :  { %1967 = vadd.xlane.f32.xlu0 %v1966_v37  ;;  %1970 = vadd.xlane.f32.xlu1 %v1969_v31 }
 0x282   :  { %v1360_v12 = vpop.xlane.xlu0 %1359  ;;  %v1363_v14 = vpop.xlane.xlu1 %1362 }
 0x283   :  { %v4865_v53 = vadd.f32 %v4753_v43, %v1360_v12  ;;  %v4868_v18 = vadd.f32 %v4756_v27, %v1363_v14  ;;  %v6469_v43 = vld [vmem:[#allocation53_spill] sm:$0xff] }
 0x284   :  { %v1680_v27 = vmul.f32 %v6469_v43, %v6469_v43  ;;  %v6470_v12 = vld [vmem:[#allocation57_spill] sm:$0xff]  ;;  %v1682_v43 = vmul.f32 %v6471_v28, %v6471_v28 }
 0x285   :  { %1973 = vadd.xlane.f32.xlu0 %v1972_v21  ;;  %1976 = vadd.xlane.f32.xlu1 %v1975_v61  ;;  %v1681_v14 = vmul.f32 %v6470_v12, %v6470_v12  ;;  %v1683_v12 = vmul.f32 %v6472_v40, %v6472_v40 }
 0x286   :  { %v4876_v37 = vpop.xlane.xlu0 %1551  ;;  %v4878_v31 = vpop.xlane.xlu1 %1554  ;;  %v1984_v26 = vsel %vm1207_vm1, %v1680_v27, 0.0  ;;  %v1990_v28 = vsel %vm1207_vm1, %v1682_v43, 0.0 }
 0x287   :  { %v1987_v11 = vsel %vm1207_vm1, %v1681_v14, 0.0  ;;  %v1993_v40 = vsel %vm1207_vm1, %v1683_v12, 0.0 }
 0x289   :  { %1979 = vadd.xlane.f32.xlu0 %v1978_v42  ;;  %1982 = vadd.xlane.f32.xlu1 %v1981_v3 }
 0x28a   :  { %v1354_v6 = vpop.xlane.xlu0 %1353  ;;  %v1357_v17 = vpop.xlane.xlu1 %1356 }
 0x28b   :  { %v4887_v21 = vadd.f32 %v4775_v52, %v1354_v6  ;;  %v4890_v61 = vadd.f32 %v4778_v35, %v1357_v17  ;;  %v6473_v52 = vld [vmem:[#allocation61_spill] sm:$0xff] }
 0x28c   :  { %v1684_v35 = vmul.f32 %v6473_v52, %v6473_v52  ;;  %v6474_v6 = vld [vmem:[#allocation65_spill] sm:$0xff]  ;;  %v1686_v52 = vmul.f32 %v6475_v10, %v6475_v10 }
 0x28d   :  { %1985 = vadd.xlane.f32.xlu0 %v1984_v26  ;;  %1988 = vadd.xlane.f32.xlu1 %v1987_v11  ;;  %v1685_v17 = vmul.f32 %v6474_v6, %v6474_v6  ;;  %v1687_v6 = vmul.f32 %v6476_v4, %v6476_v4 }
 0x28e   :  { %v4898_v3 = vpop.xlane.xlu0 %1545  ;;  %v4900_v42 = vpop.xlane.xlu1 %1548  ;;  %v1996_v43 = vsel %vm1207_vm1, %v1684_v35, 0.0  ;;  %v2002_v10 = vsel %vm1207_vm1, %v1686_v52, 0.0 }
 0x28f   :  { %v1999_v12 = vsel %vm1207_vm1, %v1685_v17, 0.0  ;;  %v2005_v4 = vsel %vm1207_vm1, %v1687_v6, 0.0 }
 0x291   :  { %1991 = vadd.xlane.f32.xlu0 %v1990_v28  ;;  %1994 = vadd.xlane.f32.xlu1 %v1993_v40 }
 0x292   :  { %v1372_v27 = vpop.xlane.xlu0 %1371  ;;  %v1375_v14 = vpop.xlane.xlu1 %1374 }
 0x293   :  { %v4909_v26 = vadd.f32 %v4821_v57, %v1372_v27  ;;  %v4912_v11 = vadd.f32 %v4824_v55, %v1375_v14  ;;  %v6477_v57 = vld [vmem:[#allocation69_spill] sm:$0xff] }
 0x294   :  { %v1688_v55 = vmul.f32 %v6477_v57, %v6477_v57  ;;  %v6478_v27 = vld [vmem:[#allocation73_spill] sm:$0xff]  ;;  %v1690_v57 = vmul.f32 %v6479_v24, %v6479_v24 }
 0x295   :  { %1997 = vadd.xlane.f32.xlu0 %v1996_v43  ;;  %2000 = vadd.xlane.f32.xlu1 %v1999_v12  ;;  %v1689_v14 = vmul.f32 %v6478_v27, %v6478_v27  ;;  %v1691_v27 = vmul.f32 %v6480_v63, %v6480_v63  ;;  %v1694_v63 = vmul.f32 %v3996_v50, %v3996_v50  ;;  %v6482_v24 = vld [vmem:[#allocation97_spill] sm:$0xff] }
 0x296   :  { %v4920_v28 = vpop.xlane.xlu0 %1563  ;;  %v4922_v40 = vpop.xlane.xlu1 %1566  ;;  %v2008_v52 = vsel %vm1207_vm1, %v1688_v55, 0.0 }
 0x297   :  { %v2011_v6 = vsel %vm1207_vm1, %v1689_v14, 0.0 }
 0x299   :  { %2003 = vadd.xlane.f32.xlu0 %v2002_v10  ;;  %2006 = vadd.xlane.f32.xlu1 %v2005_v4 }
 0x29a   :  { %v1366_v35 = vpop.xlane.xlu0 %1365  ;;  %v1369_v17 = vpop.xlane.xlu1 %1368 }
 0x29b   :  { %v4931_v43 = vadd.f32 %v4843_v13, %v1366_v35  ;;  %v4934_v12 = vadd.f32 %v4846_v2, %v1369_v17  ;;  %v1692_v13 = vmul.f32 %v3998_v44, %v3998_v44  ;;  %v1693_v2 = vmul.f32 %v4008_v41, %v4008_v41 }
 0x29c   :  { %v2014_v35 = vsel %vm1207_vm1, %v1690_v57, 0.0  ;;  %v2017_v17 = vsel %vm1207_vm1, %v1691_v27, 0.0  ;;  %v1695_v44 = vmul.f32 %v4006_v39, %v4006_v39  ;;  %v1696_v39 = vmul.f32 %v4048_v56, %v4048_v56 }
 0x29d   :  { %2009 = vadd.xlane.f32.xlu0 %v2008_v52  ;;  %2012 = vadd.xlane.f32.xlu1 %v2011_v6  ;;  %v2020_v41 = vsel %vm1207_vm1, %v1692_v13, 0.0  ;;  %v2023_v57 = vsel %vm1207_vm1, %v1693_v2, 0.0  ;;  %v1697_v13 = vmul.f32 %v4052_v5, %v4052_v5 }
 0x29e   :  { %v4942_v10 = vpop.xlane.xlu0 %1557  ;;  %v4944_v4 = vpop.xlane.xlu1 %1560  ;;  %v2029_v2 = vsel %vm1207_vm1, %v1695_v44, 0.0  ;;  %v1699_v44 = vmul.f32 %v4050_v49, %v4050_v49 }
 0x29f   :  { %6481 = vst [vmem:[#allocation159_spill] sm:$0xff] %v4944_v4 }
 0x2a1   :  { %2015 = vadd.xlane.f32.xlu0 %v2014_v35  ;;  %2018 = vadd.xlane.f32.xlu1 %v2017_v17  ;;  %v6483_v35 = vld [vmem:[#allocation102_spill] sm:$0xff] }
 0x2a2   :  { %v1384_v55 = vpop.xlane.xlu0 %1383  ;;  %v1387_v14 = vpop.xlane.xlu1 %1386 }
 0x2a3   :  { %v2162_v52 = vadd.f32 %v4865_v53, %v1384_v55  ;;  %v2163_v6 = vadd.f32 %v4868_v18, %v1387_v14  ;;  %v6484_v18 = vld [vmem:[#allocation129_spill] sm:$0xff]  ;;  %v6485_v14 = vld [vmem:[#allocation130_spill] sm:$0xff] }
 0x2a5   :  { %v2170_v27 = vadd.f32 %v2162_v52, %v6482_v24  ;;  %v2171_v17 = vadd.f32 %v2163_v6, %v6483_v35  ;;  %2021 = vadd.xlane.f32.xlu0 %v2020_v41  ;;  %2024 = vadd.xlane.f32.xlu1 %v2023_v57  ;;  %v2026_v24 = vsel %vm1207_vm1, %v1694_v63, 0.0  ;;  %v1698_v63 = vmul.f32 %v4040_v51, %v4040_v51 }
 0x2a6   :  { %v4962_v4 = vpop.xlane.xlu0 %1575  ;;  %v4964_v53 = vpop.xlane.xlu1 %1578 }
 0x2a7   :  { %v2178_v55 = vadd.f32 %v2170_v27, %v6484_v18  ;;  %v2179_v50 = vadd.f32 %v2171_v17, %v6485_v14  ;;  %v6487_v14 = vld [vmem:[#allocation107_spill] sm:$0xff] }
 0x2a9   :  { %v2186_v41 = vadd.f32 %v2178_v55, %v4398_v25  ;;  %v2187_v52 = vadd.f32 %v2179_v50, %v4400_v38  ;;  %2027 = vadd.xlane.f32.xlu0 %v2026_v24  ;;  %2030 = vadd.xlane.f32.xlu1 %v2029_v2  ;;  %v2032_v50 = vsel %vm1207_vm1, %v1696_v39, 0.0  ;;  %v2035_v25 = vsel %vm1207_vm1, %v1697_v13, 0.0  ;;  %v6486_v55 = vld [vmem:[#allocation101_spill] sm:$0xff] }
 0x2aa   :  { %v1378_v6 = vpop.xlane.xlu0 %1377  ;;  %v1381_v57 = vpop.xlane.xlu1 %1380 }
 0x2ab   :  { %v2194_v27 = vadd.f32 %v2186_v41, %v4514_v23  ;;  %v2195_v35 = vadd.f32 %v2187_v52, %v4516_v33  ;;  %v2160_v17 = vadd.f32 %v4887_v21, %v1378_v6  ;;  %v2161_v18 = vadd.f32 %v4890_v61, %v1381_v57  ;;  %v6488_v41 = vld [vmem:[#allocation138_spill] sm:$0xff]  ;;  %v6489_v52 = vld [vmem:[#allocation139_spill] sm:$0xff] }
 0x2ac   :  { %v1701_v6 = vmul.f32 %v4096_v36, %v4096_v36  ;;  %v2038_v57 = vsel %vm1207_vm1, %v1698_v63, 0.0  ;;  %v6490_v63 = vld [vmem:[#allocation149_spill] sm:$0xff] }
 0x2ad   :  { %v2202_v38 = vadd.f32 %v2194_v27, %v4627_v29  ;;  %v2203_v23 = vadd.f32 %v2195_v35, %v4629_v19  ;;  %v2168_v33 = vadd.f32 %v2160_v17, %v6486_v55  ;;  %v2169_v21 = vadd.f32 %v2161_v18, %v6487_v14  ;;  %2033 = vadd.xlane.f32.xlu0 %v2032_v50  ;;  %v6492_v55 = vld [vmem:[#allocation95_spill] sm:$0xff] }
 0x2ae   :  { %2036 = vadd.xlane.f32.xlu1 %v2035_v25  ;;  %v4990_v61 = vpop.xlane.xlu0 %1569  ;;  %v4992_v24 = vpop.xlane.xlu1 %1572  ;;  %v1700_v19 = vmul.f32 %v4092_v34, %v4092_v34  ;;  %v2041_v27 = vsel %vm1207_vm1, %v1699_v44, 0.0  ;;  %v6491_v44 = vld [vmem:[#allocation93_spill] sm:$0xff]  ;;  %v2047_v14 = vsel %vm1207_vm1, %v1701_v6, 0.0  ;;  %v6496_v6 = vld [vmem:[#allocation108_spill] sm:$0xff] }
 0x2af   :  { %v2210_v2 = vadd.f32 %v2202_v38, %v4764_v9  ;;  %v2211_v39 = vadd.f32 %v2203_v23, %v4766_v1  ;;  %v2176_v13 = vadd.f32 %v2168_v33, %v6488_v41  ;;  %v2177_v29 = vadd.f32 %v2169_v21, %v6489_v52 }
 0x2b1   :  { %v5005_v35 = vadd.f32 %v2210_v2, %v4876_v37  ;;  %v5008_v9 = vadd.f32 %v2211_v39, %v4878_v31  ;;  %v2184_v1 = vadd.f32 %v2176_v13, %v4416_v45  ;;  %v2185_v17 = vadd.f32 %v2177_v29, %v4418_v30  ;;  %2039 = vadd.xlane.f32.xlu0 %v2038_v57  ;;  %v6494_v13 = vld [vmem:[#allocation105_spill] sm:$0xff] }
 0x2b2   :  { %2042 = vadd.xlane.f32.xlu1 %v2041_v27  ;;  %v5012_v18 = vpop.xlane.xlu1 %1856  ;;  %v1396_v50 = vpop.xlane.xlu0 %1395  ;;  %v1702_v37 = vmul.f32 %v6491_v44, %v6491_v44  ;;  %v2044_v31 = vsel %vm1207_vm1, %v1700_v19, 0.0  ;;  %v1703_v45 = vmul.f32 %v6492_v55, %v6492_v55  ;;  %v1704_v52 = vmul.f32 %v6494_v13, %v6494_v13  ;;  %v6495_v29 = vld [vmem:[#allocation141_spill] sm:$0xff] }
 0x2b3   :  { %v2192_v25 = vadd.f32 %v2184_v1, %v4532_v20  ;;  %v2193_v38 = vadd.f32 %v2185_v17, %v6490_v63  ;;  %v2166_v23 = vadd.f32 %v4909_v26, %v1396_v50  ;;  %v6493_v20 = vld [vmem:[#allocation116_spill] sm:$0xff]  ;;  %v1705_v57 = vmul.f32 %v6496_v6, %v6496_v6  ;;  %v6498_v50 = vld [vmem:[#allocation117_spill] sm:$0xff] }
 0x2b4   :  { %v2050_v19 = vsel %vm1207_vm1, %v1702_v37, 0.0  ;;  %v6499_v37 = vld [vmem:[#allocation104_spill] sm:$0xff]  ;;  %v2227_v34 = vadd.f32 %v5008_v9, %v4964_v53 }
 0x2b5   :  { %v2200_v30 = vadd.f32 %v2192_v25, %v4650_v16  ;;  %v2201_v33 = vadd.f32 %v2193_v38, %v4652_v54  ;;  %2045 = vadd.xlane.f32.xlu0 %v2044_v31  ;;  %v2174_v21 = vadd.f32 %v2166_v23, %v6493_v20  ;;  %v6500_v23 = vld [vmem:[#allocation150_spill] sm:$0xff]  ;;  %v6503_v20 = vld [vmem:[#allocation119_spill] sm:$0xff] }
 0x2b6   :  { %2048 = vadd.xlane.f32.xlu1 %v2047_v14  ;;  %v5026_v2 = vpop.xlane.xlu0 %1587  ;;  %v1399_v39 = vpop.xlane.xlu1 %1398  ;;  %v5165_v6 = vmul.f32 0.03125, %v2227_v34 }
 0x2b7   :  { %v2208_v26 = vadd.f32 %v2200_v30, %v4786_v8  ;;  %v2209_v41 = vadd.f32 %v2201_v33, %v4788_v59  ;;  %v2182_v16 = vadd.f32 %v2174_v21, %v6495_v29  ;;  %v2167_v54 = vadd.f32 %v4912_v11, %v1399_v39  ;;  %v6497_v59 = vld [vmem:[#allocation145_spill] sm:$0xff] }
 0x2b8   :  { %v2053_v8 = vsel %vm1207_vm1, %v1703_v45, 0.0  ;;  %v2056_v33 = vsel %vm1207_vm1, %v1704_v52, 0.0  ;;  %v6502_v45 = vld [vmem:[#allocation106_spill] sm:$0xff]  ;;  %v2059_v39 = vsel %vm1207_vm1, %v1705_v57, 0.0 }
 0x2b9   :  { %v5038_v27 = vadd.f32 %v2208_v26, %v4898_v3  ;;  %v5041_v1 = vadd.f32 %v2209_v41, %v4900_v42  ;;  %2051 = vadd.xlane.f32.xlu0 %v2050_v19  ;;  %v2190_v17 = vadd.f32 %v2182_v16, %v6497_v59  ;;  %v2175_v25 = vadd.f32 %v2167_v54, %v6498_v50  ;;  %v6501_v42 = vld [vmem:[#allocation142_spill] sm:$0xff]  ;;  %v6505_v54 = vld [vmem:[#allocation143_spill] sm:$0xff] }
 0x2ba   :  { %2054 = vadd.xlane.f32.xlu1 %v2053_v8  ;;  %v1390_v11 = vpop.xlane.xlu0 %1389  ;;  %v5046_v63 = vpop.xlane.xlu1 %1590  ;;  %v1706_v3 = vmul.f32 %v6499_v37, %v6499_v37  ;;  %v1707_v14 = vmul.f32 %v6502_v45, %v6502_v45  ;;  %v6506_v52 = vld [vmem:[#allocation114_spill] sm:$0xff]  ;;  %v6507_v50 = vld [vmem:[#allocation151_spill] sm:$0xff] }
 0x2bb   :  { %v2164_v38 = vadd.f32 %v4931_v43, %v1390_v11  ;;  %v2198_v31 = vadd.f32 %v2190_v17, %v6500_v23  ;;  %v2183_v30 = vadd.f32 %v2175_v25, %v6501_v42  ;;  %v6504_v43 = vld [vmem:[#allocation146_spill] sm:$0xff]  ;;  %v1708_v59 = vmul.f32 %v6506_v52, %v6506_v52 }
 0x2bc   :  { %v2062_v57 = vsel %vm1207_vm1, %v1706_v3, 0.0  ;;  %v6508_v11 = vld [vmem:[#allocation118_spill] sm:$0xff]  ;;  %v6511_v3 = vld [vmem:[#allocation152_spill] sm:$0xff]  ;;  %v2226_v52 = vadd.f32 %v5005_v35, %v4962_v4  ;;  %v2225_v45 = vadd.f32 %v5041_v1, %v4992_v24 }
 0x2bd   :  { %v2172_v21 = vadd.f32 %v2164_v38, %v6503_v20  ;;  %2057 = vadd.xlane.f32.xlu0 %v2056_v33  ;;  %v2206_v26 = vadd.f32 %v2198_v31, %v4696_v48  ;;  %v2191_v41 = vadd.f32 %v2183_v30, %v6504_v43  ;;  %v1709_v48 = vmul.f32 %v6508_v11, %v6508_v11  ;;  %v6509_v38 = vld [vmem:[#allocation147_spill] sm:$0xff]  ;;  %v6510_v31 = vld [vmem:[#allocation120_spill] sm:$0xff] }
 0x2be   :  { %2060 = vadd.xlane.f32.xlu1 %v2059_v39  ;;  %v1582_v29 = vpop.xlane.xlu0 %1581  ;;  %v1393_v16 = vpop.xlane.xlu1 %1392  ;;  %v2065_v30 = vsel %vm1207_vm1, %v1707_v14, 0.0  ;;  %v6512_v39 = vld [vmem:[#allocation144_spill] sm:$0xff]  ;;  %v5163_v51 = vmul.f32 0.03125, %v2226_v52  ;;  %v5169_v4 = vmul.f32 0.03125, %v2225_v45 }
 0x2bf   :  { %v2180_v19 = vadd.f32 %v2172_v21, %v6505_v54  ;;  %v2165_v8 = vadd.f32 %v4934_v12, %v1393_v16  ;;  %v2214_v17 = vadd.f32 %v2206_v26, %v4832_v60  ;;  %v2199_v25 = vadd.f32 %v2191_v41, %v6507_v50  ;;  %v6513_v41 = vld [vmem:[#allocation113_spill] sm:$0xff]  ;;  %v6514_v54 = vld [vmem:[#allocation115_spill] sm:$0xff] }
 0x2c0   :  { %v1710_v16 = vmul.f32 %v6513_v41, %v6513_v41  ;;  %v2071_v50 = vsel %vm1207_vm1, %v1709_v48, 0.0  ;;  %v2378_v24 = vmul.f32 %v5163_v51, %v5163_v51 }
 0x2c1   :  { %v2188_v23 = vadd.f32 %v2180_v19, %v6509_v38  ;;  %v2173_v42 = vadd.f32 %v2165_v8, %v6510_v31  ;;  %2063 = vadd.xlane.f32.xlu0 %v2062_v57  ;;  %v5073_v12 = vadd.f32 %v2214_v17, %v4920_v28  ;;  %v2207_v33 = vadd.f32 %v2199_v25, %v4698_v7  ;;  %v6515_v8 = vld [vmem:[#allocation148_spill] sm:$0xff]  ;;  %v6516_v38 = vld [vmem:[#allocation153_spill] sm:$0xff]  ;;  %v6517_v31 = vld [vmem:[#allocation126_spill] sm:$0xff] }
 0x2c2   :  { %2066 = vadd.xlane.f32.xlu1 %v2065_v30  ;;  %v1854_v60 = vpop.xlane.xlu0 %1853  ;;  %v5076_v20 = vpop.xlane.xlu1 %1584  ;;  %v2068_v28 = vsel %vm1207_vm1, %v1708_v59, 0.0  ;;  %v1711_v7 = vmul.f32 %v6514_v54, %v6514_v54  ;;  %v6518_v30 = vld [vmem:[#allocation128_spill] sm:$0xff] }
 0x2c3   :  { %v2196_v21 = vadd.f32 %v2188_v23, %v6511_v3  ;;  %v2181_v26 = vadd.f32 %v2173_v42, %v6512_v39  ;;  %v2276_v43 = vadd.f32 %v4741_v22, %v1854_v60  ;;  %v2215_v14 = vadd.f32 %v2207_v33, %v4834_v58 }
 0x2c4   :  { %v2074_v42 = vsel %vm1207_vm1, %v1710_v16, 0.0  ;;  %v1713_v48 = vmul.f32 %v6518_v30, %v6518_v30  ;;  %v2077_v60 = vsel %vm1207_vm1, %v1711_v7, 0.0  ;;  %v2230_v1 = vadd.f32 %v5073_v12, %v5026_v2 }
 0x2c5   :  { %v2204_v19 = vadd.f32 %v2196_v21, %v4718_v32  ;;  %v2189_v17 = vadd.f32 %v2181_v26, %v6515_v8  ;;  %2069 = vadd.xlane.f32.xlu0 %v2068_v28  ;;  %v5091_v25 = vadd.f32 %v2215_v14, %v4922_v40  ;;  %v1712_v32 = vmul.f32 %v6517_v31, %v6517_v31  ;;  %v6519_v26 = vld [vmem:[#allocation125_spill] sm:$0xff]  ;;  %v6521_v28 = vld [vmem:[#allocation159_spill] sm:$0xff] }
 0x2c6   :  { %2072 = vadd.xlane.f32.xlu1 %v2071_v50  ;;  %v1860_v22 = vpop.xlane.xlu0 %1859  ;;  %v1863_v57 = vpop.xlane.xlu1 %1862  ;;  %v1714_v16 = vmul.f32 %v6519_v26, %v6519_v26  ;;  %v2083_v7 = vsel %vm1207_vm1, %v1713_v48, 0.0 }
 0x2c7   :  { %v2212_v58 = vadd.f32 %v2204_v19, %v4854_v46  ;;  %v2197_v59 = vadd.f32 %v2189_v17, %v6516_v38  ;;  %v2278_v23 = vadd.f32 %v4729_v0, %v1860_v22  ;;  %v2080_v14 = vsel %vm1207_vm1, %v1712_v32, 0.0 }
 0x2c8   :  { %v2086_v22 = vsel %vm1207_vm1, %v1714_v16, 0.0  ;;  %v6527_v16 = vld [vmem:[#allocation137_spill] sm:$0xff]  ;;  %v2231_v45 = vadd.f32 %v5091_v25, %v5046_v63  ;;  %v5190_v63 = vmul.f32 0.03125, %v2230_v1 }
 0x2c9   :  { %v2220_v40 = vadd.f32 %v2212_v58, %v4942_v10  ;;  %v2205_v33 = vadd.f32 %v2197_v59, %v4720_v62  ;;  %2075 = vadd.xlane.f32.xlu0 %v2074_v42  ;;  %v6520_v10 = vld [vmem:[#allocation127_spill] sm:$0xff]  ;;  %v6524_v58 = vld [vmem:[#allocation140_spill] sm:$0xff] }
 0x2ca   :  { %2078 = vadd.xlane.f32.xlu1 %v2077_v60  ;;  %v1866_v46 = vpop.xlane.xlu0 %1865  ;;  %v1869_v3 = vpop.xlane.xlu1 %1868  ;;  %v1715_v62 = vmul.f32 %v6520_v10, %v6520_v10  ;;  %v1717_v38 = vmul.f32 %v6524_v58, %v6524_v58  ;;  %v6525_v59 = vld [vmem:[#allocation155_spill] sm:$0xff]  ;;  %v2224_v10 = vadd.f32 %v5038_v27, %v4990_v61 }
 0x2cb   :  { %v5104_v21 = vadd.f32 %v2220_v40, %v1582_v29  ;;  %v2213_v0 = vadd.f32 %v2205_v33, %v4856_v47  ;;  %v2280_v39 = vadd.f32 %v4809_v15, %v1866_v46  ;;  %v6522_v47 = vld [vmem:[#allocation156_spill] sm:$0xff]  ;;  %v2277_v32 = vadd.f32 %v6525_v59, %v5012_v18  ;;  %v6526_v46 = vld [vmem:[#allocation134_spill] sm:$0xff] }
 0x2cc   :  { %v6523_v15 = vld [vmem:[#allocation136_spill] sm:$0xff]  ;;  %v2089_v42 = vsel %vm1207_vm1, %v1715_v62, 0.0  ;;  %v2095_v18 = vsel %vm1207_vm1, %v1717_v38, 0.0  ;;  %v5167_v31 = vmul.f32 0.03125, %v2224_v10 }
 0x2cd   :  { %v5114_v19 = vadd.f32 %v2213_v0, %v6521_v28  ;;  %2081 = vadd.xlane.f32.xlu0 %v2080_v14  ;;  %v1716_v50 = vmul.f32 %v6523_v15, %v6523_v15  ;;  %v1718_v0 = vmul.f32 %v6526_v46, %v6526_v46  ;;  %v1719_v28 = vmul.f32 %v6527_v16, %v6527_v16 }
 0x2ce   :  { %2084 = vadd.xlane.f32.xlu1 %v2083_v7  ;;  %v1872_v29 = vpop.xlane.xlu0 %1871  ;;  %v1875_v8 = vpop.xlane.xlu1 %1874  ;;  %v6528_v7 = vld [vmem:[#allocation154_spill] sm:$0xff] }
 0x2cf   :  { %v2282_v17 = vadd.f32 %v6522_v47, %v1872_v29  ;;  %v2092_v14 = vsel %vm1207_vm1, %v1716_v50, 0.0  ;;  %v2279_v29 = vadd.f32 %v6528_v7, %v1863_v57  ;;  %v2101_v50 = vsel %vm1207_vm1, %v1719_v28, 0.0 }
 0x2d0   :  { %v2229_v2 = vadd.f32 %v5114_v19, %v5076_v20 }
 0x2d1   :  { %2087 = vadd.xlane.f32.xlu0 %v2086_v22 }
 0x2d2   :  { %2090 = vadd.xlane.f32.xlu1 %v2089_v42  ;;  %v1878_v48 = vpop.xlane.xlu0 %1877  ;;  %v1881_v40 = vpop.xlane.xlu1 %1880 }
 0x2d3   :  { %v2284_v33 = vadd.f32 %v2276_v43, %v1878_v48  ;;  %v2285_v60 = vadd.f32 %v2277_v32, %v1881_v40  ;;  %v2098_v43 = vsel %vm1207_vm1, %v1718_v0, 0.0  ;;  %v6529_v32 = vld [vmem:[#allocation158_spill] sm:$0xff] }
 0x2d4   :  { %v2281_v42 = vadd.f32 %v6529_v32, %v1869_v3 }
 0x2d5   :  { %2093 = vadd.xlane.f32.xlu0 %v2092_v14  ;;  %v6530_v14 = vld [vmem:[#allocation157_spill] sm:$0xff] }
 0x2d6   :  { %2096 = vadd.xlane.f32.xlu1 %v2095_v18  ;;  %v1884_v62 = vpop.xlane.xlu0 %1883  ;;  %v1887_v47 = vpop.xlane.xlu1 %1886  ;;  %v2283_v7 = vadd.f32 %v6530_v14, %v1875_v8 }
 0x2d7   :  { %v2286_v22 = vadd.f32 %v2278_v23, %v1884_v62  ;;  %v2287_v59 = vadd.f32 %v2279_v29, %v1887_v47 }
 0x2d9   :  { %2099 = vadd.xlane.f32.xlu0 %v2098_v43 }
 0x2da   :  { %2102 = vadd.xlane.f32.xlu1 %v2101_v50  ;;  %v1890_v48 = vpop.xlane.xlu0 %1889  ;;  %v1893_v40 = vpop.xlane.xlu1 %1892 }
 0x2db   :  { %v2288_v46 = vadd.f32 %v2280_v39, %v1890_v48  ;;  %v2289_v57 = vadd.f32 %v2281_v42, %v1893_v40  ;;  %v3452_v40 = vmov 0  }
 0x2dc   :  { %3371 = vset.pattern.permute.xlu1 %v3452_v40  ;;  %3370 = vset.pattern.permute.xlu0 %v3452_v40 }
 0x2de   :  { %v1896_v38 = vpop.xlane.xlu0 %1895  ;;  %v1899_v18 = vpop.xlane.xlu1 %1898 }
 0x2df   :  { %v2290_v41 = vadd.f32 %v2282_v17, %v1896_v38  ;;  %v2291_v44 = vadd.f32 %v2283_v7, %v1899_v18 }
 0x2e2   :  { %v1902_v23 = vpop.xlane.xlu0 %1901  ;;  %v1905_v29 = vpop.xlane.xlu1 %1904 }
 0x2e3   :  { %v2292_v62 = vadd.f32 %v2284_v33, %v1902_v23  ;;  %v2293_v0 = vadd.f32 %v2285_v60, %v1905_v29 }
 0x2e6   :  { %v1908_v47 = vpop.xlane.xlu0 %1907  ;;  %v1911_v3 = vpop.xlane.xlu1 %1910 }
 0x2e7   :  { %v2294_v43 = vadd.f32 %v2286_v22, %v1908_v47  ;;  %v2295_v32 = vadd.f32 %v2287_v59, %v1911_v3 }
 0x2ea   :  { %v1914_v28 = vpop.xlane.xlu0 %1913  ;;  %v1917_v50 = vpop.xlane.xlu1 %1916 }
 0x2eb   :  { %v2296_v16 = vadd.f32 %v2288_v46, %v1914_v28  ;;  %v2297_v54 = vadd.f32 %v2289_v57, %v1917_v50 }
 0x2ee   :  { %v1920_v39 = vpop.xlane.xlu0 %1919  ;;  %v1923_v42 = vpop.xlane.xlu1 %1922 }
 0x2ef   :  { %v2298_v48 = vadd.f32 %v2290_v41, %v1920_v39  ;;  %v2299_v8 = vadd.f32 %v2291_v44, %v1923_v42 }
 0x2f2   :  { %v1926_v17 = vpop.xlane.xlu0 %1925  ;;  %v1929_v14 = vpop.xlane.xlu1 %1928 }
 0x2f3   :  { %v2300_v7 = vadd.f32 %v2292_v62, %v1926_v17  ;;  %v2301_v33 = vadd.f32 %v2293_v0, %v1929_v14 }
 0x2f6   :  { %v1932_v60 = vpop.xlane.xlu0 %1931  ;;  %v1935_v38 = vpop.xlane.xlu1 %1934 }
 0x2f7   :  { %v2302_v18 = vadd.f32 %v2294_v43, %v1932_v60  ;;  %v2303_v22 = vadd.f32 %v2295_v32, %v1935_v38 }
 0x2fa   :  { %v1938_v59 = vpop.xlane.xlu0 %1937  ;;  %v1941_v23 = vpop.xlane.xlu1 %1940 }
 0x2fb   :  { %v2304_v29 = vadd.f32 %v2296_v16, %v1938_v59  ;;  %v2305_v46 = vadd.f32 %v2297_v54, %v1941_v23 }
 0x2fe   :  { %v1944_v57 = vpop.xlane.xlu0 %1943  ;;  %v1947_v47 = vpop.xlane.xlu1 %1946 }
 0x2ff   :  { %v2306_v3 = vadd.f32 %v2298_v48, %v1944_v57  ;;  %v2307_v41 = vadd.f32 %v2299_v8, %v1947_v47 }
 0x302   :  { %v1950_v44 = vpop.xlane.xlu0 %1949  ;;  %v1953_v28 = vpop.xlane.xlu1 %1952 }
 0x303   :  { %v2308_v50 = vadd.f32 %v2300_v7, %v1950_v44  ;;  %v2309_v39 = vadd.f32 %v2301_v33, %v1953_v28 }
 0x306   :  { %v1956_v42 = vpop.xlane.xlu0 %1955  ;;  %v1959_v40 = vpop.xlane.xlu1 %1958 }
 0x307   :  { %v2310_v62 = vadd.f32 %v2302_v18, %v1956_v42  ;;  %v2311_v0 = vadd.f32 %v2303_v22, %v1959_v40 }
 0x30a   :  { %v1962_v17 = vpop.xlane.xlu0 %1961  ;;  %v1965_v14 = vpop.xlane.xlu1 %1964 }
 0x30b   :  { %v2312_v43 = vadd.f32 %v2304_v29, %v1962_v17  ;;  %v2313_v32 = vadd.f32 %v2305_v46, %v1965_v14 }
 0x30e   :  { %v1968_v60 = vpop.xlane.xlu0 %1967  ;;  %v1971_v38 = vpop.xlane.xlu1 %1970 }
 0x30f   :  { %v2314_v16 = vadd.f32 %v2306_v3, %v1968_v60  ;;  %v2315_v54 = vadd.f32 %v2307_v41, %v1971_v38 }
 0x312   :  { %v1974_v59 = vpop.xlane.xlu0 %1973  ;;  %v1977_v23 = vpop.xlane.xlu1 %1976 }
 0x313   :  { %v5137_v48 = vadd.f32 %v2308_v50, %v1974_v59  ;;  %v5139_v8 = vadd.f32 %v2309_v39, %v1977_v23 }
 0x316   :  { %v1980_v7 = vpop.xlane.xlu0 %1979  ;;  %v1983_v33 = vpop.xlane.xlu1 %1982 }
 0x317   :  { %v2318_v57 = vadd.f32 %v2310_v62, %v1980_v7  ;;  %v5141_v47 = vadd.f32 %v2311_v0, %v1983_v33 }
 0x31a   :  { %v1986_v18 = vpop.xlane.xlu0 %1985  ;;  %v1989_v22 = vpop.xlane.xlu1 %1988 }
 0x31b   :  { %v2320_v26 = vadd.f32 %v2312_v43, %v1986_v18  ;;  %v2321_v30 = vadd.f32 %v2313_v32, %v1989_v22  ;;  %v2377_v43 = vmul.f32 %v5169_v4, %v5169_v4 }
 0x31e   :  { %v1992_v44 = vpop.xlane.xlu0 %1991  ;;  %v1995_v29 = vpop.xlane.xlu1 %1994 }
 0x31f   :  { %v2322_v61 = vadd.f32 %v2314_v16, %v1992_v44  ;;  %v2323_v34 = vadd.f32 %v2315_v54, %v1995_v29 }
 0x322   :  { %v1998_v46 = vpop.xlane.xlu0 %1997  ;;  %v2001_v28 = vpop.xlane.xlu1 %2000 }
 0x323   :  { %v2324_v12 = vadd.f32 %v5137_v48, %v1998_v46  ;;  %v2325_v25 = vadd.f32 %v5139_v8, %v2001_v28 }
 0x326   :  { %v2004_v42 = vpop.xlane.xlu0 %2003  ;;  %v5143_v3 = vpop.xlane.xlu1 %2006 }
 0x327   :  { %v5145_v41 = vadd.f32 %v2318_v57, %v2004_v42  ;;  %v2327_v28 = vadd.f32 %v5141_v47, %v5143_v3 }
 0x32a   :  { %v2010_v50 = vpop.xlane.xlu0 %2009  ;;  %v2013_v40 = vpop.xlane.xlu1 %2012 }
 0x32b   :  { %v2328_v5 = vadd.f32 %v2320_v26, %v2010_v50  ;;  %v2329_v53 = vadd.f32 %v2321_v30, %v2013_v40  ;;  %v2379_v26 = vmul.f32 %v5165_v6, %v5165_v6  ;;  %v5193_v40 = vmul.f32 0.03125, %v2231_v45 }
 0x32e   :  { %v2016_v39 = vpop.xlane.xlu0 %2015  ;;  %v2019_v17 = vpop.xlane.xlu1 %2018 }
 0x32f   :  { %v2330_v30 = vadd.f32 %v2322_v61, %v2016_v39  ;;  %v2331_v32 = vadd.f32 %v2323_v34, %v2019_v17 }
 0x332   :  { %v2022_v14 = vpop.xlane.xlu0 %2021  ;;  %v2025_v60 = vpop.xlane.xlu1 %2024 }
 0x333   :  { %v2332_v39 = vadd.f32 %v2324_v12, %v2022_v14  ;;  %v2333_v20 = vadd.f32 %v2325_v25, %v2025_v60 }
 0x336   :  { %v5147_v62 = vpop.xlane.xlu0 %2027  ;;  %v5149_v0 = vpop.xlane.xlu1 %2030 }
 0x33a   :  { %v2034_v38 = vpop.xlane.xlu0 %2033 }
 0x33b   :  { %v2037_v59 = vpop.xlane.xlu1 %2036  ;;  %v2336_v9 = vadd.f32 %v2328_v5, %v2034_v38  ;;  %v2376_v5 = vmul.f32 %v5167_v31, %v5167_v31  ;;  %v5196_v38 = vmul.f32 0.03125, %v5104_v21  ;;  %v2334_v21 = vadd.f32 %v5145_v41, %v5147_v62 }
 0x33c   :  { %v2337_v52 = vadd.f32 %v2329_v53, %v2037_v59  ;;  %v5198_v59 = vmul.f32 0.03125, %v2229_v2 }
 0x33e   :  { %v2040_v23 = vpop.xlane.xlu0 %2039 }
 0x33f   :  { %v2043_v7 = vpop.xlane.xlu1 %2042  ;;  %v2338_v54 = vadd.f32 %v2330_v30, %v2040_v23 }
 0x340   :  { %v2339_v29 = vadd.f32 %v2331_v32, %v2043_v7 }
 0x342   :  { %v2046_v33 = vpop.xlane.xlu0 %2045 }
 0x343   :  { %v2049_v55 = vpop.xlane.xlu1 %2048  ;;  %v2340_v23 = vadd.f32 %v2332_v39, %v2046_v33  ;;  %v2393_v39 = vld [vmem:[%s6077_s2 + $0x8] sm:$0xff] }
 0x344   :  { %v2341_v7 = vadd.f32 %v2333_v20, %v2049_v55 }
 0x346   :  { %v5151_v58 = vpop.xlane.xlu0 %2051 }
 0x347   :  { %v5153_v57 = vpop.xlane.xlu1 %2054  ;;  %v2342_v45 = vadd.f32 %v2334_v21, %v5151_v58 }
 0x34a   :  { %v2058_v42 = vpop.xlane.xlu0 %2057 }
 0x34b   :  { %v2061_v11 = vpop.xlane.xlu1 %2060  ;;  %v2344_v10 = vadd.f32 %v2336_v9, %v2058_v42  ;;  %v2335_v9 = vadd.f32 %v2327_v28, %v5149_v0 }
 0x34c   :  { %v2345_v16 = vadd.f32 %v2337_v52, %v2061_v11 }
 0x34d   :  { %v2343_v3 = vadd.f32 %v2335_v9, %v5153_v57 }
 0x34e   :  { %v2064_v36 = vpop.xlane.xlu0 %2063 }
 0x34f   :  { %v2067_v15 = vpop.xlane.xlu1 %2066  ;;  %v2346_v17 = vadd.f32 %v2338_v54, %v2064_v36 }
 0x350   :  { %v2347_v19 = vadd.f32 %v2339_v29, %v2067_v15  ;;  %v2392_v29 = vld [vmem:[%s6077_s2] sm:$0xff] }
 0x352   :  { %v2070_v49 = vpop.xlane.xlu0 %2069 }
 0x353   :  { %v2073_v37 = vpop.xlane.xlu1 %2072  ;;  %v2348_v61 = vadd.f32 %v2340_v23, %v2070_v49  ;;  %v2380_v49 = vmul.f32 %v5196_v38, %v5196_v38  ;;  %v2394_v23 = vld [vmem:[%s6077_s2 + $0x10] sm:$0xff] }
 0x354   :  { %v2349_v1 = vadd.f32 %v2341_v7, %v2073_v37 }
 0x356   :  { %v5171_v35 = vpop.xlane.xlu0 %2075 }
 0x357   :  { %v5173_v27 = vpop.xlane.xlu1 %2078  ;;  %v2350_v62 = vadd.f32 %v2342_v45, %v5171_v35  ;;  %v2382_v35 = vmul.f32 %v5190_v63, %v5190_v63 }
 0x358   :  { %v2351_v58 = vadd.f32 %v2343_v3, %v5173_v27 }
 0x35a   :  { %v2082_v18 = vpop.xlane.xlu0 %2081 }
 0x35b   :  { %v2352_v22 = vadd.f32 %v2344_v10, %v2082_v18  ;;  %v2085_v44 = vpop.xlane.xlu1 %2084 }
 0x35c   :  { %v2353_v50 = vadd.f32 %v2345_v16, %v2085_v44 }
 0x35d   :  { %v2368_v11 = vmul.f32 0.03125, %v2352_v22  ;;  %v2383_v22 = vmul.f32 %v5193_v40, %v5193_v40 }
 0x35e   :  { %v2369_v48 = vmul.f32 0.03125, %v2353_v50  ;;  %v2088_v46 = vpop.xlane.xlu0 %2087 }
 0x35f   :  { %v2384_v42 = vsub.f32 %v2368_v11, %v2376_v5  ;;  %v2354_v53 = vadd.f32 %v2346_v17, %v2088_v46  ;;  %v2091_v8 = vpop.xlane.xlu1 %2090  ;;  %v2381_v5 = vmul.f32 %v5198_v59, %v5198_v59 }
 0x360   :  { %v2385_v14 = vsub.f32 %v2369_v48, %v2377_v43  ;;  %v2355_v36 = vadd.f32 %v2347_v19, %v2091_v8 }
 0x361   :  { %v2400_v60 = vadd.f32 1e-05, %v2384_v42  ;;  %v2370_v15 = vmul.f32 0.03125, %v2354_v53  ;;  %v2425_v42 = vld [vmem:[%s6078_s3 + $0x8] sm:$0xff]  ;;  %v2395_v53 = vld [vmem:[%s6077_s2 + $0x18] sm:$0xff] }
 0x362   :  { %v2401_v34 = vadd.f32 1e-05, %v2385_v14  ;;  %v2371_v33 = vmul.f32 0.03125, %v2355_v36  ;;  %v2094_v52 = vpop.xlane.xlu0 %2093 }
 0x363   :  { %3436 = vrsqrt.f32 %v2400_v60  ;;  %v2386_v30 = vsub.f32 %v2370_v15, %v2378_v24  ;;  %v2356_v47 = vadd.f32 %v2348_v61, %v2094_v52  ;;  %v2097_v55 = vpop.xlane.xlu1 %2096  ;;  %v2396_v60 = vld [vmem:[%s6077_s2 + $0x20] sm:$0xff]  ;;  %v2427_v15 = vld [vmem:[%s6078_s3 + $0x18] sm:$0xff] }
 0x364   :  { %3438 = vrsqrt.f32 %v2401_v34  ;;  %v2387_v10 = vsub.f32 %v2371_v33, %v2379_v26  ;;  %v2357_v41 = vadd.f32 %v2349_v1, %v2097_v55 }
 0x365   :  { %v2402_v37 = vadd.f32 1e-05, %v2386_v30  ;;  %v2372_v0 = vmul.f32 0.03125, %v2356_v47  ;;  %v2398_v30 = vld [vmem:[%s6077_s2 + $0x30] sm:$0xff]  ;;  %v2429_v47 = vld [vmem:[%s6078_s3 + $0x28] sm:$0xff] }
 0x366   :  { %v2403_v24 = vadd.f32 1e-05, %v2387_v10  ;;  %v2373_v43 = vmul.f32 0.03125, %v2357_v41  ;;  %v2100_v32 = vpop.xlane.xlu0 %2099 }
 0x367   :  { %3440 = vrsqrt.f32 %v2402_v37  ;;  %v2388_v57 = vsub.f32 %v2372_v0, %v2380_v49  ;;  %v2358_v16 = vadd.f32 %v2350_v62, %v2100_v32  ;;  %v2103_v26 = vpop.xlane.xlu1 %2102  ;;  %v2431_v37 = vld [vmem:[%s6078_s3 + $0x38] sm:$0xff]  ;;  %v2430_v32 = vld [vmem:[%s6078_s3 + $0x30] sm:$0xff] }
 0x368   :  { %3442 = vrsqrt.f32 %v2403_v24  ;;  %v2389_v18 = vsub.f32 %v2373_v43, %v2381_v5  ;;  %v2359_v2 = vadd.f32 %v2351_v58, %v2103_v26  ;;  %v2426_v24 = vld [vmem:[%s6078_s3 + $0x10] sm:$0xff] }
 0x369   :  { %v2404_v12 = vadd.f32 1e-05, %v2388_v57  ;;  %v2374_v54 = vmul.f32 0.03125, %v2358_v16  ;;  %v6531_v26 = vld [vmem:[#allocation4_spill] sm:$0xff] }
 0x36a   :  { %v2405_v44 = vadd.f32 1e-05, %v2389_v18  ;;  %v2375_v27 = vmul.f32 0.03125, %v2359_v2  ;;  %v6532_v2 = vld [vmem:[#allocation20_spill] sm:$0xff] }
 0x36b   :  { %3444 = vrsqrt.f32 %v2404_v12  ;;  %v2390_v25 = vsub.f32 %v2374_v54, %v2382_v35  ;;  %v6533_v12 = vld [vmem:[#allocation36_spill] sm:$0xff] }
 0x36c   :  { %3446 = vrsqrt.f32 %v2405_v44  ;;  %v2391_v50 = vsub.f32 %v2375_v27, %v2383_v22  ;;  %v6534_v22 = vld [vmem:[#allocation52_spill] sm:$0xff] }
 0x36d   :  { %v3437_v17 = vpop.eup %3436  ;;  %v2406_v11 = vadd.f32 1e-05, %v2390_v25  ;;  %v6535_v27 = vld [vmem:[#allocation68_spill] sm:$0xff] }
 0x36e   :  { %v3439_v20 = vpop.eup %3438  ;;  %v2407_v19 = vadd.f32 1e-05, %v2391_v50  ;;  %v2416_v48 = vmul.f32 %v3437_v17, %v2392_v29  ;;  %v6536_v29 = vld [vmem:[#allocation83_spill] sm:$0xff] }
 0x36f   :  { %3448 = vrsqrt.f32 %v2406_v11  ;;  %v2417_v46 = vmul.f32 %v3439_v20, %v2393_v39  ;;  %v6537_v39 = vld [vmem:[#allocation99_spill] sm:$0xff]  ;;  %v6538_v11 = vld [vmem:[#allocation122_spill] sm:$0xff] }
 0x370   :  { %3450 = vrsqrt.f32 %v2407_v19  ;;  %2450 = vperm.xlu0 %3370, %v2416_v48   ;;  %v2432_v8 = vmul.f32 %v2416_v48, %v5167_v31  ;;  %v2397_v31 = vld [vmem:[%s6077_s2 + $0x28] sm:$0xff]  ;;  %v6539_v48 = vld [vmem:[#allocation5_spill] sm:$0xff] }
 0x371   :  { %v3441_v28 = vpop.eup %3440  ;;  %2455 = vperm.xlu1 %3371, %v2417_v46   ;;  %v2433_v7 = vmul.f32 %v2417_v46, %v5169_v4 }
 0x372   :  { %v3443_v14 = vpop.eup %3442  ;;  %v2418_v36 = vmul.f32 %v3441_v28, %v2394_v23  ;;  %v6540_v23 = vld [vmem:[#allocation21_spill] sm:$0xff] }
 0x373   :  { %v2441_v21 = vsub.f32 %v2425_v42, %v2433_v7  ;;  %v2419_v61 = vmul.f32 %v3443_v14, %v2395_v53  ;;  %v6541_v53 = vld [vmem:[#allocation37_spill] sm:$0xff] }
 0x374   :  { %v2434_v9 = vmul.f32 %v2418_v36, %v5163_v51  ;;  %v2399_v51 = vld [vmem:[%s6077_s2 + $0x38] sm:$0xff] }
 0x375   :  { %v3445_v1 = vpop.eup %3444  ;;  %2460 = vperm.xlu1 %3371, %v2418_v36   ;;  %2623 = vperm.xlu0 %3370, %v2441_v21   ;;  %v2435_v4 = vmul.f32 %v2419_v61, %v5165_v6  ;;  %v6542_v28 = vld [vmem:[#allocation53_spill] sm:$0xff] }
 0x376   :  { %v3447_v34 = vpop.eup %3446  ;;  %v2420_v33 = vmul.f32 %v3445_v1, %v2396_v60  ;;  %v6543_v14 = vld [vmem:[#allocation69_spill] sm:$0xff]  ;;  %v6544_v60 = vld [vmem:[#allocation126_spill] sm:$0xff]  ;;  %v6546_v1 = vld [vmem:[#allocation24_spill] sm:$0xff] }
 0x377   :  { %v2443_v52 = vsub.f32 %v2427_v15, %v2435_v4  ;;  %v2421_v45 = vmul.f32 %v3447_v34, %v2397_v31  ;;  %v6545_v31 = vld [vmem:[#allocation8_spill] sm:$0xff] }
 0x378   :  { %v2436_v55 = vmul.f32 %v2420_v33, %v5196_v38  ;;  %v6547_v34 = vld [vmem:[#allocation40_spill] sm:$0xff] }
 0x379   :  { %v3449_v3 = vpop.eup %3448  ;;  %2465 = vperm.xlu1 %3371, %v2419_v61   ;;  %2633 = vperm.xlu0 %3370, %v2443_v52   ;;  %v2437_v6 = vmul.f32 %v2421_v45, %v5198_v59  ;;  %v2424_v59 = vld [vmem:[%s6078_s3] sm:$0xff]  ;;  %v6548_v52 = vld [vmem:[#allocation56_spill] sm:$0xff] }
 0x37a   :  { %v3451_v10 = vpop.eup %3450  ;;  %v2422_v41 = vmul.f32 %v3449_v3, %v2398_v30  ;;  %v2440_v58 = vsub.f32 %v2424_v59, %v2432_v8  ;;  %v6549_v30 = vld [vmem:[#allocation72_spill] sm:$0xff] }
 0x37b   :  { %v2445_v49 = vsub.f32 %v2429_v47, %v2437_v6  ;;  %v2423_v62 = vmul.f32 %v3451_v10, %v2399_v51  ;;  %v6550_v51 = vld [vmem:[#allocation85_spill] sm:$0xff]  ;;  %v6552_v6 = vld [vmem:[#allocation124_spill] sm:$0xff] }
 0x37c   :  { %v2438_v0 = vmul.f32 %v2422_v41, %v5190_v63  ;;  %v2442_v63 = vsub.f32 %v2426_v24, %v2434_v9 }
 0x37d   :  { %2470 = vperm.xlu1 %3371, %v2420_v33   ;;  %2643 = vperm.xlu0 %3370, %v2445_v49   ;;  %v2439_v5 = vmul.f32 %v2423_v62, %v5193_v40  ;;  %v2428_v40 = vld [vmem:[%s6078_s3 + $0x20] sm:$0xff] }
 0x37e   :  { %v2444_v43 = vsub.f32 %v2428_v40, %v2436_v55  ;;  %v2446_v57 = vsub.f32 %v2430_v32, %v2438_v0  ;;  %v6555_v0 = vld [vmem:[#allocation41_spill] sm:$0xff] }
 0x37f   :  { %v2447_v38 = vsub.f32 %v2431_v37, %v2439_v5 }
 0x381   :  { %2475 = vperm.xlu1 %3371, %v2421_v45   ;;  %2653 = vperm.xlu0 %3370, %v2447_v38   ;;  %v6556_v38 = vld [vmem:[#allocation57_spill] sm:$0xff] }
 0x385   :  { %2480 = vperm.xlu1 %3371, %v2422_v41   ;;  %v6553_v41 = vld [vmem:[#allocation9_spill] sm:$0xff] }
 0x389   :  { %2485 = vperm.xlu1 %3371, %v2423_v62   ;;  %v6554_v62 = vld [vmem:[#allocation25_spill] sm:$0xff] }
 0x38d   :  { %2618 = vperm.xlu1 %3371, %v2440_v58   ;;  %v6557_v58 = vld [vmem:[#allocation73_spill] sm:$0xff] }
 0x391   :  { %2628 = vperm.xlu1 %3371, %v2442_v63   ;;  %v6558_v63 = vld [vmem:[#allocation88_spill] sm:$0xff] }
 0x395   :  { %2638 = vperm.xlu1 %3371, %v2444_v43   ;;  %v6559_v43 = vld [vmem:[#allocation108_spill] sm:$0xff] }
 0x399   :  { %2648 = vperm.xlu1 %3371, %v2446_v57   ;;  %v6560_v57 = vld [vmem:[#allocation128_spill] sm:$0xff] }
 0x3ef   :  { %v2451_v16 = vpop.permute.xlu0 %2450 }
 0x3f0   :  { %v5274_v18 = vmul.f32 %v2451_v16, %v6531_v26  ;;  %v5277_v35 = vmul.f32 %v2451_v16, %v6532_v2  ;;  %v5280_v54 = vmul.f32 %v2451_v16, %v6533_v12  ;;  %v5283_v44 = vmul.f32 %v2451_v16, %v6534_v22  ;;  %v2456_v19 = vpop.permute.xlu1 %2455 }
 0x3f1   :  { %v5286_v25 = vmul.f32 %v2451_v16, %v6535_v27  ;;  %v5289_v50 = vmul.f32 %v2451_v16, %v6536_v29  ;;  %v5292_v17 = vmul.f32 %v2451_v16, %v6537_v39  ;;  %v5295_v20 = vmul.f32 %v2451_v16, %v6538_v11 }
 0x3f2   :  { %v5298_v46 = vmul.f32 %v2451_v16, %v6539_v48  ;;  %v5301_v42 = vmul.f32 %v2451_v16, %v6540_v23  ;;  %v5304_v8 = vmul.f32 %v2451_v16, %v6541_v53  ;;  %v5307_v7 = vmul.f32 %v2451_v16, %v6542_v28 }
 0x3f3   :  { %v5310_v36 = vmul.f32 %v2451_v16, %v6543_v14  ;;  %v5313_v21 = vmul.f32 %v2451_v16, %v4048_v56  ;;  %v5316_v61 = vmul.f32 %v2451_v16, %v6494_v13  ;;  %v5319_v15 = vmul.f32 %v2451_v16, %v6544_v60  ;;  %v6551_v56 = vld [vmem:[#allocation103_spill] sm:$0xff] }
 0x3f4   :  { %v2489_v9 = vmul.f32 %v2456_v19, %v6545_v31  ;;  %v2497_v4 = vmul.f32 %v2456_v19, %v6546_v1  ;;  %v2505_v33 = vmul.f32 %v2456_v19, %v6547_v34  ;;  %v2513_v45 = vmul.f32 %v2456_v19, %v6548_v52  ;;  %v2624_v10 = vpop.permute.xlu0 %2623  ;;  %v2461_v34 = vpop.permute.xlu1 %2460 }
 0x3f5   :  { %v2521_v47 = vmul.f32 %v2456_v19, %v6549_v30  ;;  %v2529_v55 = vmul.f32 %v2456_v19, %v6550_v51  ;;  %v2537_v3 = vmul.f32 %v2456_v19, %v6551_v56  ;;  %v2545_v13 = vmul.f32 %v2456_v19, %v6552_v6 }
 0x3f6   :  { %v2553_v49 = vmul.f32 %v2456_v19, %v6553_v41  ;;  %v2561_v37 = vmul.f32 %v2456_v19, %v6554_v62  ;;  %v2569_v5 = vmul.f32 %v2456_v19, %v6555_v0  ;;  %v2577_v59 = vmul.f32 %v2456_v19, %v6556_v38 }
 0x3f7   :  { %v2585_v24 = vmul.f32 %v2456_v19, %v6557_v58  ;;  %v2593_v40 = vmul.f32 %v2456_v19, %v6558_v63  ;;  %v2601_v32 = vmul.f32 %v2456_v19, %v6559_v43  ;;  %v2609_v16 = vmul.f32 %v2456_v19, %v6560_v57 }
 0x3f8   :  { %v2657_v26 = vadd.f32 %v2624_v10, %v2489_v9  ;;  %v2665_v2 = vadd.f32 %v2624_v10, %v2497_v4  ;;  %v2673_v12 = vadd.f32 %v2624_v10, %v2505_v33  ;;  %v2681_v22 = vadd.f32 %v2624_v10, %v2513_v45 }
 0x3f9   :  { %v2689_v27 = vadd.f32 %v2624_v10, %v2521_v47  ;;  %v2697_v29 = vadd.f32 %v2624_v10, %v2529_v55  ;;  %v2705_v39 = vadd.f32 %v2624_v10, %v2537_v3  ;;  %v2713_v11 = vadd.f32 %v2624_v10, %v2545_v13 }
 0x3fa   :  { %v2721_v48 = vadd.f32 %v2624_v10, %v2553_v49  ;;  %v2729_v23 = vadd.f32 %v2624_v10, %v2561_v37  ;;  %v2737_v53 = vadd.f32 %v2624_v10, %v2569_v5  ;;  %v2745_v28 = vadd.f32 %v2624_v10, %v2577_v59  ;;  %v6561_v49 = vld [vmem:[#allocation2_spill] sm:$0xff] }
 0x3fb   :  { %v2753_v14 = vadd.f32 %v2624_v10, %v2585_v24  ;;  %v2761_v60 = vadd.f32 %v2624_v10, %v2593_v40  ;;  %v2769_v31 = vadd.f32 %v2624_v10, %v2601_v32  ;;  %v2777_v1 = vadd.f32 %v2624_v10, %v2609_v16  ;;  %v6562_v37 = vld [vmem:[#allocation18_spill] sm:$0xff]  ;;  %v6568_v16 = vld [vmem:[#allocation121_spill] sm:$0xff] }
 0x3fc   :  { %v2785_v52 = vmax.f32 %v2657_v26, 0.0  ;;  %v2793_v30 = vmax.f32 %v2665_v2, 0.0  ;;  %v2801_v19 = vmax.f32 %v2673_v12, 0.0  ;;  %v2809_v9 = vmax.f32 %v2681_v22, 0.0  ;;  %v6563_v5 = vld [vmem:[#allocation34_spill] sm:$0xff]  ;;  %v2466_v2 = vpop.permute.xlu1 %2465  ;;  %v6569_v12 = vld [vmem:[#allocation3_spill] sm:$0xff] }
 0x3fd   :  { %v2817_v4 = vmax.f32 %v2689_v27, 0.0  ;;  %v2825_v33 = vmax.f32 %v2697_v29, 0.0  ;;  %v2833_v45 = vmax.f32 %v2705_v39, 0.0  ;;  %v2841_v47 = vmax.f32 %v2713_v11, 0.0  ;;  %v6564_v59 = vld [vmem:[#allocation50_spill] sm:$0xff]  ;;  %v6570_v27 = vld [vmem:[#allocation19_spill] sm:$0xff] }
 0x3fe   :  { %v2849_v51 = vmax.f32 %v2721_v48, 0.0  ;;  %v2857_v55 = vmax.f32 %v2729_v23, 0.0  ;;  %v2865_v56 = vmax.f32 %v2737_v53, 0.0  ;;  %v2873_v3 = vmax.f32 %v2745_v28, 0.0  ;;  %2913 = vst.msk [vmem:[%s6079_s4 + $0x8] sm:$0xff] %vm1207_vm1, %v2785_v52  ;;  %2921 = vst.msk [vmem:[%s6079_s4 + $0x48] sm:$0xff] %vm1207_vm1, %v2793_v30 }
 0x3ff   :  { %2929 = vst.msk [vmem:[%s6079_s4 + $0x88] sm:$0xff] %vm1207_vm1, %v2801_v19  ;;  %2937 = vst.msk [vmem:[%s6079_s4 + $0xc8] sm:$0xff] %vm1207_vm1, %v2809_v9  ;;  %v2881_v6 = vmax.f32 %v2753_v14, 0.0  ;;  %v2889_v13 = vmax.f32 %v2761_v60, 0.0  ;;  %v2897_v10 = vmax.f32 %v2769_v31, 0.0  ;;  %v2905_v41 = vmax.f32 %v2777_v1, 0.0 }
 0x400   :  { %2945 = vst.msk [vmem:[%s6079_s4 + $0x108] sm:$0xff] %vm1207_vm1, %v2817_v4  ;;  %2953 = vst.msk [vmem:[%s6079_s4 + $0x148] sm:$0xff] %vm1207_vm1, %v2825_v33  ;;  %v5386_v62 = vmul.f32 %v6561_v49, %v2461_v34  ;;  %v5389_v0 = vmul.f32 %v6562_v37, %v2461_v34  ;;  %v5392_v38 = vmul.f32 %v6563_v5, %v2461_v34  ;;  %v6565_v24 = vld [vmem:[#allocation66_spill] sm:$0xff]  ;;  %v6571_v39 = vld [vmem:[#allocation35_spill] sm:$0xff] }
 0x401   :  { %2961 = vst.msk [vmem:[%s6079_s4 + $0x188] sm:$0xff] %vm1207_vm1, %v2833_v45  ;;  %2969 = vst.msk [vmem:[%s6079_s4 + $0x1c8] sm:$0xff] %vm1207_vm1, %v2841_v47  ;;  %v5395_v58 = vmul.f32 %v6564_v59, %v2461_v34  ;;  %v5414_v63 = vmul.f32 %v6565_v24, %v2461_v34  ;;  %v6566_v40 = vld [vmem:[#allocation82_spill] sm:$0xff]  ;;  %v5423_v26 = vmul.f32 %v6568_v16, %v2461_v34  ;;  %v6573_v48 = vld [vmem:[#allocation51_spill] sm:$0xff] }
 0x402   :  { %2977 = vst.msk [vmem:[%s6079_s4 + $0x208] sm:$0xff] %vm1207_vm1, %v2849_v51  ;;  %2985 = vst.msk [vmem:[%s6079_s4 + $0x248] sm:$0xff] %vm1207_vm1, %v2857_v55  ;;  %v5417_v43 = vmul.f32 %v6566_v40, %v2461_v34  ;;  %v6567_v32 = vld [vmem:[#allocation98_spill] sm:$0xff]  ;;  %v5426_v22 = vmul.f32 %v6569_v12, %v2461_v34  ;;  %v5429_v29 = vmul.f32 %v6570_v27, %v2461_v34  ;;  %v6575_v53 = vld [vmem:[#allocation67_spill] sm:$0xff]  ;;  %v2634_v27 = vpop.permute.xlu0 %2633 }
 0x403   :  { %2993 = vst.msk [vmem:[%s6079_s4 + $0x288] sm:$0xff] %vm1207_vm1, %v2865_v56  ;;  %3001 = vst.msk [vmem:[%s6079_s4 + $0x2c8] sm:$0xff] %vm1207_vm1, %v2873_v3  ;;  %v5420_v57 = vmul.f32 %v6567_v32, %v2461_v34  ;;  %v5432_v11 = vmul.f32 %v6571_v39, %v2461_v34  ;;  %v5435_v23 = vmul.f32 %v6573_v48, %v2461_v34  ;;  %v6577_v14 = vld [vmem:[#allocation86_spill] sm:$0xff]  ;;  %v6579_v31 = vld [vmem:[#allocation104_spill] sm:$0xff] }
 0x404   :  { %3009 = vst.msk [vmem:[%s6079_s4 + $0x308] sm:$0xff] %vm1207_vm1, %v2881_v6  ;;  %3017 = vst.msk [vmem:[%s6079_s4 + $0x348] sm:$0xff] %vm1207_vm1, %v2889_v13  ;;  %v5438_v28 = vmul.f32 %v6575_v53, %v2461_v34  ;;  %v5441_v60 = vmul.f32 %v6577_v14, %v2461_v34  ;;  %v5444_v1 = vmul.f32 %v6579_v31, %v2461_v34  ;;  %v6581_v52 = vld [vmem:[#allocation125_spill] sm:$0xff]  ;;  %v6583_v19 = vld [vmem:[#allocation7_spill] sm:$0xff] }
 0x405   :  { %3025 = vst.msk [vmem:[%s6079_s4 + $0x388] sm:$0xff] %vm1207_vm1, %v2897_v10  ;;  %3033 = vst.msk [vmem:[%s6079_s4 + $0x3c8] sm:$0xff] %vm1207_vm1, %v2905_v41  ;;  %v5447_v30 = vmul.f32 %v6581_v52, %v2461_v34  ;;  %v2491_v9 = vmul.f32 %v6583_v19, %v2466_v2  ;;  %v6584_v4 = vld [vmem:[#allocation22_spill] sm:$0xff]  ;;  %v6588_v6 = vld [vmem:[#allocation84_spill] sm:$0xff] }
 0x406   :  { %6572 = vst [vmem:[#allocation97_spill] sm:$0xff] %v5432_v11  ;;  %6574 = vst [vmem:[#allocation102_spill] sm:$0xff] %v5435_v23  ;;  %v2499_v33 = vmul.f32 %v6584_v4, %v2466_v2  ;;  %v6585_v45 = vld [vmem:[#allocation38_spill] sm:$0xff]  ;;  %v2531_v13 = vmul.f32 %v6588_v6, %v2466_v2  ;;  %v6589_v10 = vld [vmem:[#allocation100_spill] sm:$0xff]  ;;  %v2471_v23 = vpop.permute.xlu1 %2470 }
 0x407   :  { %6576 = vst [vmem:[#allocation129_spill] sm:$0xff] %v5438_v28  ;;  %6578 = vst [vmem:[#allocation130_spill] sm:$0xff] %v5441_v60  ;;  %v2507_v47 = vmul.f32 %v6585_v45, %v2466_v2  ;;  %v6586_v51 = vld [vmem:[#allocation54_spill] sm:$0xff]  ;;  %v2539_v41 = vmul.f32 %v6589_v10, %v2466_v2  ;;  %v6590_v49 = vld [vmem:[#allocation123_spill] sm:$0xff]  ;;  %v2659_v45 = vadd.f32 %v2634_v27, %v2491_v9 }
 0x408   :  { %6580 = vst [vmem:[#allocation101_spill] sm:$0xff] %v5444_v1  ;;  %6582 = vst [vmem:[#allocation107_spill] sm:$0xff] %v5447_v30  ;;  %v2515_v55 = vmul.f32 %v6586_v51, %v2466_v2  ;;  %v6587_v56 = vld [vmem:[#allocation70_spill] sm:$0xff]  ;;  %v2547_v37 = vmul.f32 %v6590_v49, %v2466_v2  ;;  %v6592_v34 = vld [vmem:[#allocation23_spill] sm:$0xff]  ;;  %v2667_v51 = vadd.f32 %v2634_v27, %v2499_v33 }
 0x409   :  { %v2523_v3 = vmul.f32 %v6587_v56, %v2466_v2  ;;  %v6591_v5 = vld [vmem:[#allocation6_spill] sm:$0xff]  ;;  %v2563_v24 = vmul.f32 %v6592_v34, %v2466_v2  ;;  %v6593_v40 = vld [vmem:[#allocation39_spill] sm:$0xff]  ;;  %v2675_v56 = vadd.f32 %v2634_v27, %v2507_v47  ;;  %v2699_v49 = vadd.f32 %v2634_v27, %v2531_v13 }
 0x40a   :  { %v2555_v59 = vmul.f32 %v6591_v5, %v2466_v2  ;;  %v2571_v32 = vmul.f32 %v6593_v40, %v2466_v2  ;;  %v6594_v16 = vld [vmem:[#allocation55_spill] sm:$0xff]  ;;  %v6597_v31 = vld [vmem:[#allocation106_spill] sm:$0xff]  ;;  %v2683_v6 = vadd.f32 %v2634_v27, %v2515_v55  ;;  %v2707_v5 = vadd.f32 %v2634_v27, %v2539_v41 }
 0x40b   :  { %v2579_v12 = vmul.f32 %v6594_v16, %v2466_v2  ;;  %v6595_v39 = vld [vmem:[#allocation71_spill] sm:$0xff]  ;;  %v2603_v52 = vmul.f32 %v6597_v31, %v2466_v2  ;;  %v2691_v10 = vadd.f32 %v2634_v27, %v2523_v3  ;;  %v2715_v34 = vadd.f32 %v2634_v27, %v2547_v37 }
 0x40c   :  { %v2587_v48 = vmul.f32 %v6595_v39, %v2466_v2  ;;  %v6596_v53 = vld [vmem:[#allocation87_spill] sm:$0xff]  ;;  %v2723_v40 = vadd.f32 %v2634_v27, %v2555_v59  ;;  %v2731_v30 = vadd.f32 %v2634_v27, %v2563_v24  ;;  %v2739_v16 = vadd.f32 %v2634_v27, %v2571_v32 }
 0x40d   :  { %v2595_v14 = vmul.f32 %v6596_v53, %v2466_v2  ;;  %v6598_v19 = vld [vmem:[#allocation127_spill] sm:$0xff]  ;;  %v2747_v1 = vadd.f32 %v2634_v27, %v2579_v12  ;;  %v2771_v28 = vadd.f32 %v2634_v27, %v2603_v52  ;;  %v2787_v31 = vmax.f32 %v2659_v45, 0.0  ;;  %v6609_v45 = vld [vmem:[#allocation90_spill] sm:$0xff] }
 0x40e   :  { %v2611_v4 = vmul.f32 %v6598_v19, %v2466_v2  ;;  %v2755_v60 = vadd.f32 %v2634_v27, %v2587_v48  ;;  %v2795_v11 = vmax.f32 %v2667_v51, 0.0  ;;  %v2803_v2 = vmax.f32 %v2675_v56, 0.0  ;;  %v6607_v19 = vld [vmem:[#allocation75_spill] sm:$0xff]  ;;  %v6611_v56 = vld [vmem:[#allocation110_spill] sm:$0xff] }
 0x40f   :  { %v2763_v39 = vadd.f32 %v2634_v27, %v2595_v14  ;;  %v2811_v9 = vmax.f32 %v2683_v6, 0.0  ;;  %v2819_v33 = vmax.f32 %v2691_v10, 0.0  ;;  %v2827_v47 = vmax.f32 %v2699_v49, 0.0  ;;  %2915 = vst.msk [vmem:[%s6079_s4 + $0x18] sm:$0xff] %vm1207_vm1, %v2787_v31  ;;  %v6605_v14 = vld [vmem:[#allocation60_spill] sm:$0xff] }
 0x410   :  { %v2779_v53 = vadd.f32 %v2634_v27, %v2611_v4  ;;  %v2835_v55 = vmax.f32 %v2707_v5, 0.0  ;;  %v2843_v3 = vmax.f32 %v2715_v34, 0.0  ;;  %v2851_v13 = vmax.f32 %v2723_v40, 0.0  ;;  %2923 = vst.msk [vmem:[%s6079_s4 + $0x58] sm:$0xff] %vm1207_vm1, %v2795_v11  ;;  %2931 = vst.msk [vmem:[%s6079_s4 + $0x98] sm:$0xff] %vm1207_vm1, %v2803_v2  ;;  %v6599_v11 = vld [vmem:[#allocation12_spill] sm:$0xff]  ;;  %v2476_v5 = vpop.permute.xlu1 %2475 }
 0x411   :  { %v2859_v41 = vmax.f32 %v2731_v30, 0.0  ;;  %v2867_v37 = vmax.f32 %v2739_v16, 0.0  ;;  %v2875_v59 = vmax.f32 %v2747_v1, 0.0  ;;  %2939 = vst.msk [vmem:[%s6079_s4 + $0xd8] sm:$0xff] %vm1207_vm1, %v2811_v9  ;;  %v2883_v1 = vmax.f32 %v2755_v60, 0.0  ;;  %2947 = vst.msk [vmem:[%s6079_s4 + $0x118] sm:$0xff] %vm1207_vm1, %v2819_v33 }
 0x412   :  { %v2891_v30 = vmax.f32 %v2763_v39, 0.0  ;;  %v2899_v24 = vmax.f32 %v2771_v28, 0.0  ;;  %v2907_v32 = vmax.f32 %v2779_v53, 0.0  ;;  %2955 = vst.msk [vmem:[%s6079_s4 + $0x158] sm:$0xff] %vm1207_vm1, %v2827_v47  ;;  %2963 = vst.msk [vmem:[%s6079_s4 + $0x198] sm:$0xff] %vm1207_vm1, %v2835_v55  ;;  %v5514_v28 = vmul.f32 %v2471_v23, %v6599_v11  ;;  %v6601_v60 = vld [vmem:[#allocation28_spill] sm:$0xff] }
 0x413   :  { %2971 = vst.msk [vmem:[%s6079_s4 + $0x1d8] sm:$0xff] %vm1207_vm1, %v2843_v3  ;;  %2979 = vst.msk [vmem:[%s6079_s4 + $0x218] sm:$0xff] %vm1207_vm1, %v2851_v13  ;;  %v5517_v12 = vmul.f32 %v2471_v23, %v6601_v60  ;;  %v6603_v27 = vld [vmem:[#allocation44_spill] sm:$0xff]  ;;  %v5523_v52 = vmul.f32 %v2471_v23, %v6605_v14  ;;  %v5542_v4 = vmul.f32 %v2471_v23, %v6607_v19  ;;  %v6615_v34 = vld [vmem:[#allocation13_spill] sm:$0xff] }
 0x414   :  { %2987 = vst.msk [vmem:[%s6079_s4 + $0x258] sm:$0xff] %vm1207_vm1, %v2859_v41  ;;  %2995 = vst.msk [vmem:[%s6079_s4 + $0x298] sm:$0xff] %vm1207_vm1, %v2867_v37  ;;  %v5520_v48 = vmul.f32 %v2471_v23, %v6603_v27  ;;  %v5545_v51 = vmul.f32 %v2471_v23, %v6609_v45  ;;  %v5548_v6 = vmul.f32 %v2471_v23, %v6611_v56  ;;  %v6613_v10 = vld [vmem:[#allocation132_spill] sm:$0xff]  ;;  %v6617_v16 = vld [vmem:[#allocation29_spill] sm:$0xff] }
 0x415   :  { %3003 = vst.msk [vmem:[%s6079_s4 + $0x2d8] sm:$0xff] %vm1207_vm1, %v2875_v59  ;;  %6600 = vst [vmem:[#allocation138_spill] sm:$0xff] %v5514_v28  ;;  %v5551_v49 = vmul.f32 %v2471_v23, %v6613_v10  ;;  %v5554_v40 = vmul.f32 %v2471_v23, %v6615_v34  ;;  %v5557_v39 = vmul.f32 %v2471_v23, %v6617_v16  ;;  %v6619_v53 = vld [vmem:[#allocation45_spill] sm:$0xff]  ;;  %v6623_v33 = vld [vmem:[#allocation79_spill] sm:$0xff] }
 0x416   :  { %6602 = vst [vmem:[#allocation139_spill] sm:$0xff] %v5517_v12  ;;  %6604 = vst [vmem:[#allocation149_spill] sm:$0xff] %v5520_v48  ;;  %v5560_v31 = vmul.f32 %v2471_v23, %v6619_v53  ;;  %v6621_v2 = vld [vmem:[#allocation61_spill] sm:$0xff]  ;;  %v5566_v47 = vmul.f32 %v2471_v23, %v6623_v33  ;;  %v6625_v55 = vld [vmem:[#allocation94_spill] sm:$0xff] }
 0x417   :  { %6606 = vst [vmem:[#allocation116_spill] sm:$0xff] %v5523_v52  ;;  %3011 = vst.msk [vmem:[%s6079_s4 + $0x318] sm:$0xff] %vm1207_vm1, %v2883_v1  ;;  %v5563_v9 = vmul.f32 %v2471_v23, %v6621_v2  ;;  %v5569_v3 = vmul.f32 %v2471_v23, %v6625_v55  ;;  %v6627_v13 = vld [vmem:[#allocation114_spill] sm:$0xff]  ;;  %v6629_v37 = vld [vmem:[#allocation136_spill] sm:$0xff] }
 0x418   :  { %3019 = vst.msk [vmem:[%s6079_s4 + $0x358] sm:$0xff] %vm1207_vm1, %v2891_v30  ;;  %3027 = vst.msk [vmem:[%s6079_s4 + $0x398] sm:$0xff] %vm1207_vm1, %v2899_v24  ;;  %v5572_v41 = vmul.f32 %v2471_v23, %v6627_v13  ;;  %v5575_v59 = vmul.f32 %v2471_v23, %v6629_v37  ;;  %v6631_v1 = vld [vmem:[#allocation16_spill] sm:$0xff]  ;;  %v6635_v19 = vld [vmem:[#allocation77_spill] sm:$0xff] }
 0x419   :  { %3035 = vst.msk [vmem:[%s6079_s4 + $0x3d8] sm:$0xff] %vm1207_vm1, %v2907_v32  ;;  %6608 = vst [vmem:[#allocation105_spill] sm:$0xff] %v5542_v4  ;;  %v2493_v30 = vmul.f32 %v2476_v5, %v6631_v1  ;;  %v6632_v24 = vld [vmem:[#allocation32_spill] sm:$0xff]  ;;  %v2525_v45 = vmul.f32 %v2476_v5, %v6635_v19  ;;  %v6638_v53 = vld [vmem:[#allocation135_spill] sm:$0xff] }
 0x41a   :  { %6610 = vst [vmem:[#allocation141_spill] sm:$0xff] %v5545_v51  ;;  %6612 = vst [vmem:[#allocation145_spill] sm:$0xff] %v5548_v6  ;;  %v2501_v32 = vmul.f32 %v2476_v5, %v6632_v24  ;;  %v6633_v11 = vld [vmem:[#allocation48_spill] sm:$0xff]  ;;  %v2549_v2 = vmul.f32 %v2476_v5, %v6638_v53  ;;  %v6639_v33 = vld [vmem:[#allocation17_spill] sm:$0xff] }
 0x41b   :  { %6614 = vst [vmem:[#allocation117_spill] sm:$0xff] %v5551_v49  ;;  %6616 = vst [vmem:[#allocation150_spill] sm:$0xff] %v5554_v40  ;;  %v2509_v60 = vmul.f32 %v2476_v5, %v6633_v11  ;;  %v6634_v27 = vld [vmem:[#allocation64_spill] sm:$0xff]  ;;  %v2557_v55 = vmul.f32 %v2476_v5, %v6639_v33  ;;  %v6640_v23 = vld [vmem:[#allocation33_spill] sm:$0xff] }
 0x41c   :  { %6618 = vst [vmem:[#allocation142_spill] sm:$0xff] %v5557_v39  ;;  %6620 = vst [vmem:[#allocation119_spill] sm:$0xff] %v5560_v31  ;;  %v2517_v14 = vmul.f32 %v2476_v5, %v6634_v27  ;;  %v6636_v56 = vld [vmem:[#allocation92_spill] sm:$0xff]  ;;  %v2565_v13 = vmul.f32 %v2476_v5, %v6640_v23  ;;  %v6641_v37 = vld [vmem:[#allocation49_spill] sm:$0xff] }
 0x41d   :  { %6622 = vst [vmem:[#allocation146_spill] sm:$0xff] %v5563_v9  ;;  %6624 = vst [vmem:[#allocation143_spill] sm:$0xff] %v5566_v47  ;;  %v2533_v10 = vmul.f32 %v2476_v5, %v6636_v56  ;;  %v6637_v34 = vld [vmem:[#allocation112_spill] sm:$0xff]  ;;  %v2573_v1 = vmul.f32 %v2476_v5, %v6641_v37  ;;  %v6643_v11 = vld [vmem:[#allocation81_spill] sm:$0xff] }
 0x41e   :  { %6626 = vst [vmem:[#allocation151_spill] sm:$0xff] %v5569_v3  ;;  %6628 = vst [vmem:[#allocation147_spill] sm:$0xff] %v5572_v41  ;;  %v2541_v16 = vmul.f32 %v2476_v5, %v6637_v34  ;;  %v2644_v41 = vpop.permute.xlu0 %2643  ;;  %v2589_v3 = vmul.f32 %v2476_v5, %v6643_v11  ;;  %v6644_v27 = vld [vmem:[#allocation96_spill] sm:$0xff]  ;;  %v6645_v19 = vld [vmem:[#allocation118_spill] sm:$0xff]  ;;  %v5593_v34 = vpop.permute.xlu1 %2480 }
 0x41f   :  { %6630 = vst [vmem:[#allocation120_spill] sm:$0xff] %v5575_v59  ;;  %v6642_v59 = vld [vmem:[#allocation65_spill] sm:$0xff]  ;;  %v2597_v47 = vmul.f32 %v2476_v5, %v6644_v27  ;;  %v2605_v9 = vmul.f32 %v2476_v5, %v6645_v19  ;;  %v6646_v56 = vld [vmem:[#allocation140_spill] sm:$0xff]  ;;  %6647 = vst [vmem:[#allocation152_spill] sm:$0xff] %v5593_v34  ;;  %v2661_v53 = vadd.f32 %v2644_v41, %v2493_v30 }
 0x420   :  { %v2581_v24 = vmul.f32 %v2476_v5, %v6642_v59  ;;  %v2613_v31 = vmul.f32 %v2476_v5, %v6646_v56  ;;  %v2669_v39 = vadd.f32 %v2644_v41, %v2501_v32  ;;  %v2677_v33 = vadd.f32 %v2644_v41, %v2509_v60 }
 0x421   :  { %v2685_v40 = vadd.f32 %v2644_v41, %v2517_v14  ;;  %v2693_v23 = vadd.f32 %v2644_v41, %v2525_v45  ;;  %v2701_v49 = vadd.f32 %v2644_v41, %v2533_v10  ;;  %v2709_v37 = vadd.f32 %v2644_v41, %v2541_v16 }
 0x422   :  { %v2717_v6 = vadd.f32 %v2644_v41, %v2549_v2  ;;  %v2725_v59 = vadd.f32 %v2644_v41, %v2557_v55  ;;  %v2733_v51 = vadd.f32 %v2644_v41, %v2565_v13  ;;  %v2741_v4 = vadd.f32 %v2644_v41, %v2573_v1  ;;  %v2486_v45 = vpop.permute.xlu1 %2485  ;;  %v6653_v13 = vld [vmem:[#allocation91_spill] sm:$0xff] }
 0x423   :  { %v2749_v11 = vadd.f32 %v2644_v41, %v2581_v24  ;;  %v2757_v52 = vadd.f32 %v2644_v41, %v2589_v3  ;;  %v2765_v27 = vadd.f32 %v2644_v41, %v2597_v47  ;;  %v2773_v48 = vadd.f32 %v2644_v41, %v2605_v9  ;;  %v6651_v9 = vld [vmem:[#allocation62_spill] sm:$0xff]  ;;  %v6652_v3 = vld [vmem:[#allocation76_spill] sm:$0xff]  ;;  %v6654_v24 = vld [vmem:[#allocation111_spill] sm:$0xff] }
 0x424   :  { %v2781_v19 = vadd.f32 %v2644_v41, %v2613_v31  ;;  %v2789_v12 = vmax.f32 %v2661_v53, 0.0  ;;  %v2797_v5 = vmax.f32 %v2669_v39, 0.0  ;;  %v2805_v56 = vmax.f32 %v2677_v33, 0.0  ;;  %v6650_v39 = vld [vmem:[#allocation46_spill] sm:$0xff]  ;;  %v6655_v53 = vld [vmem:[#allocation133_spill] sm:$0xff] }
 0x425   :  { %v2813_v34 = vmax.f32 %v2685_v40, 0.0  ;;  %v2821_v30 = vmax.f32 %v2693_v23, 0.0  ;;  %v2829_v32 = vmax.f32 %v2701_v49, 0.0  ;;  %v2837_v60 = vmax.f32 %v2709_v37, 0.0  ;;  %v6656_v23 = vld [vmem:[#allocation15_spill] sm:$0xff] }
 0x426   :  { %v2845_v14 = vmax.f32 %v2717_v6, 0.0  ;;  %v2853_v10 = vmax.f32 %v2725_v59, 0.0  ;;  %v2861_v16 = vmax.f32 %v2733_v51, 0.0  ;;  %v2869_v2 = vmax.f32 %v2741_v4, 0.0  ;;  %2917 = vst.msk [vmem:[%s6079_s4 + $0x28] sm:$0xff] %vm1207_vm1, %v2789_v12  ;;  %2925 = vst.msk [vmem:[%s6079_s4 + $0x68] sm:$0xff] %vm1207_vm1, %v2797_v5 }
 0x427   :  { %v2877_v55 = vmax.f32 %v2749_v11, 0.0  ;;  %2933 = vst.msk [vmem:[%s6079_s4 + $0xa8] sm:$0xff] %vm1207_vm1, %v2805_v56  ;;  %2941 = vst.msk [vmem:[%s6079_s4 + $0xe8] sm:$0xff] %vm1207_vm1, %v2813_v34  ;;  %v2885_v4 = vmax.f32 %v2757_v52, 0.0  ;;  %v2893_v51 = vmax.f32 %v2765_v27, 0.0  ;;  %v2901_v6 = vmax.f32 %v2773_v48, 0.0 }
 0x428   :  { %v2909_v49 = vmax.f32 %v2781_v19, 0.0  ;;  %2949 = vst.msk [vmem:[%s6079_s4 + $0x128] sm:$0xff] %vm1207_vm1, %v2821_v30  ;;  %2957 = vst.msk [vmem:[%s6079_s4 + $0x168] sm:$0xff] %vm1207_vm1, %v2829_v32  ;;  %v6648_v12 = vld [vmem:[#allocation14_spill] sm:$0xff]  ;;  %v2511_v31 = vmul.f32 %v6650_v39, %v2486_v45  ;;  %v2519_v47 = vmul.f32 %v6651_v9, %v2486_v45  ;;  %v2527_v41 = vmul.f32 %v6652_v3, %v2486_v45  ;;  %v6657_v59 = vld [vmem:[#allocation31_spill] sm:$0xff]  ;;  %v2654_v30 = vpop.permute.xlu0 %2653 }
 0x429   :  { %2965 = vst.msk [vmem:[%s6079_s4 + $0x1a8] sm:$0xff] %vm1207_vm1, %v2837_v60  ;;  %2973 = vst.msk [vmem:[%s6079_s4 + $0x1e8] sm:$0xff] %vm1207_vm1, %v2845_v14  ;;  %v2495_v48 = vmul.f32 %v6648_v12, %v2486_v45  ;;  %v6649_v52 = vld [vmem:[#allocation30_spill] sm:$0xff]  ;;  %v2535_v1 = vmul.f32 %v6653_v13, %v2486_v45  ;;  %v2543_v34 = vmul.f32 %v6654_v24, %v2486_v45  ;;  %v6658_v27 = vld [vmem:[#allocation47_spill] sm:$0xff] }
 0x42a   :  { %2981 = vst.msk [vmem:[%s6079_s4 + $0x228] sm:$0xff] %vm1207_vm1, %v2853_v10  ;;  %2989 = vst.msk [vmem:[%s6079_s4 + $0x268] sm:$0xff] %vm1207_vm1, %v2861_v16  ;;  %v2503_v40 = vmul.f32 %v6649_v52, %v2486_v45  ;;  %v2551_v33 = vmul.f32 %v6655_v53, %v2486_v45  ;;  %v2559_v37 = vmul.f32 %v6656_v23, %v2486_v45  ;;  %v6659_v5 = vld [vmem:[#allocation63_spill] sm:$0xff]  ;;  %v6660_v32 = vld [vmem:[#allocation80_spill] sm:$0xff] }
 0x42b   :  { %2997 = vst.msk [vmem:[%s6079_s4 + $0x2a8] sm:$0xff] %vm1207_vm1, %v2869_v2  ;;  %3005 = vst.msk [vmem:[%s6079_s4 + $0x2e8] sm:$0xff] %vm1207_vm1, %v2877_v55  ;;  %v2567_v11 = vmul.f32 %v6657_v59, %v2486_v45  ;;  %v2575_v19 = vmul.f32 %v6658_v27, %v2486_v45  ;;  %v2583_v56 = vmul.f32 %v6659_v5, %v2486_v45  ;;  %v6661_v14 = vld [vmem:[#allocation95_spill] sm:$0xff]  ;;  %v6663_v55 = vld [vmem:[#allocation137_spill] sm:$0xff] }
 0x42c   :  { %3013 = vst.msk [vmem:[%s6079_s4 + $0x328] sm:$0xff] %vm1207_vm1, %v2885_v4  ;;  %3021 = vst.msk [vmem:[%s6079_s4 + $0x368] sm:$0xff] %vm1207_vm1, %v2893_v51  ;;  %v2591_v60 = vmul.f32 %v6660_v32, %v2486_v45  ;;  %v2599_v10 = vmul.f32 %v6661_v14, %v2486_v45  ;;  %v6662_v16 = vld [vmem:[#allocation115_spill] sm:$0xff]  ;;  %v2615_v4 = vmul.f32 %v6663_v55, %v2486_v45 }
 0x42d   :  { %3029 = vst.msk [vmem:[%s6079_s4 + $0x3a8] sm:$0xff] %vm1207_vm1, %v2901_v6  ;;  %3037 = vst.msk [vmem:[%s6079_s4 + $0x3e8] sm:$0xff] %vm1207_vm1, %v2909_v49  ;;  %v2607_v2 = vmul.f32 %v6662_v16, %v2486_v45  ;;  %v2663_v51 = vadd.f32 %v2654_v30, %v2495_v48  ;;  %v2671_v6 = vadd.f32 %v2654_v30, %v2503_v40 }
 0x42e   :  { %v2679_v49 = vadd.f32 %v2654_v30, %v2511_v31  ;;  %v2687_v12 = vadd.f32 %v2654_v30, %v2519_v47  ;;  %v2695_v52 = vadd.f32 %v2654_v30, %v2527_v41  ;;  %v2703_v39 = vadd.f32 %v2654_v30, %v2535_v1  ;;  %v2619_v41 = vpop.permute.xlu1 %2618 }
 0x42f   :  { %v2711_v9 = vadd.f32 %v2654_v30, %v2543_v34  ;;  %v2719_v3 = vadd.f32 %v2654_v30, %v2551_v33  ;;  %v2727_v13 = vadd.f32 %v2654_v30, %v2559_v37  ;;  %v2735_v24 = vadd.f32 %v2654_v30, %v2567_v11 }
 0x430   :  { %v2743_v53 = vadd.f32 %v2654_v30, %v2575_v19  ;;  %v2751_v23 = vadd.f32 %v2654_v30, %v2583_v56  ;;  %v2759_v59 = vadd.f32 %v2654_v30, %v2591_v60  ;;  %v2767_v27 = vadd.f32 %v2654_v30, %v2599_v10 }
 0x431   :  { %v2775_v5 = vadd.f32 %v2654_v30, %v2607_v2  ;;  %v2783_v32 = vadd.f32 %v2654_v30, %v2615_v4  ;;  %v2791_v14 = vmax.f32 %v2663_v51, 0.0  ;;  %v2799_v16 = vmax.f32 %v2671_v6, 0.0 }
 0x432   :  { %v2807_v28 = vmax.f32 %v2679_v49, 0.0  ;;  %v2815_v45 = vmax.f32 %v2687_v12, 0.0  ;;  %v2823_v48 = vmax.f32 %v2695_v52, 0.0  ;;  %v2831_v40 = vmax.f32 %v2703_v39, 0.0 }
 0x433   :  { %v2839_v31 = vmax.f32 %v2711_v9, 0.0  ;;  %v2847_v47 = vmax.f32 %v2719_v3, 0.0  ;;  %v2855_v1 = vmax.f32 %v2727_v13, 0.0  ;;  %v2863_v34 = vmax.f32 %v2735_v24, 0.0  ;;  %2919 = vst.msk [vmem:[%s6079_s4 + $0x38] sm:$0xff] %vm1207_vm1, %v2791_v14  ;;  %2927 = vst.msk [vmem:[%s6079_s4 + $0x78] sm:$0xff] %vm1207_vm1, %v2799_v16  ;;  %v2629_v13 = vpop.permute.xlu1 %2628 }
 0x434   :  { %v2871_v33 = vmax.f32 %v2743_v53, 0.0  ;;  %v2879_v37 = vmax.f32 %v2751_v23, 0.0  ;;  %2935 = vst.msk [vmem:[%s6079_s4 + $0xb8] sm:$0xff] %vm1207_vm1, %v2807_v28  ;;  %2943 = vst.msk [vmem:[%s6079_s4 + $0xf8] sm:$0xff] %vm1207_vm1, %v2815_v45  ;;  %v2887_v11 = vmax.f32 %v2759_v59, 0.0  ;;  %v2895_v19 = vmax.f32 %v2767_v27, 0.0 }
 0x435   :  { %v2903_v56 = vmax.f32 %v2775_v5, 0.0  ;;  %v2911_v30 = vmax.f32 %v2783_v32, 0.0  ;;  %2951 = vst.msk [vmem:[%s6079_s4 + $0x138] sm:$0xff] %vm1207_vm1, %v2823_v48  ;;  %2959 = vst.msk [vmem:[%s6079_s4 + $0x178] sm:$0xff] %vm1207_vm1, %v2831_v40  ;;  %v2656_v28 = vadd.f32 %v2619_v41, %v5274_v18  ;;  %v2664_v60 = vadd.f32 %v2619_v41, %v5277_v35  ;;  %v6664_v16 = vld [vmem:[#allocation97_spill] sm:$0xff]  ;;  %v6665_v48 = vld [vmem:[#allocation102_spill] sm:$0xff] }
 0x436   :  { %2967 = vst.msk [vmem:[%s6079_s4 + $0x1b8] sm:$0xff] %vm1207_vm1, %v2839_v31  ;;  %2975 = vst.msk [vmem:[%s6079_s4 + $0x1f8] sm:$0xff] %vm1207_vm1, %v2847_v47  ;;  %v2672_v10 = vadd.f32 %v2619_v41, %v5280_v54  ;;  %v2680_v2 = vadd.f32 %v2619_v41, %v5283_v44  ;;  %v2688_v18 = vadd.f32 %v2619_v41, %v5286_v25  ;;  %v6666_v31 = vld [vmem:[#allocation129_spill] sm:$0xff] }
 0x437   :  { %2983 = vst.msk [vmem:[%s6079_s4 + $0x238] sm:$0xff] %vm1207_vm1, %v2855_v1  ;;  %2991 = vst.msk [vmem:[%s6079_s4 + $0x278] sm:$0xff] %vm1207_vm1, %v2863_v34  ;;  %v2696_v35 = vadd.f32 %v2619_v41, %v5289_v50  ;;  %v2704_v54 = vadd.f32 %v2619_v41, %v5292_v17  ;;  %v2712_v44 = vadd.f32 %v2619_v41, %v5295_v20  ;;  %v2784_v52 = vmax.f32 %v2656_v28, 0.0  ;;  %v6668_v34 = vld [vmem:[#allocation101_spill] sm:$0xff] }
 0x438   :  { %2999 = vst.msk [vmem:[%s6079_s4 + $0x2b8] sm:$0xff] %vm1207_vm1, %v2871_v33  ;;  %3007 = vst.msk [vmem:[%s6079_s4 + $0x2f8] sm:$0xff] %vm1207_vm1, %v2879_v37  ;;  %v2720_v55 = vadd.f32 %v2619_v41, %v5298_v46  ;;  %v2728_v4 = vadd.f32 %v2619_v41, %v5301_v42  ;;  %v2736_v51 = vadd.f32 %v2619_v41, %v5304_v8  ;;  %v2792_v17 = vmax.f32 %v2664_v60, 0.0  ;;  %v6669_v33 = vld [vmem:[#allocation107_spill] sm:$0xff] }
 0x439   :  { %3015 = vst.msk [vmem:[%s6079_s4 + $0x338] sm:$0xff] %vm1207_vm1, %v2887_v11  ;;  %3023 = vst.msk [vmem:[%s6079_s4 + $0x378] sm:$0xff] %vm1207_vm1, %v2895_v19  ;;  %v2744_v6 = vadd.f32 %v2619_v41, %v5307_v7  ;;  %v2752_v49 = vadd.f32 %v2619_v41, %v5310_v36  ;;  %v2760_v12 = vadd.f32 %v2619_v41, %v5313_v21  ;;  %v2800_v39 = vmax.f32 %v2672_v10, 0.0 }
 0x43a   :  { %3031 = vst.msk [vmem:[%s6079_s4 + $0x3b8] sm:$0xff] %vm1207_vm1, %v2903_v56  ;;  %3039 = vst.msk [vmem:[%s6079_s4 + $0x3f8] sm:$0xff] %vm1207_vm1, %v2911_v30  ;;  %v2768_v25 = vadd.f32 %v2619_v41, %v5316_v61  ;;  %v2776_v50 = vadd.f32 %v2619_v41, %v5319_v15  ;;  %v2808_v20 = vmax.f32 %v2680_v2, 0.0  ;;  %v2816_v9 = vmax.f32 %v2688_v18, 0.0  ;;  %v6667_v41 = vld [vmem:[#allocation130_spill] sm:$0xff]  ;;  %v2639_v30 = vpop.permute.xlu1 %2638 }
 0x43b   :  { %v2824_v46 = vmax.f32 %v2696_v35, 0.0  ;;  %v2832_v3 = vmax.f32 %v2704_v54, 0.0  ;;  %v2840_v42 = vmax.f32 %v2712_v44, 0.0  ;;  %v2848_v8 = vmax.f32 %v2720_v55, 0.0  ;;  %2912 = vst.msk [vmem:[%s6079_s4] sm:$0xff] %vm1207_vm1, %v2784_v52  ;;  %2920 = vst.msk [vmem:[%s6079_s4 + $0x40] sm:$0xff] %vm1207_vm1, %v2792_v17 }
 0x43c   :  { %v2856_v24 = vmax.f32 %v2728_v4, 0.0  ;;  %v2864_v7 = vmax.f32 %v2736_v51, 0.0  ;;  %v2872_v53 = vmax.f32 %v2744_v6, 0.0  ;;  %2928 = vst.msk [vmem:[%s6079_s4 + $0x80] sm:$0xff] %vm1207_vm1, %v2800_v39  ;;  %2936 = vst.msk [vmem:[%s6079_s4 + $0xc0] sm:$0xff] %vm1207_vm1, %v2808_v20  ;;  %v2880_v36 = vmax.f32 %v2752_v49, 0.0 }
 0x43d   :  { %v2888_v21 = vmax.f32 %v2760_v12, 0.0  ;;  %v2896_v61 = vmax.f32 %v2768_v25, 0.0  ;;  %v2904_v15 = vmax.f32 %v2776_v50, 0.0  ;;  %2944 = vst.msk [vmem:[%s6079_s4 + $0x100] sm:$0xff] %vm1207_vm1, %v2816_v9  ;;  %2952 = vst.msk [vmem:[%s6079_s4 + $0x140] sm:$0xff] %vm1207_vm1, %v2824_v46  ;;  %v2658_v23 = vadd.f32 %v2629_v13, %v5386_v62  ;;  %v6670_v55 = vld [vmem:[#allocation138_spill] sm:$0xff] }
 0x43e   :  { %2960 = vst.msk [vmem:[%s6079_s4 + $0x180] sm:$0xff] %vm1207_vm1, %v2832_v3  ;;  %2968 = vst.msk [vmem:[%s6079_s4 + $0x1c0] sm:$0xff] %vm1207_vm1, %v2840_v42  ;;  %v2666_v59 = vadd.f32 %v2629_v13, %v5389_v0  ;;  %v2674_v27 = vadd.f32 %v2629_v13, %v5392_v38  ;;  %v2682_v5 = vadd.f32 %v2629_v13, %v5395_v58  ;;  %v6671_v51 = vld [vmem:[#allocation139_spill] sm:$0xff]  ;;  %v6672_v49 = vld [vmem:[#allocation149_spill] sm:$0xff] }
 0x43f   :  { %2976 = vst.msk [vmem:[%s6079_s4 + $0x200] sm:$0xff] %vm1207_vm1, %v2848_v8  ;;  %2984 = vst.msk [vmem:[%s6079_s4 + $0x240] sm:$0xff] %vm1207_vm1, %v2856_v24  ;;  %v2690_v62 = vadd.f32 %v2629_v13, %v5414_v63  ;;  %v2698_v0 = vadd.f32 %v2629_v13, %v5417_v43  ;;  %v2706_v38 = vadd.f32 %v2629_v13, %v5420_v57  ;;  %v2786_v37 = vmax.f32 %v2658_v23, 0.0  ;;  %v6673_v25 = vld [vmem:[#allocation116_spill] sm:$0xff]  ;;  %v6674_v52 = vld [vmem:[#allocation105_spill] sm:$0xff] }
 0x440   :  { %2992 = vst.msk [vmem:[%s6079_s4 + $0x280] sm:$0xff] %vm1207_vm1, %v2864_v7  ;;  %3000 = vst.msk [vmem:[%s6079_s4 + $0x2c0] sm:$0xff] %vm1207_vm1, %v2872_v53  ;;  %v2714_v58 = vadd.f32 %v2629_v13, %v5423_v26  ;;  %v2722_v32 = vadd.f32 %v2629_v13, %v5426_v22  ;;  %v2730_v14 = vadd.f32 %v2629_v13, %v5429_v29  ;;  %v2794_v57 = vmax.f32 %v2666_v59, 0.0  ;;  %v6675_v39 = vld [vmem:[#allocation141_spill] sm:$0xff]  ;;  %v6679_v24 = vld [vmem:[#allocation142_spill] sm:$0xff] }
 0x441   :  { %3008 = vst.msk [vmem:[%s6079_s4 + $0x300] sm:$0xff] %vm1207_vm1, %v2880_v36  ;;  %3016 = vst.msk [vmem:[%s6079_s4 + $0x340] sm:$0xff] %vm1207_vm1, %v2888_v21  ;;  %v2738_v45 = vadd.f32 %v2629_v13, %v6664_v16  ;;  %v2746_v40 = vadd.f32 %v2629_v13, %v6665_v48  ;;  %v2754_v47 = vadd.f32 %v2629_v13, %v6666_v31  ;;  %v2802_v11 = vmax.f32 %v2674_v27, 0.0  ;;  %v6676_v9 = vld [vmem:[#allocation145_spill] sm:$0xff]  ;;  %v6680_v53 = vld [vmem:[#allocation119_spill] sm:$0xff] }
 0x442   :  { %3024 = vst.msk [vmem:[%s6079_s4 + $0x380] sm:$0xff] %vm1207_vm1, %v2896_v61  ;;  %3032 = vst.msk [vmem:[%s6079_s4 + $0x3c0] sm:$0xff] %vm1207_vm1, %v2904_v15  ;;  %v2762_v1 = vadd.f32 %v2629_v13, %v6667_v41  ;;  %v2770_v63 = vadd.f32 %v2629_v13, %v6668_v34  ;;  %v2778_v43 = vadd.f32 %v2629_v13, %v6669_v33  ;;  %v2810_v26 = vmax.f32 %v2682_v5, 0.0  ;;  %v6677_v3 = vld [vmem:[#allocation117_spill] sm:$0xff]  ;;  %v6678_v13 = vld [vmem:[#allocation150_spill] sm:$0xff] }
 0x443   :  { %v2818_v19 = vmax.f32 %v2690_v62, 0.0  ;;  %v2826_v22 = vmax.f32 %v2698_v0, 0.0  ;;  %v2834_v56 = vmax.f32 %v2706_v38, 0.0  ;;  %v2842_v29 = vmax.f32 %v2714_v58, 0.0  ;;  %2914 = vst.msk [vmem:[%s6079_s4 + $0x10] sm:$0xff] %vm1207_vm1, %v2786_v37  ;;  %2922 = vst.msk [vmem:[%s6079_s4 + $0x50] sm:$0xff] %vm1207_vm1, %v2794_v57 }
 0x444   :  { %v2850_v28 = vmax.f32 %v2722_v32, 0.0  ;;  %v2858_v60 = vmax.f32 %v2730_v14, 0.0  ;;  %v2866_v10 = vmax.f32 %v2738_v45, 0.0  ;;  %v2874_v2 = vmax.f32 %v2746_v40, 0.0  ;;  %2930 = vst.msk [vmem:[%s6079_s4 + $0x90] sm:$0xff] %vm1207_vm1, %v2802_v11  ;;  %2938 = vst.msk [vmem:[%s6079_s4 + $0xd0] sm:$0xff] %vm1207_vm1, %v2810_v26 }
 0x445   :  { %v2882_v18 = vmax.f32 %v2754_v47, 0.0  ;;  %v2890_v35 = vmax.f32 %v2762_v1, 0.0  ;;  %v2898_v54 = vmax.f32 %v2770_v63, 0.0  ;;  %v2906_v44 = vmax.f32 %v2778_v43, 0.0  ;;  %2946 = vst.msk [vmem:[%s6079_s4 + $0x110] sm:$0xff] %vm1207_vm1, %v2818_v19  ;;  %2954 = vst.msk [vmem:[%s6079_s4 + $0x150] sm:$0xff] %vm1207_vm1, %v2826_v22 }
 0x446   :  { %2962 = vst.msk [vmem:[%s6079_s4 + $0x190] sm:$0xff] %vm1207_vm1, %v2834_v56  ;;  %2970 = vst.msk [vmem:[%s6079_s4 + $0x1d0] sm:$0xff] %vm1207_vm1, %v2842_v29  ;;  %v2660_v4 = vadd.f32 %v2639_v30, %v6670_v55  ;;  %v2668_v6 = vadd.f32 %v2639_v30, %v6671_v51  ;;  %v2676_v12 = vadd.f32 %v2639_v30, %v6672_v49  ;;  %v6681_v21 = vld [vmem:[#allocation146_spill] sm:$0xff]  ;;  %v6682_v15 = vld [vmem:[#allocation143_spill] sm:$0xff] }
 0x447   :  { %2978 = vst.msk [vmem:[%s6079_s4 + $0x210] sm:$0xff] %vm1207_vm1, %v2850_v28  ;;  %2986 = vst.msk [vmem:[%s6079_s4 + $0x250] sm:$0xff] %vm1207_vm1, %v2858_v60  ;;  %v2684_v50 = vadd.f32 %v2639_v30, %v6673_v25  ;;  %v2692_v17 = vadd.f32 %v2639_v30, %v6674_v52  ;;  %v2700_v20 = vadd.f32 %v2639_v30, %v6675_v39  ;;  %v6683_v59 = vld [vmem:[#allocation151_spill] sm:$0xff]  ;;  %v6685_v0 = vld [vmem:[#allocation120_spill] sm:$0xff] }
 0x448   :  { %2994 = vst.msk [vmem:[%s6079_s4 + $0x290] sm:$0xff] %vm1207_vm1, %v2866_v10  ;;  %3002 = vst.msk [vmem:[%s6079_s4 + $0x2d0] sm:$0xff] %vm1207_vm1, %v2874_v2  ;;  %v2708_v46 = vadd.f32 %v2639_v30, %v6676_v9  ;;  %v2716_v42 = vadd.f32 %v2639_v30, %v6677_v3  ;;  %v2724_v8 = vadd.f32 %v2639_v30, %v6678_v13  ;;  %v6684_v5 = vld [vmem:[#allocation147_spill] sm:$0xff]  ;;  %v2788_v58 = vmax.f32 %v2660_v4, 0.0  ;;  %v6686_v57 = vld [vmem:[#allocation152_spill] sm:$0xff]  ;;  %v2649_v4 = vpop.permute.xlu1 %2648 }
 0x449   :  { %3010 = vst.msk [vmem:[%s6079_s4 + $0x310] sm:$0xff] %vm1207_vm1, %v2882_v18  ;;  %3018 = vst.msk [vmem:[%s6079_s4 + $0x350] sm:$0xff] %vm1207_vm1, %v2890_v35  ;;  %v2732_v7 = vadd.f32 %v2639_v30, %v6679_v24  ;;  %v2740_v36 = vadd.f32 %v2639_v30, %v6680_v53  ;;  %v2748_v61 = vadd.f32 %v2639_v30, %v6681_v21  ;;  %v2796_v32 = vmax.f32 %v2668_v6, 0.0  ;;  %v6687_v11 = vld [vmem:[#allocation10_spill] sm:$0xff]  ;;  %v6692_v2 = vld [vmem:[#allocation89_spill] sm:$0xff] }
 0x44a   :  { %3026 = vst.msk [vmem:[%s6079_s4 + $0x390] sm:$0xff] %vm1207_vm1, %v2898_v54  ;;  %3034 = vst.msk [vmem:[%s6079_s4 + $0x3d0] sm:$0xff] %vm1207_vm1, %v2906_v44  ;;  %v2756_v23 = vadd.f32 %v2639_v30, %v6682_v15  ;;  %v2764_v27 = vadd.f32 %v2639_v30, %v6683_v59  ;;  %v2772_v62 = vadd.f32 %v2639_v30, %v6684_v5  ;;  %v2804_v14 = vmax.f32 %v2676_v12, 0.0  ;;  %v6688_v19 = vld [vmem:[#allocation26_spill] sm:$0xff]  ;;  %v6693_v35 = vld [vmem:[#allocation109_spill] sm:$0xff] }
 0x44b   :  { %v2780_v38 = vadd.f32 %v2639_v30, %v6685_v0  ;;  %v2812_v16 = vmax.f32 %v2684_v50, 0.0  ;;  %v2820_v45 = vmax.f32 %v2692_v17, 0.0  ;;  %v2828_v48 = vmax.f32 %v2700_v20, 0.0  ;;  %2916 = vst.msk [vmem:[%s6079_s4 + $0x20] sm:$0xff] %vm1207_vm1, %v2788_v58  ;;  %2924 = vst.msk [vmem:[%s6079_s4 + $0x60] sm:$0xff] %vm1207_vm1, %v2796_v32  ;;  %v6689_v56 = vld [vmem:[#allocation42_spill] sm:$0xff] }
 0x44c   :  { %v2836_v40 = vmax.f32 %v2708_v46, 0.0  ;;  %v2844_v31 = vmax.f32 %v2716_v42, 0.0  ;;  %v2852_v47 = vmax.f32 %v2724_v8, 0.0  ;;  %v2860_v41 = vmax.f32 %v2732_v7, 0.0  ;;  %2932 = vst.msk [vmem:[%s6079_s4 + $0xa0] sm:$0xff] %vm1207_vm1, %v2804_v14  ;;  %v6690_v30 = vld [vmem:[#allocation58_spill] sm:$0xff] }
 0x44d   :  { %v2868_v1 = vmax.f32 %v2740_v36, 0.0  ;;  %v2876_v34 = vmax.f32 %v2748_v61, 0.0  ;;  %2940 = vst.msk [vmem:[%s6079_s4 + $0xe0] sm:$0xff] %vm1207_vm1, %v2812_v16  ;;  %v2884_v63 = vmax.f32 %v2756_v23, 0.0  ;;  %v2892_v33 = vmax.f32 %v2764_v27, 0.0  ;;  %2948 = vst.msk [vmem:[%s6079_s4 + $0x120] sm:$0xff] %vm1207_vm1, %v2820_v45 }
 0x44e   :  { %v2900_v43 = vmax.f32 %v2772_v62, 0.0  ;;  %v2908_v37 = vmax.f32 %v2780_v38, 0.0  ;;  %2956 = vst.msk [vmem:[%s6079_s4 + $0x160] sm:$0xff] %vm1207_vm1, %v2828_v48  ;;  %2964 = vst.msk [vmem:[%s6079_s4 + $0x1a0] sm:$0xff] %vm1207_vm1, %v2836_v40  ;;  %v2494_v26 = vmul.f32 %v6687_v11, %v6686_v57  ;;  %v2502_v22 = vmul.f32 %v6688_v19, %v6686_v57  ;;  %v6691_v60 = vld [vmem:[#allocation74_spill] sm:$0xff]  ;;  %v6694_v44 = vld [vmem:[#allocation131_spill] sm:$0xff] }
 0x44f   :  { %2972 = vst.msk [vmem:[%s6079_s4 + $0x1e0] sm:$0xff] %vm1207_vm1, %v2844_v31  ;;  %2980 = vst.msk [vmem:[%s6079_s4 + $0x220] sm:$0xff] %vm1207_vm1, %v2852_v47  ;;  %v2510_v29 = vmul.f32 %v6689_v56, %v6686_v57  ;;  %v2518_v28 = vmul.f32 %v6690_v30, %v6686_v57  ;;  %v2526_v10 = vmul.f32 %v6691_v60, %v6686_v57  ;;  %v6695_v51 = vld [vmem:[#allocation11_spill] sm:$0xff]  ;;  %v6699_v39 = vld [vmem:[#allocation78_spill] sm:$0xff] }
 0x450   :  { %2988 = vst.msk [vmem:[%s6079_s4 + $0x260] sm:$0xff] %vm1207_vm1, %v2860_v41  ;;  %2996 = vst.msk [vmem:[%s6079_s4 + $0x2a0] sm:$0xff] %vm1207_vm1, %v2868_v1  ;;  %v2534_v18 = vmul.f32 %v6692_v2, %v6686_v57  ;;  %v2542_v54 = vmul.f32 %v6693_v35, %v6686_v57  ;;  %v2550_v55 = vmul.f32 %v6694_v44, %v6686_v57  ;;  %v6696_v49 = vld [vmem:[#allocation27_spill] sm:$0xff]  ;;  %v6700_v9 = vld [vmem:[#allocation93_spill] sm:$0xff] }
 0x451   :  { %3004 = vst.msk [vmem:[%s6079_s4 + $0x2e0] sm:$0xff] %vm1207_vm1, %v2876_v34  ;;  %3012 = vst.msk [vmem:[%s6079_s4 + $0x320] sm:$0xff] %vm1207_vm1, %v2884_v63  ;;  %v2558_v6 = vmul.f32 %v6695_v51, %v6686_v57  ;;  %v2566_v12 = vmul.f32 %v6696_v49, %v6686_v57  ;;  %v6697_v25 = vld [vmem:[#allocation43_spill] sm:$0xff]  ;;  %v2590_v20 = vmul.f32 %v6699_v39, %v6686_v57  ;;  %v6701_v3 = vld [vmem:[#allocation113_spill] sm:$0xff] }
 0x452   :  { %3020 = vst.msk [vmem:[%s6079_s4 + $0x360] sm:$0xff] %vm1207_vm1, %v2892_v33  ;;  %3028 = vst.msk [vmem:[%s6079_s4 + $0x3a0] sm:$0xff] %vm1207_vm1, %v2900_v43  ;;  %v2574_v50 = vmul.f32 %v6697_v25, %v6686_v57  ;;  %v6698_v52 = vld [vmem:[#allocation59_spill] sm:$0xff]  ;;  %v2598_v46 = vmul.f32 %v6700_v9, %v6686_v57  ;;  %v2606_v42 = vmul.f32 %v6701_v3, %v6686_v57  ;;  %v6702_v13 = vld [vmem:[#allocation134_spill] sm:$0xff] }
 0x453   :  { %3036 = vst.msk [vmem:[%s6079_s4 + $0x3e0] sm:$0xff] %vm1207_vm1, %v2908_v37  ;;  %v2582_v17 = vmul.f32 %v6698_v52, %v6686_v57  ;;  %v2614_v8 = vmul.f32 %v6702_v13, %v6686_v57  ;;  %v2662_v24 = vadd.f32 %v2649_v4, %v2494_v26  ;;  %v2670_v7 = vadd.f32 %v2649_v4, %v2502_v22 }
 0x454   :  { %v2678_v53 = vadd.f32 %v2649_v4, %v2510_v29  ;;  %v2686_v36 = vadd.f32 %v2649_v4, %v2518_v28  ;;  %v2694_v21 = vadd.f32 %v2649_v4, %v2526_v10  ;;  %v2702_v61 = vadd.f32 %v2649_v4, %v2534_v18 }
 0x455   :  { %v2710_v15 = vadd.f32 %v2649_v4, %v2542_v54  ;;  %v2718_v23 = vadd.f32 %v2649_v4, %v2550_v55  ;;  %v2726_v59 = vadd.f32 %v2649_v4, %v2558_v6  ;;  %v2734_v27 = vadd.f32 %v2649_v4, %v2566_v12 }
 0x456   :  { %v2742_v5 = vadd.f32 %v2649_v4, %v2574_v50  ;;  %v2750_v62 = vadd.f32 %v2649_v4, %v2582_v17  ;;  %v2758_v0 = vadd.f32 %v2649_v4, %v2590_v20  ;;  %v2766_v38 = vadd.f32 %v2649_v4, %v2598_v46 }
 0x457   :  { %v2774_v58 = vadd.f32 %v2649_v4, %v2606_v42  ;;  %v2782_v32 = vadd.f32 %v2649_v4, %v2614_v8  ;;  %v2790_v14 = vmax.f32 %v2662_v24, 0.0  ;;  %v2798_v16 = vmax.f32 %v2670_v7, 0.0 }
 0x458   :  { %v2806_v45 = vmax.f32 %v2678_v53, 0.0  ;;  %v2814_v48 = vmax.f32 %v2686_v36, 0.0  ;;  %v2822_v40 = vmax.f32 %v2694_v21, 0.0  ;;  %v2830_v31 = vmax.f32 %v2702_v61, 0.0 }
 0x459   :  { %v2838_v47 = vmax.f32 %v2710_v15, 0.0  ;;  %v2846_v41 = vmax.f32 %v2718_v23, 0.0  ;;  %v2854_v1 = vmax.f32 %v2726_v59, 0.0  ;;  %v2862_v34 = vmax.f32 %v2734_v27, 0.0  ;;  %2918 = vst.msk [vmem:[%s6079_s4 + $0x30] sm:$0xff] %vm1207_vm1, %v2790_v14  ;;  %2926 = vst.msk [vmem:[%s6079_s4 + $0x70] sm:$0xff] %vm1207_vm1, %v2798_v16 }
 0x45a   :  { %v2870_v63 = vmax.f32 %v2742_v5, 0.0  ;;  %v2878_v33 = vmax.f32 %v2750_v62, 0.0  ;;  %2934 = vst.msk [vmem:[%s6079_s4 + $0xb0] sm:$0xff] %vm1207_vm1, %v2806_v45  ;;  %2942 = vst.msk [vmem:[%s6079_s4 + $0xf0] sm:$0xff] %vm1207_vm1, %v2814_v48  ;;  %v2886_v43 = vmax.f32 %v2758_v0, 0.0  ;;  %v2894_v37 = vmax.f32 %v2766_v38, 0.0 }
 0x45b   :  { %v2902_v57 = vmax.f32 %v2774_v58, 0.0  ;;  %v2910_v11 = vmax.f32 %v2782_v32, 0.0  ;;  %2950 = vst.msk [vmem:[%s6079_s4 + $0x130] sm:$0xff] %vm1207_vm1, %v2822_v40  ;;  %2958 = vst.msk [vmem:[%s6079_s4 + $0x170] sm:$0xff] %vm1207_vm1, %v2830_v31 }
 0x45c   :  { %2966 = vst.msk [vmem:[%s6079_s4 + $0x1b0] sm:$0xff] %vm1207_vm1, %v2838_v47  ;;  %2974 = vst.msk [vmem:[%s6079_s4 + $0x1f0] sm:$0xff] %vm1207_vm1, %v2846_v41 }
 0x45d   :  { %2982 = vst.msk [vmem:[%s6079_s4 + $0x230] sm:$0xff] %vm1207_vm1, %v2854_v1  ;;  %2990 = vst.msk [vmem:[%s6079_s4 + $0x270] sm:$0xff] %vm1207_vm1, %v2862_v34 }
 0x45e   :  { %2998 = vst.msk [vmem:[%s6079_s4 + $0x2b0] sm:$0xff] %vm1207_vm1, %v2870_v63  ;;  %3006 = vst.msk [vmem:[%s6079_s4 + $0x2f0] sm:$0xff] %vm1207_vm1, %v2878_v33 }
 0x45f   :  { %3014 = vst.msk [vmem:[%s6079_s4 + $0x330] sm:$0xff] %vm1207_vm1, %v2886_v43  ;;  %3022 = vst.msk [vmem:[%s6079_s4 + $0x370] sm:$0xff] %vm1207_vm1, %v2894_v37 }
 0x460   :  { %3030 = vst.msk [vmem:[%s6079_s4 + $0x3b0] sm:$0xff] %vm1207_vm1, %v2902_v57  ;;  %3038 = vst.msk [vmem:[%s6079_s4 + $0x3f0] sm:$0xff] %vm1207_vm1, %v2910_v11 }

// kernel: generator_dc_forward.8
= control target key start
LH: loop header
LB: loop body
LE: loop exit
PB: predicated region body
PF: predicated region fallthrough
CT: control target
= control target key end

     0   :  { %s1224_s9 = smov 127   ;;  %s1225_s14 = smov 126   ;;  %vm497_vm0 = vcmask 130048   ;;  %vm69_vm1 = vcmask 1039360   ;;  %vm116_vm2 = vcmask 1031168   ;;  %vm163_vm3 = vcmask 900096   ;;  %s1823_s0 = inlined_call_operand.vmem [shape: f32[16,768], index: 0, kind: input, shape index: {}]   ;;  %s1824_s2 = inlined_call_operand.vmem [shape: bf16[32,144], index: 2, kind: input, shape index: {}]   ;;  %s1825_s1 = inlined_call_operand.vmem [shape: f32[1,648], index: 1, kind: input, shape index: {}]   ;;  %s1826_s3 = inlined_call_operand.vmem [shape: f32[8,1], index: 3, kind: input, shape index: {}]   ;;  %s1827_s4 = inlined_call_operand.vmem [shape: f32[8,1], index: 4, kind: input, shape index: {}]   ;;  %s1828_s5 = inlined_call_operand.vmem [shape: f32[32,648], index: 5, kind: output, shape index: {}]  }
   0x1   :  { %v22_v0 = vld [vmem:[%s1823_s0 + $0x8] sm:$0xff]  ;;  %v23_v1 = vld [vmem:[%s1823_s0 + $0x10] sm:$0xff]  ;;  %v21_v2 = vld [vmem:[%s1823_s0] sm:$0xff]  ;;  %s1226_s15 = smov 110   ;;  %s1227_s16 = smov 109   ;;  %vm210_vm4 = vcmask 891904  }
   0x2   :  { %v1272_v3 = vpack.i.bf16 %v23_v1, %v22_v0  ;;  %v27_v4 = vld [vmem:[%s1823_s0 + $0x30] sm:$0xff]  ;;  %v28_v5 = vld [vmem:[%s1823_s0 + $0x38] sm:$0xff]  ;;  %v29_v6 = vld [vmem:[%s1823_s0 + $0x40] sm:$0xff]  ;;  %s1228_s17 = smov 108   ;;  %s1229_s18 = smov 92   ;;  %vm257_vm5 = vcmask 883712  }
   0x3   :  { %v1283_v7 = vpack.i.bf16 %v27_v4, %v21_v2  ;;  %v24_v8 = vld [vmem:[%s1823_s0 + $0x18] sm:$0xff]  ;;  %v1291_v9 = vld [vmem:[%s1823_s0 + $0x20] sm:$0xff]  ;;  %v1295_v10 = vpack.i.bf16 %v29_v6, %v28_v5  ;;  %v30_v12 = vld [vmem:[%s1823_s0 + $0x48] sm:$0xff]  ;;  %v422_v15 = vpack.c.bf16 %v28_v5, %v22_v0  ;;  %v421_v16 = vpack.c.bf16 %v27_v4, %v21_v2  ;;  %s1230_s19 = smov 91   ;;  %s1231_s26 = smov 90  }
   0x4   :  { %975 = vrot.lane.b32.xlu0 %v1272_v3, %s1224_s9  ;;  %v989_v11 = vpack.i.bf16 %v1291_v9, %v24_v8  ;;  %v1306_v13 = vld [vmem:[%s1823_s0 + $0x50] sm:$0xff]  ;;  %v424_v17 = vpack.c.bf16 %v30_v12, %v24_v8  ;;  %v423_v18 = vpack.c.bf16 %v29_v6, %v23_v1  ;;  %v26_v19 = vld [vmem:[%s1823_s0 + $0x28] sm:$0xff]  ;;  %v32_v20 = vld [vmem:[%s1823_s0 + $0x58] sm:$0xff]  ;;  %vm304_vm6 = vcmask 752640  }
   0x5   :  { %985 = vrot.lane.b32.xlu1 %v1283_v7, %s1224_s9  ;;  %v994_v14 = vpack.i.bf16 %v1306_v13, %v30_v12  ;;  %504 = vmatprep.subr.bf16.mxu0 %v422_v15  ;;  %v1365_v21 = vld [vmem:[%s1824_s2 + $0x4] ss:$8 sps:$4 sm:$0xff]   ;;  %v1367_v22 = vpack.c.bf16 %v32_v20, %v26_v19  ;;  %v1174_v23 = vpack.i.bf16 %v32_v20, %v26_v19  ;;  %vm351_vm7 = vcmask 744448  }
   0x6   :  { %505 = vmatpush1.bf16.msra.mxu0 %v421_v16  ;;  %557 = vmatprep.subr.bf16.mxu1 %v424_v17  ;;  %vm398_vm8 = vcmask 736256   ;;  %vm723_vm9 = vcmask 64512  }
   0x7   :  { %558 = vmatpush1.bf16.msra.mxu1 %v423_v18  ;;  %941 = vmatprep.mubr.msk.bf16.mxu0 %vm497_vm0, %v1365_v21 }
   0x8   :  { %980 = vrot.lane.b32.xlu0 %v1295_v10, %s1224_s9  ;;  %943 = vmatprep.mubr.msk.bf16.mxu1 %vm497_vm0, %v1365_v21 }
   0x9   :  { %990 = vrot.lane.b32.xlu1 %v989_v11, %s1224_s9 }
   0xc   :  { %995 = vrot.lane.b32.xlu0 %v994_v14, %s1224_s9 }
   0xd   :  { %1000 = vrot.lane.b32.xlu1 %v1272_v3, %s1225_s14 }
  0x10   :  { %1005 = vrot.lane.b32.xlu0 %v1295_v10, %s1225_s14 }
  0x11   :  { %1010 = vrot.lane.b32.xlu1 %v1283_v7, %s1225_s14 }
  0x14   :  { %1015 = vrot.lane.b32.xlu0 %v989_v11, %s1225_s14 }
  0x15   :  { %1020 = vrot.lane.b32.xlu1 %v994_v14, %s1225_s14 }
  0x18   :  { %1025 = vrot.lane.b32.xlu0 %v1272_v3, %s1226_s15 }
  0x19   :  { %1030 = vrot.lane.b32.xlu1 %v1295_v10, %s1226_s15 }
  0x1c   :  { %1035 = vrot.lane.b32.xlu0 %v1283_v7, %s1226_s15 }
  0x1d   :  { %1040 = vrot.lane.b32.xlu1 %v989_v11, %s1226_s15 }
  0x20   :  { %1045 = vrot.lane.b32.xlu0 %v994_v14, %s1226_s15 }
  0x21   :  { %1050 = vrot.lane.b32.xlu1 %v1272_v3, %s1227_s16 }
  0x24   :  { %1055 = vrot.lane.b32.xlu0 %v1295_v10, %s1227_s16 }
  0x25   :  { %1060 = vrot.lane.b32.xlu1 %v1283_v7, %s1227_s16 }
  0x28   :  { %1065 = vrot.lane.b32.xlu0 %v989_v11, %s1227_s16 }
  0x29   :  { %1070 = vrot.lane.b32.xlu1 %v994_v14, %s1227_s16 }
  0x2c   :  { %1075 = vrot.lane.b32.xlu0 %v1272_v3, %s1228_s17 }
  0x2d   :  { %1080 = vrot.lane.b32.xlu1 %v1295_v10, %s1228_s17 }
  0x30   :  { %1085 = vrot.lane.b32.xlu0 %v1283_v7, %s1228_s17 }
  0x31   :  { %1090 = vrot.lane.b32.xlu1 %v989_v11, %s1228_s17 }
  0x34   :  { %1095 = vrot.lane.b32.xlu0 %v994_v14, %s1228_s17 }
  0x35   :  { %1100 = vrot.lane.b32.xlu1 %v1272_v3, %s1229_s18 }
  0x38   :  { %1105 = vrot.lane.b32.xlu0 %v1295_v10, %s1229_s18 }
  0x39   :  { %1110 = vrot.lane.b32.xlu1 %v1283_v7, %s1229_s18 }
  0x3c   :  { %1115 = vrot.lane.b32.xlu0 %v989_v11, %s1229_s18 }
  0x3d   :  { %1120 = vrot.lane.b32.xlu1 %v994_v14, %s1229_s18 }
  0x40   :  { %1125 = vrot.lane.b32.xlu0 %v1272_v3, %s1230_s19 }
  0x41   :  { %1130 = vrot.lane.b32.xlu1 %v1295_v10, %s1230_s19 }
  0x44   :  { %1135 = vrot.lane.b32.xlu0 %v1283_v7, %s1230_s19 }
  0x45   :  { %1140 = vrot.lane.b32.xlu1 %v989_v11, %s1230_s19 }
  0x48   :  { %1145 = vrot.lane.b32.xlu0 %v994_v14, %s1230_s19 }
  0x49   :  { %1150 = vrot.lane.b32.xlu1 %v1272_v3, %s1231_s26 }
  0x4c   :  { %1155 = vrot.lane.b32.xlu0 %v1295_v10, %s1231_s26 }
  0x4d   :  { %1160 = vrot.lane.b32.xlu1 %v1283_v7, %s1231_s26 }
  0x50   :  { %1165 = vrot.lane.b32.xlu0 %v989_v11, %s1231_s26 }
  0x51   :  { %1170 = vrot.lane.b32.xlu1 %v994_v14, %s1231_s26 }
  0x54   :  { %1175 = vrot.lane.b32.xlu0 %v1174_v23, %s1224_s9 }
  0x55   :  { %1180 = vrot.lane.b32.xlu1 %v1174_v23, %s1225_s14 }
  0x58   :  { %1185 = vrot.lane.b32.xlu0 %v1174_v23, %s1226_s15 }
  0x59   :  { %1190 = vrot.lane.b32.xlu1 %v1174_v23, %s1227_s16 }
  0x5c   :  { %1195 = vrot.lane.b32.xlu0 %v1174_v23, %s1228_s17 }
  0x5d   :  { %1200 = vrot.lane.b32.xlu1 %v1174_v23, %s1229_s18 }
  0x60   :  { %1205 = vrot.lane.b32.xlu0 %v1174_v23, %s1230_s19 }
  0x61   :  { %1210 = vrot.lane.b32.xlu1 %v1174_v23, %s1231_s26 }
  0x76   :  { %v976_v24 = vpop.permute.xlu0 %975 }
  0x77   :  { %v986_v25 = vpop.permute.xlu1 %985  ;;  %v978_v26 = vunpack.i.h.bf16 %v976_v24  ;;  %v977_v27 = vunpack.i.l.bf16 %v976_v24 }
  0x78   :  { %v987_v28 = vunpack.i.l.bf16 %v986_v25  ;;  %v988_v30 = vunpack.i.h.bf16 %v986_v25 }
  0x79   :  { %v71_v36 = vsel %vm69_vm1, %v977_v27, %v978_v26 }
  0x7a   :  { %v981_v29 = vpop.permute.xlu0 %980  ;;  %v70_v38 = vsel %vm69_vm1, %v987_v28, %v977_v27 }
  0x7b   :  { %v983_v31 = vunpack.i.h.bf16 %v981_v29  ;;  %v982_v32 = vunpack.i.l.bf16 %v981_v29  ;;  %v1382_v33 = vpop.permute.xlu1 %990 }
  0x7c   :  { %v993_v34 = vunpack.i.h.bf16 %v1382_v33  ;;  %v992_v35 = vunpack.i.l.bf16 %v1382_v33 }
  0x7d   :  { %v76_v37 = vsel %vm69_vm1, %v982_v32, %v983_v31  ;;  %v75_v39 = vsel %vm69_vm1, %v988_v30, %v982_v32 }
  0x7e   :  { %v1390_v40 = vpop.permute.xlu0 %995  ;;  %v428_v41 = vpack.c.bf16 %v76_v37, %v71_v36  ;;  %v427_v42 = vpack.c.bf16 %v75_v39, %v70_v38  ;;  %v73_v46 = vsel %vm69_vm1, %v992_v35, %v993_v34  ;;  %v72_v47 = vsel %vm69_vm1, %v978_v26, %v992_v35 }
  0x7f   :  { %v998_v43 = vunpack.i.h.bf16 %v1390_v40  ;;  %v997_v44 = vunpack.i.l.bf16 %v1390_v40  ;;  %v1001_v45 = vpop.permute.xlu1 %1000 }
  0x80   :  { %506 = vmatprep.subr.bf16.mxu0 %v428_v41  ;;  %v1003_v48 = vunpack.i.h.bf16 %v1001_v45  ;;  %v1002_v49 = vunpack.i.l.bf16 %v1001_v45 }
  0x81   :  { %507 = vmatpush1.bf16.msra.mxu0 %v427_v42  ;;  %v78_v50 = vsel %vm69_vm1, %v997_v44, %v998_v43  ;;  %v77_v51 = vsel %vm69_vm1, %v983_v31, %v997_v44 }
  0x82   :  { %v1006_v52 = vpop.permute.xlu0 %1005  ;;  %v430_v53 = vpack.c.bf16 %v78_v50, %v73_v46  ;;  %v429_v54 = vpack.c.bf16 %v77_v51, %v72_v47  ;;  %v118_v60 = vsel %vm116_vm2, %v1002_v49, %v1003_v48 }
  0x83   :  { %v1008_v55 = vunpack.i.h.bf16 %v1006_v52  ;;  %v1007_v56 = vunpack.i.l.bf16 %v1006_v52  ;;  %v1011_v57 = vpop.permute.xlu1 %1010 }
  0x84   :  { %v1013_v58 = vunpack.i.h.bf16 %v1011_v57  ;;  %v1012_v59 = vunpack.i.l.bf16 %v1011_v57  ;;  %559 = vmatprep.subr.bf16.mxu1 %v430_v53 }
  0x85   :  { %560 = vmatpush1.bf16.msra.mxu1 %v429_v54  ;;  %v123_v61 = vsel %vm116_vm2, %v1007_v56, %v1008_v55 }
  0x86   :  { %v1404_v62 = vpop.permute.xlu0 %1015  ;;  %v434_v63 = vpack.c.bf16 %v123_v61, %v118_v60  ;;  %v117_v0 = vsel %vm116_vm2, %v1012_v59, %v1002_v49  ;;  %v122_v1 = vsel %vm116_vm2, %v1013_v58, %v1007_v56 }
  0x87   :  { %v1018_v2 = vunpack.i.h.bf16 %v1404_v62  ;;  %v1017_v3 = vunpack.i.l.bf16 %v1404_v62  ;;  %v1410_v4 = vpop.permute.xlu1 %1020  ;;  %v433_v5 = vpack.c.bf16 %v122_v1, %v117_v0 }
  0x88   :  { %v1023_v6 = vunpack.i.h.bf16 %v1410_v4  ;;  %v1022_v7 = vunpack.i.l.bf16 %v1410_v4  ;;  %508 = vmatprep.subr.bf16.mxu0 %v434_v63 }
  0x89   :  { %509 = vmatpush1.bf16.msra.mxu0 %v433_v5  ;;  %v120_v8 = vsel %vm116_vm2, %v1017_v3, %v1018_v2  ;;  %v119_v10 = vsel %vm116_vm2, %v1003_v48, %v1017_v3 }
  0x8a   :  { %v1026_v11 = vpop.permute.xlu0 %1025  ;;  %v125_v12 = vsel %vm116_vm2, %v1022_v7, %v1023_v6  ;;  %v124_v14 = vsel %vm116_vm2, %v1008_v55, %v1022_v7 }
  0x8b   :  { %v1028_v15 = vunpack.i.h.bf16 %v1026_v11  ;;  %v1027_v16 = vunpack.i.l.bf16 %v1026_v11  ;;  %v1031_v17 = vpop.permute.xlu1 %1030  ;;  %v436_v18 = vpack.c.bf16 %v125_v12, %v120_v8  ;;  %v435_v19 = vpack.c.bf16 %v124_v14, %v119_v10 }
  0x8c   :  { %v1033_v20 = vunpack.i.h.bf16 %v1031_v17  ;;  %v1032_v23 = vunpack.i.l.bf16 %v1031_v17 }
  0x8d   :  { %561 = vmatprep.subr.bf16.mxu1 %v436_v18  ;;  %v165_v24 = vsel %vm163_vm3, %v1027_v16, %v1028_v15 }
  0x8e   :  { %562 = vmatpush1.bf16.msra.mxu1 %v435_v19  ;;  %v1036_v25 = vpop.permute.xlu0 %1035  ;;  %v170_v26 = vsel %vm163_vm3, %v1032_v23, %v1033_v20 }
  0x8f   :  { %v1038_v27 = vunpack.i.h.bf16 %v1036_v25  ;;  %v1037_v28 = vunpack.i.l.bf16 %v1036_v25  ;;  %v1424_v29 = vpop.permute.xlu1 %1040  ;;  %v440_v30 = vpack.c.bf16 %v170_v26, %v165_v24 }
  0x90   :  { %v1043_v31 = vunpack.i.h.bf16 %v1424_v29  ;;  %v1042_v32 = vunpack.i.l.bf16 %v1424_v29 }
  0x91   :  { %510 = vmatprep.subr.bf16.mxu0 %v440_v30  ;;  %v164_v35 = vsel %vm163_vm3, %v1037_v28, %v1027_v16  ;;  %v169_v36 = vsel %vm163_vm3, %v1038_v27, %v1032_v23 }
  0x92   :  { %v1430_v37 = vpop.permute.xlu0 %1045  ;;  %v439_v38 = vpack.c.bf16 %v169_v36, %v164_v35  ;;  %v167_v44 = vsel %vm163_vm3, %v1042_v32, %v1043_v31  ;;  %v166_v45 = vsel %vm163_vm3, %v1028_v15, %v1042_v32 }
  0x93   :  { %v1048_v39 = vunpack.i.h.bf16 %v1430_v37  ;;  %v1047_v41 = vunpack.i.l.bf16 %v1430_v37  ;;  %v1051_v42 = vpop.permute.xlu1 %1050 }
  0x94   :  { %511 = vmatpush1.bf16.msra.mxu0 %v439_v38  ;;  %v1053_v46 = vunpack.i.h.bf16 %v1051_v42  ;;  %v1052_v47 = vunpack.i.l.bf16 %v1051_v42 }
  0x95   :  { %v172_v48 = vsel %vm163_vm3, %v1047_v41, %v1048_v39  ;;  %v171_v49 = vsel %vm163_vm3, %v1033_v20, %v1047_v41 }
  0x96   :  { %v1056_v50 = vpop.permute.xlu0 %1055  ;;  %v442_v51 = vpack.c.bf16 %v172_v48, %v167_v44  ;;  %v441_v52 = vpack.c.bf16 %v171_v49, %v166_v45  ;;  %v212_v58 = vsel %vm210_vm4, %v1052_v47, %v1053_v46 }
  0x97   :  { %v1058_v53 = vunpack.i.h.bf16 %v1056_v50  ;;  %v1057_v54 = vunpack.i.l.bf16 %v1056_v50  ;;  %v1061_v55 = vpop.permute.xlu1 %1060 }
  0x98   :  { %v1063_v56 = vunpack.i.h.bf16 %v1061_v55  ;;  %v1062_v57 = vunpack.i.l.bf16 %v1061_v55  ;;  %563 = vmatprep.subr.bf16.mxu1 %v442_v51 }
  0x99   :  { %564 = vmatpush1.bf16.msra.mxu1 %v441_v52  ;;  %v217_v59 = vsel %vm210_vm4, %v1057_v54, %v1058_v53 }
  0x9a   :  { %v1444_v60 = vpop.permute.xlu0 %1065  ;;  %v446_v61 = vpack.c.bf16 %v217_v59, %v212_v58  ;;  %v211_v63 = vsel %vm210_vm4, %v1062_v57, %v1052_v47  ;;  %v216_v0 = vsel %vm210_vm4, %v1063_v56, %v1057_v54 }
  0x9b   :  { %v1068_v1 = vunpack.i.h.bf16 %v1444_v60  ;;  %v1067_v3 = vunpack.i.l.bf16 %v1444_v60  ;;  %v1450_v5 = vpop.permute.xlu1 %1070  ;;  %v445_v7 = vpack.c.bf16 %v216_v0, %v211_v63 }
  0x9c   :  { %v1073_v8 = vunpack.i.h.bf16 %v1450_v5  ;;  %v1072_v10 = vunpack.i.l.bf16 %v1450_v5  ;;  %512 = vmatprep.subr.bf16.mxu0 %v446_v61 }
  0x9d   :  { %513 = vmatpush1.bf16.msra.mxu0 %v445_v7  ;;  %v214_v11 = vsel %vm210_vm4, %v1067_v3, %v1068_v1  ;;  %v213_v12 = vsel %vm210_vm4, %v1053_v46, %v1067_v3 }
  0x9e   :  { %v1076_v14 = vpop.permute.xlu0 %1075  ;;  %v219_v15 = vsel %vm210_vm4, %v1072_v10, %v1073_v8  ;;  %v218_v16 = vsel %vm210_vm4, %v1058_v53, %v1072_v10 }
  0x9f   :  { %v1078_v17 = vunpack.i.h.bf16 %v1076_v14  ;;  %v1077_v18 = vunpack.i.l.bf16 %v1076_v14  ;;  %v1081_v19 = vpop.permute.xlu1 %1080  ;;  %v448_v20 = vpack.c.bf16 %v219_v15, %v214_v11  ;;  %v447_v23 = vpack.c.bf16 %v218_v16, %v213_v12 }
  0xa0   :  { %v1083_v24 = vunpack.i.h.bf16 %v1081_v19  ;;  %v1082_v25 = vunpack.i.l.bf16 %v1081_v19 }
  0xa1   :  { %565 = vmatprep.subr.bf16.mxu1 %v448_v20  ;;  %v259_v26 = vsel %vm257_vm5, %v1077_v18, %v1078_v17 }
  0xa2   :  { %566 = vmatpush1.bf16.msra.mxu1 %v447_v23  ;;  %v1086_v27 = vpop.permute.xlu0 %1085  ;;  %v264_v28 = vsel %vm257_vm5, %v1082_v25, %v1083_v24 }
  0xa3   :  { %v1088_v30 = vunpack.i.h.bf16 %v1086_v27  ;;  %v1087_v32 = vunpack.i.l.bf16 %v1086_v27  ;;  %v1464_v35 = vpop.permute.xlu1 %1090  ;;  %v452_v36 = vpack.c.bf16 %v264_v28, %v259_v26 }
  0xa4   :  { %v1093_v38 = vunpack.i.h.bf16 %v1464_v35  ;;  %v1092_v41 = vunpack.i.l.bf16 %v1464_v35 }
  0xa5   :  { %514 = vmatprep.subr.bf16.mxu0 %v452_v36  ;;  %v258_v42 = vsel %vm257_vm5, %v1087_v32, %v1077_v18  ;;  %v263_v44 = vsel %vm257_vm5, %v1088_v30, %v1082_v25 }
  0xa6   :  { %v1470_v45 = vpop.permute.xlu0 %1095  ;;  %v451_v46 = vpack.c.bf16 %v263_v44, %v258_v42  ;;  %v261_v50 = vsel %vm257_vm5, %v1092_v41, %v1093_v38  ;;  %v260_v51 = vsel %vm257_vm5, %v1078_v17, %v1092_v41 }
  0xa7   :  { %v1098_v47 = vunpack.i.h.bf16 %v1470_v45  ;;  %v1097_v48 = vunpack.i.l.bf16 %v1470_v45  ;;  %v1101_v49 = vpop.permute.xlu1 %1100 }
  0xa8   :  { %515 = vmatpush1.bf16.msra.mxu0 %v451_v46  ;;  %v1103_v52 = vunpack.i.h.bf16 %v1101_v49  ;;  %v1102_v53 = vunpack.i.l.bf16 %v1101_v49 }
  0xa9   :  { %v266_v54 = vsel %vm257_vm5, %v1097_v48, %v1098_v47  ;;  %v265_v55 = vsel %vm257_vm5, %v1083_v24, %v1097_v48 }
  0xaa   :  { %v1106_v56 = vpop.permute.xlu0 %1105  ;;  %v454_v57 = vpack.c.bf16 %v266_v54, %v261_v50  ;;  %v453_v58 = vpack.c.bf16 %v265_v55, %v260_v51  ;;  %v306_v7 = vsel %vm304_vm6, %v1102_v53, %v1103_v52 }
  0xab   :  { %v1108_v59 = vunpack.i.h.bf16 %v1106_v56  ;;  %v1107_v61 = vunpack.i.l.bf16 %v1106_v56  ;;  %v1111_v63 = vpop.permute.xlu1 %1110 }
  0xac   :  { %v1113_v0 = vunpack.i.h.bf16 %v1111_v63  ;;  %v1112_v3 = vunpack.i.l.bf16 %v1111_v63  ;;  %567 = vmatprep.subr.bf16.mxu1 %v454_v57 }
  0xad   :  { %568 = vmatpush1.bf16.msra.mxu1 %v453_v58  ;;  %v311_v10 = vsel %vm304_vm6, %v1107_v61, %v1108_v59 }
  0xae   :  { %v1484_v11 = vpop.permute.xlu0 %1115  ;;  %v458_v12 = vpack.c.bf16 %v311_v10, %v306_v7  ;;  %v305_v14 = vsel %vm304_vm6, %v1112_v3, %v1102_v53  ;;  %v310_v15 = vsel %vm304_vm6, %v1113_v0, %v1107_v61 }
  0xaf   :  { %v1118_v16 = vunpack.i.h.bf16 %v1484_v11  ;;  %v1117_v17 = vunpack.i.l.bf16 %v1484_v11  ;;  %v1490_v18 = vpop.permute.xlu1 %1120  ;;  %v457_v19 = vpack.c.bf16 %v310_v15, %v305_v14 }
  0xb0   :  { %v1123_v20 = vunpack.i.h.bf16 %v1490_v18  ;;  %v1122_v23 = vunpack.i.l.bf16 %v1490_v18  ;;  %516 = vmatprep.subr.bf16.mxu0 %v458_v12 }
  0xb1   :  { %517 = vmatpush1.bf16.msra.mxu0 %v457_v19  ;;  %v308_v24 = vsel %vm304_vm6, %v1117_v17, %v1118_v16  ;;  %v307_v25 = vsel %vm304_vm6, %v1103_v52, %v1117_v17 }
  0xb2   :  { %v1126_v26 = vpop.permute.xlu0 %1125  ;;  %v313_v27 = vsel %vm304_vm6, %v1122_v23, %v1123_v20  ;;  %v312_v28 = vsel %vm304_vm6, %v1108_v59, %v1122_v23 }
  0xb3   :  { %v1128_v30 = vunpack.i.h.bf16 %v1126_v26  ;;  %v1127_v32 = vunpack.i.l.bf16 %v1126_v26  ;;  %v1131_v36 = vpop.permute.xlu1 %1130  ;;  %v460_v41 = vpack.c.bf16 %v313_v27, %v308_v24  ;;  %v459_v42 = vpack.c.bf16 %v312_v28, %v307_v25 }
  0xb4   :  { %v1133_v44 = vunpack.i.h.bf16 %v1131_v36  ;;  %v1132_v46 = vunpack.i.l.bf16 %v1131_v36 }
  0xb5   :  { %569 = vmatprep.subr.bf16.mxu1 %v460_v41  ;;  %v353_v48 = vsel %vm351_vm7, %v1127_v32, %v1128_v30 }
  0xb6   :  { %570 = vmatpush1.bf16.msra.mxu1 %v459_v42  ;;  %v1136_v49 = vpop.permute.xlu0 %1135  ;;  %v358_v50 = vsel %vm351_vm7, %v1132_v46, %v1133_v44 }
  0xb7   :  { %v1138_v51 = vunpack.i.h.bf16 %v1136_v49  ;;  %v1137_v52 = vunpack.i.l.bf16 %v1136_v49  ;;  %v1504_v53 = vpop.permute.xlu1 %1140  ;;  %v464_v54 = vpack.c.bf16 %v358_v50, %v353_v48 }
  0xb8   :  { %v1143_v55 = vunpack.i.h.bf16 %v1504_v53  ;;  %v1142_v56 = vunpack.i.l.bf16 %v1504_v53 }
  0xb9   :  { %518 = vmatprep.subr.bf16.mxu0 %v464_v54  ;;  %v352_v57 = vsel %vm351_vm7, %v1137_v52, %v1127_v32  ;;  %v357_v58 = vsel %vm351_vm7, %v1138_v51, %v1132_v46 }
  0xba   :  { %v1510_v59 = vpop.permute.xlu0 %1145  ;;  %v463_v61 = vpack.c.bf16 %v357_v58, %v352_v57  ;;  %v355_v7 = vsel %vm351_vm7, %v1142_v56, %v1143_v55  ;;  %v354_v10 = vsel %vm351_vm7, %v1128_v30, %v1142_v56  ;;  %v1537_v56 = vld [vmem:[%s1824_s2] ss:$8 sps:$4 sm:$0xff]  }
  0xbb   :  { %v1148_v63 = vunpack.i.h.bf16 %v1510_v59  ;;  %v1147_v0 = vunpack.i.l.bf16 %v1510_v59  ;;  %v1151_v3 = vpop.permute.xlu1 %1150  ;;  %v665_v59 = vlaneseq }
  0xbc   :  { %519 = vmatpush1.bf16.msra.mxu0 %v463_v61  ;;  %v1153_v12 = vunpack.i.h.bf16 %v1151_v3  ;;  %v1152_v14 = vunpack.i.l.bf16 %v1151_v3  ;;  %v425_v61 = vpack.c.bf16 %v1306_v13, %v1291_v9  ;;  %v1219_v9 = vld [vmem:[%s1824_s2 + $0x14] ss:$8 sps:$4 sm:$0xff]  }
  0xbd   :  { %v360_v15 = vsel %vm351_vm7, %v1147_v0, %v1148_v63  ;;  %v359_v17 = vsel %vm351_vm7, %v1133_v44, %v1147_v0 }
  0xbe   :  { %v1156_v19 = vpop.permute.xlu0 %1155  ;;  %v466_v23 = vpack.c.bf16 %v360_v15, %v355_v7  ;;  %v465_v24 = vpack.c.bf16 %v359_v17, %v354_v10  ;;  %v400_v30 = vsel %vm398_vm8, %v1152_v14, %v1153_v12 }
  0xbf   :  { %v1158_v25 = vunpack.i.h.bf16 %v1156_v19  ;;  %v1157_v26 = vunpack.i.l.bf16 %v1156_v19  ;;  %v1161_v27 = vpop.permute.xlu1 %1160 }
  0xc0   :  { %v1163_v28 = vunpack.i.h.bf16 %v1161_v27  ;;  %v1162_v32 = vunpack.i.l.bf16 %v1161_v27  ;;  %571 = vmatprep.subr.bf16.mxu1 %v466_v23 }
  0xc1   :  { %572 = vmatpush1.bf16.msra.mxu1 %v465_v24  ;;  %v405_v36 = vsel %vm398_vm8, %v1157_v26, %v1158_v25 }
  0xc2   :  { %v1524_v41 = vpop.permute.xlu0 %1165  ;;  %v470_v42 = vpack.c.bf16 %v405_v36, %v400_v30  ;;  %v399_v44 = vsel %vm398_vm8, %v1162_v32, %v1152_v14  ;;  %v404_v46 = vsel %vm398_vm8, %v1163_v28, %v1157_v26  ;;  %v1571_v32 = vld [vmem:[%s1824_s2 + $0x10] ss:$8 sps:$4 sm:$0xff]  }
  0xc3   :  { %v1168_v48 = vunpack.i.h.bf16 %v1524_v41  ;;  %v1167_v49 = vunpack.i.l.bf16 %v1524_v41  ;;  %v1530_v50 = vpop.permute.xlu1 %1170  ;;  %v469_v51 = vpack.c.bf16 %v404_v46, %v399_v44 }
  0xc4   :  { %v1173_v52 = vunpack.i.h.bf16 %v1530_v50  ;;  %v1172_v54 = vunpack.i.l.bf16 %v1530_v50  ;;  %520 = vmatprep.subr.bf16.mxu0 %v470_v42 }
  0xc5   :  { %521 = vmatpush1.bf16.msra.mxu0 %v469_v51  ;;  %v402_v57 = vsel %vm398_vm8, %v1167_v49, %v1168_v48  ;;  %v401_v58 = vsel %vm398_vm8, %v1153_v12, %v1167_v49 }
  0xc6   :  { %v1176_v0 = vpop.permute.xlu0 %1175  ;;  %v407_v3 = vsel %vm398_vm8, %v1172_v54, %v1173_v52  ;;  %610 = vmatprep.subr.bf16.mxu0 %v1367_v22  ;;  %v406_v7 = vsel %vm398_vm8, %v1158_v25, %v1172_v54 }
  0xc7   :  { %v1178_v10 = vunpack.i.h.bf16 %v1176_v0  ;;  %v1177_v14 = vunpack.i.l.bf16 %v1176_v0  ;;  %v1181_v15 = vpop.permute.xlu1 %1180  ;;  %v472_v17 = vpack.c.bf16 %v407_v3, %v402_v57  ;;  %v471_v19 = vpack.c.bf16 %v406_v7, %v401_v58 }
  0xc8   :  { %v1183_v23 = vunpack.i.h.bf16 %v1181_v15  ;;  %v1182_v24 = vunpack.i.l.bf16 %v1181_v15  ;;  %537 = vmatmul.mubr.bf16.vlgmr.msra.gmra.mrb[0].mxu0 %v1537_v56 }
  0xc9   :  { %v79_v13 = vsel %vm69_vm1, %v998_v43, %v1178_v10  ;;  %v74_v12 = vsel %vm69_vm1, %v993_v34, %v1177_v14  ;;  %v432_v25 = vpack.c.bf16 %v1178_v10, %v1177_v14  ;;  %573 = vmatprep.subr.bf16.mxu1 %v472_v17  ;;  %611 = vmatpush1.bf16.msra.mxu0 %v425_v61 }
  0xca   :  { %v431_v26 = vpack.c.bf16 %v79_v13, %v74_v12  ;;  %574 = vmatpush1.bf16.msra.mxu1 %v471_v19  ;;  %v1186_v27 = vpop.permute.xlu0 %1185  ;;  %v438_v28 = vpack.c.bf16 %v1183_v23, %v1182_v24  ;;  %v121_v40 = vsel %vm116_vm2, %v1018_v2, %v1182_v24  ;;  %v126_v33 = vsel %vm116_vm2, %v1023_v6, %v1183_v23 }
  0xcb   :  { %947 = vmatprep.subr.bf16.mxu1 %v1367_v22  ;;  %612 = vmatprep.subr.bf16.mxu0 %v432_v25  ;;  %v1188_v43 = vunpack.i.h.bf16 %v1186_v27  ;;  %v1187_v34 = vunpack.i.l.bf16 %v1186_v27  ;;  %v1191_v30 = vpop.permute.xlu1 %1190  ;;  %v437_v22 = vpack.c.bf16 %v126_v33, %v121_v40 }
  0xcc   :  { %942 = vmatprep.mubr.msk.bf16.mxu0 %vm497_vm0, %v1219_v9  ;;  %v1193_v6 = vunpack.i.h.bf16 %v1191_v30  ;;  %v1192_v36 = vunpack.i.l.bf16 %v1191_v30 }
  0xcd   :  { %590 = vmatmul.mubr.bf16.vlgmr.msra.gmra.mrb[0].mxu1 %v1537_v56  ;;  %613 = vmatpush1.bf16.msra.mxu0 %v431_v26  ;;  %v444_v62 = vpack.c.bf16 %v1188_v43, %v1187_v34  ;;  %v168_v2 = vsel %vm163_vm3, %v1043_v31, %v1187_v34  ;;  %v173_v4 = vsel %vm163_vm3, %v1048_v39, %v1188_v43 }
  0xce   :  { %956 = vmatpush1.bf16.msra.mxu1 %v425_v61  ;;  %614 = vmatprep.subr.bf16.mxu0 %v438_v28  ;;  %v1196_v42 = vpop.permute.xlu0 %1195  ;;  %v443_v44 = vpack.c.bf16 %v173_v4, %v168_v2  ;;  %v450_v29 = vpack.c.bf16 %v1193_v6, %v1192_v36  ;;  %v215_v31 = vsel %vm210_vm4, %v1068_v1, %v1192_v36 }
  0xcf   :  { %948 = vmatprep.subr.bf16.mxu1 %v432_v25  ;;  %944 = vmatprep.mubr.msk.bf16.mxu1 %vm497_vm0, %v1219_v9  ;;  %v220_v37 = vsel %vm210_vm4, %v1073_v8, %v1193_v6  ;;  %v1198_v39 = vunpack.i.h.bf16 %v1196_v42  ;;  %v1197_v46 = vunpack.i.l.bf16 %v1196_v42  ;;  %v1201_v49 = vpop.permute.xlu1 %1200 }
  0xd0   :  { %547 = vmatmul.mubr.bf16.gmra.mrb[4].mxu0 %v1571_v32  ;;  %v449_v51 = vpack.c.bf16 %v220_v37, %v215_v31  ;;  %v1203_v5 = vunpack.i.h.bf16 %v1201_v49  ;;  %v1202_v8 = vunpack.i.l.bf16 %v1201_v49 }
  0xd1   :  { %615 = vmatpush1.bf16.msra.mxu0 %v437_v22  ;;  %945 = vmatprep.mubr.msk.bf16.mxu0 %vm497_vm0, %v1365_v21  ;;  %v456_v21 = vpack.c.bf16 %v1198_v39, %v1197_v46  ;;  %v262_v60 = vsel %vm257_vm5, %v1093_v38, %v1197_v46  ;;  %v267_v1 = vsel %vm257_vm5, %v1098_v47, %v1198_v39 }
  0xd2   :  { %957 = vmatpush1.bf16.msra.mxu1 %v431_v26  ;;  %616 = vmatprep.subr.bf16.mxu0 %v444_v62  ;;  %v1206_v54 = vpop.permute.xlu0 %1205  ;;  %v462_v57 = vpack.c.bf16 %v1203_v5, %v1202_v8  ;;  %v455_v58 = vpack.c.bf16 %v267_v1, %v262_v60  ;;  %v309_v35 = vsel %vm304_vm6, %v1118_v16, %v1202_v8 }
  0xd3   :  { %949 = vmatprep.subr.bf16.mxu1 %v438_v28  ;;  %v314_v38 = vsel %vm304_vm6, %v1123_v20, %v1203_v5  ;;  %v1208_v45 = vunpack.i.h.bf16 %v1206_v54  ;;  %v1207_v47 = vunpack.i.l.bf16 %v1206_v54  ;;  %v1211_v61 = vpop.permute.xlu1 %1210 }
  0xd4   :  { %v461_v3 = vpack.c.bf16 %v314_v38, %v309_v35  ;;  %v1213_v16 = vunpack.i.h.bf16 %v1211_v61  ;;  %v1212_v18 = vunpack.i.l.bf16 %v1211_v61 }
  0xd5   :  { %617 = vmatpush1.bf16.msra.mxu0 %v443_v44  ;;  %600 = vmatmul.mubr.bf16.gmra.mrb[4].mxu1 %v1571_v32  ;;  %v468_v0 = vpack.c.bf16 %v1208_v45, %v1207_v47  ;;  %v356_v7 = vsel %vm351_vm7, %v1143_v55, %v1207_v47  ;;  %v361_v11 = vsel %vm351_vm7, %v1148_v63, %v1208_v45  ;;  %v1618_v63 = vshrl.u32 %v665_v59, 7 }
  0xd6   :  { %958 = vmatpush1.bf16.msra.mxu1 %v437_v22  ;;  %618 = vmatprep.subr.bf16.mxu0 %v450_v29  ;;  %v474_v20 = vpack.c.bf16 %v1213_v16, %v1212_v18  ;;  %v467_v10 = vpack.c.bf16 %v361_v11, %v356_v7  ;;  %v403_v14 = vsel %vm398_vm8, %v1168_v48, %v1212_v18  ;;  %v1624_v48 = vld [vmem:[%s1825_s1] sm:$0x3f] }
  0xd7   :  { %950 = vmatprep.subr.bf16.mxu1 %v444_v62  ;;  %946 = vmatprep.mubr.msk.bf16.mxu1 %vm497_vm0, %v1219_v9  ;;  %v408_v53 = vsel %vm398_vm8, %v1173_v52, %v1213_v16  ;;  %v667_v41 = vsub.s32 0, %v1618_v63  ;;  %v671_v50 = vsub.s32 1, %v1618_v63  ;;  %v679_v17 = vsub.s32 3, %v1618_v63 }
  0xd8   :  { %v473_v55 = vpack.c.bf16 %v408_v53, %v403_v14 }
  0xd9   :  { %619 = vmatpush1.bf16.msra.mxu0 %v449_v51  ;;  %v668_v52 = vrot.slane %v1624_v48, %v667_v41  ;;  %v672_v15 = vrot.slane %v1624_v48, %v671_v50  ;;  %v680_v28 = vrot.slane %v1624_v48, %v679_v17 }
  0xda   :  { %959 = vmatpush1.bf16.msra.mxu1 %v443_v44  ;;  %620 = vmatprep.subr.bf16.mxu0 %v456_v21 }
  0xdb   :  { %951 = vmatprep.subr.bf16.mxu1 %v450_v29 }
  0xdd   :  { %621 = vmatpush1.bf16.msra.mxu0 %v455_v58 }
  0xde   :  { %960 = vmatpush1.bf16.msra.mxu1 %v449_v51  ;;  %622 = vmatprep.subr.bf16.mxu0 %v462_v57 }
  0xdf   :  { %952 = vmatprep.subr.bf16.mxu1 %v456_v21 }
  0xe1   :  { %623 = vmatpush1.bf16.msra.mxu0 %v461_v3 }
  0xe2   :  { %961 = vmatpush1.bf16.msra.mxu1 %v455_v58  ;;  %624 = vmatprep.subr.bf16.mxu0 %v468_v0 }
  0xe3   :  { %953 = vmatprep.subr.bf16.mxu1 %v462_v57 }
  0xe5   :  { %625 = vmatpush1.bf16.msra.mxu0 %v467_v10 }
  0xe6   :  { %962 = vmatpush1.bf16.msra.mxu1 %v461_v3  ;;  %626 = vmatprep.subr.bf16.mxu0 %v474_v20 }
  0xe7   :  { %954 = vmatprep.subr.bf16.mxu1 %v468_v0 }
  0xe9   :  { %627 = vmatpush1.bf16.msra.mxu0 %v473_v55 }
  0xea   :  { %963 = vmatpush1.bf16.msra.mxu1 %v467_v10 }
  0xeb   :  { %955 = vmatprep.subr.bf16.mxu1 %v474_v20 }
  0xec   :  { %643 = vmatmul.mubr.bf16.vlgmr.msra.gmra.mrb[8].mxu0 %v1537_v56  ;;  %v675_v56 = vsub.s32 2, %v1618_v63 }
  0xee   :  { %964 = vmatpush1.bf16.msra.mxu1 %v473_v55  ;;  %v676_v12 = vrot.slane %v1624_v48, %v675_v56 }
  0xf1   :  { %653 = vmatmul.mubr.bf16.vlgmr.msra.gmra.mrb[8].mxu1 %v1571_v32 }
 0x19b   :  { %v1631_v19 = vpop.f32.mrb[0].mxu0 }
 0x19c   :  { %v695_v23 = vmul.f32 %v668_v52, %v1631_v19  ;;  %v1634_v24 = vpop.f32.mrb[1].mxu0 }
 0x19d   :  { %v696_v9 = vmul.f32 %v672_v15, %v1634_v24  ;;  %v1637_v13 = vpop.f32.mrb[2].mxu0 }
 0x19e   :  { %v752_v25 = vmul.f32 %v695_v23, %v695_v23  ;;  %v701_v26 = vmul.f32 %v668_v52, %v1637_v13  ;;  %v1641_v27 = vpop.f32.mrb[3].mxu0 }
 0x19f   :  { %v719_v40 = vadd.f32 %v696_v9, %v695_v23  ;;  %v753_v33 = vmul.f32 %v696_v9, %v696_v9  ;;  %v702_v43 = vmul.f32 %v672_v15, %v1641_v27 }
 0x1a0   :  { %v758_v34 = vmul.f32 %v701_v26, %v701_v26  ;;  %v1645_v32 = vpop.f32.mrb[0].mxu1 }
 0x1a1   :  { %v776_v30 = vadd.f32 %v753_v33, %v752_v25  ;;  %v728_v22 = vadd.f32 %v702_v43, %v701_v26  ;;  %v759_v62 = vmul.f32 %v702_v43, %v702_v43  ;;  %v697_v2 = vmul.f32 %v676_v12, %v1645_v32  ;;  %v1648_v4 = vpop.f32.mrb[1].mxu1 }
 0x1a2   :  { %v698_v6 = vmul.f32 %v680_v28, %v1648_v4  ;;  %v1651_v36 = vpop.f32.mrb[2].mxu1 }
 0x1a3   :  { %v784_v42 = vadd.f32 %v759_v62, %v758_v34  ;;  %v720_v44 = vadd.f32 %v719_v40, %v697_v2  ;;  %v754_v29 = vmul.f32 %v697_v2, %v697_v2  ;;  %v703_v31 = vmul.f32 %v676_v12, %v1651_v36  ;;  %v1654_v37 = vpop.f32.mrb[3].mxu1  ;;  %v1656_v39 = vpop.f32.mrb[4].mxu0 }
 0x1a4   :  { %v755_v46 = vmul.f32 %v698_v6, %v698_v6  ;;  %v704_v49 = vmul.f32 %v680_v28, %v1654_v37  ;;  %v707_v21 = vmul.f32 %v668_v52, %v1656_v39  ;;  %v1660_v51 = vpop.f32.mrb[5].mxu0 }
 0x1a5   :  { %v777_v60 = vadd.f32 %v776_v30, %v754_v29  ;;  %v721_v1 = vadd.f32 %v720_v44, %v698_v6  ;;  %v729_v5 = vadd.f32 %v728_v22, %v703_v31  ;;  %v760_v8 = vmul.f32 %v703_v31, %v703_v31  ;;  %v1662_v54 = vpop.f32.mrb[6].mxu0 }
 0x1a6   :  { %v761_v57 = vmul.f32 %v704_v49, %v704_v49  ;;  %v764_v58 = vmul.f32 %v707_v21, %v707_v21  ;;  %v708_v35 = vmul.f32 %v672_v15, %v1660_v51  ;;  %v713_v38 = vmul.f32 %v668_v52, %v1662_v54  ;;  %v1666_v45 = vpop.f32.mrb[7].mxu0 }
 0x1a7   :  { %v785_v47 = vadd.f32 %v784_v42, %v760_v8  ;;  %v730_v61 = vadd.f32 %v729_v5, %v704_v49  ;;  %v714_v0 = vmul.f32 %v672_v15, %v1666_v45  ;;  %v778_v3 = vadd.f32 %v777_v60, %v755_v46 }
 0x1a8   :  { %v736_v7 = vadd.f32 %v708_v35, %v707_v21  ;;  %v765_v11 = vmul.f32 %v708_v35, %v708_v35  ;;  %v770_v16 = vmul.f32 %v713_v38, %v713_v38  ;;  %v1669_v18 = vpop.f32.mrb[4].mxu1  ;;  %v683_v6 = vsub.s32 4, %v1618_v63 }
 0x1a9   :  { %v744_v20 = vadd.f32 %v714_v0, %v713_v38  ;;  %v771_v10 = vmul.f32 %v714_v0, %v714_v0  ;;  %v709_v14 = vmul.f32 %v676_v12, %v1669_v18  ;;  %v1672_v53 = vpop.f32.mrb[5].mxu1  ;;  %v786_v55 = vadd.f32 %v785_v47, %v761_v57 }
 0x1aa   :  { %v792_v59 = vadd.f32 %v765_v11, %v764_v58  ;;  %v710_v41 = vmul.f32 %v680_v28, %v1672_v53  ;;  %v1675_v50 = vpop.f32.mrb[6].mxu1  ;;  %v687_v42 = vsub.s32 5, %v1618_v63 }
 0x1ab   :  { %v800_v52 = vadd.f32 %v771_v10, %v770_v16  ;;  %v737_v15 = vadd.f32 %v736_v7, %v709_v14  ;;  %v766_v56 = vmul.f32 %v709_v14, %v709_v14  ;;  %v715_v17 = vmul.f32 %v676_v12, %v1675_v50  ;;  %v1678_v23 = vpop.f32.mrb[7].mxu1 }
 0x1ac   :  { %v767_v9 = vmul.f32 %v710_v41, %v710_v41  ;;  %v716_v25 = vmul.f32 %v680_v28, %v1678_v23  ;;  %v684_v12 = vrot.slane %v1624_v48, %v683_v6  ;;  %v688_v44 = vrot.slane %v1624_v48, %v687_v42 }
 0x1ad   :  { %v793_v26 = vadd.f32 %v792_v59, %v766_v56  ;;  %v738_v40 = vadd.f32 %v737_v15, %v710_v41  ;;  %v745_v33 = vadd.f32 %v744_v20, %v715_v17  ;;  %v772_v43 = vmul.f32 %v715_v17, %v715_v17 }
 0x1ae   :  { %v773_v34 = vmul.f32 %v716_v25, %v716_v25 }
 0x1af   :  { %v801_v30 = vadd.f32 %v800_v52, %v772_v43  ;;  %v746_v22 = vadd.f32 %v745_v33, %v716_v25  ;;  %v794_v62 = vadd.f32 %v793_v26, %v767_v9 }
 0x1b1   :  { %v802_v2 = vadd.f32 %v801_v30, %v773_v34 }
 0x1bf   :  { %v1685_v29 = vpop.f32.mrb[8].mxu0 }
 0x1c0   :  { %v699_v28 = vmul.f32 %v684_v12, %v1685_v29  ;;  %v1688_v31 = vpop.f32.mrb[9].mxu0 }
 0x1c1   :  { %v700_v46 = vmul.f32 %v688_v44, %v1688_v31  ;;  %v1691_v49 = vpop.f32.mrb[10].mxu0 }
 0x1c2   :  { %v756_v21 = vmul.f32 %v699_v28, %v699_v28  ;;  %v705_v60 = vmul.f32 %v684_v12, %v1691_v49  ;;  %v1694_v5 = vpop.f32.mrb[11].mxu0  ;;  %v722_v63 = vadd.f32 %v721_v1, %v699_v28 }
 0x1c3   :  { %v757_v8 = vmul.f32 %v700_v46, %v700_v46  ;;  %v706_v48 = vmul.f32 %v688_v44, %v1694_v5  ;;  %v724_v57 = vsel %vm723_vm9, %v700_v46, 0.0 }
 0x1c4   :  { %v762_v58 = vmul.f32 %v705_v60, %v705_v60  ;;  %v1698_v35 = vpop.f32.mrb[8].mxu1  ;;  %v725_v38 = vadd.f32 %v724_v57, %v722_v63  ;;  %v731_v47 = vadd.f32 %v730_v61, %v705_v60  ;;  %v779_v0 = vadd.f32 %v778_v3, %v756_v21 }
 0x1c5   :  { %v763_v7 = vmul.f32 %v706_v48, %v706_v48  ;;  %v711_v11 = vmul.f32 %v684_v12, %v1698_v35  ;;  %v1701_v16 = vpop.f32.mrb[9].mxu1  ;;  %v732_v20 = vsel %vm723_vm9, %v706_v48, 0.0  ;;  %v780_v1 = vsel %vm723_vm9, %v757_v8, 0.0 }
 0x1c6   :  { %v712_v10 = vmul.f32 %v688_v44, %v1701_v16  ;;  %v1706_v14 = vpop.f32.mrb[10].mxu1  ;;  %726 = vadd.xlane.f32.xlu0 %v725_v38  ;;  %v733_v59 = vadd.f32 %v732_v20, %v731_v47  ;;  %v787_v41 = vadd.f32 %v786_v55, %v762_v58  ;;  %v781_v52 = vadd.f32 %v780_v1, %v779_v0 }
 0x1c7   :  { %v768_v15 = vmul.f32 %v711_v11, %v711_v11  ;;  %v717_v61 = vmul.f32 %v684_v12, %v1706_v14  ;;  %v1709_v3 = vpop.f32.mrb[11].mxu1  ;;  %v739_v56 = vadd.f32 %v738_v40, %v711_v11  ;;  %v788_v17 = vsel %vm723_vm9, %v763_v7, 0.0 }
 0x1c8   :  { %v769_v9 = vmul.f32 %v712_v10, %v712_v10  ;;  %v718_v25 = vmul.f32 %v688_v44, %v1709_v3  ;;  %734 = vadd.xlane.f32.xlu1 %v733_v59  ;;  %v740_v26 = vsel %vm723_vm9, %v712_v10, 0.0  ;;  %v789_v33 = vadd.f32 %v788_v17, %v787_v41  ;;  %v824_v17 = vld [vmem:[%s1827_s4] sm:$0xff] }
 0x1c9   :  { %v774_v43 = vmul.f32 %v717_v61, %v717_v61  ;;  %v741_v34 = vadd.f32 %v740_v26, %v739_v56  ;;  %v795_v30 = vadd.f32 %v794_v62, %v768_v15  ;;  %v747_v55 = vadd.f32 %v746_v22, %v717_v61  ;;  %v820_v15 = vld [vmem:[%s1826_s3] sm:$0xff] }
 0x1ca   :  { %v775_v6 = vmul.f32 %v718_v25, %v718_v25  ;;  %v796_v42 = vsel %vm723_vm9, %v769_v9, 0.0  ;;  %v748_v12 = vsel %vm723_vm9, %v718_v25, 0.0  ;;  %v1232_v60 = vmov 0  }
 0x1cb   :  { %742 = vadd.xlane.f32.xlu0 %v741_v34  ;;  %v797_v40 = vadd.f32 %v796_v42, %v795_v30  ;;  %v749_v28 = vadd.f32 %v748_v12, %v747_v55  ;;  %v803_v46 = vadd.f32 %v802_v2, %v774_v43  ;;  %1214 = vset.pattern.permute.xlu1 %v1232_v60 }
 0x1cc   :  { %790 = vadd.xlane.f32.xlu1 %v789_v33  ;;  %v804_v44 = vsel %vm723_vm9, %v775_v6, 0.0  ;;  %1215 = vset.pattern.permute.xlu0 %v1232_v60 }
 0x1cd   :  { %v805_v21 = vadd.f32 %v804_v44, %v803_v46 }
 0x1cf   :  { %782 = vadd.xlane.f32.xlu0 %v781_v52 }
 0x1d0   :  { %798 = vadd.xlane.f32.xlu1 %v797_v40 }
 0x1d3   :  { %750 = vadd.xlane.f32.xlu0 %v749_v28 }
 0x1d7   :  { %806 = vadd.xlane.f32.xlu0 %v805_v21 }
 0x253   :  { %v727_v22 = vpop.xlane.xlu0 %726 }
 0x255   :  { %v735_v62 = vpop.xlane.xlu1 %734 }
 0x256   :  { %v809_v48 = vadd.f32 %v735_v62, %v727_v22 }
 0x258   :  { %v743_v63 = vpop.xlane.xlu0 %742 }
 0x259   :  { %v791_v8 = vpop.xlane.xlu1 %790  ;;  %v810_v58 = vadd.f32 %v809_v48, %v743_v63 }
 0x25c   :  { %v783_v57 = vpop.xlane.xlu0 %782 }
 0x25d   :  { %v813_v38 = vadd.f32 %v791_v8, %v783_v57  ;;  %v799_v2 = vpop.xlane.xlu1 %798 }
 0x25f   :  { %v814_v7 = vadd.f32 %v813_v38, %v799_v2 }
 0x260   :  { %v751_v47 = vpop.xlane.xlu0 %750 }
 0x261   :  { %v811_v0 = vadd.f32 %v810_v58, %v751_v47 }
 0x263   :  { %v816_v11 = vmul.f32 0.00048828125, %v811_v0 }
 0x264   :  { %v807_v20 = vpop.xlane.xlu0 %806 }
 0x265   :  { %v815_v1 = vadd.f32 %v814_v7, %v807_v20  ;;  %v818_v10 = vmul.f32 %v816_v11, %v816_v11 }
 0x267   :  { %v817_v59 = vmul.f32 0.00048828125, %v815_v1 }
 0x269   :  { %v819_v41 = vsub.f32 %v817_v59, %v818_v10 }
 0x26b   :  { %v821_v52 = vadd.f32 1e-05, %v819_v41 }
 0x26d   :  { %1222 = vrsqrt.f32 %v821_v52 }
 0x277   :  { %v1223_v61 = vpop.eup %1222 }
 0x278   :  { %v823_v56 = vmul.f32 %v1223_v61, %v820_v15 }
 0x27a   :  { %829 = vperm.xlu1 %1214, %v823_v56   ;;  %v825_v9 = vmul.f32 %v823_v56, %v816_v11 }
 0x27c   :  { %v826_v25 = vsub.f32 %v824_v17, %v825_v9 }
 0x27e   :  { %858 = vperm.xlu0 %1215, %v826_v25  }
 0x2f9   :  { %v830_v26 = vpop.permute.xlu1 %829 }
 0x2fa   :  { %v832_v33 = vmul.f32 %v830_v26, %v1631_v19  ;;  %v833_v43 = vmul.f32 %v830_v26, %v1634_v24  ;;  %v834_v34 = vmul.f32 %v830_v26, %v1645_v32  ;;  %v835_v30 = vmul.f32 %v830_v26, %v1648_v4 }
 0x2fb   :  { %v836_v55 = vmul.f32 %v830_v26, %v1685_v29  ;;  %v837_v6 = vmul.f32 %v830_v26, %v1688_v31  ;;  %v838_v42 = vmul.f32 %v830_v26, %v1637_v13  ;;  %v839_v12 = vmul.f32 %v830_v26, %v1641_v27 }
 0x2fc   :  { %v840_v40 = vmul.f32 %v830_v26, %v1651_v36  ;;  %v841_v28 = vmul.f32 %v830_v26, %v1654_v37  ;;  %v842_v19 = vmul.f32 %v830_v26, %v1691_v49  ;;  %v843_v24 = vmul.f32 %v830_v26, %v1694_v5 }
 0x2fd   :  { %v844_v32 = vmul.f32 %v830_v26, %v1656_v39  ;;  %v845_v4 = vmul.f32 %v830_v26, %v1660_v51  ;;  %v846_v29 = vmul.f32 %v830_v26, %v1669_v18  ;;  %v847_v31 = vmul.f32 %v830_v26, %v1672_v53  ;;  %v859_v46 = vpop.permute.xlu0 %858 }
 0x2fe   :  { %v848_v13 = vmul.f32 %v830_v26, %v1698_v35  ;;  %v849_v27 = vmul.f32 %v830_v26, %v1701_v16  ;;  %v850_v36 = vmul.f32 %v830_v26, %v1662_v54  ;;  %v851_v37 = vmul.f32 %v830_v26, %v1666_v45 }
 0x2ff   :  { %v852_v49 = vmul.f32 %v830_v26, %v1675_v50  ;;  %v853_v5 = vmul.f32 %v830_v26, %v1678_v23  ;;  %v854_v39 = vmul.f32 %v830_v26, %v1706_v14  ;;  %v855_v51 = vmul.f32 %v830_v26, %v1709_v3 }
 0x300   :  { %v861_v18 = vadd.f32 %v859_v46, %v832_v33  ;;  %v862_v44 = vadd.f32 %v859_v46, %v833_v43  ;;  %v863_v53 = vadd.f32 %v859_v46, %v834_v34  ;;  %v864_v21 = vadd.f32 %v859_v46, %v835_v30 }
 0x301   :  { %v865_v60 = vadd.f32 %v859_v46, %v836_v55  ;;  %v866_v35 = vadd.f32 %v859_v46, %v837_v6  ;;  %v867_v22 = vadd.f32 %v859_v46, %v838_v42  ;;  %v868_v16 = vadd.f32 %v859_v46, %v839_v12 }
 0x302   :  { %v869_v62 = vadd.f32 %v859_v46, %v840_v40  ;;  %v870_v54 = vadd.f32 %v859_v46, %v841_v28  ;;  %v871_v63 = vadd.f32 %v859_v46, %v842_v19  ;;  %v872_v45 = vadd.f32 %v859_v46, %v843_v24 }
 0x303   :  { %v873_v8 = vadd.f32 %v859_v46, %v844_v32  ;;  %v874_v50 = vadd.f32 %v859_v46, %v845_v4  ;;  %v875_v48 = vadd.f32 %v859_v46, %v846_v29  ;;  %v876_v23 = vadd.f32 %v859_v46, %v847_v31 }
 0x304   :  { %v877_v57 = vadd.f32 %v859_v46, %v848_v13  ;;  %v878_v14 = vadd.f32 %v859_v46, %v849_v27  ;;  %v879_v58 = vadd.f32 %v859_v46, %v850_v36  ;;  %v880_v3 = vadd.f32 %v859_v46, %v851_v37 }
 0x305   :  { %v881_v38 = vadd.f32 %v859_v46, %v852_v49  ;;  %v882_v2 = vadd.f32 %v859_v46, %v853_v5  ;;  %v883_v47 = vadd.f32 %v859_v46, %v854_v39  ;;  %v884_v0 = vadd.f32 %v859_v46, %v855_v51 }
 0x306   :  { %v885_v7 = vmax.f32 %v861_v18, 0.0  ;;  %v886_v11 = vmax.f32 %v862_v44, 0.0  ;;  %v887_v20 = vmax.f32 %v863_v53, 0.0  ;;  %v888_v1 = vmax.f32 %v864_v21, 0.0 }
 0x307   :  { %v889_v10 = vmax.f32 %v865_v60, 0.0  ;;  %v890_v59 = vmax.f32 %v866_v35, 0.0  ;;  %v891_v41 = vmax.f32 %v867_v22, 0.0  ;;  %v892_v52 = vmax.f32 %v868_v16, 0.0 }
 0x308   :  { %v893_v15 = vmax.f32 %v869_v62, 0.0  ;;  %v894_v61 = vmax.f32 %v870_v54, 0.0  ;;  %v895_v56 = vmax.f32 %v871_v63, 0.0  ;;  %v896_v17 = vmax.f32 %v872_v45, 0.0  ;;  %909 = vst [vmem:[%s1828_s5] sm:$0xff] %v885_v7  ;;  %910 = vst [vmem:[%s1828_s5 + $0x8] sm:$0xff] %v886_v11 }
 0x309   :  { %911 = vst [vmem:[%s1828_s5 + $0x10] sm:$0xff] %v887_v20  ;;  %912 = vst [vmem:[%s1828_s5 + $0x18] sm:$0xff] %v888_v1  ;;  %v897_v9 = vmax.f32 %v873_v8, 0.0  ;;  %v898_v25 = vmax.f32 %v874_v50, 0.0  ;;  %v899_v26 = vmax.f32 %v875_v48, 0.0  ;;  %v900_v33 = vmax.f32 %v876_v23, 0.0 }
 0x30a   :  { %913 = vst [vmem:[%s1828_s5 + $0x20] sm:$0xff] %v889_v10  ;;  %914 = vst.msk [vmem:[%s1828_s5 + $0x28] sm:$0xff] %vm723_vm9, %v890_v59  ;;  %v901_v43 = vmax.f32 %v877_v57, 0.0  ;;  %v902_v34 = vmax.f32 %v878_v14, 0.0  ;;  %v903_v30 = vmax.f32 %v879_v58, 0.0  ;;  %v904_v55 = vmax.f32 %v880_v3, 0.0 }
 0x30b   :  { %915 = vst [vmem:[%s1828_s5 + $0x30] sm:$0xff] %v891_v41  ;;  %916 = vst [vmem:[%s1828_s5 + $0x38] sm:$0xff] %v892_v52  ;;  %v905_v6 = vmax.f32 %v881_v38, 0.0  ;;  %v906_v42 = vmax.f32 %v882_v2, 0.0  ;;  %v907_v12 = vmax.f32 %v883_v47, 0.0  ;;  %v908_v40 = vmax.f32 %v884_v0, 0.0 }
 0x30c   :  { %917 = vst [vmem:[%s1828_s5 + $0x40] sm:$0xff] %v893_v15  ;;  %918 = vst [vmem:[%s1828_s5 + $0x48] sm:$0xff] %v894_v61 }
 0x30d   :  { %919 = vst [vmem:[%s1828_s5 + $0x50] sm:$0xff] %v895_v56  ;;  %920 = vst.msk [vmem:[%s1828_s5 + $0x58] sm:$0xff] %vm723_vm9, %v896_v17 }
 0x30e   :  { %921 = vst [vmem:[%s1828_s5 + $0x60] sm:$0xff] %v897_v9  ;;  %922 = vst [vmem:[%s1828_s5 + $0x68] sm:$0xff] %v898_v25 }
 0x30f   :  { %923 = vst [vmem:[%s1828_s5 + $0x70] sm:$0xff] %v899_v26  ;;  %924 = vst [vmem:[%s1828_s5 + $0x78] sm:$0xff] %v900_v33 }
 0x310   :  { %925 = vst [vmem:[%s1828_s5 + $0x80] sm:$0xff] %v901_v43  ;;  %926 = vst.msk [vmem:[%s1828_s5 + $0x88] sm:$0xff] %vm723_vm9, %v902_v34 }
 0x311   :  { %927 = vst [vmem:[%s1828_s5 + $0x90] sm:$0xff] %v903_v30  ;;  %928 = vst [vmem:[%s1828_s5 + $0x98] sm:$0xff] %v904_v55 }
 0x312   :  { %929 = vst [vmem:[%s1828_s5 + $0xa0] sm:$0xff] %v905_v6  ;;  %930 = vst [vmem:[%s1828_s5 + $0xa8] sm:$0xff] %v906_v42 }
 0x313   :  { %931 = vst [vmem:[%s1828_s5 + $0xb0] sm:$0xff] %v907_v12  ;;  %932 = vst.msk [vmem:[%s1828_s5 + $0xb8] sm:$0xff] %vm723_vm9, %v908_v40 }

// kernel: generator_dc_forward.9
= control target key start
LH: loop header
LB: loop body
LE: loop exit
PB: predicated region body
PF: predicated region fallthrough
CT: control target
= control target key end

     0   :  { %s3458_s24 = smov 127   ;;  %s3459_s25 = smov 126   ;;  %v5087_v15 = vmov 0   ;;  %vm91_vm0 = vcmask 1039360   ;;  %vm167_vm1 = vcmask 1031168   ;;  %vm243_vm2 = vcmask 769024   ;;  %s5079_s0 = inlined_call_operand.vmem [shape: f32[8,2432], index: 0, kind: input, shape index: {}]   ;;  %s5080_s2 = inlined_call_operand.vmem [shape: f32[3,1], index: 2, kind: input, shape index: {}]   ;;  %s5081_s1 = inlined_call_operand.vmem [shape: bf16[4,3,72], index: 1, kind: input, shape index: {}]   ;;  %s5082_s3 = inlined_call_operand.vmem [shape: f32[4,3,2312], index: 3, kind: output, shape index: {}]  }
   0x1   :  { %v3492_v0 = vld [vmem:[%s5079_s0 + $0x20] sm:$0xff]  ;;  %v3497_v1 = vld [vmem:[%s5079_s0 + $0x28] sm:$0xff]  ;;  %v3509_v4 = vld [vmem:[%s5079_s0 + $0x10] sm:$0xff]  ;;  %s3460_s26 = smov 94   ;;  %s3461_s27 = smov 93   ;;  %857 = vmatprep.mubr.bf16.mxu0 %v5087_v15  ;;  %898 = vmatprep.mubr.bf16.mxu1 %v5087_v15  ;;  %vm319_vm3 = vcmask 760832  }
   0x2   :  { %v3502_v2 = vld [vmem:[%s5079_s0 + $0x8] sm:$0xff]  ;;  %v2954_v3 = vpack.i.bf16 %v3497_v1, %v3492_v0  ;;  %v3514_v5 = vld [vmem:[%s5079_s0] sm:$0xff]  ;;  %v3519_v6 = vld [vmem:[%s5079_s0 + $0x18] sm:$0xff]  ;;  %s3462_s28 = smov 92   ;;  %s3463_s29 = smov 60   ;;  %3304 = vset.pattern.permute.xlu0 %v5087_v15  ;;  %vm395_vm4 = vcmask 752640  }
   0x3   :  { %v2944_v7 = vpack.i.bf16 %v3509_v4, %v3502_v2  ;;  %v2949_v8 = vpack.i.bf16 %v3519_v6, %v3514_v5  ;;  %s3464_s30 = smov 59   ;;  %v3049_v9 = vpack.i.bf16 %v3502_v2, %v3514_v5  ;;  %s3465_s4 = smov 58   ;;  %v3054_v10 = vpack.i.bf16 %v3519_v6, %v3509_v4  ;;  %v3554_v11 = vld [vmem:[%s5079_s0 + $0x40] sm:$0xff]  ;;  %v3559_v12 = vld [vmem:[%s5079_s0 + $0x48] sm:$0xff]  ;;  %v3564_v13 = vld [vmem:[%s5079_s0 + $0x30] sm:$0xff] }
   0x4   :  { %2955 = vrot.lane.b32.xlu1 %v2954_v3, %s3458_s24  ;;  %v3569_v14 = vld [vmem:[%s5079_s0 + $0x38] sm:$0xff]  ;;  %v3069_v16 = vpack.i.bf16 %v3559_v12, %v3554_v11  ;;  %v3597_v18 = vld [vmem:[%s5079_s0 + $0x60] sm:$0xff]  ;;  %v3602_v19 = vld [vmem:[%s5079_s0 + $0x68] sm:$0xff]  ;;  %vm471_vm5 = vcmask 490496   ;;  %vm547_vm6 = vcmask 482304   ;;  %vm623_vm7 = vcmask 474112  }
   0x5   :  { %2945 = vrot.lane.b32.xlu0 %v2944_v7, %s3458_s24  ;;  %v3064_v17 = vpack.i.bf16 %v3569_v14, %v3564_v13  ;;  %v3607_v20 = vld [vmem:[%s5079_s0 + $0x50] sm:$0xff]  ;;  %v3612_v21 = vld [vmem:[%s5079_s0 + $0x58] sm:$0xff]  ;;  %v3149_v22 = vpack.i.bf16 %v3602_v19, %v3597_v18  ;;  %v3649_v26 = vld [vmem:[%s5079_s0 + $0x80] sm:$0xff]  ;;  %vm767_vm8 = vcmask 1043456   ;;  %vm763_vm9 = vcmask 588800  }
   0x6   :  { %v3144_v23 = vpack.i.bf16 %v3612_v21, %v3607_v20  ;;  %v3637_v24 = vld [vmem:[%s5079_s0 + $0x70] sm:$0xff]  ;;  %v3642_v25 = vld [vmem:[%s5079_s0 + $0x78] sm:$0xff]  ;;  %vm3468_vm10 = vmmov 0   ;;  %vm1298_vm11 = vcmask 59392  }
   0x7   :  { %v3653_v27 = vpack.i.bf16 %v3642_v25, %v3637_v24 }
   0x8   :  { %2960 = vrot.lane.b32.xlu1 %v2944_v7, %s3459_s25 }
   0x9   :  { %2950 = vrot.lane.b32.xlu0 %v2949_v8, %s3458_s24 }
   0xc   :  { %2970 = vrot.lane.b32.xlu1 %v2949_v8, %s3459_s25 }
   0xd   :  { %2965 = vrot.lane.b32.xlu0 %v2944_v7, %s3460_s26 }
  0x10   :  { %2980 = vrot.lane.b32.xlu1 %v2954_v3, %s3459_s25 }
  0x11   :  { %2975 = vrot.lane.b32.xlu0 %v2949_v8, %s3460_s26 }
  0x14   :  { %2990 = vrot.lane.b32.xlu1 %v2944_v7, %s3461_s27 }
  0x15   :  { %2985 = vrot.lane.b32.xlu0 %v2954_v3, %s3460_s26 }
  0x18   :  { %3000 = vrot.lane.b32.xlu1 %v2949_v8, %s3461_s27 }
  0x19   :  { %2995 = vrot.lane.b32.xlu0 %v2944_v7, %s3462_s28 }
  0x1c   :  { %3010 = vrot.lane.b32.xlu1 %v2954_v3, %s3461_s27 }
  0x1d   :  { %3005 = vrot.lane.b32.xlu0 %v2949_v8, %s3462_s28 }
  0x20   :  { %3020 = vrot.lane.b32.xlu1 %v2944_v7, %s3463_s29 }
  0x21   :  { %3015 = vrot.lane.b32.xlu0 %v2954_v3, %s3462_s28 }
  0x24   :  { %3030 = vrot.lane.b32.xlu1 %v2949_v8, %s3463_s29 }
  0x25   :  { %3025 = vrot.lane.b32.xlu0 %v2944_v7, %s3464_s30 }
  0x28   :  { %3040 = vrot.lane.b32.xlu1 %v2954_v3, %s3463_s29 }
  0x29   :  { %3035 = vrot.lane.b32.xlu0 %v2949_v8, %s3464_s30 }
  0x2c   :  { %3050 = vrot.lane.b32.xlu1 %v3049_v9, %s3465_s4 }
  0x2d   :  { %3045 = vrot.lane.b32.xlu0 %v2954_v3, %s3464_s30 }
  0x30   :  { %3060 = vrot.lane.b32.xlu1 %v2954_v3, %s3465_s4 }
  0x31   :  { %3055 = vrot.lane.b32.xlu0 %v3054_v10, %s3465_s4 }
  0x34   :  { %3070 = vrot.lane.b32.xlu1 %v3069_v16, %s3458_s24 }
  0x35   :  { %3065 = vrot.lane.b32.xlu0 %v3064_v17, %s3458_s24 }
  0x38   :  { %3080 = vrot.lane.b32.xlu1 %v3064_v17, %s3460_s26 }
  0x39   :  { %3075 = vrot.lane.b32.xlu0 %v3064_v17, %s3459_s25 }
  0x3c   :  { %3090 = vrot.lane.b32.xlu1 %v3069_v16, %s3460_s26 }
  0x3d   :  { %3085 = vrot.lane.b32.xlu0 %v3069_v16, %s3459_s25 }
  0x40   :  { %3100 = vrot.lane.b32.xlu1 %v3064_v17, %s3462_s28 }
  0x41   :  { %3095 = vrot.lane.b32.xlu0 %v3064_v17, %s3461_s27 }
  0x44   :  { %3110 = vrot.lane.b32.xlu1 %v3069_v16, %s3462_s28 }
  0x45   :  { %3105 = vrot.lane.b32.xlu0 %v3069_v16, %s3461_s27 }
  0x48   :  { %3120 = vrot.lane.b32.xlu1 %v3064_v17, %s3464_s30 }
  0x49   :  { %3115 = vrot.lane.b32.xlu0 %v3064_v17, %s3463_s29 }
  0x4c   :  { %3130 = vrot.lane.b32.xlu1 %v3069_v16, %s3464_s30 }
  0x4d   :  { %3125 = vrot.lane.b32.xlu0 %v3069_v16, %s3463_s29 }
  0x50   :  { %3140 = vrot.lane.b32.xlu1 %v3069_v16, %s3465_s4 }
  0x51   :  { %3135 = vrot.lane.b32.xlu0 %v3064_v17, %s3465_s4 }
  0x54   :  { %3150 = vrot.lane.b32.xlu1 %v3149_v22, %s3458_s24 }
  0x55   :  { %3145 = vrot.lane.b32.xlu0 %v3144_v23, %s3458_s24 }
  0x58   :  { %3160 = vrot.lane.b32.xlu1 %v3144_v23, %s3460_s26 }
  0x59   :  { %3155 = vrot.lane.b32.xlu0 %v3144_v23, %s3459_s25 }
  0x5c   :  { %3170 = vrot.lane.b32.xlu1 %v3149_v22, %s3460_s26 }
  0x5d   :  { %3165 = vrot.lane.b32.xlu0 %v3149_v22, %s3459_s25 }
  0x60   :  { %3180 = vrot.lane.b32.xlu1 %v3144_v23, %s3462_s28 }
  0x61   :  { %3175 = vrot.lane.b32.xlu0 %v3144_v23, %s3461_s27 }
  0x64   :  { %3190 = vrot.lane.b32.xlu1 %v3149_v22, %s3462_s28 }
  0x65   :  { %3185 = vrot.lane.b32.xlu0 %v3149_v22, %s3461_s27 }
  0x68   :  { %3200 = vrot.lane.b32.xlu1 %v3144_v23, %s3464_s30 }
  0x69   :  { %3195 = vrot.lane.b32.xlu0 %v3144_v23, %s3463_s29 }
  0x6c   :  { %3210 = vrot.lane.b32.xlu1 %v3149_v22, %s3464_s30 }
  0x6d   :  { %3205 = vrot.lane.b32.xlu0 %v3149_v22, %s3463_s29 }
  0x70   :  { %3220 = vrot.lane.b32.xlu1 %v3149_v22, %s3465_s4 }
  0x71   :  { %3215 = vrot.lane.b32.xlu0 %v3144_v23, %s3465_s4 }
  0x74   :  { %85 = vrot.lane.b32.xlu1 %v3649_v26, %s3458_s24 }
  0x75   :  { %3225 = vrot.lane.b32.xlu0 %v3653_v27, %s3458_s24 }
  0x76   :  { %v3659_v28 = vpop.permute.xlu1 %2955 }
  0x77   :  { %v2946_v29 = vpop.permute.xlu0 %2945  ;;  %v2957_v32 = vunpack.i.l.bf16 %v3659_v28 }
  0x78   :  { %v2948_v30 = vunpack.i.h.bf16 %v2946_v29  ;;  %v2947_v31 = vunpack.i.l.bf16 %v2946_v29  ;;  %3235 = vrot.lane.b32.xlu1 %v3653_v27, %s3460_s26 }
  0x79   :  { %3230 = vrot.lane.b32.xlu0 %v3653_v27, %s3459_s25 }
  0x7a   :  { %v93_v33 = vsel %vm91_vm0, %v2947_v31, %v2948_v30  ;;  %v2961_v34 = vpop.permute.xlu1 %2960 }
  0x7b   :  { %v3668_v35 = vpack.c.bf16 %v93_v33, %v3502_v2  ;;  %v2951_v36 = vpop.permute.xlu0 %2950  ;;  %v2963_v37 = vunpack.i.h.bf16 %v2961_v34  ;;  %v2962_v38 = vunpack.i.l.bf16 %v2961_v34  ;;  %v3741_v33 = vld [vmem:[%s5079_s0 + $0x88] sm:$0xff]  ;;  %v3746_v34 = vld [vmem:[%s5079_s0 + $0x90] sm:$0xff] }
  0x7c   :  { %v2953_v39 = vunpack.i.h.bf16 %v2951_v36  ;;  %v2952_v40 = vunpack.i.l.bf16 %v2951_v36  ;;  %237 = vrot.lane.b32.xlu1 %v3649_v26, %s3460_s26 }
  0x7d   :  { %825 = vmatprep.subr.bf16.mxu0 %v3668_v35  ;;  %161 = vrot.lane.b32.xlu0 %v3649_v26, %s3459_s25  ;;  %v169_v49 = vsel %vm167_vm1, %v2962_v38, %v2963_v37 }
  0x7e   :  { %v94_v41 = vsel %vm91_vm0, %v2948_v30, %v2953_v39  ;;  %v95_v42 = vsel %vm91_vm0, %v2953_v39, %v2957_v32  ;;  %v92_v43 = vsel %vm91_vm0, %v2952_v40, %v2947_v31  ;;  %v2971_v44 = vpop.permute.xlu1 %2970 }
  0x7f   :  { %v3681_v45 = vpack.c.bf16 %v94_v41, %v3509_v4  ;;  %v3684_v46 = vpack.c.bf16 %v95_v42, %v3519_v6  ;;  %v3687_v47 = vpack.c.bf16 %v92_v43, %v3514_v5  ;;  %v2966_v48 = vpop.permute.xlu0 %2965  ;;  %v2972_v52 = vunpack.i.l.bf16 %v2971_v44 }
  0x80   :  { %v2968_v50 = vunpack.i.h.bf16 %v2966_v48  ;;  %v2967_v51 = vunpack.i.l.bf16 %v2966_v48  ;;  %3245 = vrot.lane.b32.xlu1 %v3653_v27, %s3462_s28  ;;  %v2973_v63 = vunpack.i.h.bf16 %v2971_v44  ;;  %v3269_v42 = vpack.i.bf16 %v3746_v34, %v3741_v33 }
  0x81   :  { %3240 = vrot.lane.b32.xlu0 %v3653_v27, %s3461_s27  ;;  %826 = vmatpush1.bf16.msra.mxu0 %v3687_v47  ;;  %v168_v59 = vsel %vm167_vm1, %v2972_v52, %v2962_v38 }
  0x82   :  { %v245_v53 = vsel %vm243_vm2, %v2967_v51, %v2968_v50  ;;  %866 = vmatprep.subr.bf16.mxu1 %v3684_v46  ;;  %v3697_v54 = vpop.permute.xlu1 %2980  ;;  %v170_v16 = vsel %vm167_vm1, %v2963_v37, %v2973_v63 }
  0x83   :  { %v3699_v55 = vpack.c.bf16 %v245_v53, %v169_v49  ;;  %867 = vmatpush1.bf16.msra.mxu1 %v3681_v45  ;;  %v2976_v56 = vpop.permute.xlu0 %2975  ;;  %v2982_v60 = vunpack.i.l.bf16 %v3697_v54 }
  0x84   :  { %v2977_v57 = vunpack.i.l.bf16 %v2976_v56  ;;  %389 = vrot.lane.b32.xlu1 %v3649_v26, %s3462_s28  ;;  %v2978_v58 = vunpack.i.h.bf16 %v2976_v56 }
  0x85   :  { %313 = vrot.lane.b32.xlu0 %v3649_v26, %s3461_s27  ;;  %827 = vmatprep.subr.bf16.mxu0 %v3699_v55  ;;  %v171_v8 = vsel %vm167_vm1, %v2973_v63, %v2982_v60 }
  0x86   :  { %v244_v61 = vsel %vm243_vm2, %v2977_v57, %v2967_v51  ;;  %v2991_v62 = vpop.permute.xlu1 %2990  ;;  %v246_v7 = vsel %vm243_vm2, %v2968_v50, %v2978_v58 }
  0x87   :  { %v3710_v2 = vpack.c.bf16 %v244_v61, %v168_v59  ;;  %v3712_v3 = vpop.permute.xlu0 %2985  ;;  %v2993_v4 = vunpack.i.h.bf16 %v2991_v62  ;;  %v2992_v5 = vunpack.i.l.bf16 %v2991_v62  ;;  %v3730_v23 = vpack.c.bf16 %v246_v7, %v170_v16 }
  0x88   :  { %v2987_v6 = vunpack.i.l.bf16 %v3712_v3  ;;  %3255 = vrot.lane.b32.xlu1 %v3653_v27, %s3464_s30 }
  0x89   :  { %3250 = vrot.lane.b32.xlu0 %v3653_v27, %s3463_s29  ;;  %828 = vmatpush1.bf16.msra.mxu0 %v3710_v2  ;;  %v321_v29 = vsel %vm319_vm3, %v2992_v5, %v2993_v4 }
  0x8a   :  { %v247_v9 = vsel %vm243_vm2, %v2978_v58, %v2987_v6  ;;  %v3001_v10 = vpop.permute.xlu1 %3000 }
  0x8b   :  { %v3728_v17 = vpack.c.bf16 %v247_v9, %v171_v8  ;;  %v2996_v22 = vpop.permute.xlu0 %2995  ;;  %v3002_v36 = vunpack.i.l.bf16 %v3001_v10  ;;  %v3003_v51 = vunpack.i.h.bf16 %v3001_v10 }
  0x8c   :  { %v2998_v30 = vunpack.i.h.bf16 %v2996_v22  ;;  %v2997_v31 = vunpack.i.l.bf16 %v2996_v22  ;;  %541 = vrot.lane.b32.xlu1 %v3649_v26, %s3464_s30 }
  0x8d   :  { %465 = vrot.lane.b32.xlu0 %v3649_v26, %s3463_s29  ;;  %868 = vmatprep.subr.bf16.mxu1 %v3728_v17  ;;  %v320_v44 = vsel %vm319_vm3, %v3002_v36, %v2992_v5  ;;  %v322_v62 = vsel %vm319_vm3, %v2993_v4, %v3003_v51 }
  0x8e   :  { %v397_v37 = vsel %vm395_vm4, %v2997_v31, %v2998_v30  ;;  %869 = vmatpush1.bf16.msra.mxu1 %v3730_v23  ;;  %v3750_v38 = vpop.permute.xlu1 %3010 }
  0x8f   :  { %v3752_v39 = vpack.c.bf16 %v397_v37, %v321_v29  ;;  %v3006_v40 = vpop.permute.xlu0 %3005  ;;  %v3012_v48 = vunpack.i.l.bf16 %v3750_v38 }
  0x90   :  { %v3007_v41 = vunpack.i.l.bf16 %v3006_v40  ;;  %617 = vrot.lane.b32.xlu1 %v3649_v26, %s3465_s4  ;;  %v3008_v43 = vunpack.i.h.bf16 %v3006_v40 }
  0x91   :  { %3260 = vrot.lane.b32.xlu0 %v3653_v27, %s3465_s4  ;;  %829 = vmatprep.subr.bf16.mxu0 %v3752_v39  ;;  %v323_v58 = vsel %vm319_vm3, %v3003_v51, %v3012_v48 }
  0x92   :  { %v396_v49 = vsel %vm395_vm4, %v3007_v41, %v2997_v31  ;;  %v3021_v50 = vpop.permute.xlu1 %3020  ;;  %v398_v27 = vsel %vm395_vm4, %v2998_v30, %v3008_v43 }
  0x93   :  { %v3764_v52 = vpack.c.bf16 %v396_v49, %v320_v44  ;;  %v3766_v26 = vpop.permute.xlu0 %3015  ;;  %v3023_v53 = vunpack.i.h.bf16 %v3021_v50  ;;  %v3022_v56 = vunpack.i.l.bf16 %v3021_v50  ;;  %v3782_v7 = vpack.c.bf16 %v398_v27, %v322_v62 }
  0x94   :  { %v3017_v57 = vunpack.i.l.bf16 %v3766_v26  ;;  %3270 = vrot.lane.b32.xlu1 %v3269_v42, %s3459_s25 }
  0x95   :  { %3265 = vrot.lane.b32.xlu0 %v3269_v42, %s3458_s24  ;;  %830 = vmatpush1.bf16.msra.mxu0 %v3764_v52  ;;  %v473_v8 = vsel %vm471_vm5, %v3022_v56, %v3023_v53 }
  0x96   :  { %v399_v59 = vsel %vm395_vm4, %v3008_v43, %v3017_v57  ;;  %v3031_v61 = vpop.permute.xlu1 %3030 }
  0x97   :  { %v3780_v63 = vpack.c.bf16 %v399_v59, %v323_v58  ;;  %v3026_v5 = vpop.permute.xlu0 %3025  ;;  %v3032_v16 = vunpack.i.l.bf16 %v3031_v61  ;;  %v3033_v44 = vunpack.i.h.bf16 %v3031_v61 }
  0x98   :  { %v3028_v9 = vunpack.i.h.bf16 %v3026_v5  ;;  %v3027_v10 = vunpack.i.l.bf16 %v3026_v5  ;;  %3280 = vrot.lane.b32.xlu1 %v3269_v42, %s3461_s27 }
  0x99   :  { %3275 = vrot.lane.b32.xlu0 %v3269_v42, %s3460_s26  ;;  %870 = vmatprep.subr.bf16.mxu1 %v3780_v63  ;;  %v472_v37 = vsel %vm471_vm5, %v3032_v16, %v3022_v56 }
  0x9a   :  { %v549_v22 = vsel %vm547_vm6, %v3027_v10, %v3028_v9  ;;  %871 = vmatpush1.bf16.msra.mxu1 %v3782_v7  ;;  %v3790_v4 = vpop.permute.xlu1 %3040 }
  0x9b   :  { %v3792_v29 = vpack.c.bf16 %v549_v22, %v473_v8  ;;  %v3036_v30 = vpop.permute.xlu0 %3035  ;;  %v5089_v40 = vunpack.i.l.bf16 %v3790_v4  ;;  %v474_v8 = vsel %vm471_vm5, %v3023_v53, %v3033_v44 }
  0x9c   :  { %v3037_v31 = vunpack.i.l.bf16 %v3036_v30  ;;  %3290 = vrot.lane.b32.xlu1 %v3269_v42, %s3463_s29  ;;  %v3038_v36 = vunpack.i.h.bf16 %v3036_v30 }
  0x9d   :  { %3285 = vrot.lane.b32.xlu0 %v3269_v42, %s3462_s28  ;;  %831 = vmatprep.subr.bf16.mxu0 %v3792_v29  ;;  %v475_v61 = vsel %vm471_vm5, %v3033_v44, %v5089_v40 }
  0x9e   :  { %v548_v41 = vsel %vm547_vm6, %v3037_v31, %v3027_v10  ;;  %v3051_v43 = vpop.permute.xlu1 %3050  ;;  %v550_v59 = vsel %vm547_vm6, %v3028_v9, %v3038_v36 }
  0x9f   :  { %v3800_v49 = vpack.c.bf16 %v548_v41, %v472_v37  ;;  %v3053_v50 = vunpack.i.h.bf16 %v3051_v43  ;;  %v3052_v51 = vunpack.i.l.bf16 %v3051_v43  ;;  %v3802_v27 = vpop.permute.xlu0 %3045  ;;  %v3822_v22 = vpack.c.bf16 %v550_v59, %v474_v8 }
  0xa0   :  { %v5085_v58 = vunpack.i.l.bf16 %v3802_v27  ;;  %3300 = vrot.lane.b32.xlu1 %v3269_v42, %s3465_s4  ;;  %v2958_v37 = vunpack.i.h.bf16 %v3659_v28 }
  0xa1   :  { %3295 = vrot.lane.b32.xlu0 %v3269_v42, %s3464_s30  ;;  %832 = vmatpush1.bf16.msra.mxu0 %v3800_v49  ;;  %v624_v56 = vsel %vm623_vm7, %v3052_v51, %v3053_v50 }
  0xa2   :  { %v551_v62 = vsel %vm547_vm6, %v3038_v36, %v5085_v58  ;;  %v3816_v5 = vpop.permute.xlu1 %3060  ;;  %v737_v16 = vpack.c.bf16 %v624_v56, %v624_v56  ;;  %v756_v36 = vld [vmem:[%s5080_s2] sm:$0x7] }
  0xa3   :  { %v3819_v10 = vpack.c.bf16 %v551_v62, %v475_v61  ;;  %v5083_v42 = vunpack.i.l.bf16 %v3816_v5  ;;  %v3056_v9 = vpop.permute.xlu0 %3055 }
  0xa4   :  { %v3058_v30 = vunpack.i.h.bf16 %v3056_v9  ;;  %v3057_v31 = vunpack.i.l.bf16 %v3056_v9  ;;  %v3843_v62 = vsel %vm767_vm8, %v737_v16, 0 }
  0xa5   :  { %872 = vmatprep.subr.bf16.mxu1 %v3819_v10  ;;  %760 = vperm.xlu0 %3304, %v756_v36  }
  0xa6   :  { %v627_v53 = vsel %vm623_vm7, %v3058_v30, %v5083_v42  ;;  %v625_v41 = vsel %vm623_vm7, %v3053_v50, %v3057_v31  ;;  %873 = vmatpush1.bf16.msra.mxu1 %v3822_v22  ;;  %v3834_v43 = vpop.permute.xlu1 %3070  ;;  %v626_v44 = vsel %vm623_vm7, %v3057_v31, %v3058_v30  ;;  %v96_v42 = vsel %vm91_vm0, %v2957_v32, %v2958_v37 }
  0xa7   :  { %v3837_v51 = vpack.c.bf16 %v627_v53, %v627_v53  ;;  %v3839_v59 = vpack.c.bf16 %v625_v41, %v625_v41  ;;  %v5084_v56 = vunpack.i.l.bf16 %v3834_v43  ;;  %v3066_v61 = vpop.permute.xlu0 %3065  ;;  %v739_v50 = vpack.c.bf16 %v626_v44, %v626_v44 }
  0xa8   :  { %v3068_v8 = vunpack.i.h.bf16 %v3066_v61  ;;  %v3067_v9 = vunpack.i.l.bf16 %v3066_v61  ;;  %v2983_v30 = vunpack.i.h.bf16 %v3697_v54  ;;  %v2988_v31 = vunpack.i.h.bf16 %v3712_v3 }
  0xa9   :  { %2744 = vmatprep.subr.msk.bf16.mxu0 %vm767_vm8, %v3839_v59  ;;  %2746 = vmatprep.subr.msk.bf16.mxu1 %vm767_vm8, %v3837_v51  ;;  %v3867_v44 = vsel %vm767_vm8, %v739_v50, 0 }
  0xaa   :  { %v99_v16 = vsel %vm91_vm0, %v3068_v8, %v5084_v56  ;;  %v97_v36 = vsel %vm91_vm0, %v2958_v37, %v3067_v9  ;;  %v98_v28 = vsel %vm91_vm0, %v3067_v9, %v3068_v8  ;;  %834 = vmatpush1.bf16.msra.mxu0 %v3843_v62  ;;  %v3081_v32 = vpop.permute.xlu1 %3080  ;;  %v3872_v56 = vld [vmem:[%s5081_s1] sm:$0x3]  ;;  %v3875_v37 = vpack.c.bf16 %v96_v42, %v3492_v0 }
  0xab   :  { %v3861_v53 = vpack.c.bf16 %v99_v16, %v3569_v14  ;;  %v3864_v41 = vpack.c.bf16 %v97_v36, %v3497_v1  ;;  %v3076_v61 = vpop.permute.xlu0 %3075  ;;  %v3878_v8 = vpack.c.bf16 %v98_v28, %v3564_v13  ;;  %875 = vmatpush1.bf16.msra.mxu1 %v3867_v44  ;;  %v3082_v1 = vunpack.i.l.bf16 %v3081_v32 }
  0xac   :  { %v3077_v14 = vunpack.i.l.bf16 %v3076_v61  ;;  %v172_v9 = vsel %vm167_vm1, %v2982_v60, %v2983_v30  ;;  %v248_v50 = vsel %vm243_vm2, %v2987_v6, %v2988_v31  ;;  %v3083_v16 = vunpack.i.h.bf16 %v3081_v32 }
  0xad   :  { %v3078_v36 = vunpack.i.h.bf16 %v3076_v61  ;;  %907 = vmatprep.subr.bf16.mxu0 %v3864_v41  ;;  %948 = vmatprep.subr.bf16.mxu1 %v3861_v53  ;;  %v249_v0 = vsel %vm243_vm2, %v2988_v31, %v3082_v1  ;;  %v3903_v42 = vpack.c.bf16 %v248_v50, %v172_v9  ;;  %v3018_v28 = vunpack.i.h.bf16 %v3766_v26 }
  0xae   :  { %v173_v13 = vsel %vm167_vm1, %v2983_v30, %v3077_v14  ;;  %2745 = vmatmul.mubr.msk.bf16.vlgmr.msra.gmra.mrb[0].mxu0 %vm763_vm9, %v3872_v56  ;;  %v3893_v54 = vpop.permute.xlu1 %3090  ;;  %2747 = vmatmul.mubr.msk.bf16.vlgmr.msra.gmra.mrb[0].mxu1 %vm763_vm9, %v3872_v56  ;;  %v3013_v30 = vunpack.i.h.bf16 %v3750_v38  ;;  %v250_v32 = vsel %vm243_vm2, %v3082_v1, %v3083_v16 }
  0xaf   :  { %v3895_v60 = vpack.c.bf16 %v249_v0, %v173_v13  ;;  %908 = vmatpush1.bf16.msra.mxu0 %v3875_v37  ;;  %v5086_v3 = vunpack.i.l.bf16 %v3893_v54  ;;  %v3901_v6 = vpop.permute.xlu0 %3085  ;;  %5257 = vst [vmem:[#allocation2_spill] sm:$0xff] %v3903_v42  ;;  %949 = vmatpush1.bf16.msra.mxu1 %v3878_v8  ;;  %v174_v61 = vsel %vm167_vm1, %v3077_v14, %v3078_v36 }
  0xb0   :  { %v5090_v31 = vunpack.i.l.bf16 %v3901_v6  ;;  %939 = vmatprep.mubr.bf16.mxu0 %v5087_v15  ;;  %980 = vmatprep.mubr.bf16.mxu1 %v5087_v15  ;;  %v324_v14 = vsel %vm319_vm3, %v3012_v48, %v3013_v30  ;;  %v400_v15 = vsel %vm395_vm4, %v3017_v57, %v3018_v28  ;;  %v3043_v57 = vunpack.i.h.bf16 %v3790_v4 }
  0xb1   :  { %v251_v0 = vsel %vm243_vm2, %v3083_v16, %v5086_v3  ;;  %909 = vmatprep.subr.bf16.mxu0 %v3895_v60  ;;  %v3926_v16 = vpack.c.bf16 %v250_v32, %v174_v61  ;;  %v3942_v26 = vpack.c.bf16 %v400_v15, %v324_v14 }
  0xb2   :  { %v175_v9 = vsel %vm167_vm1, %v3078_v36, %v5090_v31  ;;  %v3101_v50 = vpop.permute.xlu1 %3100 }
  0xb3   :  { %v3920_v13 = vpack.c.bf16 %v251_v0, %v175_v9  ;;  %910 = vmatpush1.bf16.msra.mxu0 %v3903_v42  ;;  %v3102_v1 = vunpack.i.l.bf16 %v3101_v50  ;;  %v3096_v58 = vpop.permute.xlu0 %3095  ;;  %5259 = vst [vmem:[#allocation4_spill] sm:$0xff] %v3926_v16  ;;  %v3103_v40 = vunpack.i.h.bf16 %v3101_v50  ;;  %5261 = vst [vmem:[#allocation6_spill] sm:$0xff] %v3942_v26 }
  0xb4   :  { %v3097_v3 = vunpack.i.l.bf16 %v3096_v58  ;;  %v3098_v0 = vunpack.i.h.bf16 %v3096_v58 }
  0xb5   :  { %5258 = vst [vmem:[#allocation3_spill] sm:$0xff] %v3920_v13  ;;  %v401_v36 = vsel %vm395_vm4, %v3018_v28, %v3102_v1  ;;  %950 = vmatprep.subr.bf16.mxu1 %v3920_v13  ;;  %v3048_v28 = vunpack.i.h.bf16 %v3802_v27 }
  0xb6   :  { %v325_v9 = vsel %vm319_vm3, %v3013_v30, %v3097_v3  ;;  %951 = vmatpush1.bf16.msra.mxu1 %v3926_v16  ;;  %v3935_v38 = vpop.permute.xlu1 %3110  ;;  %v402_v30 = vsel %vm395_vm4, %v3102_v1, %v3103_v40  ;;  %v326_v50 = vsel %vm319_vm3, %v3097_v3, %v3098_v0  ;;  %v5263_v1 = vunpack.i.l.bf16 %v3790_v4 }
  0xb7   :  { %v3937_v48 = vpack.c.bf16 %v401_v36, %v325_v9  ;;  %v5095_v32 = vunpack.i.l.bf16 %v3935_v38  ;;  %v3940_v61 = vpop.permute.xlu0 %3105  ;;  %v3962_v42 = vpack.c.bf16 %v402_v30, %v326_v50 }
  0xb8   :  { %v5100_v58 = vunpack.i.l.bf16 %v3940_v61  ;;  %v476_v3 = vsel %vm471_vm5, %v5263_v1, %v3043_v57 }
  0xb9   :  { %5260 = vst [vmem:[#allocation5_spill] sm:$0xff] %v3937_v48  ;;  %v403_v36 = vsel %vm395_vm4, %v3103_v40, %v5095_v32  ;;  %911 = vmatprep.subr.bf16.mxu0 %v3937_v48  ;;  %5264 = vst [vmem:[#allocation8_spill] sm:$0xff] %v3962_v42  ;;  %v5265_v32 = vunpack.i.l.bf16 %v3802_v27 }
  0xba   :  { %v327_v15 = vsel %vm319_vm3, %v3098_v0, %v5100_v58  ;;  %912 = vmatpush1.bf16.msra.mxu0 %v3942_v26  ;;  %v3121_v14 = vpop.permute.xlu1 %3120  ;;  %v3088_v26 = vunpack.i.h.bf16 %v3901_v6 }
  0xbb   :  { %v3957_v9 = vpack.c.bf16 %v403_v36, %v327_v15  ;;  %v3122_v31 = vunpack.i.l.bf16 %v3121_v14  ;;  %v3116_v16 = vpop.permute.xlu0 %3115  ;;  %v552_v48 = vsel %vm547_vm6, %v5265_v32, %v3048_v28  ;;  %v3123_v13 = vunpack.i.h.bf16 %v3121_v14 }
  0xbc   :  { %v3117_v40 = vunpack.i.l.bf16 %v3116_v16  ;;  %v3118_v58 = vunpack.i.h.bf16 %v3116_v16  ;;  %v3063_v36 = vunpack.i.h.bf16 %v3816_v5  ;;  %v3979_v32 = vpack.c.bf16 %v552_v48, %v476_v3 }
  0xbd   :  { %5262 = vst [vmem:[#allocation7_spill] sm:$0xff] %v3957_v9  ;;  %v553_v0 = vsel %vm547_vm6, %v3048_v28, %v3122_v31  ;;  %952 = vmatprep.subr.bf16.mxu1 %v3957_v9  ;;  %v554_v28 = vsel %vm547_vm6, %v3122_v31, %v3123_v13  ;;  %v5268_v3 = vunpack.i.l.bf16 %v3816_v5 }
  0xbe   :  { %v477_v15 = vsel %vm471_vm5, %v3043_v57, %v3117_v40  ;;  %953 = vmatpush1.bf16.msra.mxu1 %v3962_v42  ;;  %v3972_v4 = vpop.permute.xlu1 %3130  ;;  %5267 = vst [vmem:[#allocation10_spill] sm:$0xff] %v3979_v32  ;;  %v478_v14 = vsel %vm471_vm5, %v3117_v40, %v3118_v58  ;;  %v3073_v42 = vunpack.i.h.bf16 %v3834_v43 }
  0xbf   :  { %v3974_v30 = vpack.c.bf16 %v553_v0, %v477_v15  ;;  %v5101_v27 = vunpack.i.l.bf16 %v3972_v4  ;;  %v3977_v50 = vpop.permute.xlu0 %3125  ;;  %v628_v31 = vsel %vm623_vm7, %v5268_v3, %v3063_v36 }
  0xc0   :  { %v5106_v16 = vunpack.i.l.bf16 %v3977_v50 }
  0xc1   :  { %5266 = vst [vmem:[#allocation9_spill] sm:$0xff] %v3974_v30  ;;  %v555_v57 = vsel %vm547_vm6, %v3123_v13, %v5101_v27  ;;  %913 = vmatprep.subr.bf16.mxu0 %v3974_v30  ;;  %v4000_v13 = vpack.c.bf16 %v554_v28, %v478_v14 }
  0xc2   :  { %v479_v1 = vsel %vm471_vm5, %v3118_v58, %v5106_v16  ;;  %914 = vmatpush1.bf16.msra.mxu0 %v3979_v32  ;;  %v3992_v48 = vpop.permute.xlu1 %3140  ;;  %v741_v58 = vpack.c.bf16 %v628_v31, %v628_v31 }
  0xc3   :  { %v3997_v0 = vpack.c.bf16 %v555_v57, %v479_v1  ;;  %v5111_v40 = vunpack.i.l.bf16 %v3992_v48  ;;  %v3136_v15 = vpop.permute.xlu0 %3135  ;;  %5270 = vst [vmem:[#allocation12_spill] sm:$0xff] %v4000_v13 }
  0xc4   :  { %v3138_v27 = vunpack.i.h.bf16 %v3136_v15  ;;  %v3137_v30 = vunpack.i.l.bf16 %v3136_v15 }
  0xc5   :  { %5269 = vst [vmem:[#allocation11_spill] sm:$0xff] %v3997_v0  ;;  %954 = vmatprep.subr.bf16.mxu1 %v3997_v0 }
  0xc6   :  { %v631_v5 = vsel %vm623_vm7, %v3138_v27, %v5111_v40  ;;  %v629_v3 = vsel %vm623_vm7, %v3063_v36, %v3137_v30  ;;  %955 = vmatpush1.bf16.msra.mxu1 %v4000_v13  ;;  %v4009_v57 = vpop.permute.xlu1 %3150  ;;  %v630_v28 = vsel %vm623_vm7, %v3137_v30, %v3138_v27  ;;  %v5273_v40 = vunpack.i.l.bf16 %v3834_v43 }
  0xc7   :  { %v4012_v14 = vpack.c.bf16 %v631_v5, %v631_v5  ;;  %v4014_v1 = vpack.c.bf16 %v629_v3, %v629_v3  ;;  %v5118_v15 = vunpack.i.l.bf16 %v4009_v57  ;;  %v3146_v16 = vpop.permute.xlu0 %3145  ;;  %v743_v0 = vpack.c.bf16 %v630_v28, %v630_v28 }
  0xc8   :  { %v3148_v31 = vunpack.i.h.bf16 %v3146_v16  ;;  %v3147_v32 = vunpack.i.l.bf16 %v3146_v16  ;;  %v100_v36 = vsel %vm91_vm0, %v5273_v40, %v3073_v42  ;;  %v3093_v13 = vunpack.i.h.bf16 %v3893_v54 }
  0xc9   :  { %5271 = vst [vmem:[#allocation13_spill] sm:$0xff] %v4012_v14  ;;  %5272 = vst [vmem:[#allocation14_spill] sm:$0xff] %v4014_v1  ;;  %2748 = vmatprep.subr.msk.bf16.mxu0 %vm767_vm8, %v4014_v1  ;;  %2750 = vmatprep.subr.msk.bf16.mxu1 %vm767_vm8, %v4012_v14  ;;  %v4027_v30 = vsel %vm767_vm8, %v741_v58, 0  ;;  %v4042_v58 = vsel %vm767_vm8, %v743_v0, 0  ;;  %v4045_v14 = vpack.c.bf16 %v100_v36, %v3554_v11 }
  0xca   :  { %5274 = vst [vmem:[#allocation15_spill] sm:$0xff] %v4027_v30  ;;  %v103_v27 = vsel %vm91_vm0, %v3148_v31, %v5118_v15  ;;  %v101_v43 = vsel %vm91_vm0, %v3073_v42, %v3147_v32  ;;  %v102_v16 = vsel %vm91_vm0, %v3147_v32, %v3148_v31  ;;  %916 = vmatpush1.bf16.msra.mxu0 %v4027_v30  ;;  %v3161_v40 = vpop.permute.xlu1 %3160  ;;  %5277 = vst [vmem:[#allocation18_spill] sm:$0xff] %v4042_v58 }
  0xcb   :  { %v4036_v5 = vpack.c.bf16 %v103_v27, %v3612_v21  ;;  %v4039_v3 = vpack.c.bf16 %v101_v43, %v3559_v12  ;;  %v3156_v28 = vpop.permute.xlu0 %3155  ;;  %5278 = vst [vmem:[#allocation19_spill] sm:$0xff] %v4045_v14  ;;  %v4048_v42 = vpack.c.bf16 %v102_v16, %v3607_v20  ;;  %957 = vmatpush1.bf16.msra.mxu1 %v4042_v58  ;;  %v3162_v32 = vunpack.i.l.bf16 %v3161_v40 }
  0xcc   :  { %v3157_v31 = vunpack.i.l.bf16 %v3156_v28  ;;  %v5280_v21 = vunpack.i.l.bf16 %v3893_v54  ;;  %v5281_v12 = vunpack.i.l.bf16 %v3901_v6  ;;  %v3163_v43 = vunpack.i.h.bf16 %v3161_v40 }
  0xcd   :  { %5275 = vst [vmem:[#allocation16_spill] sm:$0xff] %v4036_v5  ;;  %5276 = vst [vmem:[#allocation17_spill] sm:$0xff] %v4039_v3  ;;  %v3158_v15 = vunpack.i.h.bf16 %v3156_v28  ;;  %989 = vmatprep.subr.bf16.mxu0 %v4039_v3  ;;  %1030 = vmatprep.subr.bf16.mxu1 %v4036_v5  ;;  %v253_v11 = vsel %vm243_vm2, %v3093_v13, %v3162_v32  ;;  %v5284_v28 = vmov 0  }
  0xce   :  { %5279 = vst [vmem:[#allocation20_spill] sm:$0xff] %v4048_v42  ;;  %v252_v27 = vsel %vm243_vm2, %v5280_v21, %v3093_v13  ;;  %v176_v0 = vsel %vm167_vm1, %v5281_v12, %v3088_v26  ;;  %v177_v20 = vsel %vm167_vm1, %v3088_v26, %v3157_v31  ;;  %2749 = vmatmul.mubr.msk.bf16.vlgmr.msra.gmra.mrb[4].mxu0 %vm763_vm9, %v3872_v56  ;;  %v4063_v54 = vpop.permute.xlu1 %3170  ;;  %v3113_v26 = vunpack.i.h.bf16 %v3935_v38 }
  0xcf   :  { %v4065_v36 = vpack.c.bf16 %v253_v11, %v177_v20  ;;  %2751 = vmatmul.mubr.msk.bf16.vlgmr.msra.gmra.mrb[4].mxu1 %vm763_vm9, %v3872_v56  ;;  %990 = vmatpush1.bf16.msra.mxu0 %v4045_v14  ;;  %v5125_v6 = vunpack.i.l.bf16 %v4063_v54  ;;  %v4071_v16 = vpop.permute.xlu0 %3165  ;;  %v4073_v40 = vpack.c.bf16 %v252_v27, %v176_v0  ;;  %v3108_v21 = vunpack.i.h.bf16 %v3940_v61 }
  0xd0   :  { %1031 = vmatpush1.bf16.msra.mxu1 %v4048_v42  ;;  %v5132_v13 = vunpack.i.l.bf16 %v4071_v16  ;;  %1021 = vmatprep.mubr.bf16.mxu0 %v5284_v28  ;;  %v254_v12 = vsel %vm243_vm2, %v3162_v32, %v3163_v43  ;;  %v178_v11 = vsel %vm167_vm1, %v3157_v31, %v3158_v15  ;;  %v5286_v31 = vunpack.i.l.bf16 %v3935_v38 }
  0xd1   :  { %5282 = vst [vmem:[#allocation21_spill] sm:$0xff] %v4065_v36  ;;  %5283 = vst [vmem:[#allocation22_spill] sm:$0xff] %v4073_v40  ;;  %v255_v20 = vsel %vm243_vm2, %v3163_v43, %v5125_v6  ;;  %991 = vmatprep.subr.bf16.mxu0 %v4065_v36  ;;  %1062 = vmatprep.mubr.bf16.mxu1 %v5284_v28  ;;  %v4096_v43 = vpack.c.bf16 %v254_v12, %v178_v11  ;;  %v5288_v36 = vunpack.i.l.bf16 %v3940_v61 }
  0xd2   :  { %v179_v27 = vsel %vm167_vm1, %v3158_v15, %v5132_v13  ;;  %v3181_v0 = vpop.permute.xlu1 %3180  ;;  %v404_v5 = vsel %vm395_vm4, %v5286_v31, %v3113_v26 }
  0xd3   :  { %v4090_v42 = vpack.c.bf16 %v255_v20, %v179_v27  ;;  %992 = vmatpush1.bf16.msra.mxu0 %v4073_v40  ;;  %v3182_v32 = vunpack.i.l.bf16 %v3181_v0  ;;  %v3176_v14 = vpop.permute.xlu0 %3175  ;;  %5287 = vst [vmem:[#allocation24_spill] sm:$0xff] %v4096_v43  ;;  %v328_v3 = vsel %vm319_vm3, %v5288_v36, %v3108_v21  ;;  %v3183_v58 = vunpack.i.h.bf16 %v3181_v0 }
  0xd4   :  { %v3177_v6 = vunpack.i.l.bf16 %v3176_v14  ;;  %v3178_v20 = vunpack.i.h.bf16 %v3176_v14  ;;  %v4112_v61 = vpack.c.bf16 %v404_v5, %v328_v3  ;;  %v3133_v36 = vunpack.i.h.bf16 %v3972_v4 }
  0xd5   :  { %5285 = vst [vmem:[#allocation23_spill] sm:$0xff] %v4090_v42  ;;  %v405_v15 = vsel %vm395_vm4, %v3113_v26, %v3182_v32  ;;  %1032 = vmatprep.subr.bf16.mxu1 %v4090_v42  ;;  %v3128_v26 = vunpack.i.h.bf16 %v3977_v50 }
  0xd6   :  { %v329_v27 = vsel %vm319_vm3, %v3108_v21, %v3177_v6  ;;  %1033 = vmatpush1.bf16.msra.mxu1 %v4096_v43  ;;  %v4105_v38 = vpop.permute.xlu1 %3190  ;;  %5290 = vst [vmem:[#allocation26_spill] sm:$0xff] %v4112_v61  ;;  %v406_v21 = vsel %vm395_vm4, %v3182_v32, %v3183_v58  ;;  %v330_v0 = vsel %vm319_vm3, %v3177_v6, %v3178_v20  ;;  %v5292_v32 = vunpack.i.l.bf16 %v3972_v4 }
  0xd7   :  { %v4107_v31 = vpack.c.bf16 %v405_v15, %v329_v27  ;;  %v5137_v12 = vunpack.i.l.bf16 %v4105_v38  ;;  %v4110_v11 = vpop.permute.xlu0 %3185  ;;  %v4132_v40 = vpack.c.bf16 %v406_v21, %v330_v0 }
  0xd8   :  { %v5142_v14 = vunpack.i.l.bf16 %v4110_v11  ;;  %v556_v6 = vsel %vm547_vm6, %v5292_v32, %v3133_v36 }
  0xd9   :  { %5289 = vst [vmem:[#allocation25_spill] sm:$0xff] %v4107_v31  ;;  %v407_v15 = vsel %vm395_vm4, %v3183_v58, %v5137_v12  ;;  %993 = vmatprep.subr.bf16.mxu0 %v4107_v31  ;;  %5293 = vst [vmem:[#allocation28_spill] sm:$0xff] %v4132_v40  ;;  %v5294_v12 = vunpack.i.l.bf16 %v3977_v50 }
  0xda   :  { %v331_v5 = vsel %vm319_vm3, %v3178_v20, %v5142_v14  ;;  %994 = vmatpush1.bf16.msra.mxu0 %v4112_v61  ;;  %v3201_v3 = vpop.permute.xlu1 %3200 }
  0xdb   :  { %v4127_v27 = vpack.c.bf16 %v407_v15, %v331_v5  ;;  %v3202_v13 = vunpack.i.l.bf16 %v3201_v3  ;;  %v3196_v43 = vpop.permute.xlu0 %3195  ;;  %v480_v31 = vsel %vm471_vm5, %v5294_v12, %v3128_v26  ;;  %v3203_v42 = vunpack.i.h.bf16 %v3201_v3 }
  0xdc   :  { %v3197_v58 = vunpack.i.l.bf16 %v3196_v43  ;;  %v3198_v14 = vunpack.i.h.bf16 %v3196_v43  ;;  %v3143_v15 = vunpack.i.h.bf16 %v3992_v48  ;;  %v4149_v12 = vpack.c.bf16 %v556_v6, %v480_v31 }
  0xdd   :  { %5291 = vst [vmem:[#allocation27_spill] sm:$0xff] %v4127_v27  ;;  %v557_v20 = vsel %vm547_vm6, %v3133_v36, %v3202_v13  ;;  %1034 = vmatprep.subr.bf16.mxu1 %v4127_v27  ;;  %v558_v36 = vsel %vm547_vm6, %v3202_v13, %v3203_v42  ;;  %v5297_v6 = vunpack.i.l.bf16 %v3992_v48 }
  0xde   :  { %v481_v5 = vsel %vm471_vm5, %v3128_v26, %v3197_v58  ;;  %1035 = vmatpush1.bf16.msra.mxu1 %v4132_v40  ;;  %v4142_v4 = vpop.permute.xlu1 %3210  ;;  %5296 = vst [vmem:[#allocation30_spill] sm:$0xff] %v4149_v12  ;;  %v482_v3 = vsel %vm471_vm5, %v3197_v58, %v3198_v14  ;;  %v3153_v40 = vunpack.i.h.bf16 %v4009_v57 }
  0xdf   :  { %v4144_v21 = vpack.c.bf16 %v557_v20, %v481_v5  ;;  %v5143_v50 = vunpack.i.l.bf16 %v4142_v4  ;;  %v4147_v0 = vpop.permute.xlu0 %3205  ;;  %v632_v13 = vsel %vm623_vm7, %v5297_v6, %v3143_v15 }
  0xe0   :  { %v5148_v43 = vunpack.i.l.bf16 %v4147_v0 }
  0xe1   :  { %5295 = vst [vmem:[#allocation29_spill] sm:$0xff] %v4144_v21  ;;  %v559_v26 = vsel %vm547_vm6, %v3203_v42, %v5143_v50  ;;  %995 = vmatprep.subr.bf16.mxu0 %v4144_v21  ;;  %v4170_v42 = vpack.c.bf16 %v558_v36, %v482_v3 }
  0xe2   :  { %v483_v32 = vsel %vm471_vm5, %v3198_v14, %v5148_v43  ;;  %996 = vmatpush1.bf16.msra.mxu0 %v4149_v12  ;;  %v4162_v31 = vpop.permute.xlu1 %3220  ;;  %v745_v14 = vpack.c.bf16 %v632_v13, %v632_v13 }
  0xe3   :  { %v4167_v20 = vpack.c.bf16 %v559_v26, %v483_v32  ;;  %v5153_v58 = vunpack.i.l.bf16 %v4162_v31  ;;  %v3216_v5 = vpop.permute.xlu0 %3215  ;;  %5299 = vst [vmem:[#allocation32_spill] sm:$0xff] %v4170_v42 }
  0xe4   :  { %v3218_v50 = vunpack.i.h.bf16 %v3216_v5  ;;  %v3217_v21 = vunpack.i.l.bf16 %v3216_v5 }
  0xe5   :  { %5298 = vst [vmem:[#allocation31_spill] sm:$0xff] %v4167_v20  ;;  %1036 = vmatprep.subr.bf16.mxu1 %v4167_v20  ;;  %v5302_v20 = vunpack.i.l.bf16 %v4009_v57 }
  0xe6   :  { %v635_v48 = vsel %vm623_vm7, %v3218_v50, %v5153_v58  ;;  %v633_v6 = vsel %vm623_vm7, %v3143_v15, %v3217_v21  ;;  %1037 = vmatpush1.bf16.msra.mxu1 %v4170_v42  ;;  %v4179_v26 = vpop.permute.xlu1 %85  ;;  %v634_v36 = vsel %vm623_vm7, %v3217_v21, %v3218_v50  ;;  %v3173_v15 = vunpack.i.h.bf16 %v4063_v54 }
  0xe7   :  { %v4182_v3 = vpack.c.bf16 %v635_v48, %v635_v48  ;;  %v4184_v32 = vpack.c.bf16 %v633_v6, %v633_v6  ;;  %v3226_v5 = vpop.permute.xlu0 %3225  ;;  %v747_v43 = vpack.c.bf16 %v634_v36, %v634_v36  ;;  %v104_v58 = vsel %vm91_vm0, %v5302_v20, %v3153_v40 }
  0xe8   :  { %v3228_v12 = vunpack.i.h.bf16 %v3226_v5  ;;  %v3227_v13 = vunpack.i.l.bf16 %v3226_v5  ;;  %v4195_v21 = vsel %vm767_vm8, %v745_v14, 0  ;;  %v3168_v48 = vunpack.i.h.bf16 %v4071_v16 }
  0xe9   :  { %5300 = vst [vmem:[#allocation33_spill] sm:$0xff] %v4182_v3  ;;  %5301 = vst [vmem:[#allocation34_spill] sm:$0xff] %v4184_v32  ;;  %2752 = vmatprep.subr.msk.bf16.mxu0 %vm767_vm8, %v4184_v32  ;;  %2754 = vmatprep.subr.msk.bf16.mxu1 %vm767_vm8, %v4182_v3  ;;  %v4198_v50 = vsel %vm767_vm8, %v747_v43, 0 }
  0xea   :  { %5303 = vst [vmem:[#allocation35_spill] sm:$0xff] %v4195_v21  ;;  %5304 = vst [vmem:[#allocation36_spill] sm:$0xff] %v4198_v50  ;;  %v107_v57 = vsel %vm91_vm0, %v3228_v12, %v4179_v26  ;;  %v105_v20 = vsel %vm91_vm0, %v3153_v40, %v3227_v13  ;;  %v106_v6 = vsel %vm91_vm0, %v3227_v13, %v3228_v12  ;;  %998 = vmatpush1.bf16.msra.mxu0 %v4195_v21  ;;  %v3236_v36 = vpop.permute.xlu1 %3235 }
  0xeb   :  { %1039 = vmatpush1.bf16.msra.mxu1 %v4198_v50  ;;  %v4208_v14 = vpack.c.bf16 %v107_v57, %v3642_v25  ;;  %v4211_v43 = vpack.c.bf16 %v105_v20, %v3602_v19  ;;  %v3238_v5 = vunpack.i.h.bf16 %v3236_v36  ;;  %v3231_v3 = vpop.permute.xlu0 %3230  ;;  %v4214_v32 = vpack.c.bf16 %v106_v6, %v3637_v24 }
  0xec   :  { %v3237_v42 = vunpack.i.l.bf16 %v3236_v36  ;;  %v3233_v40 = vunpack.i.h.bf16 %v3231_v3  ;;  %v3232_v61 = vunpack.i.l.bf16 %v3231_v3  ;;  %v4217_v12 = vpack.c.bf16 %v104_v58, %v3597_v18 }
  0xed   :  { %5305 = vst [vmem:[#allocation37_spill] sm:$0xff] %v4208_v14  ;;  %5306 = vst [vmem:[#allocation38_spill] sm:$0xff] %v4211_v43  ;;  %v5309_v13 = vunpack.i.l.bf16 %v4063_v54  ;;  %1071 = vmatprep.subr.bf16.mxu0 %v4211_v43  ;;  %1112 = vmatprep.subr.bf16.mxu1 %v4208_v14  ;;  %v5310_v19 = vunpack.i.l.bf16 %v4071_v16  ;;  %v3188_v20 = vunpack.i.h.bf16 %v4110_v11 }
  0xee   :  { %5307 = vst [vmem:[#allocation39_spill] sm:$0xff] %v4214_v32  ;;  %5308 = vst [vmem:[#allocation40_spill] sm:$0xff] %v4217_v12  ;;  %v257_v24 = vsel %vm243_vm2, %v3173_v15, %v3237_v42  ;;  %v258_v57 = vsel %vm243_vm2, %v3237_v42, %v3238_v5  ;;  %v181_v3 = vsel %vm167_vm1, %v3168_v48, %v3232_v61  ;;  %2753 = vmatmul.mubr.msk.bf16.vlgmr.msra.gmra.mrb[8].mxu0 %vm763_vm9, %v3872_v56  ;;  %v4232_v18 = vpop.permute.xlu1 %237 }
  0xef   :  { %v256_v50 = vsel %vm243_vm2, %v5309_v13, %v3173_v15  ;;  %v180_v25 = vsel %vm167_vm1, %v5310_v19, %v3168_v48  ;;  %v182_v54 = vsel %vm167_vm1, %v3232_v61, %v3233_v40  ;;  %v4235_v58 = vpack.c.bf16 %v257_v24, %v181_v3  ;;  %2755 = vmatmul.mubr.msk.bf16.vlgmr.msra.gmra.mrb[8].mxu1 %vm763_vm9, %v3872_v56  ;;  %v4242_v42 = vpop.permute.xlu0 %161 }
  0xf0   :  { %1072 = vmatpush1.bf16.msra.mxu0 %v4217_v12  ;;  %v259_v16 = vsel %vm243_vm2, %v3238_v5, %v4232_v18  ;;  %1113 = vmatpush1.bf16.msra.mxu1 %v4214_v32  ;;  %v183_v15 = vsel %vm167_vm1, %v3233_v40, %v4242_v42  ;;  %v4248_v61 = vpack.c.bf16 %v256_v50, %v180_v25  ;;  %v3193_v48 = vunpack.i.h.bf16 %v4105_v38 }
  0xf1   :  { %5311 = vst [vmem:[#allocation41_spill] sm:$0xff] %v4235_v58  ;;  %1103 = vmatprep.mubr.bf16.mxu0 %v5284_v28  ;;  %v4252_v6 = vpack.c.bf16 %v259_v16, %v183_v15  ;;  %1073 = vmatprep.subr.bf16.mxu0 %v4235_v58  ;;  %v4256_v36 = vpack.c.bf16 %v258_v57, %v182_v54  ;;  %v5315_v24 = vunpack.i.l.bf16 %v4105_v38  ;;  %v5316_v16 = vunpack.i.l.bf16 %v4110_v11 }
  0xf2   :  { %5312 = vst [vmem:[#allocation42_spill] sm:$0xff] %v4248_v61  ;;  %1144 = vmatprep.mubr.bf16.mxu1 %v5284_v28  ;;  %v3246_v5 = vpop.permute.xlu1 %3245 }
  0xf3   :  { %5313 = vst [vmem:[#allocation43_spill] sm:$0xff] %v4252_v6  ;;  %5314 = vst [vmem:[#allocation44_spill] sm:$0xff] %v4256_v36  ;;  %v3248_v40 = vunpack.i.h.bf16 %v3246_v5  ;;  %v3247_v13 = vunpack.i.l.bf16 %v3246_v5  ;;  %v3241_v19 = vpop.permute.xlu0 %3240  ;;  %1114 = vmatprep.subr.bf16.mxu1 %v4252_v6  ;;  %v408_v3 = vsel %vm395_vm4, %v5315_v24, %v3193_v48  ;;  %v332_v57 = vsel %vm319_vm3, %v5316_v16, %v3188_v20 }
  0xf4   :  { %1074 = vmatpush1.bf16.msra.mxu0 %v4248_v61  ;;  %v3243_v50 = vunpack.i.h.bf16 %v3241_v19  ;;  %v3242_v25 = vunpack.i.l.bf16 %v3241_v19  ;;  %1115 = vmatpush1.bf16.msra.mxu1 %v4256_v36  ;;  %v4279_v11 = vpack.c.bf16 %v408_v3, %v332_v57  ;;  %v3208_v16 = vunpack.i.h.bf16 %v4147_v0 }
  0xf5   :  { %v409_v54 = vsel %vm395_vm4, %v3193_v48, %v3247_v13  ;;  %v410_v61 = vsel %vm395_vm4, %v3247_v13, %v3248_v40 }
  0xf6   :  { %v333_v15 = vsel %vm319_vm3, %v3188_v20, %v3242_v25  ;;  %v4269_v5 = vpop.permute.xlu1 %389  ;;  %v334_v19 = vsel %vm319_vm3, %v3242_v25, %v3243_v50  ;;  %5318 = vst [vmem:[#allocation46_spill] sm:$0xff] %v4279_v11  ;;  %v3213_v20 = vunpack.i.h.bf16 %v4142_v4 }
  0xf7   :  { %v4273_v6 = vpack.c.bf16 %v409_v54, %v333_v15  ;;  %v411_v38 = vsel %vm395_vm4, %v3248_v40, %v4269_v5  ;;  %v4277_v24 = vpop.permute.xlu0 %313  ;;  %v4288_v13 = vpack.c.bf16 %v410_v61, %v334_v19  ;;  %v5321_v15 = vunpack.i.l.bf16 %v4142_v4 }
  0xf8   :  { %v335_v48 = vsel %vm319_vm3, %v3243_v50, %v4277_v24 }
  0xf9   :  { %5317 = vst [vmem:[#allocation45_spill] sm:$0xff] %v4273_v6  ;;  %v4285_v36 = vpack.c.bf16 %v411_v38, %v335_v48  ;;  %1075 = vmatprep.subr.bf16.mxu0 %v4273_v6  ;;  %5320 = vst [vmem:[#allocation48_spill] sm:$0xff] %v4288_v13  ;;  %v560_v38 = vsel %vm547_vm6, %v5321_v15, %v3213_v20  ;;  %v5322_v48 = vunpack.i.l.bf16 %v4147_v0 }
  0xfa   :  { %1076 = vmatpush1.bf16.msra.mxu0 %v4279_v11  ;;  %v3256_v40 = vpop.permute.xlu1 %3255  ;;  %v3223_v11 = vunpack.i.h.bf16 %v4162_v31 }
  0xfb   :  { %5319 = vst [vmem:[#allocation47_spill] sm:$0xff] %v4285_v36  ;;  %v3258_v25 = vunpack.i.h.bf16 %v3256_v40  ;;  %v3257_v54 = vunpack.i.l.bf16 %v3256_v40  ;;  %v3251_v3 = vpop.permute.xlu0 %3250  ;;  %1116 = vmatprep.subr.bf16.mxu1 %v4285_v36  ;;  %v484_v61 = vsel %vm471_vm5, %v5322_v48, %v3208_v16 }
  0xfc   :  { %v3253_v57 = vunpack.i.h.bf16 %v3251_v3  ;;  %v3252_v50 = vunpack.i.l.bf16 %v3251_v3  ;;  %1117 = vmatpush1.bf16.msra.mxu1 %v4288_v13  ;;  %v4312_v15 = vpack.c.bf16 %v560_v38, %v484_v61 }
  0xfd   :  { %v561_v19 = vsel %vm547_vm6, %v3213_v20, %v3257_v54  ;;  %v562_v3 = vsel %vm547_vm6, %v3257_v54, %v3258_v25 }
  0xfe   :  { %v485_v40 = vsel %vm471_vm5, %v3208_v16, %v3252_v50  ;;  %v4302_v6 = vpop.permute.xlu1 %541  ;;  %v486_v13 = vsel %vm471_vm5, %v3252_v50, %v3253_v57  ;;  %5324 = vst [vmem:[#allocation50_spill] sm:$0xff] %v4312_v15  ;;  %v5327_v50 = vunpack.i.l.bf16 %v4162_v31 }
  0xff   :  { %v4306_v36 = vpack.c.bf16 %v561_v19, %v485_v40  ;;  %v563_v4 = vsel %vm547_vm6, %v3258_v25, %v4302_v6  ;;  %v4310_v0 = vpop.permute.xlu0 %465  ;;  %v4319_v16 = vpack.c.bf16 %v562_v3, %v486_v13 }
 0x100   :  { %v487_v20 = vsel %vm471_vm5, %v3253_v57, %v4310_v0  ;;  %v636_v25 = vsel %vm623_vm7, %v5327_v50, %v3223_v11 }
 0x101   :  { %5323 = vst [vmem:[#allocation49_spill] sm:$0xff] %v4306_v36  ;;  %v4316_v48 = vpack.c.bf16 %v563_v4, %v487_v20  ;;  %1077 = vmatprep.subr.bf16.mxu0 %v4306_v36  ;;  %5326 = vst [vmem:[#allocation52_spill] sm:$0xff] %v4319_v16  ;;  %v749_v57 = vpack.c.bf16 %v636_v25, %v636_v25 }
 0x102   :  { %1078 = vmatpush1.bf16.msra.mxu0 %v4312_v15  ;;  %v4322_v54 = vpop.permute.xlu1 %617 }
 0x103   :  { %5325 = vst [vmem:[#allocation51_spill] sm:$0xff] %v4316_v48  ;;  %v3261_v19 = vpop.permute.xlu0 %3260  ;;  %1118 = vmatprep.subr.bf16.mxu1 %v4316_v48 }
 0x104   :  { %v3263_v38 = vunpack.i.h.bf16 %v3261_v19  ;;  %v3262_v61 = vunpack.i.l.bf16 %v3261_v19  ;;  %1119 = vmatpush1.bf16.msra.mxu1 %v4319_v16 }
 0x106   :  { %v639_v13 = vsel %vm623_vm7, %v3263_v38, %v4322_v54  ;;  %v637_v40 = vsel %vm623_vm7, %v3223_v11, %v3262_v61  ;;  %v3271_v3 = vpop.permute.xlu1 %3270  ;;  %v638_v4 = vsel %vm623_vm7, %v3262_v61, %v3263_v38  ;;  %v4342_v11 = vsel %vm767_vm8, %v749_v57, 0 }
 0x107   :  { %v4333_v20 = vpack.c.bf16 %v639_v13, %v639_v13  ;;  %v4335_v31 = vpack.c.bf16 %v637_v40, %v637_v40  ;;  %v3266_v50 = vpop.permute.xlu0 %3265  ;;  %v3273_v15 = vunpack.i.h.bf16 %v3271_v3  ;;  %v751_v19 = vpack.c.bf16 %v638_v4, %v638_v4  ;;  %5330 = vst [vmem:[#allocation55_spill] sm:$0xff] %v4342_v11  ;;  %v3457_v4 = vld [vmem:[%s5079_s0 + $0x80] sm:$0xff] }
 0x108   :  { %v3268_v48 = vunpack.i.h.bf16 %v3266_v50  ;;  %v3267_v36 = vunpack.i.l.bf16 %v3266_v50  ;;  %v3272_v25 = vunpack.i.l.bf16 %v3271_v3 }
 0x109   :  { %5328 = vst [vmem:[#allocation53_spill] sm:$0xff] %v4333_v20  ;;  %5329 = vst [vmem:[#allocation54_spill] sm:$0xff] %v4335_v31  ;;  %2756 = vmatprep.subr.msk.bf16.mxu0 %vm767_vm8, %v4335_v31  ;;  %2758 = vmatprep.subr.msk.bf16.mxu1 %vm767_vm8, %v4333_v20  ;;  %v4349_v13 = vsel %vm767_vm8, %v751_v19, 0  ;;  %v5190_v19 = vmov 0.0  }
 0x10a   :  { %v108_v38 = vsel %vm91_vm0, %v4179_v26, %v3267_v36  ;;  %v109_v61 = vsel %vm91_vm0, %v3267_v36, %v3268_v48  ;;  %1080 = vmatpush1.bf16.msra.mxu0 %v4342_v11  ;;  %5331 = vst [vmem:[#allocation56_spill] sm:$0xff] %v4349_v13  ;;  %v3281_v40 = vpop.permute.xlu1 %3280  ;;  %1121 = vmatpush1.bf16.msra.mxu1 %v4349_v13 }
 0x10b   :  { %v4354_v50 = vpack.c.bf16 %v108_v38, %v3457_v4  ;;  %v4357_v57 = vpack.c.bf16 %v109_v61, %v3741_v33  ;;  %v3276_v26 = vpop.permute.xlu0 %3275  ;;  %v185_v36 = vsel %vm167_vm1, %v3272_v25, %v3273_v15  ;;  %v3283_v3 = vunpack.i.h.bf16 %v3281_v40  ;;  %2877 = vmatprep.subr.bf16.mxu1 %v5190_v19 }
 0x10c   :  { %v3278_v11 = vunpack.i.h.bf16 %v3276_v26  ;;  %v3277_v20 = vunpack.i.l.bf16 %v3276_v26  ;;  %v4363_v31 = vpack.c.bf16 %v3268_v48, %v3746_v34  ;;  %v184_v33 = vsel %vm167_vm1, %v4242_v42, %v3272_v25 }
 0x10d   :  { %5332 = vst [vmem:[#allocation57_spill] sm:$0xff] %v4354_v50  ;;  %5333 = vst [vmem:[#allocation58_spill] sm:$0xff] %v4357_v57  ;;  %2757 = vmatmul.mubr.msk.bf16.vlgmr.msra.gmra.mrb[12].mxu0 %vm763_vm9, %v3872_v56  ;;  %1153 = vmatprep.subr.bf16.mxu0 %v4357_v57  ;;  %v3282_v38 = vunpack.i.l.bf16 %v3281_v40 }
 0x10e   :  { %5334 = vst [vmem:[#allocation59_spill] sm:$0xff] %v4363_v31  ;;  %v260_v61 = vsel %vm243_vm2, %v4232_v18, %v3277_v20  ;;  %v261_v4 = vsel %vm243_vm2, %v3277_v20, %v3278_v11  ;;  %2759 = vmatmul.mubr.msk.bf16.vlgmr.msra.gmra.mrb[12].mxu1 %vm763_vm9, %v3872_v56  ;;  %1154 = vmatpush1.bf16.msra.mxu0 %v4354_v50  ;;  %v3291_v34 = vpop.permute.xlu1 %3290  ;;  %v5337_v20 = vmov 0.0  }
 0x10f   :  { %v4376_v48 = vpack.c.bf16 %v260_v61, %v184_v33  ;;  %v4378_v26 = vpack.c.bf16 %v261_v4, %v185_v36  ;;  %2878 = vmatpush3.bf16.msra.mxu1 %v4363_v31  ;;  %v3286_v19 = vpop.permute.xlu0 %3285  ;;  %1185 = vmatprep.mubr.bf16.mxu0 %v5284_v28  ;;  %v337_v42 = vsel %vm319_vm3, %v3282_v38, %v3283_v3  ;;  %v3293_v33 = vunpack.i.h.bf16 %v3291_v34 }
 0x110   :  { %v3288_v18 = vunpack.i.h.bf16 %v3286_v19  ;;  %v3287_v25 = vunpack.i.l.bf16 %v3286_v19  ;;  %2879 = vmatprep.subr.bf16.mxu1 %v5337_v20  ;;  %2887 = vmatprep.mubr.msk.bf16.mxu1 %vm3468_vm10, %v5337_v20  ;;  %v4386_v40 = vpack.c.bf16 %v3278_v11, %v3273_v15  ;;  %v336_v36 = vsel %vm319_vm3, %v4277_v24, %v3282_v38 }
 0x111   :  { %5335 = vst [vmem:[#allocation60_spill] sm:$0xff] %v4376_v48  ;;  %5336 = vst [vmem:[#allocation61_spill] sm:$0xff] %v4378_v26  ;;  %1155 = vmatprep.subr.bf16.mxu0 %v4378_v26  ;;  %v3292_v61 = vunpack.i.l.bf16 %v3291_v34 }
 0x112   :  { %5338 = vst [vmem:[#allocation62_spill] sm:$0xff] %v4386_v40  ;;  %v412_v4 = vsel %vm395_vm4, %v4269_v5, %v3287_v25  ;;  %v413_v19 = vsel %vm395_vm4, %v3287_v25, %v3288_v18  ;;  %1156 = vmatpush1.bf16.msra.mxu0 %v4376_v48  ;;  %v3301_v31 = vpop.permute.xlu1 %3300  ;;  %v4402_v38 = vpack.c.bf16 %v3288_v18, %v3283_v3 }
 0x113   :  { %v4395_v50 = vpack.c.bf16 %v412_v4, %v336_v36  ;;  %v4397_v57 = vpack.c.bf16 %v413_v19, %v337_v42  ;;  %2880 = vmatpush3.bf16.msra.mxu1 %v4386_v40  ;;  %v3303_v15 = vunpack.i.h.bf16 %v3301_v31  ;;  %v3302_v11 = vunpack.i.l.bf16 %v3301_v31  ;;  %v3296_v26 = vpop.permute.xlu0 %3295  ;;  %v5348_v19 = vld [vmem:[#allocation4_spill] sm:$0xff] }
 0x114   :  { %v3298_v13 = vunpack.i.h.bf16 %v3296_v26  ;;  %v3297_v24 = vunpack.i.l.bf16 %v3296_v26  ;;  %2881 = vmatprep.subr.bf16.mxu1 %v5337_v20  ;;  %v489_v5 = vsel %vm471_vm5, %v3292_v61, %v3293_v33  ;;  %5341 = vst [vmem:[#allocation65_spill] sm:$0xff] %v4402_v38  ;;  %v488_v42 = vsel %vm471_vm5, %v4310_v0, %v3292_v61 }
 0x115   :  { %5339 = vst [vmem:[#allocation63_spill] sm:$0xff] %v4395_v50  ;;  %5340 = vst [vmem:[#allocation64_spill] sm:$0xff] %v4397_v57  ;;  %v641_v34 = vsel %vm623_vm7, %v3302_v11, %v3303_v15  ;;  %1157 = vmatprep.subr.bf16.mxu0 %v4397_v57  ;;  %v640_v31 = vsel %vm623_vm7, %v4322_v54, %v3302_v11  ;;  %v755_v3 = vpack.c.bf16 %v3303_v15, %v3303_v15  ;;  %v5349_v15 = vld [vmem:[#allocation5_spill] sm:$0xff]  ;;  %v5350_v11 = vld [vmem:[#allocation6_spill] sm:$0xff] }
 0x116   :  { %v564_v25 = vsel %vm547_vm6, %v4302_v6, %v3297_v24  ;;  %1158 = vmatpush1.bf16.msra.mxu0 %v4395_v50  ;;  %v565_v26 = vsel %vm547_vm6, %v3297_v24, %v3298_v13  ;;  %v4417_v18 = vpack.c.bf16 %v641_v34, %v641_v34  ;;  %v4422_v0 = vpack.c.bf16 %v3298_v13, %v3293_v33  ;;  %v5346_v13 = vld [vmem:[#allocation3_spill] sm:$0xff]  ;;  %v5347_v33 = vld [vmem:[#allocation2_spill] sm:$0xff]  ;;  %v5351_v24 = vld [vmem:[#allocation8_spill] sm:$0xff] }
 0x117   :  { %v4414_v36 = vpack.c.bf16 %v564_v25, %v488_v42  ;;  %2882 = vmatpush3.bf16.msra.mxu1 %v4402_v38  ;;  %v4419_v4 = vpack.c.bf16 %v565_v26, %v489_v5  ;;  %v753_v6 = vpack.c.bf16 %v640_v31, %v640_v31  ;;  %v4431_v54 = vsel %vm767_vm8, %v755_v3, 0  ;;  %v5352_v5 = vld [vmem:[#allocation9_spill] sm:$0xff]  ;;  %v5353_v34 = vld [vmem:[#allocation11_spill] sm:$0xff]  ;;  %v5354_v42 = vld [vmem:[#allocation10_spill] sm:$0xff] }
 0x118   :  { %5343 = vst [vmem:[#allocation67_spill] sm:$0xff] %v4417_v18  ;;  %2883 = vmatprep.subr.bf16.mxu1 %v5337_v20  ;;  %5345 = vst [vmem:[#allocation69_spill] sm:$0xff] %v4422_v0  ;;  %v5355_v25 = vld [vmem:[#allocation12_spill] sm:$0xff]  ;;  %v5356_v31 = vld [vmem:[#allocation13_spill] sm:$0xff] }
 0x119   :  { %5342 = vst [vmem:[#allocation66_spill] sm:$0xff] %v4414_v36  ;;  %5344 = vst [vmem:[#allocation68_spill] sm:$0xff] %v4419_v4  ;;  %1159 = vmatprep.subr.bf16.mxu0 %v4419_v4  ;;  %v4434_v61 = vsel %vm767_vm8, %v753_v6, 0  ;;  %v5357_v26 = vld [vmem:[#allocation18_spill] sm:$0xff]  ;;  %v5358_v3 = vld [vmem:[#allocation17_spill] sm:$0xff] }
 0x11a   :  { %1160 = vmatpush1.bf16.msra.mxu0 %v4414_v36  ;;  %v5359_v6 = vld [vmem:[#allocation16_spill] sm:$0xff] }
 0x11b   :  { %2884 = vmatpush3.bf16.msra.mxu1 %v4422_v0  ;;  %2760 = vmatprep.subr.msk.bf16.mxu0 %vm767_vm8, %v4417_v18 }
 0x11c   :  { %2885 = vmatprep.subr.bf16.mxu1 %v5337_v20 }
 0x11e   :  { %1162 = vmatpush1.bf16.msra.mxu0 %v4434_v61 }
 0x11f   :  { %2886 = vmatpush3.bf16.msra.mxu1 %v4431_v54  ;;  %1305 = vmatprep.subr.bf16.mxu0 %v3668_v35 }
 0x120   :  { %1346 = vmatprep.subr.bf16.mxu1 %v3684_v46 }
 0x121   :  { %2761 = vmatmul.mubr.msk.bf16.vlgmr.msra.gmra.mrb[16].mxu0 %vm763_vm9, %v3872_v56 }
 0x122   :  { %2888 = vmatmul.mubr.msk.bf16.vlgmr.msra.gmra.mrb[16].mxu1 %vm763_vm9, %v3872_v56  ;;  %1306 = vmatpush1.bf16.msra.mxu0 %v3687_v47  ;;  %v4469_v56 = vld [vmem:[%s5081_s1 + $0x2] sm:$0x3] }
 0x123   :  { %1347 = vmatpush1.bf16.msra.mxu1 %v3681_v45  ;;  %1307 = vmatprep.subr.bf16.mxu0 %v3699_v55 }
 0x124   :  { %1348 = vmatprep.subr.bf16.mxu1 %v3728_v17  ;;  %1337 = vmatprep.mubr.bf16.mxu0 %v5284_v28 }
 0x125   :  { %1378 = vmatprep.mubr.bf16.mxu1 %v5284_v28 }
 0x126   :  { %1308 = vmatpush1.bf16.msra.mxu0 %v3710_v2 }
 0x127   :  { %1349 = vmatpush1.bf16.msra.mxu1 %v3730_v23  ;;  %1309 = vmatprep.subr.bf16.mxu0 %v3752_v39 }
 0x128   :  { %1350 = vmatprep.subr.bf16.mxu1 %v3780_v63 }
 0x12a   :  { %1310 = vmatpush1.bf16.msra.mxu0 %v3764_v52 }
 0x12b   :  { %1351 = vmatpush1.bf16.msra.mxu1 %v3782_v7  ;;  %1311 = vmatprep.subr.bf16.mxu0 %v3792_v29 }
 0x12c   :  { %1352 = vmatprep.subr.bf16.mxu1 %v3819_v10 }
 0x12e   :  { %1312 = vmatpush1.bf16.msra.mxu0 %v3800_v49 }
 0x12f   :  { %1353 = vmatpush1.bf16.msra.mxu1 %v3822_v22  ;;  %2764 = vmatprep.subr.msk.bf16.mxu0 %vm767_vm8, %v3839_v59 }
 0x130   :  { %2766 = vmatprep.subr.msk.bf16.mxu1 %vm767_vm8, %v3837_v51 }
 0x132   :  { %1314 = vmatpush1.bf16.msra.mxu0 %v3843_v62 }
 0x133   :  { %1355 = vmatpush1.bf16.msra.mxu1 %v3867_v44  ;;  %1387 = vmatprep.subr.bf16.mxu0 %v3864_v41 }
 0x134   :  { %1428 = vmatprep.subr.bf16.mxu1 %v3861_v53 }
 0x135   :  { %2765 = vmatmul.mubr.msk.bf16.vlgmr.msra.gmra.mrb[20].mxu0 %vm763_vm9, %v4469_v56 }
 0x136   :  { %2767 = vmatmul.mubr.msk.bf16.vlgmr.msra.gmra.mrb[20].mxu1 %vm763_vm9, %v4469_v56  ;;  %1388 = vmatpush1.bf16.msra.mxu0 %v3875_v37 }
 0x137   :  { %1429 = vmatpush1.bf16.msra.mxu1 %v3878_v8  ;;  %1389 = vmatprep.subr.bf16.mxu0 %v3895_v60 }
 0x138   :  { %1430 = vmatprep.subr.bf16.mxu1 %v5346_v13  ;;  %1419 = vmatprep.mubr.bf16.mxu0 %v5284_v28 }
 0x139   :  { %1460 = vmatprep.mubr.bf16.mxu1 %v5284_v28 }
 0x13a   :  { %1390 = vmatpush1.bf16.msra.mxu0 %v5347_v33 }
 0x13b   :  { %1431 = vmatpush1.bf16.msra.mxu1 %v5348_v19  ;;  %1391 = vmatprep.subr.bf16.mxu0 %v5349_v15 }
 0x13c   :  { %1432 = vmatprep.subr.bf16.mxu1 %v3957_v9 }
 0x13e   :  { %1392 = vmatpush1.bf16.msra.mxu0 %v5350_v11 }
 0x13f   :  { %1433 = vmatpush1.bf16.msra.mxu1 %v5351_v24  ;;  %1393 = vmatprep.subr.bf16.mxu0 %v5352_v5  ;;  %v5373_v5 = vld [vmem:[#allocation34_spill] sm:$0xff] }
 0x140   :  { %1434 = vmatprep.subr.bf16.mxu1 %v5353_v34  ;;  %v5372_v34 = vld [vmem:[#allocation32_spill] sm:$0xff] }
 0x142   :  { %1394 = vmatpush1.bf16.msra.mxu0 %v5354_v42  ;;  %v5362_v42 = vld [vmem:[#allocation21_spill] sm:$0xff] }
 0x143   :  { %1435 = vmatpush1.bf16.msra.mxu1 %v5355_v25  ;;  %2768 = vmatprep.subr.msk.bf16.mxu0 %vm767_vm8, %v4014_v1  ;;  %v5360_v25 = vld [vmem:[#allocation19_spill] sm:$0xff]  ;;  %v5361_v1 = vld [vmem:[#allocation20_spill] sm:$0xff] }
 0x144   :  { %2770 = vmatprep.subr.msk.bf16.mxu1 %vm767_vm8, %v5356_v31  ;;  %v5363_v31 = vld [vmem:[#allocation23_spill] sm:$0xff] }
 0x146   :  { %1396 = vmatpush1.bf16.msra.mxu0 %v4027_v30  ;;  %v5367_v30 = vld [vmem:[#allocation26_spill] sm:$0xff] }
 0x147   :  { %1437 = vmatpush1.bf16.msra.mxu1 %v5357_v26  ;;  %1469 = vmatprep.subr.bf16.mxu0 %v5358_v3  ;;  %v5364_v3 = vld [vmem:[#allocation22_spill] sm:$0xff]  ;;  %v5366_v26 = vld [vmem:[#allocation25_spill] sm:$0xff] }
 0x148   :  { %1510 = vmatprep.subr.bf16.mxu1 %v5359_v6  ;;  %v5365_v6 = vld [vmem:[#allocation24_spill] sm:$0xff] }
 0x149   :  { %2769 = vmatmul.mubr.msk.bf16.vlgmr.msra.gmra.mrb[24].mxu0 %vm763_vm9, %v4469_v56 }
 0x14a   :  { %2771 = vmatmul.mubr.msk.bf16.vlgmr.msra.gmra.mrb[24].mxu1 %vm763_vm9, %v4469_v56  ;;  %1470 = vmatpush1.bf16.msra.mxu0 %v5360_v25  ;;  %v5368_v25 = vld [vmem:[#allocation28_spill] sm:$0xff] }
 0x14b   :  { %1511 = vmatpush1.bf16.msra.mxu1 %v5361_v1  ;;  %1471 = vmatprep.subr.bf16.mxu0 %v5362_v42  ;;  %v5369_v1 = vld [vmem:[#allocation29_spill] sm:$0xff]  ;;  %v5370_v42 = vld [vmem:[#allocation31_spill] sm:$0xff] }
 0x14c   :  { %1512 = vmatprep.subr.bf16.mxu1 %v5363_v31  ;;  %1501 = vmatprep.mubr.bf16.mxu0 %v5284_v28  ;;  %v5371_v31 = vld [vmem:[#allocation30_spill] sm:$0xff] }
 0x14d   :  { %1542 = vmatprep.mubr.bf16.mxu1 %v5284_v28 }
 0x14e   :  { %1472 = vmatpush1.bf16.msra.mxu0 %v5364_v3 }
 0x14f   :  { %1513 = vmatpush1.bf16.msra.mxu1 %v5365_v6  ;;  %1473 = vmatprep.subr.bf16.mxu0 %v5366_v26  ;;  %v5374_v6 = vld [vmem:[#allocation33_spill] sm:$0xff] }
 0x150   :  { %1514 = vmatprep.subr.bf16.mxu1 %v4127_v27  ;;  %v5375_v27 = vld [vmem:[#allocation36_spill] sm:$0xff] }
 0x152   :  { %1474 = vmatpush1.bf16.msra.mxu0 %v5367_v30 }
 0x153   :  { %1515 = vmatpush1.bf16.msra.mxu1 %v5368_v25  ;;  %1475 = vmatprep.subr.bf16.mxu0 %v5369_v1 }
 0x154   :  { %1516 = vmatprep.subr.bf16.mxu1 %v5370_v42 }
 0x156   :  { %1476 = vmatpush1.bf16.msra.mxu0 %v5371_v31 }
 0x157   :  { %1517 = vmatpush1.bf16.msra.mxu1 %v5372_v34  ;;  %2772 = vmatprep.subr.msk.bf16.mxu0 %vm767_vm8, %v5373_v5  ;;  %v5381_v5 = vld [vmem:[#allocation46_spill] sm:$0xff] }
 0x158   :  { %2774 = vmatprep.subr.msk.bf16.mxu1 %vm767_vm8, %v5374_v6  ;;  %v5376_v6 = vld [vmem:[#allocation43_spill] sm:$0xff]  ;;  %v5386_v34 = vld [vmem:[#allocation54_spill] sm:$0xff] }
 0x15a   :  { %1478 = vmatpush1.bf16.msra.mxu0 %v4195_v21  ;;  %v5380_v21 = vld [vmem:[#allocation47_spill] sm:$0xff] }
 0x15b   :  { %1519 = vmatpush1.bf16.msra.mxu1 %v5375_v27  ;;  %1551 = vmatprep.subr.bf16.mxu0 %v4211_v43  ;;  %v5377_v43 = vld [vmem:[#allocation42_spill] sm:$0xff]  ;;  %v5379_v27 = vld [vmem:[#allocation45_spill] sm:$0xff] }
 0x15c   :  { %1592 = vmatprep.subr.bf16.mxu1 %v4208_v14  ;;  %v5378_v14 = vld [vmem:[#allocation44_spill] sm:$0xff] }
 0x15d   :  { %2773 = vmatmul.mubr.msk.bf16.vlgmr.msra.gmra.mrb[28].mxu0 %vm763_vm9, %v4469_v56 }
 0x15e   :  { %2775 = vmatmul.mubr.msk.bf16.vlgmr.msra.gmra.mrb[28].mxu1 %vm763_vm9, %v4469_v56  ;;  %1552 = vmatpush1.bf16.msra.mxu0 %v4217_v12  ;;  %v5382_v12 = vld [vmem:[#allocation48_spill] sm:$0xff] }
 0x15f   :  { %1593 = vmatpush1.bf16.msra.mxu1 %v4214_v32  ;;  %1553 = vmatprep.subr.bf16.mxu0 %v4235_v58  ;;  %v5383_v32 = vld [vmem:[#allocation49_spill] sm:$0xff]  ;;  %v5384_v58 = vld [vmem:[#allocation51_spill] sm:$0xff] }
 0x160   :  { %1594 = vmatprep.subr.bf16.mxu1 %v5376_v6  ;;  %1583 = vmatprep.mubr.bf16.mxu0 %v5284_v28  ;;  %v5385_v6 = vld [vmem:[#allocation50_spill] sm:$0xff] }
 0x161   :  { %1624 = vmatprep.mubr.bf16.mxu1 %v5284_v28 }
 0x162   :  { %1554 = vmatpush1.bf16.msra.mxu0 %v5377_v43 }
 0x163   :  { %1595 = vmatpush1.bf16.msra.mxu1 %v5378_v14  ;;  %1555 = vmatprep.subr.bf16.mxu0 %v5379_v27  ;;  %v5387_v14 = vld [vmem:[#allocation53_spill] sm:$0xff]  ;;  %v5388_v27 = vld [vmem:[#allocation55_spill] sm:$0xff] }
 0x164   :  { %1596 = vmatprep.subr.bf16.mxu1 %v5380_v21  ;;  %v5389_v21 = vld [vmem:[#allocation56_spill] sm:$0xff] }
 0x166   :  { %1556 = vmatpush1.bf16.msra.mxu0 %v5381_v5  ;;  %v5390_v5 = vld [vmem:[#allocation58_spill] sm:$0xff] }
 0x167   :  { %1597 = vmatpush1.bf16.msra.mxu1 %v5382_v12  ;;  %1557 = vmatprep.subr.bf16.mxu0 %v5383_v32 }
 0x168   :  { %1598 = vmatprep.subr.bf16.mxu1 %v5384_v58 }
 0x16a   :  { %1558 = vmatpush1.bf16.msra.mxu0 %v5385_v6  ;;  %v5393_v6 = vld [vmem:[#allocation61_spill] sm:$0xff] }
 0x16b   :  { %1599 = vmatpush1.bf16.msra.mxu1 %v4319_v16  ;;  %2776 = vmatprep.subr.msk.bf16.mxu0 %vm767_vm8, %v5386_v34  ;;  %v5391_v16 = vld [vmem:[#allocation57_spill] sm:$0xff]  ;;  %v5392_v34 = vld [vmem:[#allocation59_spill] sm:$0xff] }
 0x16c   :  { %2778 = vmatprep.subr.msk.bf16.mxu1 %vm767_vm8, %v5387_v14 }
 0x16e   :  { %1560 = vmatpush1.bf16.msra.mxu0 %v5388_v27 }
 0x16f   :  { %1601 = vmatpush1.bf16.msra.mxu1 %v5389_v21  ;;  %1633 = vmatprep.subr.bf16.mxu0 %v5390_v5 }
 0x170   :  { %2891 = vmatprep.subr.bf16.mxu1 %v5337_v20 }
 0x171   :  { %2777 = vmatmul.mubr.msk.bf16.vlgmr.msra.gmra.mrb[32].mxu0 %vm763_vm9, %v4469_v56 }
 0x172   :  { %2779 = vmatmul.mubr.msk.bf16.vlgmr.msra.gmra.mrb[32].mxu1 %vm763_vm9, %v4469_v56  ;;  %1634 = vmatpush1.bf16.msra.mxu0 %v5391_v16 }
 0x173   :  { %2892 = vmatpush3.bf16.msra.mxu1 %v5392_v34  ;;  %1635 = vmatprep.subr.bf16.mxu0 %v5393_v6  ;;  %v4578_v6 = vpop.permute.xlu0 %760 }
 0x174   :  { %2893 = vmatprep.subr.bf16.mxu1 %v5337_v20  ;;  %1665 = vmatprep.mubr.bf16.mxu0 %v5284_v28 }
 0x175   :  { %2901 = vmatprep.mubr.msk.bf16.mxu1 %vm3468_vm10, %v5337_v20 }
 0x176   :  { %1636 = vmatpush1.bf16.msra.mxu0 %v4376_v48 }
 0x177   :  { %2894 = vmatpush3.bf16.msra.mxu1 %v4386_v40  ;;  %1637 = vmatprep.subr.bf16.mxu0 %v4397_v57 }
 0x178   :  { %2895 = vmatprep.subr.bf16.mxu1 %v5337_v20 }
 0x17a   :  { %1638 = vmatpush1.bf16.msra.mxu0 %v4395_v50 }
 0x17b   :  { %2896 = vmatpush3.bf16.msra.mxu1 %v4402_v38  ;;  %1639 = vmatprep.subr.bf16.mxu0 %v4419_v4 }
 0x17c   :  { %2897 = vmatprep.subr.bf16.mxu1 %v5337_v20 }
 0x17e   :  { %1640 = vmatpush1.bf16.msra.mxu0 %v4414_v36 }
 0x17f   :  { %2898 = vmatpush3.bf16.msra.mxu1 %v4422_v0  ;;  %2780 = vmatprep.subr.msk.bf16.mxu0 %vm767_vm8, %v4417_v18 }
 0x180   :  { %2899 = vmatprep.subr.bf16.mxu1 %v5337_v20 }
 0x181   :  { %v859_v57 = vpop.f32.mrb[0].mxu0  ;;  %v900_v38 = vpop.f32.mrb[0].mxu1 }
 0x182   :  { %v861_v40 = vpop.f32.mrb[1].mxu0  ;;  %v860_v50 = vadd.f32 %v859_v57, %v4578_v6  ;;  %1642 = vmatpush1.bf16.msra.mxu0 %v4434_v61  ;;  %v901_v0 = vadd.f32 %v900_v38, %v4578_v6  ;;  %v902_v48 = vpop.f32.mrb[1].mxu1 }
 0x183   :  { %2900 = vmatpush3.bf16.msra.mxu1 %v4431_v54  ;;  %v863_v4 = vpop.f32.mrb[2].mxu0  ;;  %v862_v36 = vadd.f32 %v861_v40, %v4578_v6  ;;  %1785 = vmatprep.subr.bf16.mxu0 %v3668_v35  ;;  %v903_v34 = vadd.f32 %v902_v48, %v4578_v6  ;;  %v904_v57 = vpop.f32.mrb[2].mxu1 }
 0x184   :  { %1826 = vmatprep.subr.bf16.mxu1 %v3684_v46  ;;  %3305 = vtanh.f32 %v860_v50  ;;  %v864_v18 = vpop.f32.mrb[3].mxu0  ;;  %v905_v16 = vpop.f32.mrb[3].mxu1 }
 0x185   :  { %3307 = vtanh.f32 %v862_v36  ;;  %2781 = vmatmul.mubr.msk.bf16.vlgmr.msra.gmra.mrb[36].mxu0 %vm763_vm9, %v4469_v56  ;;  %v4626_v18 = vld [vmem:[%s5081_s1 + $0x4] sm:$0x3] }
 0x186   :  { %2902 = vmatmul.mubr.msk.bf16.vlgmr.msra.gmra.mrb[36].mxu1 %vm763_vm9, %v4469_v56  ;;  %3309 = vtanh.f32 %v901_v0  ;;  %1786 = vmatpush1.bf16.msra.mxu0 %v3687_v47 }
 0x187   :  { %1827 = vmatpush1.bf16.msra.mxu1 %v3681_v45  ;;  %3311 = vtanh.f32 %v903_v34  ;;  %1787 = vmatprep.subr.bf16.mxu0 %v3699_v55 }
 0x188   :  { %1828 = vmatprep.subr.bf16.mxu1 %v3728_v17  ;;  %1817 = vmatprep.mubr.bf16.mxu0 %v5284_v28 }
 0x189   :  { %1858 = vmatprep.mubr.bf16.mxu1 %v5284_v28 }
 0x18a   :  { %1788 = vmatpush1.bf16.msra.mxu0 %v3710_v2 }
 0x18b   :  { %1829 = vmatpush1.bf16.msra.mxu1 %v3730_v23  ;;  %1789 = vmatprep.subr.bf16.mxu0 %v3752_v39 }
 0x18c   :  { %1830 = vmatprep.subr.bf16.mxu1 %v3780_v63 }
 0x18e   :  { %v3306_v16 = vpop.eup %3305  ;;  %1790 = vmatpush1.bf16.msra.mxu0 %v3764_v52 }
 0x18f   :  { %v3308_v50 = vpop.eup %3307  ;;  %1831 = vmatpush1.bf16.msra.mxu1 %v3782_v7  ;;  %1791 = vmatprep.subr.bf16.mxu0 %v3792_v29 }
 0x190   :  { %v3310_v48 = vpop.eup %3309  ;;  %1832 = vmatprep.subr.bf16.mxu1 %v3819_v10  ;;  %v1271_v40 = vcombine.low %v3306_v16, %v3308_v50 }
 0x191   :  { %v3312_v38 = vpop.eup %3311 }
 0x192   :  { %1289 = vst [vmem:[%s5082_s3] sm:$0x77] %v1271_v40  ;;  %v1272_v36 = vcombine.low %v3310_v48, %v3312_v38  ;;  %1792 = vmatpush1.bf16.msra.mxu0 %v3800_v49  ;;  %v5394_v40 = vld [vmem:[#allocation9_spill] sm:$0xff]  ;;  %v5395_v38 = vld [vmem:[#allocation11_spill] sm:$0xff] }
 0x193   :  { %1833 = vmatpush1.bf16.msra.mxu1 %v3822_v22  ;;  %2794 = vmatprep.subr.msk.bf16.mxu0 %vm767_vm8, %v3839_v59 }
 0x194   :  { %2796 = vmatprep.subr.msk.bf16.mxu1 %vm767_vm8, %v3837_v51  ;;  %1290 = vst [vmem:[%s5082_s3 + $0x8] sm:$0x77] %v1272_v36 }
 0x196   :  { %1794 = vmatpush1.bf16.msra.mxu0 %v3843_v62 }
 0x197   :  { %1835 = vmatpush1.bf16.msra.mxu1 %v3867_v44  ;;  %1867 = vmatprep.subr.bf16.mxu0 %v3864_v41 }
 0x198   :  { %1908 = vmatprep.subr.bf16.mxu1 %v3861_v53 }
 0x199   :  { %2795 = vmatmul.mubr.msk.bf16.vlgmr.msra.gmra.mrb[40].mxu0 %vm763_vm9, %v4626_v18 }
 0x19a   :  { %2797 = vmatmul.mubr.msk.bf16.vlgmr.msra.gmra.mrb[40].mxu1 %vm763_vm9, %v4626_v18  ;;  %1868 = vmatpush1.bf16.msra.mxu0 %v3875_v37 }
 0x19b   :  { %1909 = vmatpush1.bf16.msra.mxu1 %v3878_v8  ;;  %1869 = vmatprep.subr.bf16.mxu0 %v3895_v60 }
 0x19c   :  { %1910 = vmatprep.subr.bf16.mxu1 %v5346_v13  ;;  %1899 = vmatprep.mubr.bf16.mxu0 %v5284_v28 }
 0x19d   :  { %1940 = vmatprep.mubr.bf16.mxu1 %v5284_v28 }
 0x19e   :  { %1870 = vmatpush1.bf16.msra.mxu0 %v5347_v33 }
 0x19f   :  { %1911 = vmatpush1.bf16.msra.mxu1 %v5348_v19  ;;  %1871 = vmatprep.subr.bf16.mxu0 %v5349_v15 }
 0x1a0   :  { %1912 = vmatprep.subr.bf16.mxu1 %v3957_v9 }
 0x1a1   :  { %v941_v4 = vpop.f32.mrb[4].mxu0 }
 0x1a2   :  { %v942_v0 = vadd.f32 %v941_v4, %v4578_v6  ;;  %v943_v56 = vpop.f32.mrb[5].mxu0  ;;  %v982_v34 = vpop.f32.mrb[4].mxu1  ;;  %1872 = vmatpush1.bf16.msra.mxu0 %v5350_v11  ;;  %v5396_v11 = vld [vmem:[#allocation10_spill] sm:$0xff] }
 0x1a3   :  { %1913 = vmatpush1.bf16.msra.mxu1 %v5351_v24  ;;  %v944_v57 = vadd.f32 %v943_v56, %v4578_v6  ;;  %v945_v16 = vpop.f32.mrb[6].mxu0  ;;  %v983_v50 = vadd.f32 %v982_v34, %v4578_v6  ;;  %v984_v48 = vpop.f32.mrb[5].mxu1  ;;  %1873 = vmatprep.subr.bf16.mxu0 %v5394_v40  ;;  %v5397_v24 = vld [vmem:[#allocation12_spill] sm:$0xff]  ;;  %v5398_v56 = vld [vmem:[#allocation14_spill] sm:$0xff]  ;;  %v5399_v34 = vld [vmem:[#allocation13_spill] sm:$0xff] }
 0x1a4   :  { %1914 = vmatprep.subr.bf16.mxu1 %v5395_v38  ;;  %3313 = vtanh.f32 %v942_v0  ;;  %v946_v36 = vpop.f32.mrb[7].mxu0  ;;  %v985_v4 = vadd.f32 %v984_v48, %v4578_v6  ;;  %v986_v9 = vpop.f32.mrb[6].mxu1  ;;  %v5400_v16 = vld [vmem:[#allocation15_spill] sm:$0xff]  ;;  %v5401_v0 = vld [vmem:[#allocation18_spill] sm:$0xff]  ;;  %v5402_v48 = vld [vmem:[#allocation17_spill] sm:$0xff] }
 0x1a5   :  { %3315 = vtanh.f32 %v944_v57  ;;  %v987_v15 = vpop.f32.mrb[7].mxu1  ;;  %v5403_v9 = vld [vmem:[#allocation16_spill] sm:$0xff] }
 0x1a6   :  { %3317 = vtanh.f32 %v983_v50  ;;  %1874 = vmatpush1.bf16.msra.mxu0 %v5396_v11  ;;  %v5404_v50 = vld [vmem:[#allocation19_spill] sm:$0xff]  ;;  %v5405_v36 = vld [vmem:[#allocation20_spill] sm:$0xff] }
 0x1a7   :  { %1915 = vmatpush1.bf16.msra.mxu1 %v5397_v24  ;;  %3319 = vtanh.f32 %v985_v4  ;;  %2798 = vmatprep.subr.msk.bf16.mxu0 %vm767_vm8, %v5398_v56 }
 0x1a8   :  { %2800 = vmatprep.subr.msk.bf16.mxu1 %vm767_vm8, %v5399_v34 }
 0x1aa   :  { %1876 = vmatpush1.bf16.msra.mxu0 %v5400_v16  ;;  %v5406_v16 = vld [vmem:[#allocation21_spill] sm:$0xff] }
 0x1ab   :  { %1917 = vmatpush1.bf16.msra.mxu1 %v5401_v0  ;;  %1949 = vmatprep.subr.bf16.mxu0 %v5402_v48  ;;  %v5407_v0 = vld [vmem:[#allocation23_spill] sm:$0xff] }
 0x1ac   :  { %1990 = vmatprep.subr.bf16.mxu1 %v5403_v9 }
 0x1ad   :  { %2799 = vmatmul.mubr.msk.bf16.vlgmr.msra.gmra.mrb[44].mxu0 %vm763_vm9, %v4626_v18 }
 0x1ae   :  { %v3314_v15 = vpop.eup %3313  ;;  %2801 = vmatmul.mubr.msk.bf16.vlgmr.msra.gmra.mrb[44].mxu1 %vm763_vm9, %v4626_v18  ;;  %1950 = vmatpush1.bf16.msra.mxu0 %v5404_v50  ;;  %v5408_v50 = vld [vmem:[#allocation24_spill] sm:$0xff] }
 0x1af   :  { %v3316_v57 = vpop.eup %3315  ;;  %1991 = vmatpush1.bf16.msra.mxu1 %v5405_v36  ;;  %1951 = vmatprep.subr.bf16.mxu0 %v5406_v16  ;;  %v5409_v16 = vld [vmem:[#allocation27_spill] sm:$0xff] }
 0x1b0   :  { %v3318_v4 = vpop.eup %3317  ;;  %1992 = vmatprep.subr.bf16.mxu1 %v5407_v0  ;;  %v1273_v48 = vcombine.low %v3314_v15, %v3316_v57  ;;  %1981 = vmatprep.mubr.bf16.mxu0 %v5284_v28  ;;  %v5412_v15 = vld [vmem:[#allocation33_spill] sm:$0xff]  ;;  %v5413_v57 = vld [vmem:[#allocation35_spill] sm:$0xff] }
 0x1b1   :  { %v3320_v34 = vpop.eup %3319  ;;  %2022 = vmatprep.mubr.bf16.mxu1 %v5284_v28 }
 0x1b2   :  { %1291 = vst [vmem:[%s5082_s3 + $0x10] sm:$0x77] %v1273_v48  ;;  %v1274_v9 = vcombine.low %v3318_v4, %v3320_v34  ;;  %1952 = vmatpush1.bf16.msra.mxu0 %v5364_v3  ;;  %v5410_v34 = vld [vmem:[#allocation32_spill] sm:$0xff]  ;;  %v5411_v48 = vld [vmem:[#allocation34_spill] sm:$0xff] }
 0x1b3   :  { %1993 = vmatpush1.bf16.msra.mxu1 %v5408_v50  ;;  %1953 = vmatprep.subr.bf16.mxu0 %v5366_v26  ;;  %v5415_v4 = vld [vmem:[#allocation38_spill] sm:$0xff] }
 0x1b4   :  { %1994 = vmatprep.subr.bf16.mxu1 %v5409_v16  ;;  %1292 = vst [vmem:[%s5082_s3 + $0x18] sm:$0x77] %v1274_v9  ;;  %v5414_v9 = vld [vmem:[#allocation36_spill] sm:$0xff]  ;;  %v5420_v16 = vld [vmem:[#allocation43_spill] sm:$0xff] }
 0x1b6   :  { %1954 = vmatpush1.bf16.msra.mxu0 %v5367_v30  ;;  %v5419_v30 = vld [vmem:[#allocation41_spill] sm:$0xff] }
 0x1b7   :  { %1995 = vmatpush1.bf16.msra.mxu1 %v5368_v25  ;;  %1955 = vmatprep.subr.bf16.mxu0 %v5369_v1  ;;  %v5416_v25 = vld [vmem:[#allocation37_spill] sm:$0xff] }
 0x1b8   :  { %1996 = vmatprep.subr.bf16.mxu1 %v5370_v42 }
 0x1ba   :  { %1956 = vmatpush1.bf16.msra.mxu0 %v5371_v31 }
 0x1bb   :  { %1997 = vmatpush1.bf16.msra.mxu1 %v5410_v34  ;;  %2802 = vmatprep.subr.msk.bf16.mxu0 %vm767_vm8, %v5411_v48 }
 0x1bc   :  { %2804 = vmatprep.subr.msk.bf16.mxu1 %vm767_vm8, %v5412_v15  ;;  %v5417_v15 = vld [vmem:[#allocation40_spill] sm:$0xff] }
 0x1be   :  { %1958 = vmatpush1.bf16.msra.mxu0 %v5413_v57  ;;  %v5418_v57 = vld [vmem:[#allocation39_spill] sm:$0xff] }
 0x1bf   :  { %1999 = vmatpush1.bf16.msra.mxu1 %v5414_v9  ;;  %2031 = vmatprep.subr.bf16.mxu0 %v5415_v4 }
 0x1c0   :  { %2072 = vmatprep.subr.bf16.mxu1 %v5416_v25 }
 0x1c1   :  { %v1023_v1 = vpop.f32.mrb[8].mxu0  ;;  %2803 = vmatmul.mubr.msk.bf16.vlgmr.msra.gmra.mrb[48].mxu0 %vm763_vm9, %v4626_v18 }
 0x1c2   :  { %2805 = vmatmul.mubr.msk.bf16.vlgmr.msra.gmra.mrb[48].mxu1 %vm763_vm9, %v4626_v18  ;;  %v1024_v48 = vadd.f32 %v1023_v1, %v4578_v6  ;;  %v1025_v34 = vpop.f32.mrb[9].mxu0  ;;  %v1064_v31 = vpop.f32.mrb[8].mxu1  ;;  %2032 = vmatpush1.bf16.msra.mxu0 %v5417_v15 }
 0x1c3   :  { %2073 = vmatpush1.bf16.msra.mxu1 %v5418_v57  ;;  %v1026_v9 = vadd.f32 %v1025_v34, %v4578_v6  ;;  %v1027_v4 = vpop.f32.mrb[10].mxu0  ;;  %v1065_v25 = vadd.f32 %v1064_v31, %v4578_v6  ;;  %v1066_v42 = vpop.f32.mrb[9].mxu1  ;;  %2033 = vmatprep.subr.bf16.mxu0 %v5419_v30  ;;  %v5421_v31 = vld [vmem:[#allocation44_spill] sm:$0xff]  ;;  %v5422_v34 = vld [vmem:[#allocation45_spill] sm:$0xff] }
 0x1c4   :  { %2074 = vmatprep.subr.bf16.mxu1 %v5420_v16  ;;  %3321 = vtanh.f32 %v1024_v48  ;;  %v1028_v26 = vpop.f32.mrb[11].mxu0  ;;  %v1067_v1 = vadd.f32 %v1066_v42, %v4578_v6  ;;  %v1068_v50 = vpop.f32.mrb[10].mxu1  ;;  %2063 = vmatprep.mubr.bf16.mxu0 %v5284_v28  ;;  %v5423_v4 = vld [vmem:[#allocation47_spill] sm:$0xff] }
 0x1c5   :  { %3323 = vtanh.f32 %v1026_v9  ;;  %v1069_v3 = vpop.f32.mrb[11].mxu1  ;;  %2104 = vmatprep.mubr.bf16.mxu1 %v5284_v28  ;;  %v5424_v26 = vld [vmem:[#allocation46_spill] sm:$0xff]  ;;  %v5426_v50 = vld [vmem:[#allocation52_spill] sm:$0xff] }
 0x1c6   :  { %3325 = vtanh.f32 %v1065_v25  ;;  %2034 = vmatpush1.bf16.msra.mxu0 %v5377_v43  ;;  %v5425_v25 = vld [vmem:[#allocation50_spill] sm:$0xff] }
 0x1c7   :  { %2075 = vmatpush1.bf16.msra.mxu1 %v5421_v31  ;;  %3327 = vtanh.f32 %v1067_v1  ;;  %2035 = vmatprep.subr.bf16.mxu0 %v5422_v34  ;;  %v5427_v1 = vld [vmem:[#allocation54_spill] sm:$0xff] }
 0x1c8   :  { %2076 = vmatprep.subr.bf16.mxu1 %v5423_v4 }
 0x1ca   :  { %2036 = vmatpush1.bf16.msra.mxu0 %v5424_v26 }
 0x1cb   :  { %2077 = vmatpush1.bf16.msra.mxu1 %v5382_v12  ;;  %2037 = vmatprep.subr.bf16.mxu0 %v5383_v32  ;;  %v5439_v32 = vld [vmem:[#allocation67_spill] sm:$0xff] }
 0x1cc   :  { %2078 = vmatprep.subr.bf16.mxu1 %v5384_v58 }
 0x1ce   :  { %v3322_v42 = vpop.eup %3321  ;;  %2038 = vmatpush1.bf16.msra.mxu0 %v5425_v25 }
 0x1cf   :  { %v3324_v3 = vpop.eup %3323  ;;  %2079 = vmatpush1.bf16.msra.mxu1 %v5426_v50  ;;  %2806 = vmatprep.subr.msk.bf16.mxu0 %vm767_vm8, %v5427_v1  ;;  %v5437_v50 = vld [vmem:[#allocation66_spill] sm:$0xff] }
 0x1d0   :  { %v3326_v48 = vpop.eup %3325  ;;  %v1275_v9 = vcombine.low %v3322_v42, %v3324_v3  ;;  %2808 = vmatprep.subr.msk.bf16.mxu1 %vm767_vm8, %v5387_v14  ;;  %v5428_v42 = vld [vmem:[#allocation57_spill] sm:$0xff] }
 0x1d1   :  { %v3328_v26 = vpop.eup %3327  ;;  %v5430_v3 = vld [vmem:[#allocation61_spill] sm:$0xff] }
 0x1d2   :  { %1293 = vst [vmem:[%s5082_s3 + $0x20] sm:$0x77] %v1275_v9  ;;  %v1276_v58 = vcombine.low %v3326_v48, %v3328_v26  ;;  %2040 = vmatpush1.bf16.msra.mxu0 %v5388_v27  ;;  %v5429_v26 = vld [vmem:[#allocation59_spill] sm:$0xff]  ;;  %v5432_v48 = vld [vmem:[#allocation62_spill] sm:$0xff]  ;;  %v5433_v9 = vld [vmem:[#allocation64_spill] sm:$0xff] }
 0x1d3   :  { %2081 = vmatpush1.bf16.msra.mxu1 %v5389_v21  ;;  %2113 = vmatprep.subr.bf16.mxu0 %v5390_v5 }
 0x1d4   :  { %1294 = vst [vmem:[%s5082_s3 + $0x28] sm:$0x77] %v1276_v58  ;;  %2905 = vmatprep.subr.bf16.mxu1 %v5337_v20  ;;  %v5431_v58 = vld [vmem:[#allocation60_spill] sm:$0xff] }
 0x1d5   :  { %2807 = vmatmul.mubr.msk.bf16.vlgmr.msra.gmra.mrb[52].mxu0 %vm763_vm9, %v4626_v18 }
 0x1d6   :  { %2809 = vmatmul.mubr.msk.bf16.vlgmr.msra.gmra.mrb[52].mxu1 %vm763_vm9, %v4626_v18  ;;  %2114 = vmatpush1.bf16.msra.mxu0 %v5428_v42  ;;  %v5434_v42 = vld [vmem:[#allocation63_spill] sm:$0xff] }
 0x1d7   :  { %2906 = vmatpush3.bf16.msra.mxu1 %v5429_v26  ;;  %2115 = vmatprep.subr.bf16.mxu0 %v5430_v3  ;;  %v5435_v26 = vld [vmem:[#allocation65_spill] sm:$0xff]  ;;  %v5436_v3 = vld [vmem:[#allocation68_spill] sm:$0xff] }
 0x1d8   :  { %2907 = vmatprep.subr.bf16.mxu1 %v5337_v20  ;;  %2145 = vmatprep.mubr.bf16.mxu0 %v5284_v28 }
 0x1d9   :  { %2915 = vmatprep.mubr.msk.bf16.mxu1 %vm3468_vm10, %v5337_v20 }
 0x1da   :  { %2116 = vmatpush1.bf16.msra.mxu0 %v5431_v58 }
 0x1db   :  { %2908 = vmatpush3.bf16.msra.mxu1 %v5432_v48  ;;  %2117 = vmatprep.subr.bf16.mxu0 %v5433_v9 }
 0x1dc   :  { %2909 = vmatprep.subr.bf16.mxu1 %v5337_v20 }
 0x1de   :  { %2118 = vmatpush1.bf16.msra.mxu0 %v5434_v42 }
 0x1df   :  { %2910 = vmatpush3.bf16.msra.mxu1 %v5435_v26  ;;  %2119 = vmatprep.subr.bf16.mxu0 %v5436_v3  ;;  %v5438_v26 = vld [vmem:[#allocation69_spill] sm:$0xff] }
 0x1e0   :  { %v1105_v5 = vpop.f32.mrb[12].mxu0  ;;  %2911 = vmatprep.subr.bf16.mxu1 %v5337_v20 }
 0x1e1   :  { %v1106_v21 = vadd.f32 %v1105_v5, %v4578_v6  ;;  %v1107_v27 = vpop.f32.mrb[13].mxu0  ;;  %v1146_v14 = vpop.f32.mrb[12].mxu1 }
 0x1e2   :  { %v1108_v58 = vadd.f32 %v1107_v27, %v4578_v6  ;;  %v1147_v48 = vadd.f32 %v1146_v14, %v4578_v6  ;;  %v1109_v9 = vpop.f32.mrb[14].mxu0  ;;  %v1148_v1 = vpop.f32.mrb[13].mxu1  ;;  %2120 = vmatpush1.bf16.msra.mxu0 %v5437_v50 }
 0x1e3   :  { %3329 = vtanh.f32 %v1106_v21  ;;  %v1149_v42 = vadd.f32 %v1148_v1, %v4578_v6  ;;  %2912 = vmatpush3.bf16.msra.mxu1 %v5438_v26  ;;  %v1110_v3 = vpop.f32.mrb[15].mxu0  ;;  %v1150_v25 = vpop.f32.mrb[14].mxu1  ;;  %2810 = vmatprep.subr.msk.bf16.mxu0 %vm767_vm8, %v5439_v32  ;;  %v5446_v9 = vld [vmem:[#allocation18_spill] sm:$0xff] }
 0x1e4   :  { %3331 = vtanh.f32 %v1108_v58  ;;  %v1151_v5 = vpop.f32.mrb[15].mxu1  ;;  %2913 = vmatprep.subr.bf16.mxu1 %v5337_v20  ;;  %v5444_v3 = vld [vmem:[#allocation13_spill] sm:$0xff] }
 0x1e5   :  { %3333 = vtanh.f32 %v1147_v48  ;;  %v5445_v48 = vld [vmem:[#allocation15_spill] sm:$0xff]  ;;  %v5450_v5 = vld [vmem:[#allocation21_spill] sm:$0xff] }
 0x1e6   :  { %3335 = vtanh.f32 %v1149_v42  ;;  %2122 = vmatpush1.bf16.msra.mxu0 %v4434_v61 }
 0x1e7   :  { %2914 = vmatpush3.bf16.msra.mxu1 %v4431_v54  ;;  %2265 = vmatprep.subr.bf16.mxu0 %v3668_v35 }
 0x1e8   :  { %2306 = vmatprep.subr.bf16.mxu1 %v3684_v46 }
 0x1e9   :  { %2811 = vmatmul.mubr.msk.bf16.vlgmr.msra.gmra.mrb[56].mxu0 %vm763_vm9, %v4626_v18 }
 0x1ea   :  { %2916 = vmatmul.mubr.msk.bf16.vlgmr.msra.gmra.mrb[56].mxu1 %vm763_vm9, %v4626_v18  ;;  %2266 = vmatpush1.bf16.msra.mxu0 %v3687_v47 }
 0x1eb   :  { %2307 = vmatpush1.bf16.msra.mxu1 %v3681_v45  ;;  %2267 = vmatprep.subr.bf16.mxu0 %v3699_v55 }
 0x1ec   :  { %2308 = vmatprep.subr.bf16.mxu1 %v3728_v17  ;;  %2297 = vmatprep.mubr.bf16.mxu0 %v5284_v28 }
 0x1ed   :  { %v3330_v27 = vpop.eup %3329  ;;  %2338 = vmatprep.mubr.bf16.mxu1 %v5284_v28 }
 0x1ee   :  { %v3332_v35 = vpop.eup %3331  ;;  %2268 = vmatpush1.bf16.msra.mxu0 %v3710_v2 }
 0x1ef   :  { %v3334_v46 = vpop.eup %3333  ;;  %v1277_v21 = vcombine.low %v3330_v27, %v3332_v35  ;;  %2309 = vmatpush1.bf16.msra.mxu1 %v3730_v23  ;;  %2269 = vmatprep.subr.bf16.mxu0 %v3752_v39 }
 0x1f0   :  { %v3336_v14 = vpop.eup %3335  ;;  %2310 = vmatprep.subr.bf16.mxu1 %v3780_v63 }
 0x1f1   :  { %1295 = vst [vmem:[%s5082_s3 + $0x30] sm:$0x77] %v1277_v21  ;;  %v1278_v45 = vcombine.low %v3334_v46, %v3336_v14  ;;  %v5451_v46 = vld [vmem:[#allocation22_spill] sm:$0xff]  ;;  %v5452_v21 = vld [vmem:[#allocation24_spill] sm:$0xff] }
 0x1f2   :  { %2270 = vmatpush1.bf16.msra.mxu0 %v3764_v52 }
 0x1f3   :  { %1296 = vst [vmem:[%s5082_s3 + $0x38] sm:$0x77] %v1278_v45  ;;  %2311 = vmatpush1.bf16.msra.mxu1 %v3782_v7  ;;  %2271 = vmatprep.subr.bf16.mxu0 %v3792_v29 }
 0x1f4   :  { %2312 = vmatprep.subr.bf16.mxu1 %v3819_v10  ;;  %v1187_v47 = vpop.f32.mrb[16].mxu0 }
 0x1f5   :  { %v1228_v55 = vpop.f32.mrb[16].mxu1  ;;  %v1188_v2 = vadd.f32 %v1187_v47, %v4578_v6  ;;  %v1189_v17 = vpop.f32.mrb[17].mxu0  ;;  %v5453_v47 = vld [vmem:[#allocation25_spill] sm:$0xff] }
 0x1f6   :  { %v1229_v23 = vadd.f32 %v1228_v55, %v4578_v6  ;;  %v2889_v39 = vpop.f32.mrb[17].mxu1  ;;  %v1190_v63 = vadd.f32 %v1189_v17, %v4578_v6  ;;  %v1191_v18 = vpop.f32.mrb[18].mxu0  ;;  %2272 = vmatpush1.bf16.msra.mxu0 %v3800_v49  ;;  %v4804_v49 = vld [vmem:[%s5081_s1 + $0x6] sm:$0x3]  ;;  %v5454_v55 = vld [vmem:[#allocation27_spill] sm:$0xff]  ;;  %v5456_v17 = vld [vmem:[#allocation28_spill] sm:$0xff] }
 0x1f7   :  { %2313 = vmatpush1.bf16.msra.mxu1 %v3822_v22  ;;  %v1231_v52 = vpop.f32.mrb[18].mxu1  ;;  %3337 = vtanh.f32 %v1188_v2  ;;  %v1192_v7 = vpop.f32.mrb[19].mxu0  ;;  %2824 = vmatprep.subr.msk.bf16.mxu0 %vm767_vm8, %v3839_v59  ;;  %v5455_v2 = vld [vmem:[#allocation26_spill] sm:$0xff]  ;;  %v5458_v39 = vld [vmem:[#allocation31_spill] sm:$0xff] }
 0x1f8   :  { %2826 = vmatprep.subr.msk.bf16.mxu1 %vm767_vm8, %v3837_v51  ;;  %v2890_v29 = vpop.f32.mrb[19].mxu1  ;;  %3339 = vtanh.f32 %v1190_v63 }
 0x1f9   :  { %3341 = vtanh.f32 %v1229_v23  ;;  %v5457_v23 = vld [vmem:[#allocation29_spill] sm:$0xff] }
 0x1fa   :  { %2274 = vmatpush1.bf16.msra.mxu0 %v3843_v62  ;;  %v5440_v62 = vld [vmem:[#allocation5_spill] sm:$0xff] }
 0x1fb   :  { %2315 = vmatpush1.bf16.msra.mxu1 %v3867_v44  ;;  %2347 = vmatprep.subr.bf16.mxu0 %v3864_v41  ;;  %v5442_v41 = vld [vmem:[#allocation6_spill] sm:$0xff]  ;;  %v5443_v44 = vld [vmem:[#allocation8_spill] sm:$0xff] }
 0x1fc   :  { %2388 = vmatprep.subr.bf16.mxu1 %v3861_v53  ;;  %v5441_v53 = vld [vmem:[#allocation7_spill] sm:$0xff] }
 0x1fd   :  { %2825 = vmatmul.mubr.msk.bf16.vlgmr.msra.gmra.mrb[60].mxu0 %vm763_vm9, %v4804_v49 }
 0x1fe   :  { %2827 = vmatmul.mubr.msk.bf16.vlgmr.msra.gmra.mrb[60].mxu1 %vm763_vm9, %v4804_v49  ;;  %2348 = vmatpush1.bf16.msra.mxu0 %v3875_v37 }
 0x1ff   :  { %2389 = vmatpush1.bf16.msra.mxu1 %v3878_v8  ;;  %2349 = vmatprep.subr.bf16.mxu0 %v3895_v60 }
 0x200   :  { %2390 = vmatprep.subr.bf16.mxu1 %v5346_v13  ;;  %2379 = vmatprep.mubr.bf16.mxu0 %v5284_v28 }
 0x201   :  { %2420 = vmatprep.mubr.bf16.mxu1 %v5284_v28  ;;  %v3338_v10 = vpop.eup %3337 }
 0x202   :  { %v3340_v22 = vpop.eup %3339  ;;  %2350 = vmatpush1.bf16.msra.mxu0 %v5347_v33 }
 0x203   :  { %2391 = vmatpush1.bf16.msra.mxu1 %v5348_v19  ;;  %v3342_v51 = vpop.eup %3341  ;;  %v1279_v59 = vcombine.low %v3338_v10, %v3340_v22  ;;  %2351 = vmatprep.subr.bf16.mxu0 %v5440_v62  ;;  %v5459_v62 = vld [vmem:[#allocation30_spill] sm:$0xff] }
 0x204   :  { %2392 = vmatprep.subr.bf16.mxu1 %v5441_v53  ;;  %1299 = vst.msk [vmem:[%s5082_s3 + $0x48] sm:$0x7] %vm1298_vm11, %v3342_v51  ;;  %v5460_v53 = vld [vmem:[#allocation32_spill] sm:$0xff] }
 0x205   :  { %1297 = vst [vmem:[%s5082_s3 + $0x40] sm:$0x77] %v1279_v59 }
 0x206   :  { %2352 = vmatpush1.bf16.msra.mxu0 %v5442_v41 }
 0x207   :  { %2393 = vmatpush1.bf16.msra.mxu1 %v5443_v44  ;;  %2353 = vmatprep.subr.bf16.mxu0 %v5394_v40 }
 0x208   :  { %2394 = vmatprep.subr.bf16.mxu1 %v5395_v38  ;;  %v1339_v37 = vpop.f32.mrb[20].mxu0 }
 0x209   :  { %v1380_v8 = vpop.f32.mrb[20].mxu1  ;;  %v1340_v60 = vadd.f32 %v1339_v37, %v4578_v6  ;;  %v1341_v13 = vpop.f32.mrb[21].mxu0  ;;  %v5461_v37 = vld [vmem:[#allocation34_spill] sm:$0xff] }
 0x20a   :  { %v1381_v33 = vadd.f32 %v1380_v8, %v4578_v6  ;;  %v1382_v19 = vpop.f32.mrb[21].mxu1  ;;  %v1342_v25 = vadd.f32 %v1341_v13, %v4578_v6  ;;  %v1343_v1 = vpop.f32.mrb[22].mxu0  ;;  %2354 = vmatpush1.bf16.msra.mxu0 %v5396_v11  ;;  %v5447_v11 = vld [vmem:[#allocation17_spill] sm:$0xff]  ;;  %v5463_v13 = vld [vmem:[#allocation35_spill] sm:$0xff] }
 0x20b   :  { %v1383_v42 = vadd.f32 %v1382_v19, %v4578_v6  ;;  %2395 = vmatpush1.bf16.msra.mxu1 %v5397_v24  ;;  %v1384_v40 = vpop.f32.mrb[22].mxu1  ;;  %3343 = vtanh.f32 %v1340_v60  ;;  %v1344_v38 = vpop.f32.mrb[23].mxu0  ;;  %2828 = vmatprep.subr.msk.bf16.mxu0 %vm767_vm8, %v5398_v56  ;;  %v5448_v24 = vld [vmem:[#allocation16_spill] sm:$0xff]  ;;  %v5449_v56 = vld [vmem:[#allocation19_spill] sm:$0xff]  ;;  %v5462_v8 = vld [vmem:[#allocation33_spill] sm:$0xff] }
 0x20c   :  { %2830 = vmatprep.subr.msk.bf16.mxu1 %vm767_vm8, %v5444_v3  ;;  %v1385_v58 = vpop.f32.mrb[23].mxu1  ;;  %3345 = vtanh.f32 %v1342_v25  ;;  %v5465_v19 = vld [vmem:[#allocation38_spill] sm:$0xff]  ;;  %v5466_v25 = vld [vmem:[#allocation37_spill] sm:$0xff] }
 0x20d   :  { %3347 = vtanh.f32 %v1381_v33  ;;  %v5464_v33 = vld [vmem:[#allocation36_spill] sm:$0xff] }
 0x20e   :  { %3349 = vtanh.f32 %v1383_v42  ;;  %2356 = vmatpush1.bf16.msra.mxu0 %v5445_v48 }
 0x20f   :  { %2397 = vmatpush1.bf16.msra.mxu1 %v5446_v9  ;;  %2429 = vmatprep.subr.bf16.mxu0 %v5447_v11 }
 0x210   :  { %2470 = vmatprep.subr.bf16.mxu1 %v5448_v24  ;;  %v5470_v24 = vld [vmem:[#allocation50_spill] sm:$0xff] }
 0x211   :  { %2829 = vmatmul.mubr.msk.bf16.vlgmr.msra.gmra.mrb[64].mxu0 %vm763_vm9, %v4804_v49 }
 0x212   :  { %2831 = vmatmul.mubr.msk.bf16.vlgmr.msra.gmra.mrb[64].mxu1 %vm763_vm9, %v4804_v49  ;;  %2430 = vmatpush1.bf16.msra.mxu0 %v5449_v56  ;;  %v5471_v56 = vld [vmem:[#allocation52_spill] sm:$0xff] }
 0x213   :  { %2471 = vmatpush1.bf16.msra.mxu1 %v5405_v36  ;;  %2431 = vmatprep.subr.bf16.mxu0 %v5450_v5 }
 0x214   :  { %2472 = vmatprep.subr.bf16.mxu1 %v5407_v0  ;;  %2461 = vmatprep.mubr.bf16.mxu0 %v5284_v28 }
 0x215   :  { %2502 = vmatprep.mubr.bf16.mxu1 %v5284_v28  ;;  %v3344_v27 = vpop.eup %3343 }
 0x216   :  { %v3346_v35 = vpop.eup %3345  ;;  %2432 = vmatpush1.bf16.msra.mxu0 %v5451_v46  ;;  %v5473_v46 = vld [vmem:[#allocation53_spill] sm:$0xff] }
 0x217   :  { %2473 = vmatpush1.bf16.msra.mxu1 %v5452_v21  ;;  %v3348_v14 = vpop.eup %3347  ;;  %v1751_v45 = vcombine.low %v3344_v27, %v3346_v35  ;;  %2433 = vmatprep.subr.bf16.mxu0 %v5453_v47  ;;  %v5472_v35 = vld [vmem:[#allocation54_spill] sm:$0xff] }
 0x218   :  { %2474 = vmatprep.subr.bf16.mxu1 %v5454_v55  ;;  %v3350_v36 = vpop.eup %3349  ;;  %v5476_v47 = vld [vmem:[#allocation58_spill] sm:$0xff]  ;;  %v5477_v55 = vld [vmem:[#allocation57_spill] sm:$0xff] }
 0x219   :  { %2783 = vst [vmem:[%s5082_s3 + $0x4c] sm:$0x77] %v1751_v45  ;;  %v1752_v0 = vcombine.low %v3348_v14, %v3350_v36  ;;  %v5474_v14 = vld [vmem:[#allocation55_spill] sm:$0xff]  ;;  %v5475_v45 = vld [vmem:[#allocation56_spill] sm:$0xff] }
 0x21a   :  { %2434 = vmatpush1.bf16.msra.mxu0 %v5455_v2  ;;  %v5478_v36 = vld [vmem:[#allocation59_spill] sm:$0xff] }
 0x21b   :  { %2475 = vmatpush1.bf16.msra.mxu1 %v5456_v17  ;;  %2784 = vst [vmem:[%s5082_s3 + $0x54] sm:$0x77] %v1752_v0  ;;  %2435 = vmatprep.subr.bf16.mxu0 %v5457_v23  ;;  %v5479_v0 = vld [vmem:[#allocation61_spill] sm:$0xff]  ;;  %v5480_v23 = vld [vmem:[#allocation60_spill] sm:$0xff] }
 0x21c   :  { %2476 = vmatprep.subr.bf16.mxu1 %v5458_v39  ;;  %v1421_v63 = vpop.f32.mrb[24].mxu0  ;;  %v5481_v39 = vld [vmem:[#allocation62_spill] sm:$0xff] }
 0x21d   :  { %v1462_v18 = vpop.f32.mrb[24].mxu1  ;;  %v1422_v52 = vadd.f32 %v1421_v63, %v4578_v6  ;;  %v1423_v7 = vpop.f32.mrb[25].mxu0 }
 0x21e   :  { %v1463_v29 = vadd.f32 %v1462_v18, %v4578_v6  ;;  %v1464_v10 = vpop.f32.mrb[25].mxu1  ;;  %v1424_v22 = vadd.f32 %v1423_v7, %v4578_v6  ;;  %v1425_v51 = vpop.f32.mrb[26].mxu0  ;;  %2436 = vmatpush1.bf16.msra.mxu0 %v5459_v62 }
 0x21f   :  { %v1465_v59 = vadd.f32 %v1464_v10, %v4578_v6  ;;  %2477 = vmatpush1.bf16.msra.mxu1 %v5460_v53  ;;  %v1466_v41 = vpop.f32.mrb[26].mxu1  ;;  %3351 = vtanh.f32 %v1422_v52  ;;  %v1426_v44 = vpop.f32.mrb[27].mxu0  ;;  %2832 = vmatprep.subr.msk.bf16.mxu0 %vm767_vm8, %v5461_v37  ;;  %v5482_v52 = vld [vmem:[#allocation64_spill] sm:$0xff]  ;;  %v5484_v10 = vld [vmem:[#allocation65_spill] sm:$0xff] }
 0x220   :  { %2834 = vmatprep.subr.msk.bf16.mxu1 %vm767_vm8, %v5462_v8  ;;  %v1467_v60 = vpop.f32.mrb[27].mxu1  ;;  %3353 = vtanh.f32 %v1424_v22  ;;  %v5485_v22 = vld [vmem:[#allocation68_spill] sm:$0xff] }
 0x221   :  { %3355 = vtanh.f32 %v1463_v29  ;;  %v5483_v29 = vld [vmem:[#allocation63_spill] sm:$0xff] }
 0x222   :  { %3357 = vtanh.f32 %v1465_v59  ;;  %2438 = vmatpush1.bf16.msra.mxu0 %v5463_v13 }
 0x223   :  { %2479 = vmatpush1.bf16.msra.mxu1 %v5464_v33  ;;  %2511 = vmatprep.subr.bf16.mxu0 %v5465_v19 }
 0x224   :  { %2552 = vmatprep.subr.bf16.mxu1 %v5466_v25 }
 0x225   :  { %2833 = vmatmul.mubr.msk.bf16.vlgmr.msra.gmra.mrb[68].mxu0 %vm763_vm9, %v4804_v49 }
 0x226   :  { %2835 = vmatmul.mubr.msk.bf16.vlgmr.msra.gmra.mrb[68].mxu1 %vm763_vm9, %v4804_v49  ;;  %2512 = vmatpush1.bf16.msra.mxu0 %v5417_v15 }
 0x227   :  { %2553 = vmatpush1.bf16.msra.mxu1 %v5418_v57  ;;  %2513 = vmatprep.subr.bf16.mxu0 %v5419_v30  ;;  %v5469_v57 = vld [vmem:[#allocation51_spill] sm:$0xff] }
 0x228   :  { %2554 = vmatprep.subr.bf16.mxu1 %v5420_v16  ;;  %2543 = vmatprep.mubr.bf16.mxu0 %v5284_v28  ;;  %v5467_v16 = vld [vmem:[#allocation46_spill] sm:$0xff] }
 0x229   :  { %2584 = vmatprep.mubr.bf16.mxu1 %v5284_v28  ;;  %v3352_v1 = vpop.eup %3351 }
 0x22a   :  { %v3354_v42 = vpop.eup %3353  ;;  %2514 = vmatpush1.bf16.msra.mxu0 %v5377_v43  ;;  %v5468_v43 = vld [vmem:[#allocation49_spill] sm:$0xff] }
 0x22b   :  { %2555 = vmatpush1.bf16.msra.mxu1 %v5421_v31  ;;  %v3356_v40 = vpop.eup %3355  ;;  %v1753_v38 = vcombine.low %v3352_v1, %v3354_v42  ;;  %2515 = vmatprep.subr.bf16.mxu0 %v5422_v34 }
 0x22c   :  { %2556 = vmatprep.subr.bf16.mxu1 %v5423_v4  ;;  %v3358_v15 = vpop.eup %3357 }
 0x22d   :  { %2785 = vst [vmem:[%s5082_s3 + $0x5c] sm:$0x77] %v1753_v38  ;;  %v1754_v30 = vcombine.low %v3356_v40, %v3358_v15 }
 0x22e   :  { %2516 = vmatpush1.bf16.msra.mxu0 %v5467_v16 }
 0x22f   :  { %2557 = vmatpush1.bf16.msra.mxu1 %v5382_v12  ;;  %2786 = vst [vmem:[%s5082_s3 + $0x64] sm:$0x77] %v1754_v30  ;;  %2517 = vmatprep.subr.bf16.mxu0 %v5468_v43 }
 0x230   :  { %2558 = vmatprep.subr.bf16.mxu1 %v5469_v57  ;;  %v1503_v31 = vpop.f32.mrb[28].mxu0 }
 0x231   :  { %v1544_v34 = vpop.f32.mrb[28].mxu1  ;;  %v1504_v4 = vadd.f32 %v1503_v31, %v4578_v6  ;;  %v1505_v3 = vpop.f32.mrb[29].mxu0 }
 0x232   :  { %v1545_v58 = vadd.f32 %v1544_v34, %v4578_v6  ;;  %v1546_v48 = vpop.f32.mrb[29].mxu1  ;;  %v1506_v9 = vadd.f32 %v1505_v3, %v4578_v6  ;;  %v1507_v11 = vpop.f32.mrb[30].mxu0  ;;  %2518 = vmatpush1.bf16.msra.mxu0 %v5470_v24 }
 0x233   :  { %v1547_v12 = vadd.f32 %v1546_v48, %v4578_v6  ;;  %2559 = vmatpush1.bf16.msra.mxu1 %v5471_v56  ;;  %v1548_v5 = vpop.f32.mrb[30].mxu1  ;;  %3359 = vtanh.f32 %v1504_v4  ;;  %v1508_v27 = vpop.f32.mrb[31].mxu0  ;;  %2836 = vmatprep.subr.msk.bf16.mxu0 %vm767_vm8, %v5472_v35 }
 0x234   :  { %2838 = vmatprep.subr.msk.bf16.mxu1 %vm767_vm8, %v5473_v46  ;;  %v1549_v21 = vpop.f32.mrb[31].mxu1  ;;  %3361 = vtanh.f32 %v1506_v9 }
 0x235   :  { %3363 = vtanh.f32 %v1545_v58 }
 0x236   :  { %3365 = vtanh.f32 %v1547_v12  ;;  %2520 = vmatpush1.bf16.msra.mxu0 %v5474_v14 }
 0x237   :  { %2561 = vmatpush1.bf16.msra.mxu1 %v5475_v45  ;;  %2593 = vmatprep.subr.bf16.mxu0 %v5476_v47 }
 0x238   :  { %2919 = vmatprep.subr.bf16.mxu1 %v5337_v20 }
 0x239   :  { %2837 = vmatmul.mubr.msk.bf16.vlgmr.msra.gmra.mrb[72].mxu0 %vm763_vm9, %v4804_v49 }
 0x23a   :  { %2839 = vmatmul.mubr.msk.bf16.vlgmr.msra.gmra.mrb[72].mxu1 %vm763_vm9, %v4804_v49  ;;  %2594 = vmatpush1.bf16.msra.mxu0 %v5477_v55 }
 0x23b   :  { %2920 = vmatpush3.bf16.msra.mxu1 %v5478_v36  ;;  %2595 = vmatprep.subr.bf16.mxu0 %v5479_v0 }
 0x23c   :  { %2921 = vmatprep.subr.bf16.mxu1 %v5337_v20  ;;  %2625 = vmatprep.mubr.bf16.mxu0 %v5284_v28 }
 0x23d   :  { %2929 = vmatprep.mubr.msk.bf16.mxu1 %vm3468_vm10, %v5337_v20  ;;  %v3360_v2 = vpop.eup %3359 }
 0x23e   :  { %v3362_v17 = vpop.eup %3361  ;;  %2596 = vmatpush1.bf16.msra.mxu0 %v5480_v23 }
 0x23f   :  { %2922 = vmatpush3.bf16.msra.mxu1 %v5481_v39  ;;  %v3364_v63 = vpop.eup %3363  ;;  %v1755_v18 = vcombine.low %v3360_v2, %v3362_v17  ;;  %2597 = vmatprep.subr.bf16.mxu0 %v5482_v52 }
 0x240   :  { %2923 = vmatprep.subr.bf16.mxu1 %v5337_v20  ;;  %v3366_v7 = vpop.eup %3365 }
 0x241   :  { %2787 = vst [vmem:[%s5082_s3 + $0x6c] sm:$0x77] %v1755_v18  ;;  %v1756_v28 = vcombine.low %v3364_v63, %v3366_v7 }
 0x242   :  { %2598 = vmatpush1.bf16.msra.mxu0 %v5483_v29 }
 0x243   :  { %2924 = vmatpush3.bf16.msra.mxu1 %v5484_v10  ;;  %2788 = vst [vmem:[%s5082_s3 + $0x74] sm:$0x77] %v1756_v28  ;;  %2599 = vmatprep.subr.bf16.mxu0 %v5485_v22 }
 0x244   :  { %2925 = vmatprep.subr.bf16.mxu1 %v5337_v20  ;;  %v1585_v51 = vpop.f32.mrb[32].mxu0 }
 0x245   :  { %v1626_v59 = vpop.f32.mrb[32].mxu1  ;;  %v1586_v62 = vadd.f32 %v1585_v51, %v4578_v6  ;;  %v1587_v53 = vpop.f32.mrb[33].mxu0 }
 0x246   :  { %v1627_v41 = vadd.f32 %v1626_v59, %v4578_v6  ;;  %v1628_v44 = vpop.f32.mrb[33].mxu1  ;;  %v1588_v37 = vadd.f32 %v1587_v53, %v4578_v6  ;;  %v1589_v8 = vpop.f32.mrb[34].mxu0  ;;  %2600 = vmatpush1.bf16.msra.mxu0 %v5437_v50 }
 0x247   :  { %v1629_v60 = vadd.f32 %v1628_v44, %v4578_v6  ;;  %2926 = vmatpush3.bf16.msra.mxu1 %v5438_v26  ;;  %v1630_v13 = vpop.f32.mrb[34].mxu1  ;;  %3367 = vtanh.f32 %v1586_v62  ;;  %v1590_v33 = vpop.f32.mrb[35].mxu0  ;;  %2840 = vmatprep.subr.msk.bf16.mxu0 %vm767_vm8, %v5439_v32 }
 0x248   :  { %v1631_v19 = vpop.f32.mrb[35].mxu1  ;;  %2927 = vmatprep.subr.bf16.mxu1 %v5337_v20  ;;  %3369 = vtanh.f32 %v1588_v37 }
 0x249   :  { %3371 = vtanh.f32 %v1627_v41 }
 0x24a   :  { %3373 = vtanh.f32 %v1629_v60  ;;  %2602 = vmatpush1.bf16.msra.mxu0 %v4434_v61 }
 0x24b   :  { %2928 = vmatpush3.bf16.msra.mxu1 %v4431_v54 }
 0x24d   :  { %2841 = vmatmul.mubr.msk.bf16.vlgmr.msra.gmra.mrb[76].mxu0 %vm763_vm9, %v4804_v49 }
 0x24e   :  { %2930 = vmatmul.mubr.msk.bf16.vlgmr.msra.gmra.mrb[76].mxu1 %vm763_vm9, %v4804_v49 }
 0x251   :  { %v3368_v50 = vpop.eup %3367 }
 0x252   :  { %v3370_v26 = vpop.eup %3369 }
 0x253   :  { %v3372_v25 = vpop.eup %3371  ;;  %v1757_v32 = vcombine.low %v3368_v50, %v3370_v26 }
 0x254   :  { %v3374_v1 = vpop.eup %3373 }
 0x255   :  { %2789 = vst [vmem:[%s5082_s3 + $0x7c] sm:$0x77] %v1757_v32  ;;  %v1758_v20 = vcombine.low %v3372_v25, %v3374_v1 }
 0x257   :  { %2790 = vst [vmem:[%s5082_s3 + $0x84] sm:$0x77] %v1758_v20 }
 0x258   :  { %v1667_v54 = vpop.f32.mrb[36].mxu0 }
 0x259   :  { %v1708_v61 = vpop.f32.mrb[36].mxu1  ;;  %v1668_v42 = vadd.f32 %v1667_v54, %v4578_v6  ;;  %v1669_v40 = vpop.f32.mrb[37].mxu0 }
 0x25a   :  { %v1709_v49 = vadd.f32 %v1708_v61, %v4578_v6  ;;  %v2903_v38 = vpop.f32.mrb[37].mxu1  ;;  %v1670_v15 = vadd.f32 %v1669_v40, %v4578_v6  ;;  %v1671_v30 = vpop.f32.mrb[38].mxu0 }
 0x25b   :  { %v1711_v16 = vpop.f32.mrb[38].mxu1  ;;  %3375 = vtanh.f32 %v1668_v42  ;;  %v1672_v43 = vpop.f32.mrb[39].mxu0 }
 0x25c   :  { %v2904_v57 = vpop.f32.mrb[39].mxu1  ;;  %3377 = vtanh.f32 %v1670_v15 }
 0x25d   :  { %3379 = vtanh.f32 %v1709_v49 }
 0x265   :  { %v3376_v31 = vpop.eup %3375 }
 0x266   :  { %v3378_v34 = vpop.eup %3377 }
 0x267   :  { %v3380_v4 = vpop.eup %3379  ;;  %v1759_v3 = vcombine.low %v3376_v31, %v3378_v34 }
 0x268   :  { %2792 = vst.msk [vmem:[%s5082_s3 + $0x94] sm:$0x7] %vm1298_vm11, %v3380_v4 }
 0x269   :  { %2791 = vst [vmem:[%s5082_s3 + $0x8c] sm:$0x77] %v1759_v3 }
 0x26c   :  { %v1819_v58 = vpop.f32.mrb[40].mxu0 }
 0x26d   :  { %v1860_v48 = vpop.f32.mrb[40].mxu1  ;;  %v1820_v9 = vadd.f32 %v1819_v58, %v4578_v6  ;;  %v1821_v11 = vpop.f32.mrb[41].mxu0 }
 0x26e   :  { %v1861_v12 = vadd.f32 %v1860_v48, %v4578_v6  ;;  %v1862_v24 = vpop.f32.mrb[41].mxu1  ;;  %v1822_v56 = vadd.f32 %v1821_v11, %v4578_v6  ;;  %v1823_v5 = vpop.f32.mrb[42].mxu0 }
 0x26f   :  { %v1863_v27 = vadd.f32 %v1862_v24, %v4578_v6  ;;  %v1864_v35 = vpop.f32.mrb[42].mxu1  ;;  %3381 = vtanh.f32 %v1820_v9  ;;  %v1824_v46 = vpop.f32.mrb[43].mxu0 }
 0x270   :  { %v1865_v21 = vpop.f32.mrb[43].mxu1  ;;  %3383 = vtanh.f32 %v1822_v56 }
 0x271   :  { %3385 = vtanh.f32 %v1861_v12 }
 0x272   :  { %3387 = vtanh.f32 %v1863_v27 }
 0x279   :  { %v3382_v14 = vpop.eup %3381 }
 0x27a   :  { %v3384_v45 = vpop.eup %3383 }
 0x27b   :  { %v3386_v47 = vpop.eup %3385  ;;  %v2231_v55 = vcombine.low %v3382_v14, %v3384_v45 }
 0x27c   :  { %v3388_v36 = vpop.eup %3387 }
 0x27d   :  { %2813 = vst [vmem:[%s5082_s3 + $0x98] sm:$0x77] %v2231_v55  ;;  %v2232_v0 = vcombine.low %v3386_v47, %v3388_v36 }
 0x27f   :  { %2814 = vst [vmem:[%s5082_s3 + $0xa0] sm:$0x77] %v2232_v0 }
 0x280   :  { %v1901_v2 = vpop.f32.mrb[44].mxu0 }
 0x281   :  { %v1942_v17 = vpop.f32.mrb[44].mxu1  ;;  %v1902_v23 = vadd.f32 %v1901_v2, %v4578_v6  ;;  %v1903_v39 = vpop.f32.mrb[45].mxu0 }
 0x282   :  { %v1943_v63 = vadd.f32 %v1942_v17, %v4578_v6  ;;  %v1944_v18 = vpop.f32.mrb[45].mxu1  ;;  %v1904_v52 = vadd.f32 %v1903_v39, %v4578_v6  ;;  %v1905_v7 = vpop.f32.mrb[46].mxu0 }
 0x283   :  { %v1945_v28 = vadd.f32 %v1944_v18, %v4578_v6  ;;  %v1946_v29 = vpop.f32.mrb[46].mxu1  ;;  %3389 = vtanh.f32 %v1902_v23  ;;  %v1906_v10 = vpop.f32.mrb[47].mxu0 }
 0x284   :  { %v1947_v22 = vpop.f32.mrb[47].mxu1  ;;  %3391 = vtanh.f32 %v1904_v52 }
 0x285   :  { %3393 = vtanh.f32 %v1943_v63 }
 0x286   :  { %3395 = vtanh.f32 %v1945_v28 }
 0x28d   :  { %v3390_v51 = vpop.eup %3389 }
 0x28e   :  { %v3392_v59 = vpop.eup %3391 }
 0x28f   :  { %v3394_v62 = vpop.eup %3393  ;;  %v2233_v53 = vcombine.low %v3390_v51, %v3392_v59 }
 0x290   :  { %v3396_v41 = vpop.eup %3395 }
 0x291   :  { %2815 = vst [vmem:[%s5082_s3 + $0xa8] sm:$0x77] %v2233_v53  ;;  %v2234_v44 = vcombine.low %v3394_v62, %v3396_v41 }
 0x293   :  { %2816 = vst [vmem:[%s5082_s3 + $0xb0] sm:$0x77] %v2234_v44 }
 0x294   :  { %v1983_v37 = vpop.f32.mrb[48].mxu0 }
 0x295   :  { %v2024_v8 = vpop.f32.mrb[48].mxu1  ;;  %v1984_v60 = vadd.f32 %v1983_v37, %v4578_v6  ;;  %v1985_v13 = vpop.f32.mrb[49].mxu0 }
 0x296   :  { %v2025_v33 = vadd.f32 %v2024_v8, %v4578_v6  ;;  %v2026_v19 = vpop.f32.mrb[49].mxu1  ;;  %v1986_v50 = vadd.f32 %v1985_v13, %v4578_v6  ;;  %v1987_v26 = vpop.f32.mrb[50].mxu0 }
 0x297   :  { %v2027_v25 = vadd.f32 %v2026_v19, %v4578_v6  ;;  %v2028_v32 = vpop.f32.mrb[50].mxu1  ;;  %3397 = vtanh.f32 %v1984_v60  ;;  %v1988_v1 = vpop.f32.mrb[51].mxu0 }
 0x298   :  { %v2029_v20 = vpop.f32.mrb[51].mxu1  ;;  %3399 = vtanh.f32 %v1986_v50 }
 0x299   :  { %3401 = vtanh.f32 %v2025_v33 }
 0x29a   :  { %3403 = vtanh.f32 %v2027_v25 }
 0x2a1   :  { %v3398_v54 = vpop.eup %3397 }
 0x2a2   :  { %v3400_v61 = vpop.eup %3399 }
 0x2a3   :  { %v3402_v42 = vpop.eup %3401  ;;  %v2235_v40 = vcombine.low %v3398_v54, %v3400_v61 }
 0x2a4   :  { %v3404_v49 = vpop.eup %3403 }
 0x2a5   :  { %2817 = vst [vmem:[%s5082_s3 + $0xb8] sm:$0x77] %v2235_v40  ;;  %v2236_v38 = vcombine.low %v3402_v42, %v3404_v49 }
 0x2a7   :  { %2818 = vst [vmem:[%s5082_s3 + $0xc0] sm:$0x77] %v2236_v38 }
 0x2a8   :  { %v2065_v15 = vpop.f32.mrb[52].mxu0 }
 0x2a9   :  { %v2106_v30 = vpop.f32.mrb[52].mxu1  ;;  %v2066_v16 = vadd.f32 %v2065_v15, %v4578_v6  ;;  %v2067_v43 = vpop.f32.mrb[53].mxu0 }
 0x2aa   :  { %v2107_v57 = vadd.f32 %v2106_v30, %v4578_v6  ;;  %v2108_v31 = vpop.f32.mrb[53].mxu1  ;;  %v2068_v34 = vadd.f32 %v2067_v43, %v4578_v6  ;;  %v2069_v4 = vpop.f32.mrb[54].mxu0 }
 0x2ab   :  { %v2109_v3 = vadd.f32 %v2108_v31, %v4578_v6  ;;  %v2110_v58 = vpop.f32.mrb[54].mxu1  ;;  %3405 = vtanh.f32 %v2066_v16  ;;  %v2070_v48 = vpop.f32.mrb[55].mxu0 }
 0x2ac   :  { %v2111_v9 = vpop.f32.mrb[55].mxu1  ;;  %3407 = vtanh.f32 %v2068_v34 }
 0x2ad   :  { %3409 = vtanh.f32 %v2107_v57 }
 0x2ae   :  { %3411 = vtanh.f32 %v2109_v3 }
 0x2b5   :  { %v3406_v11 = vpop.eup %3405 }
 0x2b6   :  { %v3408_v12 = vpop.eup %3407 }
 0x2b7   :  { %v3410_v24 = vpop.eup %3409  ;;  %v2237_v56 = vcombine.low %v3406_v11, %v3408_v12 }
 0x2b8   :  { %v3412_v5 = vpop.eup %3411 }
 0x2b9   :  { %2819 = vst [vmem:[%s5082_s3 + $0xc8] sm:$0x77] %v2237_v56  ;;  %v2238_v27 = vcombine.low %v3410_v24, %v3412_v5 }
 0x2bb   :  { %2820 = vst [vmem:[%s5082_s3 + $0xd0] sm:$0x77] %v2238_v27 }
 0x2bc   :  { %v2147_v35 = vpop.f32.mrb[56].mxu0 }
 0x2bd   :  { %v2188_v46 = vpop.f32.mrb[56].mxu1  ;;  %v2148_v21 = vadd.f32 %v2147_v35, %v4578_v6  ;;  %v2149_v14 = vpop.f32.mrb[57].mxu0 }
 0x2be   :  { %v2189_v45 = vadd.f32 %v2188_v46, %v4578_v6  ;;  %v2917_v47 = vpop.f32.mrb[57].mxu1  ;;  %v2150_v55 = vadd.f32 %v2149_v14, %v4578_v6  ;;  %v2151_v36 = vpop.f32.mrb[58].mxu0 }
 0x2bf   :  { %v2191_v0 = vpop.f32.mrb[58].mxu1  ;;  %3413 = vtanh.f32 %v2148_v21  ;;  %v2152_v2 = vpop.f32.mrb[59].mxu0 }
 0x2c0   :  { %v2918_v17 = vpop.f32.mrb[59].mxu1  ;;  %3415 = vtanh.f32 %v2150_v55 }
 0x2c1   :  { %3417 = vtanh.f32 %v2189_v45 }
 0x2c9   :  { %v3414_v23 = vpop.eup %3413 }
 0x2ca   :  { %v3416_v39 = vpop.eup %3415 }
 0x2cb   :  { %v3418_v63 = vpop.eup %3417  ;;  %v2239_v18 = vcombine.low %v3414_v23, %v3416_v39 }
 0x2cc   :  { %2822 = vst.msk [vmem:[%s5082_s3 + $0xe0] sm:$0x7] %vm1298_vm11, %v3418_v63 }
 0x2cd   :  { %2821 = vst [vmem:[%s5082_s3 + $0xd8] sm:$0x77] %v2239_v18 }
 0x2d0   :  { %v2299_v52 = vpop.f32.mrb[60].mxu0 }
 0x2d1   :  { %v2340_v7 = vpop.f32.mrb[60].mxu1  ;;  %v2300_v28 = vadd.f32 %v2299_v52, %v4578_v6  ;;  %v2301_v29 = vpop.f32.mrb[61].mxu0 }
 0x2d2   :  { %v2341_v10 = vadd.f32 %v2340_v7, %v4578_v6  ;;  %v2342_v22 = vpop.f32.mrb[61].mxu1  ;;  %v2302_v51 = vadd.f32 %v2301_v29, %v4578_v6  ;;  %v2303_v59 = vpop.f32.mrb[62].mxu0 }
 0x2d3   :  { %v2343_v62 = vadd.f32 %v2342_v22, %v4578_v6  ;;  %v2344_v53 = vpop.f32.mrb[62].mxu1  ;;  %3419 = vtanh.f32 %v2300_v28  ;;  %v2304_v41 = vpop.f32.mrb[63].mxu0 }
 0x2d4   :  { %v2345_v44 = vpop.f32.mrb[63].mxu1  ;;  %3421 = vtanh.f32 %v2302_v51 }
 0x2d5   :  { %3423 = vtanh.f32 %v2341_v10 }
 0x2d6   :  { %3425 = vtanh.f32 %v2343_v62 }
 0x2dd   :  { %v3420_v37 = vpop.eup %3419 }
 0x2de   :  { %v3422_v8 = vpop.eup %3421 }
 0x2df   :  { %v3424_v60 = vpop.eup %3423  ;;  %v2711_v13 = vcombine.low %v3420_v37, %v3422_v8 }
 0x2e0   :  { %v3426_v33 = vpop.eup %3425 }
 0x2e1   :  { %2843 = vst [vmem:[%s5082_s3 + $0xe4] sm:$0x77] %v2711_v13  ;;  %v2712_v19 = vcombine.low %v3424_v60, %v3426_v33 }
 0x2e3   :  { %2844 = vst [vmem:[%s5082_s3 + $0xec] sm:$0x77] %v2712_v19 }
 0x2e4   :  { %v2381_v50 = vpop.f32.mrb[64].mxu0 }
 0x2e5   :  { %v2422_v26 = vpop.f32.mrb[64].mxu1  ;;  %v2382_v25 = vadd.f32 %v2381_v50, %v4578_v6  ;;  %v2383_v32 = vpop.f32.mrb[65].mxu0 }
 0x2e6   :  { %v2423_v1 = vadd.f32 %v2422_v26, %v4578_v6  ;;  %v2424_v20 = vpop.f32.mrb[65].mxu1  ;;  %v2384_v54 = vadd.f32 %v2383_v32, %v4578_v6  ;;  %v2385_v61 = vpop.f32.mrb[66].mxu0 }
 0x2e7   :  { %v2425_v42 = vadd.f32 %v2424_v20, %v4578_v6  ;;  %v2426_v40 = vpop.f32.mrb[66].mxu1  ;;  %3427 = vtanh.f32 %v2382_v25  ;;  %v2386_v49 = vpop.f32.mrb[67].mxu0 }
 0x2e8   :  { %v2427_v38 = vpop.f32.mrb[67].mxu1  ;;  %3429 = vtanh.f32 %v2384_v54 }
 0x2e9   :  { %3431 = vtanh.f32 %v2423_v1 }
 0x2ea   :  { %3433 = vtanh.f32 %v2425_v42 }
 0x2f1   :  { %v3428_v15 = vpop.eup %3427 }
 0x2f2   :  { %v3430_v30 = vpop.eup %3429 }
 0x2f3   :  { %v3432_v16 = vpop.eup %3431  ;;  %v2713_v43 = vcombine.low %v3428_v15, %v3430_v30 }
 0x2f4   :  { %v3434_v57 = vpop.eup %3433 }
 0x2f5   :  { %2845 = vst [vmem:[%s5082_s3 + $0xf4] sm:$0x77] %v2713_v43  ;;  %v2714_v31 = vcombine.low %v3432_v16, %v3434_v57 }
 0x2f7   :  { %2846 = vst [vmem:[%s5082_s3 + $0xfc] sm:$0x77] %v2714_v31 }
 0x2f8   :  { %v2463_v34 = vpop.f32.mrb[68].mxu0 }
 0x2f9   :  { %v2504_v4 = vpop.f32.mrb[68].mxu1  ;;  %v2464_v3 = vadd.f32 %v2463_v34, %v4578_v6  ;;  %v2465_v58 = vpop.f32.mrb[69].mxu0 }
 0x2fa   :  { %v2505_v48 = vadd.f32 %v2504_v4, %v4578_v6  ;;  %v2506_v9 = vpop.f32.mrb[69].mxu1  ;;  %v2466_v11 = vadd.f32 %v2465_v58, %v4578_v6  ;;  %v2467_v12 = vpop.f32.mrb[70].mxu0 }
 0x2fb   :  { %v2507_v24 = vadd.f32 %v2506_v9, %v4578_v6  ;;  %v2508_v56 = vpop.f32.mrb[70].mxu1  ;;  %3435 = vtanh.f32 %v2464_v3  ;;  %v2468_v5 = vpop.f32.mrb[71].mxu0 }
 0x2fc   :  { %v2509_v27 = vpop.f32.mrb[71].mxu1  ;;  %3437 = vtanh.f32 %v2466_v11 }
 0x2fd   :  { %3439 = vtanh.f32 %v2505_v48 }
 0x2fe   :  { %3441 = vtanh.f32 %v2507_v24 }
 0x305   :  { %v3436_v35 = vpop.eup %3435 }
 0x306   :  { %v3438_v46 = vpop.eup %3437 }
 0x307   :  { %v3440_v21 = vpop.eup %3439  ;;  %v2715_v14 = vcombine.low %v3436_v35, %v3438_v46 }
 0x308   :  { %v3442_v45 = vpop.eup %3441 }
 0x309   :  { %2847 = vst [vmem:[%s5082_s3 + $0x104] sm:$0x77] %v2715_v14  ;;  %v2716_v47 = vcombine.low %v3440_v21, %v3442_v45 }
 0x30b   :  { %2848 = vst [vmem:[%s5082_s3 + $0x10c] sm:$0x77] %v2716_v47 }
 0x30c   :  { %v2545_v55 = vpop.f32.mrb[72].mxu0 }
 0x30d   :  { %v2586_v36 = vpop.f32.mrb[72].mxu1  ;;  %v2546_v0 = vadd.f32 %v2545_v55, %v4578_v6  ;;  %v2547_v2 = vpop.f32.mrb[73].mxu0 }
 0x30e   :  { %v2587_v17 = vadd.f32 %v2586_v36, %v4578_v6  ;;  %v2588_v23 = vpop.f32.mrb[73].mxu1  ;;  %v2548_v39 = vadd.f32 %v2547_v2, %v4578_v6  ;;  %v2549_v63 = vpop.f32.mrb[74].mxu0 }
 0x30f   :  { %v2589_v18 = vadd.f32 %v2588_v23, %v4578_v6  ;;  %v2590_v52 = vpop.f32.mrb[74].mxu1  ;;  %3443 = vtanh.f32 %v2546_v0  ;;  %v2550_v7 = vpop.f32.mrb[75].mxu0 }
 0x310   :  { %v2591_v28 = vpop.f32.mrb[75].mxu1  ;;  %3445 = vtanh.f32 %v2548_v39 }
 0x311   :  { %3447 = vtanh.f32 %v2587_v17 }
 0x312   :  { %3449 = vtanh.f32 %v2589_v18 }
 0x319   :  { %v3444_v29 = vpop.eup %3443 }
 0x31a   :  { %v3446_v10 = vpop.eup %3445 }
 0x31b   :  { %v3448_v22 = vpop.eup %3447  ;;  %v2717_v51 = vcombine.low %v3444_v29, %v3446_v10 }
 0x31c   :  { %v3450_v59 = vpop.eup %3449 }
 0x31d   :  { %2849 = vst [vmem:[%s5082_s3 + $0x114] sm:$0x77] %v2717_v51  ;;  %v2718_v62 = vcombine.low %v3448_v22, %v3450_v59 }
 0x31f   :  { %2850 = vst [vmem:[%s5082_s3 + $0x11c] sm:$0x77] %v2718_v62 }
 0x320   :  { %v2627_v53 = vpop.f32.mrb[76].mxu0 }
 0x321   :  { %v2668_v41 = vpop.f32.mrb[76].mxu1  ;;  %v2628_v44 = vadd.f32 %v2627_v53, %v4578_v6  ;;  %v2629_v8 = vpop.f32.mrb[77].mxu0 }
 0x322   :  { %v2669_v37 = vadd.f32 %v2668_v41, %v4578_v6  ;;  %v2931_v60 = vpop.f32.mrb[77].mxu1  ;;  %v2630_v13 = vadd.f32 %v2629_v8, %v4578_v6  ;;  %v2631_v33 = vpop.f32.mrb[78].mxu0 }
 0x323   :  { %v2671_v19 = vpop.f32.mrb[78].mxu1  ;;  %3451 = vtanh.f32 %v2628_v44  ;;  %v2632_v50 = vpop.f32.mrb[79].mxu0 }
 0x324   :  { %v2932_v26 = vpop.f32.mrb[79].mxu1  ;;  %3453 = vtanh.f32 %v2669_v37 }
 0x325   :  { %3455 = vtanh.f32 %v2630_v13 }
 0x32d   :  { %v3452_v25 = vpop.eup %3451 }
 0x32e   :  { %v3454_v32 = vpop.eup %3453 }
 0x32f   :  { %v3456_v1 = vpop.eup %3455  ;;  %2852 = vst.msk [vmem:[%s5082_s3 + $0x12c] sm:$0x7] %vm1298_vm11, %v3454_v32 }
 0x330   :  { %v2719_v20 = vcombine.low %v3452_v25, %v3456_v1 }
 0x332   :  { %2851 = vst [vmem:[%s5082_s3 + $0x124] sm:$0x77] %v2719_v20 }

</bundles_post_ra>
